<compile_context>
chip_gen: v7x
topology: tpu7x:2x2x1
jax: 0.10.0
libtpu: 0.0.40
codegen_flags: <defaults>
</compile_context>

<pallas_src>
import functools
from math import sqrt

import jax
import jax.numpy as jnp
from jax.experimental import pallas as pl
from jax.experimental.pallas import tpu as pltpu


def _fused_rc_attention_kernel(q_ref, k_ref, v_ref, o_ref, *, scale, use_softmax):
    # Blocks are (1, C, H, W): one batch element per grid step.
    _, C, H, W = q_ref.shape
    f32 = jnp.float32

    # ---- attention logits for both branches, contracting over C on the VPU.
    #   row branch   : attn_r[h, g, w] = sum_c q[c,h,w] * k[c,g,w]   (seq = H)
    #   column branch: attn_c[h, w, x] = sum_c q[c,h,w] * k[c,h,x]   (seq = W)
    # C is small and static, so the contraction is a static unrolled
    # broadcast-multiply-accumulate (no MXU, no k.T materialization).
    attn_r = None
    attn_c = None
    for c in range(C):
        qc = q_ref[0, c].astype(f32)                     # (H, W)
        if use_softmax:
            qc = qc * scale                              # fold 1/sqrt(n) into q
        kc = k_ref[0, c].astype(f32)                     # (H, W)
        tr = qc[:, None, :] * kc[None, :, :]             # (H, H, W)
        tc = qc[:, :, None] * kc[:, None, :]             # (H, W, W)
        attn_r = tr if attn_r is None else attn_r + tr
        attn_c = tc if attn_c is None else attn_c + tc

    if use_softmax:
        # softmax over the key axis of each branch (axis 1 for rows, axis 2
        # for columns); reciprocal-multiply instead of a per-element divide.
        m_r = jnp.max(attn_r, axis=1, keepdims=True)
        e_r = jnp.exp(attn_r - m_r)
        attn_r = e_r * pl.reciprocal(
            jnp.sum(e_r, axis=1, keepdims=True), approx=False)
        m_c = jnp.max(attn_c, axis=2, keepdims=True)
        e_c = jnp.exp(attn_c - m_c)
        attn_c = e_c * pl.reciprocal(
            jnp.sum(e_c, axis=2, keepdims=True), approx=False)

    # ---- attn @ v for both branches + fused add, written back per channel
    # in native NCHW (output written exactly once).
    for c in range(C):
        vc = v_ref[0, c].astype(f32)                           # (H, W)
        out_r = jnp.sum(attn_r * vc[None, :, :], axis=1)       # (H, W)
        out_c = jnp.sum(attn_c * vc[:, None, :], axis=2)       # (H, W)
        o_ref[0, c] = (out_r + out_c).astype(o_ref.dtype)


def channel_wise_row_column_attention(q, k, v, require_scaling=True):
    """q, k, v: (N, C, H, W) NCHW. Returns (N, C, H, W)."""
    N, C, H, W = q.shape
    n = k.shape[-1]                       # == W, matches the PyTorch module
    scale = 1.0 / sqrt(float(n))

    kernel = functools.partial(
        _fused_rc_attention_kernel, scale=scale, use_softmax=require_scaling)
    # Per-step block = one full (C, H, W) slab; last two block dims equal the
    # full array dims, so the (8, 128) constraint is satisfied.  VMEM use per
    # step is 4 arrays * C*H*W*4 B * 2 buffers — trivial on v5e/v6e/v7x.
    spec = pl.BlockSpec((1, C, H, W), lambda b: (b, 0, 0, 0))
    return pl.pallas_call(
        kernel,
        out_shape=jax.ShapeDtypeStruct((N, C, H, W), q.dtype),
        grid=(N,),
        in_specs=[spec, spec, spec],
        out_specs=spec,
        compiler_params=pltpu.CompilerParams(
            dimension_semantics=("parallel",)),
    )(q, k, v)


def _reference(q, k, v, require_scaling=True):
    """Pure-JAX reference mirroring the PyTorch forward, for validation."""
    n = k.shape[-1]

    def sdpa(qq, kk, vv):
        attn = jnp.einsum("bxsc,bxtc->bxst", qq, kk)
        if require_scaling:
            attn = jax.nn.softmax(attn / sqrt(float(n)), axis=-1)
        return jnp.einsum("bxst,bxtc->bxsc", attn, vv)

    q_r, k_r, v_r = (jnp.transpose(t, (0, 3, 2, 1)) for t in (q, k, v))
    q_c, k_c, v_c = (jnp.transpose(t, (0, 2, 3, 1)) for t in (q, k, v))
    out_r = jnp.transpose(sdpa(q_r, k_r, v_r), (0, 3, 2, 1))
    out_c = jnp.transpose(sdpa(q_c, k_c, v_c), (0, 3, 1, 2))
    return out_r + out_c


if __name__ == "__main__":
    N, C, H, W = 2, 4, 16, 16
    key = jax.random.PRNGKey(0)
    kq, kk, kv = jax.random.split(key, 3)
    q = jax.random.normal(kq, (N, C, H, W), dtype=jnp.float32)
    k = jax.random.normal(kk, (N, C, H, W), dtype=jnp.float32)
    v = jax.random.normal(kv, (N, C, H, W), dtype=jnp.float32)

    out = channel_wise_row_column_attention(q, k, v, require_scaling=True)
    out = jax.block_until_ready(out)

    ref = _reference(q, k, v, require_scaling=True)
    assert out.shape == (N, C, H, W)
    assert jnp.allclose(out, ref, atol=1e-4, rtol=1e-4), "mismatch vs reference"

    print("KERNEL_OK")
</pallas_src>

<mosaic_0001>
module attributes {stable_mosaic.version = 11 : i64} {
  func.func @_fused_rc_attention_kernel(%arg0: i32, %arg1: memref<1x4x16x16xf32, #tpu.memory_space<vmem>>, %arg2: memref<1x4x16x16xf32, #tpu.memory_space<vmem>>, %arg3: memref<1x4x16x16xf32, #tpu.memory_space<vmem>>, %arg4: memref<1x4x16x16xf32, #tpu.memory_space<vmem>>) attributes {dimension_semantics = [#tpu.dimension_semantics<parallel>], iteration_bounds = array<i64: 2>, scalar_prefetch = 0 : i64, scratch_operands = 0 : i64, tpu.core_type = #tpu.core_type<tc>, window_params = [{transform_indices = @transform_0, window_bounds = array<i64: 1, 4, 16, 16>}, {transform_indices = @transform_1, window_bounds = array<i64: 1, 4, 16, 16>}, {transform_indices = @transform_2, window_bounds = array<i64: 1, 4, 16, 16>}, {transform_indices = @transform_3, window_bounds = array<i64: 1, 4, 16, 16>}]} {
    %c0 = arith.constant 0 : index
    %c0_0 = arith.constant 0 : index
    %c0_1 = arith.constant 0 : index
    %c0_2 = arith.constant 0 : index
    %0 = vector.load %arg1[%c0, %c0_0, %c0_1, %c0_2] : memref<1x4x16x16xf32, #tpu.memory_space<vmem>>, vector<1x1x16x16xf32>
    %1 = vector.shape_cast %0 : vector<1x1x16x16xf32> to vector<16x16xf32>
    %cst = arith.constant 2.500000e-01 : f32
    %2 = vector.broadcast %cst : f32 to vector<16x16xf32>
    %3 = arith.mulf %1, %2 : vector<16x16xf32>
    %c0_3 = arith.constant 0 : index
    %c0_4 = arith.constant 0 : index
    %c0_5 = arith.constant 0 : index
    %c0_6 = arith.constant 0 : index
    %4 = vector.load %arg2[%c0_3, %c0_4, %c0_5, %c0_6] : memref<1x4x16x16xf32, #tpu.memory_space<vmem>>, vector<1x1x16x16xf32>
    %5 = vector.shape_cast %4 : vector<1x1x16x16xf32> to vector<16x16xf32>
    %6 = vector.shape_cast %3 : vector<16x16xf32> to vector<16x1x16xf32>
    %7 = vector.shape_cast %5 : vector<16x16xf32> to vector<1x16x16xf32>
    %8 = vector.broadcast %6 : vector<16x1x16xf32> to vector<16x16x16xf32>
    %9 = vector.broadcast %7 : vector<1x16x16xf32> to vector<16x16x16xf32>
    %10 = arith.mulf %8, %9 : vector<16x16x16xf32>
    %11 = vector.shape_cast %3 : vector<16x16xf32> to vector<16x16x1xf32>
    %12 = vector.shape_cast %5 : vector<16x16xf32> to vector<16x1x16xf32>
    %13 = vector.broadcast %11 : vector<16x16x1xf32> to vector<16x16x16xf32>
    %14 = vector.broadcast %12 : vector<16x1x16xf32> to vector<16x16x16xf32>
    %15 = arith.mulf %13, %14 : vector<16x16x16xf32>
    %c0_7 = arith.constant 0 : index
    %c1 = arith.constant 1 : index
    %c0_8 = arith.constant 0 : index
    %c0_9 = arith.constant 0 : index
    %16 = vector.load %arg1[%c0_7, %c1, %c0_8, %c0_9] : memref<1x4x16x16xf32, #tpu.memory_space<vmem>>, vector<1x1x16x16xf32>
    %17 = vector.shape_cast %16 : vector<1x1x16x16xf32> to vector<16x16xf32>
    %cst_10 = arith.constant 2.500000e-01 : f32
    %18 = vector.broadcast %cst_10 : f32 to vector<16x16xf32>
    %19 = arith.mulf %17, %18 : vector<16x16xf32>
    %c0_11 = arith.constant 0 : index
    %c1_12 = arith.constant 1 : index
    %c0_13 = arith.constant 0 : index
    %c0_14 = arith.constant 0 : index
    %20 = vector.load %arg2[%c0_11, %c1_12, %c0_13, %c0_14] : memref<1x4x16x16xf32, #tpu.memory_space<vmem>>, vector<1x1x16x16xf32>
    %21 = vector.shape_cast %20 : vector<1x1x16x16xf32> to vector<16x16xf32>
    %22 = vector.shape_cast %19 : vector<16x16xf32> to vector<16x1x16xf32>
    %23 = vector.shape_cast %21 : vector<16x16xf32> to vector<1x16x16xf32>
    %24 = vector.broadcast %22 : vector<16x1x16xf32> to vector<16x16x16xf32>
    %25 = vector.broadcast %23 : vector<1x16x16xf32> to vector<16x16x16xf32>
    %26 = arith.mulf %24, %25 : vector<16x16x16xf32>
    %27 = vector.shape_cast %19 : vector<16x16xf32> to vector<16x16x1xf32>
    %28 = vector.shape_cast %21 : vector<16x16xf32> to vector<16x1x16xf32>
    %29 = vector.broadcast %27 : vector<16x16x1xf32> to vector<16x16x16xf32>
    %30 = vector.broadcast %28 : vector<16x1x16xf32> to vector<16x16x16xf32>
    %31 = arith.mulf %29, %30 : vector<16x16x16xf32>
    %32 = arith.addf %10, %26 : vector<16x16x16xf32>
    %33 = arith.addf %15, %31 : vector<16x16x16xf32>
    %c0_15 = arith.constant 0 : index
    %c2 = arith.constant 2 : index
    %c0_16 = arith.constant 0 : index
    %c0_17 = arith.constant 0 : index
    %34 = vector.load %arg1[%c0_15, %c2, %c0_16, %c0_17] : memref<1x4x16x16xf32, #tpu.memory_space<vmem>>, vector<1x1x16x16xf32>
    %35 = vector.shape_cast %34 : vector<1x1x16x16xf32> to vector<16x16xf32>
    %cst_18 = arith.constant 2.500000e-01 : f32
    %36 = vector.broadcast %cst_18 : f32 to vector<16x16xf32>
    %37 = arith.mulf %35, %36 : vector<16x16xf32>
    %c0_19 = arith.constant 0 : index
    %c2_20 = arith.constant 2 : index
    %c0_21 = arith.constant 0 : index
    %c0_22 = arith.constant 0 : index
    %38 = vector.load %arg2[%c0_19, %c2_20, %c0_21, %c0_22] : memref<1x4x16x16xf32, #tpu.memory_space<vmem>>, vector<1x1x16x16xf32>
    %39 = vector.shape_cast %38 : vector<1x1x16x16xf32> to vector<16x16xf32>
    %40 = vector.shape_cast %37 : vector<16x16xf32> to vector<16x1x16xf32>
    %41 = vector.shape_cast %39 : vector<16x16xf32> to vector<1x16x16xf32>
    %42 = vector.broadcast %40 : vector<16x1x16xf32> to vector<16x16x16xf32>
    %43 = vector.broadcast %41 : vector<1x16x16xf32> to vector<16x16x16xf32>
    %44 = arith.mulf %42, %43 : vector<16x16x16xf32>
    %45 = vector.shape_cast %37 : vector<16x16xf32> to vector<16x16x1xf32>
    %46 = vector.shape_cast %39 : vector<16x16xf32> to vector<16x1x16xf32>
    %47 = vector.broadcast %45 : vector<16x16x1xf32> to vector<16x16x16xf32>
    %48 = vector.broadcast %46 : vector<16x1x16xf32> to vector<16x16x16xf32>
    %49 = arith.mulf %47, %48 : vector<16x16x16xf32>
    %50 = arith.addf %32, %44 : vector<16x16x16xf32>
    %51 = arith.addf %33, %49 : vector<16x16x16xf32>
    %c0_23 = arith.constant 0 : index
    %c3 = arith.constant 3 : index
    %c0_24 = arith.constant 0 : index
    %c0_25 = arith.constant 0 : index
    %52 = vector.load %arg1[%c0_23, %c3, %c0_24, %c0_25] : memref<1x4x16x16xf32, #tpu.memory_space<vmem>>, vector<1x1x16x16xf32>
    %53 = vector.shape_cast %52 : vector<1x1x16x16xf32> to vector<16x16xf32>
    %cst_26 = arith.constant 2.500000e-01 : f32
    %54 = vector.broadcast %cst_26 : f32 to vector<16x16xf32>
    %55 = arith.mulf %53, %54 : vector<16x16xf32>
    %c0_27 = arith.constant 0 : index
    %c3_28 = arith.constant 3 : index
    %c0_29 = arith.constant 0 : index
    %c0_30 = arith.constant 0 : index
    %56 = vector.load %arg2[%c0_27, %c3_28, %c0_29, %c0_30] : memref<1x4x16x16xf32, #tpu.memory_space<vmem>>, vector<1x1x16x16xf32>
    %57 = vector.shape_cast %56 : vector<1x1x16x16xf32> to vector<16x16xf32>
    %58 = vector.shape_cast %55 : vector<16x16xf32> to vector<16x1x16xf32>
    %59 = vector.shape_cast %57 : vector<16x16xf32> to vector<1x16x16xf32>
    %60 = vector.broadcast %58 : vector<16x1x16xf32> to vector<16x16x16xf32>
    %61 = vector.broadcast %59 : vector<1x16x16xf32> to vector<16x16x16xf32>
    %62 = arith.mulf %60, %61 : vector<16x16x16xf32>
    %63 = vector.shape_cast %55 : vector<16x16xf32> to vector<16x16x1xf32>
    %64 = vector.shape_cast %57 : vector<16x16xf32> to vector<16x1x16xf32>
    %65 = vector.broadcast %63 : vector<16x16x1xf32> to vector<16x16x16xf32>
    %66 = vector.broadcast %64 : vector<16x1x16xf32> to vector<16x16x16xf32>
    %67 = arith.mulf %65, %66 : vector<16x16x16xf32>
    %68 = arith.addf %50, %62 : vector<16x16x16xf32>
    %69 = arith.addf %51, %67 : vector<16x16x16xf32>
    %cst_31 = arith.constant dense<0xFF800000> : vector<16x16xf32>
    %70 = vector.multi_reduction <maximumf>, %68, %cst_31 [1] : vector<16x16x16xf32> to vector<16x16xf32>
    %71 = vector.shape_cast %70 : vector<16x16xf32> to vector<16x1x16xf32>
    %72 = vector.broadcast %71 : vector<16x1x16xf32> to vector<16x16x16xf32>
    %73 = arith.subf %68, %72 : vector<16x16x16xf32>
    %74 = math.exp %73 : vector<16x16x16xf32>
    %cst_32 = arith.constant dense<0.000000e+00> : vector<16x16xf32>
    %75 = vector.multi_reduction <add>, %74, %cst_32 [1] : vector<16x16x16xf32> to vector<16x16xf32>
    %76 = vector.shape_cast %75 : vector<16x16xf32> to vector<16x1x16xf32>
    %77 = tpu.reciprocal %76 : vector<16x1x16xf32> -> vector<16x1x16xf32>
    %78 = vector.broadcast %77 : vector<16x1x16xf32> to vector<16x16x16xf32>
    %79 = arith.mulf %74, %78 : vector<16x16x16xf32>
    %cst_33 = arith.constant dense<0xFF800000> : vector<16x16xf32>
    %80 = vector.multi_reduction <maximumf>, %69, %cst_33 [2] : vector<16x16x16xf32> to vector<16x16xf32>
    %81 = vector.shape_cast %80 : vector<16x16xf32> to vector<16x16x1xf32>
    %82 = vector.broadcast %81 : vector<16x16x1xf32> to vector<16x16x16xf32>
    %83 = arith.subf %69, %82 : vector<16x16x16xf32>
    %84 = math.exp %83 : vector<16x16x16xf32>
    %cst_34 = arith.constant dense<0.000000e+00> : vector<16x16xf32>
    %85 = vector.multi_reduction <add>, %84, %cst_34 [2] : vector<16x16x16xf32> to vector<16x16xf32>
    %86 = vector.shape_cast %85 : vector<16x16xf32> to vector<16x16x1xf32>
    %87 = tpu.reciprocal %86 : vector<16x16x1xf32> -> vector<16x16x1xf32>
    %88 = vector.broadcast %87 : vector<16x16x1xf32> to vector<16x16x16xf32>
    %89 = arith.mulf %84, %88 : vector<16x16x16xf32>
    %c0_35 = arith.constant 0 : index
    %c0_36 = arith.constant 0 : index
    %c0_37 = arith.constant 0 : index
    %c0_38 = arith.constant 0 : index
    %90 = vector.load %arg3[%c0_35, %c0_36, %c0_37, %c0_38] : memref<1x4x16x16xf32, #tpu.memory_space<vmem>>, vector<1x1x16x16xf32>
    %91 = vector.shape_cast %90 : vector<1x1x16x16xf32> to vector<16x16xf32>
    %92 = vector.shape_cast %91 : vector<16x16xf32> to vector<1x16x16xf32>
    %93 = vector.broadcast %92 : vector<1x16x16xf32> to vector<16x16x16xf32>
    %94 = arith.mulf %79, %93 : vector<16x16x16xf32>
    %cst_39 = arith.constant dense<0.000000e+00> : vector<16x16xf32>
    %95 = vector.multi_reduction <add>, %94, %cst_39 [1] : vector<16x16x16xf32> to vector<16x16xf32>
    %96 = vector.shape_cast %91 : vector<16x16xf32> to vector<16x1x16xf32>
    %97 = vector.broadcast %96 : vector<16x1x16xf32> to vector<16x16x16xf32>
    %98 = arith.mulf %89, %97 : vector<16x16x16xf32>
    %cst_40 = arith.constant dense<0.000000e+00> : vector<16x16xf32>
    %99 = vector.multi_reduction <add>, %98, %cst_40 [2] : vector<16x16x16xf32> to vector<16x16xf32>
    %100 = arith.addf %95, %99 : vector<16x16xf32>
    %c0_41 = arith.constant 0 : index
    %c0_42 = arith.constant 0 : index
    %c0_43 = arith.constant 0 : index
    %c0_44 = arith.constant 0 : index
    %101 = vector.load %arg4[%c0_41, %c0_42, %c0_43, %c0_44] : memref<1x4x16x16xf32, #tpu.memory_space<vmem>>, vector<1x1x16x16xf32>
    %102 = vector.shape_cast %101 : vector<1x1x16x16xf32> to vector<16x16xf32>
    %103 = vector.shape_cast %100 : vector<16x16xf32> to vector<1x1x16x16xf32>
    tpu.vector_store %arg4[%c0_41, %c0_42, %c0_43, %c0_44], %103 {strides = array<i32>} : memref<1x4x16x16xf32, #tpu.memory_space<vmem>>, vector<1x1x16x16xf32>,
    %c0_45 = arith.constant 0 : index
    %c1_46 = arith.constant 1 : index
    %c0_47 = arith.constant 0 : index
    %c0_48 = arith.constant 0 : index
    %104 = vector.load %arg3[%c0_45, %c1_46, %c0_47, %c0_48] : memref<1x4x16x16xf32, #tpu.memory_space<vmem>>, vector<1x1x16x16xf32>
    %105 = vector.shape_cast %104 : vector<1x1x16x16xf32> to vector<16x16xf32>
    %106 = vector.shape_cast %105 : vector<16x16xf32> to vector<1x16x16xf32>
    %107 = vector.broadcast %106 : vector<1x16x16xf32> to vector<16x16x16xf32>
    %108 = arith.mulf %79, %107 : vector<16x16x16xf32>
    %cst_49 = arith.constant dense<0.000000e+00> : vector<16x16xf32>
    %109 = vector.multi_reduction <add>, %108, %cst_49 [1] : vector<16x16x16xf32> to vector<16x16xf32>
    %110 = vector.shape_cast %105 : vector<16x16xf32> to vector<16x1x16xf32>
    %111 = vector.broadcast %110 : vector<16x1x16xf32> to vector<16x16x16xf32>
    %112 = arith.mulf %89, %111 : vector<16x16x16xf32>
    %cst_50 = arith.constant dense<0.000000e+00> : vector<16x16xf32>
    %113 = vector.multi_reduction <add>, %112, %cst_50 [2] : vector<16x16x16xf32> to vector<16x16xf32>
    %114 = arith.addf %109, %113 : vector<16x16xf32>
    %c0_51 = arith.constant 0 : index
    %c1_52 = arith.constant 1 : index
    %c0_53 = arith.constant 0 : index
    %c0_54 = arith.constant 0 : index
    %115 = vector.load %arg4[%c0_51, %c1_52, %c0_53, %c0_54] : memref<1x4x16x16xf32, #tpu.memory_space<vmem>>, vector<1x1x16x16xf32>
    %116 = vector.shape_cast %115 : vector<1x1x16x16xf32> to vector<16x16xf32>
    %117 = vector.shape_cast %114 : vector<16x16xf32> to vector<1x1x16x16xf32>
    tpu.vector_store %arg4[%c0_51, %c1_52, %c0_53, %c0_54], %117 {strides = array<i32>} : memref<1x4x16x16xf32, #tpu.memory_space<vmem>>, vector<1x1x16x16xf32>,
    %c0_55 = arith.constant 0 : index
    %c2_56 = arith.constant 2 : index
    %c0_57 = arith.constant 0 : index
    %c0_58 = arith.constant 0 : index
    %118 = vector.load %arg3[%c0_55, %c2_56, %c0_57, %c0_58] : memref<1x4x16x16xf32, #tpu.memory_space<vmem>>, vector<1x1x16x16xf32>
    %119 = vector.shape_cast %118 : vector<1x1x16x16xf32> to vector<16x16xf32>
    %120 = vector.shape_cast %119 : vector<16x16xf32> to vector<1x16x16xf32>
    %121 = vector.broadcast %120 : vector<1x16x16xf32> to vector<16x16x16xf32>
    %122 = arith.mulf %79, %121 : vector<16x16x16xf32>
    %cst_59 = arith.constant dense<0.000000e+00> : vector<16x16xf32>
    %123 = vector.multi_reduction <add>, %122, %cst_59 [1] : vector<16x16x16xf32> to vector<16x16xf32>
    %124 = vector.shape_cast %119 : vector<16x16xf32> to vector<16x1x16xf32>
    %125 = vector.broadcast %124 : vector<16x1x16xf32> to vector<16x16x16xf32>
    %126 = arith.mulf %89, %125 : vector<16x16x16xf32>
    %cst_60 = arith.constant dense<0.000000e+00> : vector<16x16xf32>
    %127 = vector.multi_reduction <add>, %126, %cst_60 [2] : vector<16x16x16xf32> to vector<16x16xf32>
    %128 = arith.addf %123, %127 : vector<16x16xf32>
    %c0_61 = arith.constant 0 : index
    %c2_62 = arith.constant 2 : index
    %c0_63 = arith.constant 0 : index
    %c0_64 = arith.constant 0 : index
    %129 = vector.load %arg4[%c0_61, %c2_62, %c0_63, %c0_64] : memref<1x4x16x16xf32, #tpu.memory_space<vmem>>, vector<1x1x16x16xf32>
    %130 = vector.shape_cast %129 : vector<1x1x16x16xf32> to vector<16x16xf32>
    %131 = vector.shape_cast %128 : vector<16x16xf32> to vector<1x1x16x16xf32>
    tpu.vector_store %arg4[%c0_61, %c2_62, %c0_63, %c0_64], %131 {strides = array<i32>} : memref<1x4x16x16xf32, #tpu.memory_space<vmem>>, vector<1x1x16x16xf32>,
    %c0_65 = arith.constant 0 : index
    %c3_66 = arith.constant 3 : index
    %c0_67 = arith.constant 0 : index
    %c0_68 = arith.constant 0 : index
    %132 = vector.load %arg3[%c0_65, %c3_66, %c0_67, %c0_68] : memref<1x4x16x16xf32, #tpu.memory_space<vmem>>, vector<1x1x16x16xf32>
    %133 = vector.shape_cast %132 : vector<1x1x16x16xf32> to vector<16x16xf32>
    %134 = vector.shape_cast %133 : vector<16x16xf32> to vector<1x16x16xf32>
    %135 = vector.broadcast %134 : vector<1x16x16xf32> to vector<16x16x16xf32>
    %136 = arith.mulf %79, %135 : vector<16x16x16xf32>
    %cst_69 = arith.constant dense<0.000000e+00> : vector<16x16xf32>
    %137 = vector.multi_reduction <add>, %136, %cst_69 [1] : vector<16x16x16xf32> to vector<16x16xf32>
    %138 = vector.shape_cast %133 : vector<16x16xf32> to vector<16x1x16xf32>
    %139 = vector.broadcast %138 : vector<16x1x16xf32> to vector<16x16x16xf32>
    %140 = arith.mulf %89, %139 : vector<16x16x16xf32>
    %cst_70 = arith.constant dense<0.000000e+00> : vector<16x16xf32>
    %141 = vector.multi_reduction <add>, %140, %cst_70 [2] : vector<16x16x16xf32> to vector<16x16xf32>
    %142 = arith.addf %137, %141 : vector<16x16xf32>
    %c0_71 = arith.constant 0 : index
    %c3_72 = arith.constant 3 : index
    %c0_73 = arith.constant 0 : index
    %c0_74 = arith.constant 0 : index
    %143 = vector.load %arg4[%c0_71, %c3_72, %c0_73, %c0_74] : memref<1x4x16x16xf32, #tpu.memory_space<vmem>>, vector<1x1x16x16xf32>
    %144 = vector.shape_cast %143 : vector<1x1x16x16xf32> to vector<16x16xf32>
    %145 = vector.shape_cast %142 : vector<16x16xf32> to vector<1x1x16x16xf32>
    tpu.vector_store %arg4[%c0_71, %c3_72, %c0_73, %c0_74], %145 {strides = array<i32>} : memref<1x4x16x16xf32, #tpu.memory_space<vmem>>, vector<1x1x16x16xf32>,
    return
  }
  func.func @transform_0(%arg0: i32) -> (i32, i32, i32, i32) {
    %c0_i32 = arith.constant 0 : i32
    %c0_i32_0 = arith.constant 0 : i32
    %c0_i32_1 = arith.constant 0 : i32
    %c0_i32_2 = arith.constant 0 : i32
    return %arg0, %c0_i32, %c0_i32_0, %c0_i32_1 : i32, i32, i32, i32
  }
  func.func @transform_1(%arg0: i32) -> (i32, i32, i32, i32) {
    %c0_i32 = arith.constant 0 : i32
    %c0_i32_0 = arith.constant 0 : i32
    %c0_i32_1 = arith.constant 0 : i32
    %c0_i32_2 = arith.constant 0 : i32
    return %arg0, %c0_i32, %c0_i32_0, %c0_i32_1 : i32, i32, i32, i32
  }
  func.func @transform_2(%arg0: i32) -> (i32, i32, i32, i32) {
    %c0_i32 = arith.constant 0 : i32
    %c0_i32_0 = arith.constant 0 : i32
    %c0_i32_1 = arith.constant 0 : i32
    %c0_i32_2 = arith.constant 0 : i32
    return %arg0, %c0_i32, %c0_i32_0, %c0_i32_1 : i32, i32, i32, i32
  }
  func.func @transform_3(%arg0: i32) -> (i32, i32, i32, i32) {
    %c0_i32 = arith.constant 0 : i32
    %c0_i32_0 = arith.constant 0 : i32
    %c0_i32_1 = arith.constant 0 : i32
    %c0_i32_2 = arith.constant 0 : i32
    return %arg0, %c0_i32, %c0_i32_0, %c0_i32_1 : i32, i32, i32, i32
  }
}

</mosaic_0001>

<bundles_post_ra>
// kernel: tpu_custom_call.1
= control target key start
LH: loop header
LB: loop body
LE: loop exit
PB: predicated region body
PF: predicated region fallthrough
CT: control target
= control target key end

     0   :  { %s12009_s0 = inlined_call_operand.hbm [shape: f32[2,4,16,16], index: 0, kind: input, shape index: {}]   ;;  %s12010_s1 = inlined_call_operand.hbm [shape: f32[2,4,16,16], index: 1, kind: input, shape index: {}]   ;;  %s12011_s2 = inlined_call_operand.hbm [shape: f32[2,4,16,16], index: 2, kind: input, shape index: {}]   ;;  %s12012_s3 = inlined_call_operand.hbm [shape: f32[2,4,16,16], index: 3, kind: output, shape index: {}]  }
   0x1   :  { %12238 = sst [smem:[#allocation108_spill]] %s12009_s0 }
   0x2   :  { %8 = vsyncpa [#allocation3], 0 }
   0x3   :  { %10 = vsyncpa [#allocation3 + $0x1], 0 }
   0x4   :  { %11 = vsyncpa [#allocation6], 0 }
   0x5   :  { %13 = vsyncpa [#allocation6 + $0x1], 0 }
   0x6   :  { %14 = vsyncpa [#allocation4], 0 }
   0x7   :  { %16 = vsyncpa [#allocation4 + $0x1], 0  ;;  %s7369_s12 = smov 0   ;;  %s7371_s13 = smov 0  }
   0x8   :  { %s7373_s14 = smov 0   ;;  %s7375_s15 = smov 0  }
   0x9 LB: > { %s7390_s16 = sadd.s32 4294967295, %s7338_s15   ;;  %s6788_s17 = sadd.s32 4294967294, %s7338_s15   ;;  %s7338_s15 = sphi %s7375_s15, %s12915_s15   ;;  %s7334_s14 = sphi %s7373_s14, %s12914_s14   ;;  %s7330_s13 = sphi %s7371_s13, %s12913_s13   ;;  %s7326_s12 = sphi %s7369_s12, %s12912_s12  }
   0xa   : > { %s7394_s18 = sadd.s32 1, %s7338_s15   ;;  %s29_s19 = sadd.s32 1, %s7334_s14 }
   0xb   : > { %s26_s20 = ssub.s32 %s7338_s15, %s7394_s18  ;;  %p36_p0 = scmp.ne.s32.totalorder %s7334_s14, %s7330_s13 }
   0xc   : > { %p27_p1 = scmp.eq.s32.totalorder %s26_s20, 0  ;;  %p37_p2 = scmp.eq.s32.totalorder %s7338_s15, 0 }
   0xd   : > { %p42_p3 = scmp.ne.s32.totalorder %s7330_s13, %s7326_s12  ;;  %p43_p4 = scmp.eq.s32.totalorder %s7390_s16, 0 }
   0xe   : > { %s7406_s21 = scalar_select %p27_p1, %s7334_s14, %s29_s19  }
   0xf   : > { %p38_p5 = por %p37_p2, %p36_p0  ;;  %p7408_p6 = por %p43_p4, %p42_p3 }
  0x10   : > { %p118_p7 = scmp.eq.s32.totalorder %s7390_s16, 1  ;;  %p124_p8 = scmp.eq.s32.totalorder %s6788_s17, 1 }
  0x11   : > { %s12239_s22 = scalar_select %p7408_p6, 1, 0 }
  0x12   : > { %p6860_p10 = scmp.lt.s32.totalorder %s7338_s15, 2  ;;  %p7415_p11 = por %p118_p7, %p36_p0 }
  0x13   : > { %p7419_p12 = por %p124_p8, %p42_p3  ;;  %s144_s25 = sand.u32 1, %s7334_s14  }
  0x14   : > { %s12240_s23 = scalar_select %p7415_p11, 1, 0 }
  0x15   : > { %s12241_s24 = scalar_select %p7419_p12, 1, 0 }
  0x16   : > { %s7425_s26 = sshll.u32 %s7338_s15, 10  ;;  %s7429_s27 = sshll.u32 %s144_s25, 6 }
  0x17   : > { %p7431_p13 = pnand %p6860_p10, %p38_p5  ;;  %s165_s29 = sand.u32 1, %s7338_s15  }
  0x18   : > { %s7440_s5 = scalar_lea.hbm %s12010_s1, %s7425_s26  ;;  %s169_s6 = scalar_lea.vmem [#allocation5], %s7429_s27 }
  0x19   : > { %s176_s7 = sshll.u32 %s169_s6, 4  ;;  %s7446_s8 = scalar_lea.sflag [#allocation6], %s165_s29  ;;  %s7443_s7 = int_to_ptr.vmem [resolvable:$true] %s176_s7 }
  0x1a   : > { %s7178_s9 = scalar_lea.hbm %s7440_s5, 1024  ;;  %p7452_p2 = pneg %p7431_p13 }
  0x1b   : > { %p7179_p1 = scmp.ne.s32.totalorder %s7440_s5, %s7178_s9  ;;  %s7183_s19 = scalar_lea.hbm %s12010_s1, 2048 }
  0x1c   : > { %p7184_p5 = scmp.lt.u32.totalorder %s7440_s5, %s12010_s1  ;;  %p7185_p7 = scmp.lt.u32.totalorder %s7183_s19, %s7178_s9 }
  0x1d   : > { %p7181_p3 = pnand %p7452_p2, %p7179_p1  ;;  %p7187_p10 = scmp.lt.u32.totalorder %s7178_s9, %s7440_s5 }
  0x1e   : > { %p7186_p8 = por %p7185_p7, %p7184_p5 }
  0x1f   : > { %p7182_p4 = pneg %p7181_p3 }
  0x20   : > { %p7188_p9 = por %p7187_p10, %p7186_p8 }
  0x22   : > { %p7189_p0 = pnand %p7188_p9, %p7182_p4 }
  0x24   : > { %7192 = shalt.err (!%p7189_p0)
}
  0x25   : > { %s7193_s29 = scalar_lea.vmem %s7443_s7, 1024  ;;  %s7340_s4 = smov [#allocation5]  }
  0x26   : > { %p7194_p1 = scmp.ne.s32.totalorder %s7443_s7, %s7193_s29  ;;  %s7198_s6 = sshll.u32 %s7340_s4, 4  ;;  %s7199_s6 = int_to_ptr.vmem [resolvable:$false] %s7198_s6 }
  0x27   : > { %s7200_s11 = scalar_lea.vmem %s7199_s6, 2048  ;;  %p7201_p11 = scmp.lt.s32.totalorder %s7443_s7, %s7199_s6 }
  0x28   : > { %p7196_p3 = pnand %p7194_p1, %p7452_p2  ;;  %p7202_p6 = scmp.lt.s32.totalorder %s7200_s11, %s7193_s29 }
  0x2a   : > { %p7197_p12 = pneg %p7196_p3  ;;  %p7203_p5 = por %p7202_p6, %p7201_p11 }
  0x2c   : > { %p7204_p7 = pnand %p7203_p5, %p7197_p12 }
  0x2e   : > { %7207 = shalt.err (!%p7204_p7)
}
  0x2f   : > { %s12015_s9 = smov 128   ;;  %s12017_s17 = smov 8  }
  0x30   : > { %6852 = dma.hbm_to_vmem [thread:$0]  (!%p7431_p13), %s7440_s5, 1024, %s7443_s7, %s7446_s8, %s12015_s9, %s12015_s9, %s12017_s17  }
  0x31   : > { %p205_p6 = scmp.lt.s32.totalorder %s7338_s15, 3  ;;  %s12244_s0 = sld [smem:[#allocation108_spill]] }
  0x32   : > { %p12245_p9 = scmp.ge.s32.totalorder %s7338_s15, 1  ;;  %s148_s4 = scalar_lea.vmem [#allocation2], %s7429_s27 }
  0x33   : > { %s155_s6 = sshll.u32 %s148_s4, 4  ;;  %s7497_s5 = scalar_lea.sflag [#allocation3], %s144_s25  ;;  %s7493_s6 = int_to_ptr.vmem [resolvable:$true] %s155_s6 }
  0x34   : > { %p7488_p11 = pnand %p12245_p9, %p205_p6 }
  0x36   : > { %s12246_s29 = scalar_select %p7488_p11, 1, 0 }
  0x37   : > { %s7484_s30 = scalar_lea.hbm %s12244_s0, %s7425_s26  ;;  %s7213_s20 = scalar_lea.hbm %s12244_s0, 2048 }
  0x38   : > { %s7208_s7 = scalar_lea.hbm %s7484_s30, 1024  ;;  %p7214_p8 = scmp.lt.u32.totalorder %s7484_s30, %s12244_s0 }
  0x39   : > { %p7209_p12 = scmp.ne.s32.totalorder %s7484_s30, %s7208_s7  ;;  %p7215_p10 = scmp.lt.u32.totalorder %s7213_s20, %s7208_s7 }
  0x3a   : > { %p7217_p3 = scmp.lt.u32.totalorder %s7208_s7, %s7484_s30 }
  0x3b   : > { %p7211_p0 = pnand %p7209_p12, %p7452_p2  ;;  %p7216_p1 = por %p7215_p10, %p7214_p8 }
  0x3d   : > { %p7212_p4 = pneg %p7211_p0  ;;  %p7218_p5 = por %p7217_p3, %p7216_p1 }
  0x3f   : > { %p7219_p7 = pnand %p7218_p5, %p7212_p4 }
  0x41   : > { %7222 = shalt.err (!%p7219_p7)
}
  0x42   : > { %s7223_s25 = scalar_lea.vmem %s7493_s6, 1024  ;;  %s7343_s4 = smov [#allocation2]  }
  0x43   : > { %p7224_p6 = scmp.ne.s32.totalorder %s7493_s6, %s7223_s25  ;;  %s7228_s11 = sshll.u32 %s7343_s4, 4  ;;  %s7229_s11 = int_to_ptr.vmem [resolvable:$false] %s7228_s11 }
  0x44   : > { %s7230_s9 = scalar_lea.vmem %s7229_s11, 2048  ;;  %p7231_p0 = scmp.lt.s32.totalorder %s7493_s6, %s7229_s11 }
  0x45   : > { %p7226_p9 = pnand %p7224_p6, %p7452_p2  ;;  %p7232_p11 = scmp.lt.s32.totalorder %s7230_s9, %s7223_s25 }
  0x47   : > { %p7227_p12 = pneg %p7226_p9  ;;  %p7233_p8 = por %p7232_p11, %p7231_p0 }
  0x49   : > { %p7234_p10 = pnand %p7233_p8, %p7227_p12 }
  0x4b   : > { %7237 = shalt.err (!%p7234_p10)
}
  0x4c   : > { %s12247_s17 = smov 8   ;;  %s12248_s7 = smov 128  }
  0x4d   : > { %6849 = dma.hbm_to_vmem [thread:$0]  (!%p7431_p13), %s7484_s30, 1024, %s7493_s6, %s7497_s5, %s12248_s7, %s12248_s7, %s12247_s17  }
  0x4e   : > { %s7528_s4 = scalar_lea.hbm %s12011_s2, %s7425_s26  ;;  %s190_s25 = scalar_lea.vmem [#allocation7], %s7429_s27 }
  0x4f   : > { %s197_s11 = sshll.u32 %s190_s25, 4  ;;  %s7238_s9 = scalar_lea.hbm %s7528_s4, 1024  ;;  %s7531_s11 = int_to_ptr.vmem [resolvable:$true] %s197_s11 }
  0x50   : > { %p7239_p11 = scmp.ne.s32.totalorder %s7528_s4, %s7238_s9  ;;  %s7243_s6 = scalar_lea.hbm %s12011_s2, 2048 }
  0x51   : > { %p7244_p3 = scmp.lt.u32.totalorder %s7528_s4, %s12011_s2  ;;  %p7245_p5 = scmp.lt.u32.totalorder %s7243_s6, %s7238_s9 }
  0x52   : > { %p7241_p4 = pnand %p7239_p11, %p7452_p2  ;;  %p7247_p6 = scmp.lt.u32.totalorder %s7238_s9, %s7528_s4 }
  0x53   : > { %p7246_p7 = por %p7245_p5, %p7244_p3 }
  0x54   : > { %p7242_p1 = pneg %p7241_p4 }
  0x55   : > { %p7248_p9 = por %p7247_p6, %p7246_p7 }
  0x57   : > { %p7249_p12 = pnand %p7248_p9, %p7242_p1 }
  0x59   : > { %7252 = shalt.err (!%p7249_p12)
}
  0x5a   : > { %s7253_s27 = scalar_lea.vmem %s7531_s11, 1024  ;;  %s7344_s0 = smov [#allocation7]  }
  0x5b   : > { %p7254_p0 = scmp.ne.s32.totalorder %s7531_s11, %s7253_s27  ;;  %s7258_s19 = sshll.u32 %s7344_s0, 4  ;;  %s7259_s19 = int_to_ptr.vmem [resolvable:$false] %s7258_s19 }
  0x5c   : > { %s7260_s20 = scalar_lea.vmem %s7259_s19, 2048  ;;  %p7261_p11 = scmp.lt.s32.totalorder %s7531_s11, %s7259_s19 }
  0x5d   : > { %p7256_p8 = pnand %p7254_p0, %p7452_p2  ;;  %p7262_p4 = scmp.lt.s32.totalorder %s7260_s20, %s7253_s27 }
  0x5f   : > { %p7257_p10 = pneg %p7256_p8  ;;  %p7263_p3 = por %p7262_p4, %p7261_p11 }
  0x61   : > { %p7264_p5 = pnand %p7263_p3, %p7257_p10 }
  0x63   : > { %7267 = shalt.err (!%p7264_p5)
}
  0x64   : > { %6855 = dma.hbm_to_vmem [thread:$0]  (!%p7431_p13), %s7528_s4, 1024, %s7531_s11, %s7446_s8, %s12248_s7, %s12248_s7, %s12247_s17  }
  0x65   : > { %p12249_p2 = scmp.ne.s32.totalorder %s12246_s29, 0 }
  0x67   : > { %209 = sbr.rel (%p12249_p2) target bundleno = 1295 (0x50f), region = 32 }
  0x6e   : > { %s7561_s10 = sand.u32 1, %s7330_s13   ;;  %p12250_p1 = scmp.ne.s32.totalorder %s12239_s22, 0 }
  0x6f   : > { %s7564_s25 = sshll.u32 %s7561_s10, 6  ;;  %s212_s28 = scalar_lea.sflag [#allocation3], %s7561_s10 }
  0x70   : > { %s7568_s9 = scalar_lea.vmem [#allocation2], %s7564_s25 }
  0x71   : > { %7313 = dma.done.wait (%p12250_p1), %s212_s28, 1024  }
  0x72   : > { %7315 = vsyncadd (%p12250_p1), %s212_s28, 4294966272  ;;  %s220_s8 = sand.u32 1, %s7390_s16   ;;  %s7576_s17 = scalar_lea.vmem [#allocation5], %s7564_s25 }
  0x73   : > { %s221_s29 = scalar_lea.sflag [#allocation6], %s220_s8 }
  0x74   : > { %7317 = dma.done.wait (%p12250_p1), %s221_s29, 2048  }
  0x75   : > { %7319 = vsyncadd (%p12250_p1), %s221_s29, 4294965248  ;;  %v278_v0 = vlaneseq  ;;  %v266_v8 = vld [vmem:[%s7568_s9] sm:$0xff]  ;;  %v267_v23 = vld [vmem:[%s7568_s9 + $0x8] sm:$0xff]  ;;  %vm2888_vm0 = vcmask 130048   ;;  %s8804_s22 = scalar_lea.vmem [#allocation7], %s7564_s25  ;;  %vm4202_vm1 = vcmask 130112  }
  0x76   : > { %v7597_v9 = vmul.f32 0.25, %v266_v8  ;;  %v7634_v25 = vmul.f32 0.25, %v267_v23  ;;  %v6805_v33 = vld [vmem:[%s7568_s9 + $0x10] sm:$0xff]  ;;  %v6806_v43 = vld [vmem:[%s7568_s9 + $0x18] sm:$0xff]  ;;  %v6809_v55 = vld [vmem:[%s7568_s9 + $0x20] sm:$0xff]  ;;  %vm4388_vm2 = vcmask 1041409  }
  0x77   : > { %v7582_v1 = vshrl.u32 %v278_v0, 7  ;;  %v4192_v2 = vand.u32 127, %v278_v0  ;;  %v7653_v35 = vmul.f32 0.25, %v6805_v33  ;;  %v7672_v45 = vmul.f32 0.25, %v6806_v43  ;;  %s10491_s7 = scalar_lea.vmem [#allocation8], %s7564_s25  ;;  %s6837_s4 = sshll.u32 %s7390_s16, 10 }
  0x78   : > { %12253 = vst [vmem:[#allocation14_spill] sm:$0xff] %v7597_v9  ;;  %12254 = vst [vmem:[#allocation15_spill] sm:$0xff] %v7634_v25  ;;  %v7699_v59 = vmul.f32 0.25, %v6809_v55  ;;  %vm4391_vm3 = vcmask 1042434   ;;  %vm4394_vm4 = vcmask 1043459   ;;  %vm4397_vm5 = vcmask 1044484   ;;  %s11959_s16 = scalar_lea.hbm %s12012_s3, %s6837_s4 }
  0x79   : > { %v7585_v3 = vsub.s32 %v4192_v2, %v7582_v1  ;;  %v4197_v4 = vadd.s32 4294967288, %v4192_v2  ;;  %v7588_v5 = vsub.s32 0, %v7582_v1  ;;  %v7591_v6 = vsub.s32 1, %v7582_v1  ;;  %12255 = vst [vmem:[#allocation16_spill] sm:$0xff] %v7653_v35  ;;  %12256 = vst [vmem:[#allocation17_spill] sm:$0xff] %v7672_v45  ;;  %s6672_s11 = sshll.u32 %s10491_s7, 4  ;;  %s11961_s11 = int_to_ptr.vmem [resolvable:$true] %s6672_s11 }
  0x7a   : > { %v7604_v12 = vsub.s32 2, %v7582_v1  ;;  %v7609_v14 = vsub.s32 3, %v7582_v1  ;;  %v7614_v16 = vsub.s32 4, %v7582_v1  ;;  %v7619_v18 = vsub.s32 5, %v7582_v1  ;;  %12257 = vst [vmem:[#allocation18_spill] sm:$0xff] %v7699_v59  ;;  %s6659_s5 = scalar_lea.sflag [#allocation4], %s7561_s10 }
  0x7b   : > { %12251 = vst [vmem:[#allocation12_spill] sm:$0xff] %v7585_v3  ;;  %v7594_v7 = vsub.s32 %v4197_v4, %v7582_v1  ;;  %v498_v10 = vrot.slane %v7597_v9, %v7591_v6  ;;  %v487_v11 = vrot.slane %v7597_v9, %v7588_v5  ;;  %v7624_v20 = vsub.s32 6, %v7582_v1  ;;  %s7268_s26 = scalar_lea.vmem %s11961_s11, 1024  ;;  %p12909_p7 = scmp.ne.s32.totalorder %s12240_s23, 0 }
  0x7c   : > { %v509_v13 = vrot.slane %v7597_v9, %v7604_v12  ;;  %v520_v15 = vrot.slane %v7597_v9, %v7609_v14  ;;  %v531_v17 = vrot.slane %v7597_v9, %v7614_v16  ;;  %v542_v19 = vrot.slane %v7597_v9, %v7619_v18  ;;  %p7269_p13 = scmp.ne.s32.totalorder %s11961_s11, %s7268_s26  ;;  %s7346_s27 = smov [#allocation8]  }
  0x7d   : > { %12252 = vst [vmem:[#allocation13_spill] sm:$0xff] %v7594_v7  ;;  %500 = vbcast.lane.b32.xlu1 %v498_v10, 256  ;;  %489 = vbcast.lane.b32.xlu0 %v487_v11, 256  ;;  %v553_v21 = vrot.slane %v7597_v9, %v7624_v20  ;;  %v7629_v22 = vsub.s32 7, %v7582_v1  ;;  %v575_v26 = vrot.slane %v7634_v25, %v7588_v5  ;;  %vm4400_vm6 = vcmask 1045509   ;;  %s7272_s0 = sshll.u32 %s7346_s27, 4  ;;  %s7273_s0 = int_to_ptr.vmem [resolvable:$false] %s7272_s0 }
  0x7e   : > { %v586_v27 = vrot.slane %v7634_v25, %v7591_v6  ;;  %v597_v28 = vrot.slane %v7634_v25, %v7604_v12  ;;  %v608_v29 = vrot.slane %v7634_v25, %v7609_v14  ;;  %v619_v30 = vrot.slane %v7634_v25, %v7614_v16  ;;  %p7270_p6 = pnand %p7269_p13, %p12909_p7  ;;  %s7274_s19 = scalar_lea.vmem %s7273_s0, 2048 }
  0x7f   : > { %v564_v24 = vrot.slane %v7597_v9, %v7629_v22  ;;  %v630_v31 = vrot.slane %v7634_v25, %v7619_v18  ;;  %v641_v32 = vrot.slane %v7634_v25, %v7624_v20  ;;  %v652_v34 = vrot.slane %v7634_v25, %v7629_v22  ;;  %p7275_p12 = scmp.lt.s32.totalorder %s11961_s11, %s7273_s0  ;;  %p7276_p0 = scmp.lt.s32.totalorder %s7274_s19, %s7268_s26 }
  0x80   : > { %v1095_v36 = vrot.slane %v7653_v35, %v7588_v5  ;;  %v1106_v37 = vrot.slane %v7653_v35, %v7591_v6  ;;  %v1117_v38 = vrot.slane %v7653_v35, %v7604_v12  ;;  %v1128_v39 = vrot.slane %v7653_v35, %v7609_v14  ;;  %p7271_p9 = pneg %p7270_p6 }
  0x81   : > { %504 = vbcast.lane.b32.xlu1 %v498_v10, 264  ;;  %493 = vbcast.lane.b32.xlu0 %v487_v11, 264  ;;  %v1139_v40 = vrot.slane %v7653_v35, %v7614_v16  ;;  %v1150_v41 = vrot.slane %v7653_v35, %v7619_v18  ;;  %v1161_v42 = vrot.slane %v7653_v35, %v7624_v20  ;;  %vm4403_vm7 = vcmask 1046534   ;;  %p7277_p8 = por %p7276_p0, %p7275_p12 }
  0x82   : > { %v1172_v44 = vrot.slane %v7653_v35, %v7629_v22  ;;  %v1183_v46 = vrot.slane %v7672_v45, %v7588_v5  ;;  %v1194_v47 = vrot.slane %v7672_v45, %v7591_v6  ;;  %v1205_v48 = vrot.slane %v7672_v45, %v7604_v12  ;;  %v6814_v35 = vld [vmem:[%s7568_s9 + $0x38] sm:$0xff] }
  0x83   : > { %v1216_v49 = vrot.slane %v7672_v45, %v7609_v14  ;;  %v1227_v50 = vrot.slane %v7672_v45, %v7614_v16  ;;  %v1238_v51 = vrot.slane %v7672_v45, %v7619_v18  ;;  %v1249_v54 = vrot.slane %v7672_v45, %v7624_v20  ;;  %p7278_p10 = pnand %p7277_p8, %p7271_p9 }
  0x84   : > { %v1260_v58 = vrot.slane %v7672_v45, %v7629_v22  ;;  %v1767_v62 = vrot.slane %v7699_v59, %v7588_v5  ;;  %v1778_v2 = vrot.slane %v7699_v59, %v7591_v6  ;;  %v1789_v10 = vrot.slane %v7699_v59, %v7604_v12 }
  0x85   : > { %515 = vbcast.lane.b32.xlu1 %v509_v13, 264  ;;  %511 = vbcast.lane.b32.xlu0 %v509_v13, 256  ;;  %v1844_v33 = vrot.slane %v7699_v59, %v7629_v22  ;;  %vm4406_vm8 = vcmask 1047559  }
  0x89   : > { %526 = vbcast.lane.b32.xlu1 %v520_v15, 264  ;;  %522 = vbcast.lane.b32.xlu0 %v520_v15, 256  ;;  %v1800_v15 = vrot.slane %v7699_v59, %v7609_v14 }
  0x8d   : > { %537 = vbcast.lane.b32.xlu1 %v531_v17, 264  ;;  %533 = vbcast.lane.b32.xlu0 %v531_v17, 256 }
  0x91   : > { %548 = vbcast.lane.b32.xlu1 %v542_v19, 264  ;;  %544 = vbcast.lane.b32.xlu0 %v542_v19, 256 }
  0x95   : > { %559 = vbcast.lane.b32.xlu1 %v553_v21, 264  ;;  %555 = vbcast.lane.b32.xlu0 %v553_v21, 256  ;;  %v1811_v21 = vrot.slane %v7699_v59, %v7614_v16 }
  0x99   : > { %570 = vbcast.lane.b32.xlu1 %v564_v24, 264  ;;  %566 = vbcast.lane.b32.xlu0 %v564_v24, 256 }
  0x9d   : > { %581 = vbcast.lane.b32.xlu1 %v575_v26, 264  ;;  %577 = vbcast.lane.b32.xlu0 %v575_v26, 256  ;;  %v1822_v26 = vrot.slane %v7699_v59, %v7619_v18 }
  0xa1   : > { %592 = vbcast.lane.b32.xlu1 %v586_v27, 264  ;;  %588 = vbcast.lane.b32.xlu0 %v586_v27, 256 }
  0xa5   : > { %603 = vbcast.lane.b32.xlu1 %v597_v28, 264  ;;  %599 = vbcast.lane.b32.xlu0 %v597_v28, 256 }
  0xa9   : > { %614 = vbcast.lane.b32.xlu1 %v608_v29, 264  ;;  %610 = vbcast.lane.b32.xlu0 %v608_v29, 256  ;;  %v1833_v29 = vrot.slane %v7699_v59, %v7624_v20 }
  0xad   : > { %625 = vbcast.lane.b32.xlu1 %v619_v30, 264  ;;  %621 = vbcast.lane.b32.xlu0 %v619_v30, 256  ;;  %v6810_v30 = vld [vmem:[%s7568_s9 + $0x28] sm:$0xff] }
  0xb1   : > { %636 = vbcast.lane.b32.xlu1 %v630_v31, 264  ;;  %632 = vbcast.lane.b32.xlu0 %v630_v31, 256 }
  0xb5   : > { %647 = vbcast.lane.b32.xlu1 %v641_v32, 264  ;;  %643 = vbcast.lane.b32.xlu0 %v641_v32, 256 }
  0xb9   : > { %658 = vbcast.lane.b32.xlu1 %v652_v34, 264  ;;  %654 = vbcast.lane.b32.xlu0 %v652_v34, 256  ;;  %v7750_v34 = vmul.f32 0.25, %v6810_v30 }
  0xbb   : > { %12258 = vst [vmem:[#allocation19_spill] sm:$0xff] %v7750_v34 }
  0xbd   : > { %1101 = vbcast.lane.b32.xlu1 %v1095_v36, 264  ;;  %1097 = vbcast.lane.b32.xlu0 %v1095_v36, 256 }
  0xc1   : > { %1112 = vbcast.lane.b32.xlu1 %v1106_v37, 264  ;;  %1108 = vbcast.lane.b32.xlu0 %v1106_v37, 256 }
  0xc5   : > { %1123 = vbcast.lane.b32.xlu1 %v1117_v38, 264  ;;  %1119 = vbcast.lane.b32.xlu0 %v1117_v38, 256  ;;  %v1855_v38 = vrot.slane %v7750_v34, %v7588_v5 }
  0xc9   : > { %1134 = vbcast.lane.b32.xlu1 %v1128_v39, 264  ;;  %1130 = vbcast.lane.b32.xlu0 %v1128_v39, 256 }
  0xcd   : > { %1145 = vbcast.lane.b32.xlu1 %v1139_v40, 264  ;;  %1141 = vbcast.lane.b32.xlu0 %v1139_v40, 256 }
  0xd1   : > { %1156 = vbcast.lane.b32.xlu1 %v1150_v41, 264  ;;  %1152 = vbcast.lane.b32.xlu0 %v1150_v41, 256  ;;  %v1866_v41 = vrot.slane %v7750_v34, %v7591_v6 }
  0xd5   : > { %1167 = vbcast.lane.b32.xlu1 %v1161_v42, 264  ;;  %1163 = vbcast.lane.b32.xlu0 %v1161_v42, 256 }
  0xd9   : > { %1178 = vbcast.lane.b32.xlu1 %v1172_v44, 264  ;;  %1174 = vbcast.lane.b32.xlu0 %v1172_v44, 256  ;;  %v1877_v44 = vrot.slane %v7750_v34, %v7604_v12 }
  0xdd   : > { %1189 = vbcast.lane.b32.xlu1 %v1183_v46, 264  ;;  %1185 = vbcast.lane.b32.xlu0 %v1183_v46, 256 }
  0xe1   : > { %1200 = vbcast.lane.b32.xlu1 %v1194_v47, 264  ;;  %1196 = vbcast.lane.b32.xlu0 %v1194_v47, 256 }
  0xe5   : > { %1211 = vbcast.lane.b32.xlu1 %v1205_v48, 264  ;;  %1207 = vbcast.lane.b32.xlu0 %v1205_v48, 256  ;;  %v1888_v48 = vrot.slane %v7750_v34, %v7609_v14 }
  0xe9   : > { %1222 = vbcast.lane.b32.xlu1 %v1216_v49, 264  ;;  %1218 = vbcast.lane.b32.xlu0 %v1216_v49, 256 }
  0xed   : > { %1233 = vbcast.lane.b32.xlu1 %v1227_v50, 264  ;;  %1229 = vbcast.lane.b32.xlu0 %v1227_v50, 256 }
  0xef   : > { %v7686_v52 = vpop.permute.xlu1 %500  ;;  %v7688_v53 = vpop.permute.xlu0 %489 }
  0xf1   : > { %1244 = vbcast.lane.b32.xlu1 %v1238_v51, 264  ;;  %1240 = vbcast.lane.b32.xlu0 %v1238_v51, 256  ;;  %v1899_v51 = vrot.slane %v7750_v34, %v7614_v16 }
  0xf3   : > { %v7693_v56 = vpop.permute.xlu1 %504  ;;  %v7695_v57 = vpop.permute.xlu0 %493 }
  0xf5   : > { %1255 = vbcast.lane.b32.xlu1 %v1249_v54, 264  ;;  %1251 = vbcast.lane.b32.xlu0 %v1249_v54, 256 }
  0xf7   : > { %v7701_v60 = vpop.permute.xlu1 %515  ;;  %v7703_v61 = vpop.permute.xlu0 %511 }
  0xf9   : > { %1266 = vbcast.lane.b32.xlu1 %v1260_v58, 264  ;;  %1262 = vbcast.lane.b32.xlu0 %v1260_v58, 256  ;;  %v1910_v58 = vrot.slane %v7750_v34, %v7619_v18 }
  0xfb   : > { %v7707_v63 = vpop.permute.xlu1 %526  ;;  %v7709_v0 = vpop.permute.xlu0 %522 }
  0xfd   : > { %1773 = vbcast.lane.b32.xlu1 %v1767_v62, 264  ;;  %1769 = vbcast.lane.b32.xlu0 %v1767_v62, 256 }
  0xff   : > { %v7713_v4 = vpop.permute.xlu1 %537  ;;  %v7715_v8 = vpop.permute.xlu0 %533 }
 0x101   : > { %1784 = vbcast.lane.b32.xlu1 %v1778_v2, 264  ;;  %1780 = vbcast.lane.b32.xlu0 %v1778_v2, 256 }
 0x103   : > { %v7719_v11 = vpop.permute.xlu1 %548  ;;  %v7721_v13 = vpop.permute.xlu0 %544 }
 0x105   : > { %1795 = vbcast.lane.b32.xlu1 %v1789_v10, 264  ;;  %1791 = vbcast.lane.b32.xlu0 %v1789_v10, 256  ;;  %v1921_v10 = vrot.slane %v7750_v34, %v7624_v20 }
 0x107   : > { %v7725_v17 = vpop.permute.xlu1 %559  ;;  %v7727_v19 = vpop.permute.xlu0 %555 }
 0x109   : > { %1806 = vbcast.lane.b32.xlu1 %v1800_v15, 264  ;;  %1802 = vbcast.lane.b32.xlu0 %v1800_v15, 256  ;;  %v6813_v15 = vld [vmem:[%s7568_s9 + $0x30] sm:$0xff] }
 0x10a   : > { %v7801_v30 = vmul.f32 0.25, %v6813_v15 }
 0x10b   : > { %v7731_v23 = vpop.permute.xlu1 %570  ;;  %v7733_v24 = vpop.permute.xlu0 %566 }
 0x10c   : > { %12270 = vst [vmem:[#allocation31_spill] sm:$0xff] %v7801_v30  ;;  %v2461_v15 = vrot.slane %v7801_v30, %v7604_v12 }
 0x10d   : > { %1817 = vbcast.lane.b32.xlu1 %v1811_v21, 264  ;;  %1813 = vbcast.lane.b32.xlu0 %v1811_v21, 256 }
 0x10f   : > { %v7737_v27 = vpop.permute.xlu1 %581  ;;  %v7739_v28 = vpop.permute.xlu0 %577 }
 0x111   : > { %1828 = vbcast.lane.b32.xlu1 %v1822_v26, 264  ;;  %1824 = vbcast.lane.b32.xlu0 %v1822_v26, 256 }
 0x113   : > { %v7744_v31 = vpop.permute.xlu1 %592  ;;  %v7746_v32 = vpop.permute.xlu0 %588 }
 0x115   : > { %1839 = vbcast.lane.b32.xlu1 %v1833_v29, 264  ;;  %1835 = vbcast.lane.b32.xlu0 %v1833_v29, 256  ;;  %v1932_v29 = vrot.slane %v7750_v34, %v7629_v22 }
 0x117   : > { %v7752_v36 = vpop.permute.xlu1 %603  ;;  %v7754_v37 = vpop.permute.xlu0 %599 }
 0x119   : > { %1850 = vbcast.lane.b32.xlu1 %v1844_v33, 264  ;;  %1846 = vbcast.lane.b32.xlu0 %v1844_v33, 256 }
 0x11b   : > { %v7758_v39 = vpop.permute.xlu1 %614  ;;  %v7760_v40 = vpop.permute.xlu0 %610 }
 0x11d   : > { %1861 = vbcast.lane.b32.xlu1 %v1855_v38, 264  ;;  %1857 = vbcast.lane.b32.xlu0 %v1855_v38, 256 }
 0x11f   : > { %v7764_v42 = vpop.permute.xlu1 %625  ;;  %v7766_v43 = vpop.permute.xlu0 %621 }
 0x120   : > { %12259 = vst [vmem:[#allocation20_spill] sm:$0xff] %v7766_v43 }
 0x121   : > { %1872 = vbcast.lane.b32.xlu1 %v1866_v41, 264  ;;  %1868 = vbcast.lane.b32.xlu0 %v1866_v41, 256  ;;  %v2439_v41 = vrot.slane %v7801_v30, %v7588_v5 }
 0x123   : > { %v7770_v46 = vpop.permute.xlu1 %636  ;;  %v7772_v47 = vpop.permute.xlu0 %632 }
 0x124   : > { %12260 = vst [vmem:[#allocation21_spill] sm:$0xff] %v7770_v46  ;;  %12261 = vst [vmem:[#allocation22_spill] sm:$0xff] %v7772_v47 }
 0x125   : > { %1883 = vbcast.lane.b32.xlu1 %v1877_v44, 264  ;;  %1879 = vbcast.lane.b32.xlu0 %v1877_v44, 256 }
 0x127   : > { %v7776_v49 = vpop.permute.xlu1 %647  ;;  %v7778_v50 = vpop.permute.xlu0 %643 }
 0x128   : > { %12262 = vst [vmem:[#allocation23_spill] sm:$0xff] %v7776_v49  ;;  %12263 = vst [vmem:[#allocation24_spill] sm:$0xff] %v7778_v50 }
 0x129   : > { %1894 = vbcast.lane.b32.xlu1 %v1888_v48, 264  ;;  %1890 = vbcast.lane.b32.xlu0 %v1888_v48, 256 }
 0x12b   : > { %v7782_v54 = vpop.permute.xlu1 %658  ;;  %v7784_v55 = vpop.permute.xlu0 %654 }
 0x12c   : > { %12264 = vst [vmem:[#allocation25_spill] sm:$0xff] %v7782_v54  ;;  %12265 = vst [vmem:[#allocation26_spill] sm:$0xff] %v7784_v55 }
 0x12d   : > { %1905 = vbcast.lane.b32.xlu1 %v1899_v51, 264  ;;  %1901 = vbcast.lane.b32.xlu0 %v1899_v51, 256  ;;  %v2450_v51 = vrot.slane %v7801_v30, %v7591_v6 }
 0x12f   : > { %v7788_v62 = vpop.permute.xlu1 %1101  ;;  %v7790_v2 = vpop.permute.xlu0 %1097 }
 0x130   : > { %12266 = vst [vmem:[#allocation27_spill] sm:$0xff] %v7788_v62  ;;  %12267 = vst [vmem:[#allocation28_spill] sm:$0xff] %v7790_v2 }
 0x131   : > { %1916 = vbcast.lane.b32.xlu1 %v1910_v58, 264  ;;  %1912 = vbcast.lane.b32.xlu0 %v1910_v58, 256 }
 0x133   : > { %v7795_v21 = vpop.permute.xlu1 %1112  ;;  %v7797_v26 = vpop.permute.xlu0 %1108 }
 0x134   : > { %12268 = vst [vmem:[#allocation29_spill] sm:$0xff] %v7795_v21  ;;  %12269 = vst [vmem:[#allocation30_spill] sm:$0xff] %v7797_v26 }
 0x135   : > { %1927 = vbcast.lane.b32.xlu1 %v1921_v10, 264  ;;  %1923 = vbcast.lane.b32.xlu0 %v1921_v10, 256 }
 0x137   : > { %v7803_v33 = vpop.permute.xlu1 %1123  ;;  %v7805_v38 = vpop.permute.xlu0 %1119 }
 0x138   : > { %12271 = vst [vmem:[#allocation32_spill] sm:$0xff] %v7803_v33  ;;  %12272 = vst [vmem:[#allocation33_spill] sm:$0xff] %v7805_v38 }
 0x139   : > { %1938 = vbcast.lane.b32.xlu1 %v1932_v29, 264  ;;  %1934 = vbcast.lane.b32.xlu0 %v1932_v29, 256 }
 0x13b   : > { %v7809_v44 = vpop.permute.xlu1 %1134  ;;  %v7811_v48 = vpop.permute.xlu0 %1130 }
 0x13c   : > { %12273 = vst [vmem:[#allocation34_spill] sm:$0xff] %v7809_v44  ;;  %12274 = vst [vmem:[#allocation35_spill] sm:$0xff] %v7811_v48  ;;  %v6808_v48 = vld [vmem:[%s7576_s17 + $0x18] sm:$0xff] }
 0x13d   : > { %2445 = vbcast.lane.b32.xlu1 %v2439_v41, 264  ;;  %2441 = vbcast.lane.b32.xlu0 %v2439_v41, 256  ;;  %v2472_v41 = vrot.slane %v7801_v30, %v7609_v14 }
 0x13f   : > { %v7815_v58 = vpop.permute.xlu1 %1145  ;;  %v7817_v10 = vpop.permute.xlu0 %1141 }
 0x140   : > { %12275 = vst [vmem:[#allocation36_spill] sm:$0xff] %v7815_v58  ;;  %12276 = vst [vmem:[#allocation37_spill] sm:$0xff] %v7817_v10 }
 0x141   : > { %2456 = vbcast.lane.b32.xlu1 %v2450_v51, 264  ;;  %2452 = vbcast.lane.b32.xlu0 %v2450_v51, 256  ;;  %v2483_v51 = vrot.slane %v7801_v30, %v7614_v16 }
 0x143   : > { %v7821_v29 = vpop.permute.xlu1 %1156  ;;  %v7823_v7 = vpop.permute.xlu0 %1152 }
 0x144   : > { %12277 = vst [vmem:[#allocation38_spill] sm:$0xff] %v7821_v29  ;;  %12278 = vst [vmem:[#allocation39_spill] sm:$0xff] %v7823_v7 }
 0x145   : > { %2467 = vbcast.lane.b32.xlu1 %v2461_v15, 264  ;;  %2463 = vbcast.lane.b32.xlu0 %v2461_v15, 256  ;;  %v2494_v15 = vrot.slane %v7801_v30, %v7619_v18 }
 0x147   : > { %v7827_v3 = vpop.permute.xlu1 %1167  ;;  %v7829_v34 = vpop.permute.xlu0 %1163 }
 0x148   : > { %12279 = vst [vmem:[#allocation40_spill] sm:$0xff] %v7827_v3  ;;  %12280 = vst [vmem:[#allocation41_spill] sm:$0xff] %v7829_v34 }
 0x149   : > { %2478 = vbcast.lane.b32.xlu1 %v2472_v41, 264  ;;  %2474 = vbcast.lane.b32.xlu0 %v2472_v41, 256  ;;  %v2505_v41 = vrot.slane %v7801_v30, %v7624_v20 }
 0x14b   : > { %v7833_v45 = vpop.permute.xlu1 %1178  ;;  %v7835_v25 = vpop.permute.xlu0 %1174 }
 0x14c   : > { %12281 = vst [vmem:[#allocation42_spill] sm:$0xff] %v7833_v45  ;;  %12282 = vst [vmem:[#allocation43_spill] sm:$0xff] %v7835_v25  ;;  %v7852_v25 = vmul.f32 0.25, %v6814_v35 }
 0x14d   : > { %2489 = vbcast.lane.b32.xlu1 %v2483_v51, 264  ;;  %2485 = vbcast.lane.b32.xlu0 %v2483_v51, 256  ;;  %v2516_v51 = vrot.slane %v7801_v30, %v7629_v22 }
 0x14e   : > { %12287 = vst [vmem:[#allocation48_spill] sm:$0xff] %v7852_v25 }
 0x14f   : > { %v7839_v59 = vpop.permute.xlu1 %1189  ;;  %v7841_v9 = vpop.permute.xlu0 %1185 }
 0x150   : > { %12283 = vst [vmem:[#allocation44_spill] sm:$0xff] %v7839_v59  ;;  %12284 = vst [vmem:[#allocation45_spill] sm:$0xff] %v7841_v9 }
 0x151   : > { %2500 = vbcast.lane.b32.xlu1 %v2494_v15, 264  ;;  %2496 = vbcast.lane.b32.xlu0 %v2494_v15, 256  ;;  %v2527_v15 = vrot.slane %v7852_v25, %v7588_v5 }
 0x153   : > { %v7846_v54 = vpop.permute.xlu1 %1200  ;;  %v7848_v45 = vpop.permute.xlu0 %1196 }
 0x154   : > { %12285 = vst [vmem:[#allocation46_spill] sm:$0xff] %v7846_v54  ;;  %12286 = vst [vmem:[#allocation47_spill] sm:$0xff] %v7848_v45 }
 0x155   : > { %2511 = vbcast.lane.b32.xlu1 %v2505_v41, 264  ;;  %2507 = vbcast.lane.b32.xlu0 %v2505_v41, 256  ;;  %v2538_v41 = vrot.slane %v7852_v25, %v7591_v6 }
 0x157   : > { %v7854_v59 = vpop.permute.xlu1 %1211  ;;  %v7856_v9 = vpop.permute.xlu0 %1207 }
 0x158   : > { %12288 = vst [vmem:[#allocation49_spill] sm:$0xff] %v7854_v59  ;;  %12289 = vst [vmem:[#allocation50_spill] sm:$0xff] %v7856_v9 }
 0x159   : > { %2522 = vbcast.lane.b32.xlu1 %v2516_v51, 264  ;;  %2518 = vbcast.lane.b32.xlu0 %v2516_v51, 256  ;;  %v2549_v51 = vrot.slane %v7852_v25, %v7604_v12 }
 0x15b   : > { %v7860_v34 = vpop.permute.xlu1 %1222  ;;  %v7862_v54 = vpop.permute.xlu0 %1218 }
 0x15c   : > { %12290 = vst [vmem:[#allocation51_spill] sm:$0xff] %v7860_v34  ;;  %12291 = vst [vmem:[#allocation52_spill] sm:$0xff] %v7862_v54 }
 0x15d   : > { %2533 = vbcast.lane.b32.xlu1 %v2527_v15, 264  ;;  %2529 = vbcast.lane.b32.xlu0 %v2527_v15, 256  ;;  %v2560_v15 = vrot.slane %v7852_v25, %v7609_v14  ;;  %v2582_v14 = vrot.slane %v7852_v25, %v7619_v18  ;;  %v2604_v18 = vrot.slane %v7852_v25, %v7629_v22 }
 0x15f   : > { %v7866_v35 = vpop.permute.xlu1 %1233  ;;  %v7868_v30 = vpop.permute.xlu0 %1229 }
 0x160   : > { %12292 = vst [vmem:[#allocation53_spill] sm:$0xff] %v7866_v35  ;;  %12293 = vst [vmem:[#allocation54_spill] sm:$0xff] %v7868_v30 }
 0x161   : > { %2544 = vbcast.lane.b32.xlu1 %v2538_v41, 264  ;;  %2540 = vbcast.lane.b32.xlu0 %v2538_v41, 256  ;;  %v2571_v41 = vrot.slane %v7852_v25, %v7614_v16  ;;  %v2593_v16 = vrot.slane %v7852_v25, %v7624_v20 }
 0x163   : > { %v7872_v9 = vpop.permute.xlu1 %1244  ;;  %v7874_v59 = vpop.permute.xlu0 %1240 }
 0x164   : > { %12294 = vst [vmem:[#allocation55_spill] sm:$0xff] %v7872_v9  ;;  %12295 = vst [vmem:[#allocation56_spill] sm:$0xff] %v7874_v59  ;;  %v7345_v9 = vmov 1966171168  }
 0x165   : > { %2555 = vbcast.lane.b32.xlu1 %v2549_v51, 264  ;;  %2551 = vbcast.lane.b32.xlu0 %v2549_v51, 256  ;;  %v276_v59 = vunpack.c.l.s4 %v7345_v9 }
 0x167   : > { %v7878_v54 = vpop.permute.xlu1 %1255  ;;  %v7880_v6 = vpop.permute.xlu0 %1251 }
 0x168   : > { %12296 = vst [vmem:[#allocation57_spill] sm:$0xff] %v7878_v54  ;;  %12297 = vst [vmem:[#allocation58_spill] sm:$0xff] %v7880_v6 }
 0x169   : > { %2566 = vbcast.lane.b32.xlu1 %v2560_v15, 264  ;;  %2562 = vbcast.lane.b32.xlu0 %v2560_v15, 256  ;;  %v277_v15 = vunpack.c.0.s8 %v276_v59 }
 0x16b   : > { %v7884_v30 = vpop.permute.xlu1 %1266  ;;  %v7886_v12 = vpop.permute.xlu0 %1262 }
 0x16c   : > { %12298 = vst [vmem:[#allocation59_spill] sm:$0xff] %v7884_v30  ;;  %12299 = vst [vmem:[#allocation60_spill] sm:$0xff] %v7886_v12  ;;  %v270_v12 = vld [vmem:[%s7576_s17] sm:$0xff] }
 0x16d   : > { %2577 = vbcast.lane.b32.xlu1 %v2571_v41, 264  ;;  %2573 = vbcast.lane.b32.xlu0 %v2571_v41, 256  ;;  %v7901_v41 = vsub.s32 %v277_v15, %v7582_v1  ;;  %v662_v6 = vcombine.high %v270_v12, %v270_v12  ;;  %v271_v15 = vld [vmem:[%s7576_s17 + $0x8] sm:$0xff] }
 0x16f   : > { %v7890_v51 = vpop.permute.xlu1 %1773  ;;  %v7892_v54 = vpop.permute.xlu0 %1769  ;;  %12304 = vst [vmem:[#allocation65_spill] sm:$0xff] %v7901_v41  ;;  %v669_v20 = vrot.slane %v270_v12, %v7901_v41  ;;  %v676_v22 = vrot.slane %v662_v6, %v7901_v41  ;;  %v718_v12 = vrot.slane %v271_v15, %v7901_v41 }
 0x170   : > { %12300 = vst [vmem:[#allocation61_spill] sm:$0xff] %v7890_v51  ;;  %12301 = vst [vmem:[#allocation62_spill] sm:$0xff] %v7892_v54  ;;  %v1319_v51 = vcombine.high %v6808_v48, %v6808_v48 }
 0x171   : > { %2588 = vbcast.lane.b32.xlu1 %v2582_v14, 264  ;;  %2584 = vbcast.lane.b32.xlu0 %v2582_v14, 256  ;;  %v677_v35 = vcombine.high %v669_v20, %v669_v20  ;;  %v685_v45 = vrot.slane %v669_v20, %v7901_v41  ;;  %v726_v29 = vcombine.high %v718_v12, %v718_v12 }
 0x172   : > { %v1333_v55 = vrot.slane %v1319_v51, %v7901_v41 }
 0x173   : > { %v7896_v30 = vpop.permute.xlu1 %1784  ;;  %v7898_v9 = vpop.permute.xlu0 %1780  ;;  %v699_v25 = vrot.slane %v677_v35, %v7901_v41 }
 0x174   : > { %12302 = vst [vmem:[#allocation63_spill] sm:$0xff] %v7896_v30  ;;  %12303 = vst [vmem:[#allocation64_spill] sm:$0xff] %v7898_v9  ;;  %v6807_v30 = vld [vmem:[%s7576_s17 + $0x10] sm:$0xff]  ;;  %v734_v9 = vrot.slane %v718_v12, %v7901_v41 }
 0x175   : > { %2599 = vbcast.lane.b32.xlu1 %v2593_v16, 264  ;;  %2595 = vbcast.lane.b32.xlu0 %v2593_v16, 256  ;;  %v711_v16 = vcombine.high %v271_v15, %v271_v15  ;;  %v1270_v10 = vcombine.high %v6807_v30, %v6807_v30 }
 0x177   : > { %v7906_v59 = vpop.permute.xlu1 %1795  ;;  %v7908_v14 = vpop.permute.xlu0 %1791  ;;  %v725_v7 = vrot.slane %v711_v16, %v7901_v41 }
 0x178   : > { %12305 = vst [vmem:[#allocation66_spill] sm:$0xff] %v7906_v59  ;;  %12306 = vst [vmem:[#allocation67_spill] sm:$0xff] %v7908_v14  ;;  %v707_v14 = vcombine.high %v685_v45, %v685_v45 }
 0x179   : > { %2610 = vbcast.lane.b32.xlu1 %v2604_v18, 264  ;;  %2606 = vbcast.lane.b32.xlu0 %v2604_v18, 256  ;;  %v678_v18 = vcombine.high %v676_v22, %v676_v22  ;;  %v727_v6 = vcombine.high %v725_v7, %v725_v7  ;;  %v741_v54 = vrot.slane %v725_v7, %v7901_v41 }
 0x17a   : > { %v7939_v16 = vrot.slane %v707_v14, %v7588_v5  ;;  %v1326_v7 = vrot.slane %v6808_v48, %v7901_v41 }
 0x17b   : > { %v7911_v34 = vpop.permute.xlu1 %1806  ;;  %v7913_v1 = vpop.permute.xlu0 %1802  ;;  %v706_v15 = vrot.slane %v678_v18, %v7901_v41  ;;  %v756_v18 = vcombine.high %v734_v9, %v734_v9  ;;  %v755_v14 = vrot.slane %v727_v6, %v7901_v41  ;;  %v757_v33 = vcombine.high %v741_v54, %v741_v54 }
 0x17c   : > { %12307 = vst [vmem:[#allocation68_spill] sm:$0xff] %v7911_v34  ;;  %12308 = vst [vmem:[#allocation69_spill] sm:$0xff] %v7913_v1  ;;  %v709_v34 = vcombine.high %v699_v25, %v699_v25  ;;  %v692_v1 = vrot.slane %v676_v22, %v7901_v41  ;;  %v1342_v47 = vrot.slane %v1326_v7, %v7901_v41 }
 0x17d   : > { %v710_v58 = vcombine.high %v706_v15, %v706_v15  ;;  %v7990_v50 = vrot.slane %v755_v14, %v7588_v5  ;;  %v7995_v49 = vrot.slane %v757_v33, %v7588_v5 }
 0x17e   : > { %v7942_v22 = vrot.slane %v709_v34, %v7588_v5 }
 0x17f   : > { %v7919_v59 = vpop.permute.xlu1 %1817  ;;  %v7921_v3 = vpop.permute.xlu0 %1813  ;;  %12318 = vst [vmem:[#allocation79_spill] sm:$0xff] %v7990_v50  ;;  %12319 = vst [vmem:[#allocation80_spill] sm:$0xff] %v7995_v49 }
 0x180   : > { %12309 = vst [vmem:[#allocation70_spill] sm:$0xff] %v7919_v59  ;;  %12310 = vst [vmem:[#allocation71_spill] sm:$0xff] %v7921_v3  ;;  %v7932_v59 = vrot.slane %v699_v25, %v7588_v5  ;;  %v7935_v3 = vrot.slane %v685_v45, %v7588_v5  ;;  %v708_v25 = vcombine.high %v692_v1, %v692_v1 }
 0x181   : > { %v748_v45 = vrot.slane %v726_v29, %v7901_v41  ;;  %v759_v29 = vcombine.high %v755_v14, %v755_v14 }
 0x182   : > { %v7964_v6 = vrot.slane %v708_v25, %v7588_v5 }
 0x183   : > { %v7927_v35 = vpop.permute.xlu1 %1828  ;;  %v7929_v20 = vpop.permute.xlu0 %1824  ;;  %v758_v12 = vcombine.high %v748_v45, %v748_v45  ;;  %v7973_v21 = vrot.slane %v748_v45, %v7588_v5  ;;  %v7998_v51 = vrot.slane %v759_v29, %v7588_v5 }
 0x184   : > { %12311 = vst [vmem:[#allocation72_spill] sm:$0xff] %v7927_v35  ;;  %12312 = vst [vmem:[#allocation73_spill] sm:$0xff] %v7929_v20  ;;  %v1277_v35 = vrot.slane %v6807_v30, %v7901_v41  ;;  %v7947_v20 = vrot.slane %v692_v1, %v7588_v5  ;;  %v7958_v30 = vrot.slane %v706_v15, %v7588_v5 }
 0x185   : > { %v1284_v1 = vrot.slane %v1270_v10, %v7901_v41  ;;  %v7970_v15 = vrot.slane %v734_v9, %v7588_v5  ;;  %v7976_v10 = vrot.slane %v756_v18, %v7588_v5  ;;  %v7987_v9 = vrot.slane %v741_v54, %v7588_v5  ;;  %v6811_v18 = vld [vmem:[%s7576_s17 + $0x20] sm:$0xff]  ;;  %12320 = vst [vmem:[#allocation81_spill] sm:$0xff] %v7998_v51 }
 0x186   : > { %v1285_v38 = vcombine.high %v1277_v35, %v1277_v35  ;;  %v1293_v26 = vrot.slane %v1277_v35, %v7901_v41  ;;  %v1334_v35 = vcombine.high %v1326_v7, %v1326_v7  ;;  %v1949_v33 = vrot.slane %v6811_v18, %v7901_v41 }
 0x187   : > { %v7953_v34 = vpop.permute.xlu1 %1839  ;;  %v7955_v44 = vpop.permute.xlu0 %1835  ;;  %12317 = vst [vmem:[#allocation78_spill] sm:$0xff] %v7987_v9  ;;  %v1300_v54 = vrot.slane %v1284_v1, %v7901_v41  ;;  %v1942_v49 = vcombine.high %v6811_v18, %v6811_v18 }
 0x188   : > { %12313 = vst [vmem:[#allocation74_spill] sm:$0xff] %v7953_v34  ;;  %12314 = vst [vmem:[#allocation75_spill] sm:$0xff] %v7955_v44  ;;  %v7967_v34 = vrot.slane %v710_v58, %v7588_v5  ;;  %v1286_v44 = vcombine.high %v1284_v1, %v1284_v1  ;;  %v7984_v58 = vrot.slane %v758_v12, %v7588_v5 }
 0x189   : > { %v1307_v45 = vrot.slane %v1285_v38, %v7901_v41  ;;  %v1335_v12 = vcombine.high %v1333_v55, %v1333_v55  ;;  %v1356_v38 = vrot.slane %v1334_v35, %v7901_v41  ;;  %v1349_v1 = vrot.slane %v1333_v55, %v7901_v41 }
 0x18a   : > { %v1314_v14 = vrot.slane %v1286_v44, %v7901_v41  ;;  %v1957_v35 = vcombine.high %v1949_v33, %v1949_v33 }
 0x18b   : > { %v7979_v48 = vpop.permute.xlu1 %1850  ;;  %v7981_v25 = vpop.permute.xlu0 %1846  ;;  %v1317_v2 = vcombine.high %v1307_v45, %v1307_v45  ;;  %v8013_v51 = vrot.slane %v1307_v45, %v7588_v5  ;;  %v1366_v44 = vcombine.high %v1356_v38, %v1356_v38  ;;  %v1363_v7 = vrot.slane %v1335_v12, %v7901_v41 }
 0x18c   : > { %12315 = vst [vmem:[#allocation76_spill] sm:$0xff] %v7979_v48  ;;  %12316 = vst [vmem:[#allocation77_spill] sm:$0xff] %v7981_v25  ;;  %v8001_v48 = vrot.slane %v1293_v26, %v7588_v5  ;;  %v1315_v25 = vcombine.high %v1293_v26, %v1293_v26  ;;  %v1316_v26 = vcombine.high %v1300_v54, %v1300_v54 }
 0x18d   : > { %12324 = vst [vmem:[#allocation85_spill] sm:$0xff] %v8013_v51  ;;  %v1318_v46 = vcombine.high %v1314_v14, %v1314_v14  ;;  %v8021_v18 = vrot.slane %v1317_v2, %v7588_v5  ;;  %v1365_v45 = vcombine.high %v1349_v1, %v1349_v1  ;;  %v1367_v55 = vcombine.high %v1363_v7, %v1363_v7 }
 0x18e   : > { %12321 = vst [vmem:[#allocation82_spill] sm:$0xff] %v8001_v48  ;;  %v1364_v48 = vcombine.high %v1342_v47, %v1342_v47  ;;  %v8018_v62 = vrot.slane %v1315_v25, %v7588_v5  ;;  %v1965_v51 = vrot.slane %v1949_v33, %v7901_v41  ;;  %v1956_v12 = vrot.slane %v1942_v49, %v7901_v41 }
 0x18f   : > { %v8008_v50 = vpop.permute.xlu1 %1861  ;;  %v8010_v29 = vpop.permute.xlu0 %1857  ;;  %v8036_v25 = vrot.slane %v1316_v26, %v7588_v5  ;;  %v8039_v2 = vrot.slane %v1318_v46, %v7588_v5  ;;  %v8052_v49 = vrot.slane %v1366_v44, %v7588_v5  ;;  %v8059_v46 = vrot.slane %v1363_v7, %v7588_v5 }
 0x190   : > { %12322 = vst [vmem:[#allocation83_spill] sm:$0xff] %v8008_v50  ;;  %12323 = vst [vmem:[#allocation84_spill] sm:$0xff] %v8010_v29  ;;  %v8024_v50 = vrot.slane %v1300_v54, %v7588_v5  ;;  %v8027_v29 = vrot.slane %v1314_v14, %v7588_v5  ;;  %v8042_v54 = vrot.slane %v1342_v47, %v7588_v5 }
 0x191   : > { %v8045_v14 = vrot.slane %v1356_v38, %v7588_v5  ;;  %v8049_v33 = vrot.slane %v1364_v48, %v7588_v5  ;;  %12329 = vst [vmem:[#allocation90_spill] sm:$0xff] %v8052_v49  ;;  %v1958_v26 = vcombine.high %v1956_v12, %v1956_v12  ;;  %12331 = vst [vmem:[#allocation92_spill] sm:$0xff] %v8059_v46 }
 0x192   : > { %12325 = vst [vmem:[#allocation86_spill] sm:$0xff] %v8027_v29  ;;  %v6812_v29 = vld [vmem:[%s7576_s17 + $0x28] sm:$0xff]  ;;  %v8062_v47 = vrot.slane %v1365_v45, %v7588_v5  ;;  %v1987_v38 = vcombine.high %v1965_v51, %v1965_v51  ;;  %v8068_v48 = vrot.slane %v1965_v51, %v7588_v5  ;;  %v8077_v7 = vmul.f32 %v7932_v59, %v7686_v52 }
 0x193   : > { %v8031_v43 = vpop.permute.xlu1 %1872  ;;  %v8033_v9 = vpop.permute.xlu0 %1868  ;;  %12328 = vst [vmem:[#allocation89_spill] sm:$0xff] %v8045_v14  ;;  %v8065_v14 = vrot.slane %v1367_v55, %v7588_v5  ;;  %v8081_v45 = vmul.f32 %v7935_v3, %v7688_v53  ;;  %v1972_v55 = vrot.slane %v1956_v12, %v7901_v41  ;;  %v8086_v51 = vmul.f32 %v7932_v59, %v7693_v56 }
 0x194   : > { %12326 = vst [vmem:[#allocation87_spill] sm:$0xff] %v8031_v43  ;;  %12327 = vst [vmem:[#allocation88_spill] sm:$0xff] %v8033_v9  ;;  %v1979_v43 = vrot.slane %v1957_v35, %v7901_v41  ;;  %v8056_v9 = vrot.slane %v1349_v1, %v7588_v5  ;;  %v1998_v35 = vrot.slane %v6812_v29, %v7901_v41 }
 0x195   : > { %12332 = vst [vmem:[#allocation93_spill] sm:$0xff] %v8062_v47  ;;  %12333 = vst [vmem:[#allocation94_spill] sm:$0xff] %v8065_v14  ;;  %v1991_v14 = vcombine.high %v6812_v29, %v6812_v29  ;;  %v1986_v46 = vrot.slane %v1958_v26, %v7901_v41  ;;  %v8094_v52 = vmul.f32 %v7935_v3, %v7695_v57 }
 0x196   : > { %12330 = vst [vmem:[#allocation91_spill] sm:$0xff] %v8056_v9  ;;  %v1989_v44 = vcombine.high %v1979_v43, %v1979_v43  ;;  %v8089_v47 = vrot.slane %v1979_v43, %v7588_v5  ;;  %v8098_v53 = vmul.f32 %v7939_v16, %v7701_v60  ;;  %v8101_v29 = vrot.slane %v1987_v38, %v7588_v5 }
 0x197   : > { %v8071_v49 = vpop.permute.xlu1 %1883  ;;  %v8073_v1 = vpop.permute.xlu0 %1879  ;;  %v1988_v12 = vcombine.high %v1972_v55, %v1972_v55  ;;  %v8105_v56 = vmul.f32 %v7939_v16, %v7703_v61  ;;  %v8109_v43 = vmul.f32 %v7942_v22, %v7707_v63  ;;  %v1990_v3 = vcombine.high %v1986_v46, %v1986_v46 }
 0x198   : > { %12334 = vst [vmem:[#allocation95_spill] sm:$0xff] %v8071_v49  ;;  %12335 = vst [vmem:[#allocation96_spill] sm:$0xff] %v8073_v1  ;;  %v2006_v49 = vcombine.high %v1998_v35, %v1998_v35  ;;  %v8112_v59 = vrot.slane %v1989_v44, %v7588_v5  ;;  %v8120_v26 = vmul.f32 %v7942_v22, %v7709_v0 }
 0x199   : > { %v8123_v38 = vrot.slane %v1972_v55, %v7588_v5  ;;  %v2014_v61 = vrot.slane %v1998_v35, %v7901_v41  ;;  %v2005_v63 = vrot.slane %v1991_v14, %v7901_v41  ;;  %v8129_v16 = vmul.f32 %v7947_v20, %v7713_v4 }
 0x19a   : > { %v8133_v44 = vmul.f32 %v7947_v20, %v7715_v8  ;;  %v2028_v0 = vrot.slane %v2006_v49, %v7901_v41  ;;  %v8141_v22 = vmul.f32 %v7958_v30, %v7719_v11  ;;  %v8145_v14 = vmul.f32 %v7958_v30, %v7721_v13  ;;  %v6815_v30 = vld [vmem:[%s7576_s17 + $0x30] sm:$0xff] }
 0x19b   : > { %v8114_v57 = vpop.permute.xlu1 %1894  ;;  %v8116_v60 = vpop.permute.xlu0 %1890  ;;  %v8148_v4 = vrot.slane %v1988_v12, %v7588_v5  ;;  %v2007_v35 = vcombine.high %v2005_v63, %v2005_v63  ;;  %v8152_v8 = vmul.f32 %v7964_v6, %v7725_v17  ;;  %v8156_v20 = vmul.f32 %v7964_v6, %v7727_v19 }
 0x19c   : > { %12336 = vst [vmem:[#allocation97_spill] sm:$0xff] %v8114_v57  ;;  %12337 = vst [vmem:[#allocation98_spill] sm:$0xff] %v8116_v60  ;;  %v8136_v57 = vrot.slane %v1986_v46, %v7588_v5  ;;  %v8159_v49 = vrot.slane %v1990_v3, %v7588_v5  ;;  %v2036_v11 = vcombine.high %v2014_v61, %v2014_v61  ;;  %v12349_v60 = vld [vmem:[#allocation20_spill] sm:$0xff] }
 0x19d   : > { %v8168_v55 = vmul.f32 %v7967_v34, %v7731_v23  ;;  %v8172_v17 = vmul.f32 %v7967_v34, %v7733_v24  ;;  %v8175_v19 = vrot.slane %v2014_v61, %v7588_v5  ;;  %v2038_v6 = vcombine.high %v2028_v0, %v2028_v0 }
 0x19e   : > { %v8179_v12 = vmul.f32 %v7970_v15, %v7737_v27  ;;  %v8183_v3 = vmul.f32 %v7970_v15, %v7739_v28  ;;  %v2021_v23 = vrot.slane %v2005_v63, %v7901_v41  ;;  %v8191_v24 = vmul.f32 %v7973_v21, %v7744_v31 }
 0x19f   : > { %v8161_v46 = vpop.permute.xlu1 %1905  ;;  %v8163_v13 = vpop.permute.xlu0 %1901  ;;  %v8195_v34 = vmul.f32 %v7973_v21, %v7746_v32  ;;  %v2035_v27 = vrot.slane %v2007_v35, %v7901_v41  ;;  %v2621_v61 = vrot.slane %v6815_v30, %v7901_v41  ;;  %v8201_v28 = vmul.f32 %v7976_v10, %v7752_v36 }
 0x1a0   : > { %12338 = vst [vmem:[#allocation99_spill] sm:$0xff] %v8161_v46  ;;  %12339 = vst [vmem:[#allocation100_spill] sm:$0xff] %v8163_v13  ;;  %v8186_v46 = vrot.slane %v2028_v0, %v7588_v5  ;;  %v8205_v15 = vmul.f32 %v7976_v10, %v7754_v37  ;;  %v8208_v63 = vrot.slane %v2036_v11, %v7588_v5  ;;  %v12346_v10 = vld [vmem:[#allocation78_spill] sm:$0xff] }
 0x1a1   : > { %v2037_v32 = vcombine.high %v2021_v23, %v2021_v23  ;;  %v8216_v21 = vmul.f32 %v7984_v58, %v7758_v39  ;;  %v8219_v35 = vrot.slane %v2038_v6, %v7588_v5  ;;  %v2039_v36 = vcombine.high %v2035_v27, %v2035_v27  ;;  %v12351_v6 = vld [vmem:[#allocation27_spill] sm:$0xff] }
 0x1a2   : > { %12340 = vst [vmem:[#allocation101_spill] sm:$0xff] %v8208_v63  ;;  %v2629_v13 = vcombine.high %v2621_v61, %v2621_v61  ;;  %v8223_v37 = vmul.f32 %v7984_v58, %v7760_v40  ;;  %v8227_v11 = vmul.f32 %v12346_v10, %v7764_v42  ;;  %v8234_v39 = vmul.f32 %v12346_v10, %v12349_v60  ;;  %v12354_v58 = vld [vmem:[#allocation21_spill] sm:$0xff] }
 0x1a3   : > { %v8210_v31 = vpop.permute.xlu1 %1916  ;;  %v8212_v0 = vpop.permute.xlu0 %1912  ;;  %12343 = vst [vmem:[#allocation104_spill] sm:$0xff] %v8216_v21  ;;  %12344 = vst [vmem:[#allocation105_spill] sm:$0xff] %v8219_v35  ;;  %v12352_v35 = vld [vmem:[#allocation82_spill] sm:$0xff]  ;;  %v8239_v21 = vrot.slane %v2035_v27, %v7588_v5  ;;  %v2637_v40 = vrot.slane %v2621_v61, %v7901_v41  ;;  %v8253_v10 = vrot.slane %v2037_v32, %v7588_v5  ;;  %v12364_v61 = vld [vmem:[#allocation80_spill] sm:$0xff] }
 0x1a4   : > { %12341 = vst [vmem:[#allocation102_spill] sm:$0xff] %v8210_v31  ;;  %12342 = vst [vmem:[#allocation103_spill] sm:$0xff] %v8212_v0  ;;  %v8230_v31 = vrot.slane %v2021_v23, %v7588_v5  ;;  %v2614_v0 = vcombine.high %v6815_v30, %v6815_v30  ;;  %v1449_v9 = vmul.f32 %v12352_v35, %v12351_v6  ;;  %v12359_v30 = vld [vmem:[#allocation28_spill] sm:$0xff]  ;;  %v12370_v32 = vld [vmem:[#allocation81_spill] sm:$0xff] }
 0x1a5   : > { %12345 = vst [vmem:[#allocation106_spill] sm:$0xff] %v8223_v37  ;;  %12347 = vst [vmem:[#allocation78_spill] sm:$0xff] %v8227_v11  ;;  %v12355_v37 = vld [vmem:[#allocation79_spill] sm:$0xff]  ;;  %v12357_v11 = vld [vmem:[#allocation22_spill] sm:$0xff]  ;;  %v1448_v60 = vmul.f32 %v12352_v35, %v12359_v30  ;;  %v2651_v35 = vrot.slane %v2629_v13, %v7901_v41  ;;  %v2659_v13 = vcombine.high %v2637_v40, %v2637_v40 }
 0x1a6   : > { %12348 = vst [vmem:[#allocation107_spill] sm:$0xff] %v8230_v31  ;;  %12350 = vst [vmem:[#allocation20_spill] sm:$0xff] %v8234_v39  ;;  %v8244_v42 = vmul.f32 %v12355_v37, %v12354_v58  ;;  %v8248_v23 = vmul.f32 %v12355_v37, %v12357_v11  ;;  %v12366_v58 = vld [vmem:[#allocation24_spill] sm:$0xff]  ;;  %v8268_v37 = vrot.slane %v2039_v36, %v7588_v5  ;;  %v12369_v11 = vld [vmem:[#allocation26_spill] sm:$0xff] }
 0x1a7   : > { %12353 = vst [vmem:[#allocation27_spill] sm:$0xff] %v8239_v21  ;;  %12360 = vst [vmem:[#allocation79_spill] sm:$0xff] %v8253_v10  ;;  %v8255_v6 = vpop.permute.xlu1 %1927  ;;  %v8257_v27 = vpop.permute.xlu0 %1923  ;;  %v12363_v21 = vld [vmem:[#allocation23_spill] sm:$0xff]  ;;  %v8273_v30 = vmul.f32 %v12370_v32, %v12369_v11  ;;  %v12373_v10 = vld [vmem:[#allocation85_spill] sm:$0xff]  ;;  %v2723_v63 = vrot.slane %v2659_v13, %v7588_v5 }
 0x1a8   : > { %12356 = vst [vmem:[#allocation82_spill] sm:$0xff] %v8244_v42  ;;  %12358 = vst [vmem:[#allocation21_spill] sm:$0xff] %v8248_v23  ;;  %v8261_v39 = vmul.f32 %v12364_v61, %v12363_v21  ;;  %v8265_v42 = vmul.f32 %v12364_v61, %v12366_v58  ;;  %v12374_v23 = vld [vmem:[#allocation30_spill] sm:$0xff]  ;;  %v1513_v61 = vadd.f32 %v1449_v9, %v8094_v52  ;;  %v12375_v58 = vld [vmem:[#allocation32_spill] sm:$0xff] }
 0x1a9   : > { %12361 = vst [vmem:[#allocation22_spill] sm:$0xff] %v8255_v6  ;;  %12362 = vst [vmem:[#allocation28_spill] sm:$0xff] %v8257_v27  ;;  %v12372_v6 = vld [vmem:[#allocation29_spill] sm:$0xff]  ;;  %v1450_v21 = vmul.f32 %v12373_v10, %v12374_v23  ;;  %v1453_v36 = vmul.f32 %v8018_v62, %v12375_v58  ;;  %v12377_v32 = vld [vmem:[#allocation34_spill] sm:$0xff] }
 0x1aa   : > { %12365 = vst [vmem:[#allocation23_spill] sm:$0xff] %v8261_v39  ;;  %12367 = vst [vmem:[#allocation80_spill] sm:$0xff] %v8265_v42  ;;  %v1451_v27 = vmul.f32 %v12373_v10, %v12372_v6  ;;  %v2628_v39 = vrot.slane %v2614_v0, %v7901_v41  ;;  %v1512_v42 = vadd.f32 %v1448_v60, %v8081_v45  ;;  %v12376_v11 = vld [vmem:[#allocation33_spill] sm:$0xff]  ;;  %v12381_v10 = vld [vmem:[#allocation62_spill] sm:$0xff] }
 0x1ab   : > { %12368 = vst [vmem:[#allocation24_spill] sm:$0xff] %v8268_v37  ;;  %12371 = vst [vmem:[#allocation26_spill] sm:$0xff] %v8273_v30  ;;  %v2715_v37 = vrot.slane %v2637_v40, %v7588_v5  ;;  %v1452_v30 = vmul.f32 %v8018_v62, %v12376_v11  ;;  %v1455_v6 = vmul.f32 %v8021_v18, %v12377_v32  ;;  %v8289_v31 = vpop.permute.xlu1 %1938  ;;  %v8291_v23 = vpop.permute.xlu0 %1934  ;;  %v12380_v9 = vld [vmem:[#allocation61_spill] sm:$0xff]  ;;  %v12382_v60 = vld [vmem:[#allocation35_spill] sm:$0xff] }
 0x1ac   : > { %12378 = vst [vmem:[#allocation29_spill] sm:$0xff] %v8289_v31  ;;  %12379 = vst [vmem:[#allocation85_spill] sm:$0xff] %v8291_v23  ;;  %v2661_v0 = vcombine.high %v2651_v35, %v2651_v35  ;;  %v2121_v52 = vmul.f32 %v8068_v48, %v12380_v9  ;;  %v2120_v58 = vmul.f32 %v8068_v48, %v12381_v10  ;;  %v12383_v23 = vld [vmem:[#allocation36_spill] sm:$0xff]  ;;  %v12385_v13 = vld [vmem:[#allocation37_spill] sm:$0xff] }
 0x1ad   : > { %v2719_v40 = vrot.slane %v2651_v35, %v7588_v5  ;;  %v1515_v45 = vadd.f32 %v1451_v27, %v8086_v51  ;;  %v1514_v62 = vadd.f32 %v1450_v21, %v8077_v7  ;;  %v1454_v32 = vmul.f32 %v8021_v18, %v12382_v60  ;;  %v12384_v51 = vld [vmem:[#allocation64_spill] sm:$0xff] }
 0x1ae   : > { %v2644_v11 = vrot.slane %v2628_v39, %v7901_v41  ;;  %v1517_v31 = vadd.f32 %v1453_v36, %v8098_v53  ;;  %v1457_v9 = vmul.f32 %v8024_v50, %v12383_v23  ;;  %v2630_v48 = vcombine.high %v2628_v39, %v2628_v39 }
 0x1af   : > { %v1516_v35 = vadd.f32 %v1452_v30, %v8105_v56  ;;  %v8309_v10 = vadd.f32 %v1455_v6, %v8109_v43  ;;  %v2122_v7 = vmul.f32 %v8089_v47, %v12384_v51  ;;  %v2446_v27 = vpop.permute.xlu1 %2445  ;;  %v2442_v18 = vpop.permute.xlu0 %2441  ;;  %v2727_v21 = vrot.slane %v2661_v0, %v7588_v5  ;;  %v12386_v56 = vld [vmem:[#allocation63_spill] sm:$0xff] }
 0x1b0   : > { %v2185_v60 = vadd.f32 %v2121_v52, %v1513_v61  ;;  %v2184_v53 = vadd.f32 %v2120_v58, %v1512_v42  ;;  %v2793_v36 = vmul.f32 %v2715_v37, %v2446_v27  ;;  %v2792_v1 = vmul.f32 %v2715_v37, %v2442_v18  ;;  %v12387_v37 = vld [vmem:[#allocation38_spill] sm:$0xff]  ;;  %v12389_v52 = vld [vmem:[#allocation39_spill] sm:$0xff] }
 0x1b1   : > { %v1518_v23 = vadd.f32 %v1454_v32, %v8120_v26  ;;  %v1456_v39 = vmul.f32 %v8024_v50, %v12385_v13  ;;  %v2123_v43 = vmul.f32 %v8089_v47, %v12386_v56  ;;  %v8320_v30 = vrot.slane %v2644_v11, %v7588_v5  ;;  %v12388_v26 = vld [vmem:[#allocation86_spill] sm:$0xff]  ;;  %v12390_v47 = vld [vmem:[#allocation67_spill] sm:$0xff] }
 0x1b2   : > { %v8323_v6 = vadd.f32 %v1457_v9, %v8129_v16  ;;  %v8325_v51 = vadd.f32 %v2793_v36, %v2185_v60  ;;  %v8327_v61 = vadd.f32 %v2792_v1, %v2184_v53  ;;  %v2658_v42 = vrot.slane %v2630_v48, %v7901_v41  ;;  %v12392_v13 = vld [vmem:[#allocation66_spill] sm:$0xff] }
 0x1b3   : > { %v1459_v0 = vmul.f32 %v12388_v26, %v12387_v37  ;;  %v1458_v50 = vmul.f32 %v12388_v26, %v12389_v52  ;;  %v2186_v58 = vadd.f32 %v2122_v7, %v1514_v62  ;;  %v2124_v32 = vmul.f32 %v8101_v29, %v12390_v47  ;;  %v2457_v27 = vpop.permute.xlu1 %2456  ;;  %v2453_v18 = vpop.permute.xlu0 %2452  ;;  %v12391_v7 = vld [vmem:[#allocation40_spill] sm:$0xff]  ;;  %v8359_v47 = vld [vmem:[%s7576_s17 + $0x38] sm:$0xff] }
 0x1b4   : > { %v2795_v16 = vmul.f32 %v2719_v40, %v2457_v27  ;;  %v2794_v9 = vmul.f32 %v2719_v40, %v2453_v18  ;;  %v3324_v1 = vsel %vm2888_vm0, %v8325_v51, -inf  ;;  %v3321_v48 = vsel %vm2888_vm0, %v8327_v61, -inf }
 0x1b5   : > { %v1520_v60 = vadd.f32 %v1456_v39, %v8133_v44  ;;  %v2187_v53 = vadd.f32 %v2123_v43, %v1515_v45  ;;  %3325 = vmax.xlane.f32.xlu1 %v3324_v1  ;;  %3322 = vmax.xlane.f32.xlu0 %v3321_v48  ;;  %v2660_v62 = vcombine.high %v2644_v11, %v2644_v11  ;;  %v12393_v45 = vld [vmem:[#allocation69_spill] sm:$0xff]  ;;  %v12396_v48 = vld [vmem:[#allocation42_spill] sm:$0xff] }
 0x1b6   : > { %v1461_v36 = vmul.f32 %v8036_v25, %v12391_v7  ;;  %v2125_v56 = vmul.f32 %v8101_v29, %v12392_v13  ;;  %v8345_v40 = vadd.f32 %v2794_v9, %v2186_v58  ;;  %v8348_v37 = vrot.slane %v2658_v42, %v7588_v5  ;;  %v12394_v9 = vld [vmem:[#allocation41_spill] sm:$0xff]  ;;  %v12397_v7 = vld [vmem:[#allocation71_spill] sm:$0xff] }
 0x1b7   : > { %v8351_v26 = vadd.f32 %v1459_v0, %v8141_v22  ;;  %v1522_v44 = vadd.f32 %v1458_v50, %v8145_v14  ;;  %v2126_v39 = vmul.f32 %v8112_v59, %v12393_v45  ;;  %v2468_v11 = vpop.permute.xlu1 %2467  ;;  %v2464_v43 = vpop.permute.xlu0 %2463  ;;  %v8356_v52 = vadd.f32 %v2795_v16, %v2187_v53  ;;  %v12395_v0 = vld [vmem:[#allocation68_spill] sm:$0xff] }
 0x1b8   : > { %v2188_v29 = vadd.f32 %v2124_v32, %v1516_v35  ;;  %v2797_v58 = vmul.f32 %v2723_v63, %v2468_v11  ;;  %v2796_v27 = vmul.f32 %v2723_v63, %v2464_v43  ;;  %v3327_v18 = vsel %vm2888_vm0, %v8345_v40, -inf }
 0x1b9   : > { %v1460_v22 = vmul.f32 %v8036_v25, %v12394_v9  ;;  %v2127_v14 = vmul.f32 %v8112_v59, %v12395_v0  ;;  %3328 = vmax.xlane.f32.xlu0 %v3327_v18  ;;  %v8368_v50 = vrot.slane %v2660_v62, %v7588_v5  ;;  %v2662_v16 = vcombine.high %v2658_v42, %v2658_v42  ;;  %v12400_v18 = vld [vmem:[#allocation73_spill] sm:$0xff] }
 0x1ba   : > { %v8371_v1 = vadd.f32 %v1461_v36, %v8152_v8  ;;  %v2189_v35 = vadd.f32 %v2125_v56, %v1517_v31  ;;  %v8373_v32 = vadd.f32 %v2796_v27, %v2188_v29  ;;  %v2670_v63 = vrot.slane %v8359_v47, %v7901_v41  ;;  %v12399_v29 = vld [vmem:[#allocation70_spill] sm:$0xff] }
 0x1bb   : > { %v1463_v25 = vmul.f32 %v8039_v2, %v12396_v48  ;;  %v2190_v53 = vadd.f32 %v2126_v39, %v1518_v23  ;;  %v2128_v59 = vmul.f32 %v8123_v38, %v12397_v7  ;;  %v2479_v13 = vpop.permute.xlu1 %2478  ;;  %v2475_v62 = vpop.permute.xlu0 %2474  ;;  %v3330_v42 = vsel %vm2888_vm0, %v8356_v52, -inf  ;;  %v12398_v39 = vld [vmem:[#allocation43_spill] sm:$0xff]  ;;  %v12402_v48 = vld [vmem:[#allocation72_spill] sm:$0xff] }
 0x1bc   : > { %v2799_v8 = vmul.f32 %v2727_v21, %v2479_v13  ;;  %v2798_v36 = vmul.f32 %v2727_v21, %v2475_v62  ;;  %v3333_v31 = vsel %vm2888_vm0, %v8373_v32, -inf  ;;  %v8385_v56 = vadd.f32 %v2797_v58, %v2189_v35  ;;  %v12403_v62 = vld [vmem:[#allocation45_spill] sm:$0xff] }
 0x1bd   : > { %v1524_v45 = vadd.f32 %v1460_v22, %v8156_v20  ;;  %v2191_v11 = vadd.f32 %v2127_v14, %v8309_v10  ;;  %3331 = vmax.xlane.f32.xlu0 %v3330_v42  ;;  %3334 = vmax.xlane.f32.xlu1 %v3333_v31  ;;  %v8390_v23 = vrot.slane %v2662_v16, %v7588_v5 }
 0x1be   : > { %v1462_v43 = vmul.f32 %v8039_v2, %v12398_v39  ;;  %v2129_v21 = vmul.f32 %v8123_v38, %v12399_v29  ;;  %v8396_v27 = vadd.f32 %v2798_v36, %v2190_v53  ;;  %v8399_v58 = vrot.slane %v2670_v63, %v7901_v41  ;;  %v12404_v36 = vld [vmem:[#allocation75_spill] sm:$0xff] }
 0x1bf   : > { %v8402_v20 = vadd.f32 %v1463_v25, %v8168_v55  ;;  %v2192_v10 = vadd.f32 %v2128_v59, %v1520_v60  ;;  %v2130_v9 = vmul.f32 %v8136_v57, %v12400_v18  ;;  %v2490_v22 = vpop.permute.xlu1 %2489  ;;  %v2486_v0 = vpop.permute.xlu0 %2485  ;;  %v8406_v14 = vadd.f32 %v2799_v8, %v2191_v11  ;;  %v12401_v55 = vld [vmem:[#allocation44_spill] sm:$0xff] }
 0x1c0   : > { %v2801_v2 = vmul.f32 %v8320_v30, %v2490_v22  ;;  %v2800_v38 = vmul.f32 %v8320_v30, %v2486_v0  ;;  %v3336_v16 = vsel %vm2888_vm0, %v8385_v56, -inf  ;;  %v3339_v35 = vsel %vm2888_vm0, %v8396_v27, -inf  ;;  %v12408_v22 = vld [vmem:[#allocation74_spill] sm:$0xff] }
 0x1c1   : > { %v1465_v60 = vmul.f32 %v8042_v54, %v12401_v55  ;;  %v2131_v25 = vmul.f32 %v8136_v57, %v12402_v48  ;;  %3337 = vmax.xlane.f32.xlu0 %v3336_v16  ;;  %3340 = vmax.xlane.f32.xlu1 %v3339_v35  ;;  %v2678_v53 = vcombine.high %v2670_v63, %v2670_v63  ;;  %v12409_v16 = vld [vmem:[#allocation77_spill] sm:$0xff] }
 0x1c2   : > { %v1526_v7 = vadd.f32 %v1462_v43, %v8172_v17  ;;  %v2193_v59 = vadd.f32 %v2129_v21, %v8323_v6  ;;  %v8420_v30 = vadd.f32 %v2800_v38, %v2192_v10  ;;  %v8424_v13 = vrot.slane %v8399_v58, %v7588_v5  ;;  %v12405_v21 = vld [vmem:[#allocation46_spill] sm:$0xff]  ;;  %v12406_v10 = vld [vmem:[#allocation89_spill] sm:$0xff] }
 0x1c3   : > { %v1464_v42 = vmul.f32 %v8042_v54, %v12403_v62  ;;  %v2194_v8 = vadd.f32 %v2130_v9, %v1522_v44  ;;  %v2132_v57 = vmul.f32 %v8148_v4, %v12404_v36  ;;  %v2501_v31 = vpop.permute.xlu1 %2500  ;;  %v2497_v11 = vpop.permute.xlu0 %2496  ;;  %v3342_v17 = vsel %vm2888_vm0, %v8406_v14, -inf  ;;  %v12407_v9 = vld [vmem:[#allocation47_spill] sm:$0xff] }
 0x1c4   : > { %v2803_v6 = vmul.f32 %v8348_v37, %v2501_v31  ;;  %v2802_v63 = vmul.f32 %v8348_v37, %v2497_v11  ;;  %v3345_v39 = vsel %vm2888_vm0, %v8420_v30, -inf  ;;  %v8436_v43 = vadd.f32 %v2801_v2, %v2193_v59  ;;  %v12410_v59 = vld [vmem:[#allocation76_spill] sm:$0xff] }
 0x1c5   : > { %v8439_v54 = vadd.f32 %v1465_v60, %v8179_v12  ;;  %v2195_v44 = vadd.f32 %v2131_v25, %v8351_v26  ;;  %3343 = vmax.xlane.f32.xlu0 %v3342_v17  ;;  %3346 = vmax.xlane.f32.xlu1 %v3345_v39  ;;  %v2700_v29 = vrot.slane %v2678_v53, %v7901_v41 }
 0x1c6   : > { %v1467_v18 = vmul.f32 %v12406_v10, %v12405_v21  ;;  %v1466_v37 = vmul.f32 %v12406_v10, %v12407_v9  ;;  %v2133_v0 = vmul.f32 %v8148_v4, %v12408_v22  ;;  %v8449_v2 = vadd.f32 %v2802_v63, %v2194_v8  ;;  %v12413_v10 = vld [vmem:[#allocation50_spill] sm:$0xff]  ;;  %v12414_v9 = vld [vmem:[#allocation83_spill] sm:$0xff] }
 0x1c7   : > { %v1528_v12 = vadd.f32 %v1464_v42, %v8183_v3  ;;  %v2196_v38 = vadd.f32 %v2132_v57, %v1524_v45  ;;  %v2134_v26 = vmul.f32 %v8159_v49, %v12409_v16  ;;  %v2512_v35 = vpop.permute.xlu1 %2511  ;;  %v2508_v55 = vpop.permute.xlu0 %2507  ;;  %v8454_v60 = vadd.f32 %v2803_v6, %v2195_v44  ;;  %v12411_v57 = vld [vmem:[#allocation49_spill] sm:$0xff] }
 0x1c8   : > { %v2805_v48 = vmul.f32 %v8368_v50, %v2512_v35  ;;  %v2804_v25 = vmul.f32 %v8368_v50, %v2508_v55  ;;  %v3348_v53 = vsel %vm2888_vm0, %v8436_v43, -inf  ;;  %v3351_v4 = vsel %vm2888_vm0, %v8449_v2, -inf }
 0x1c9   : > { %v2135_v3 = vmul.f32 %v8159_v49, %v12410_v59  ;;  %3349 = vmax.xlane.f32.xlu0 %v3348_v53  ;;  %3352 = vmax.xlane.f32.xlu1 %v3351_v4  ;;  %v2751_v45 = vrot.slane %v2700_v29, %v7588_v5  ;;  %v2708_v62 = vcombine.high %v8399_v58, %v8399_v58  ;;  %v12412_v49 = vld [vmem:[#allocation84_spill] sm:$0xff]  ;;  %v3354_v58 = vsel %vm2888_vm0, %v8454_v60, -inf }
 0x1ca   : > { %v1531_v42 = vadd.f32 %v1467_v18, %v8191_v24  ;;  %v1530_v50 = vadd.f32 %v1466_v37, %v8195_v34  ;;  %v2197_v8 = vadd.f32 %v2133_v0, %v8371_v1  ;;  %v8470_v36 = vadd.f32 %v2804_v25, %v2196_v38  ;;  %v12418_v25 = vld [vmem:[#allocation87_spill] sm:$0xff] }
 0x1cb   : > { %v1469_v31 = vmul.f32 %v8049_v33, %v12411_v57  ;;  %v2198_v11 = vadd.f32 %v2134_v26, %v1526_v7  ;;  %v2136_v17 = vmul.f32 %v8175_v19, %v12412_v49  ;;  %v2523_v6 = vpop.permute.xlu1 %2522  ;;  %v2519_v63 = vpop.permute.xlu0 %2518  ;;  %v2199_v44 = vadd.f32 %v2135_v3, %v8402_v20  ;;  %v12415_v20 = vld [vmem:[#allocation88_spill] sm:$0xff]  ;;  %v12421_v49 = vld [vmem:[#allocation101_spill] sm:$0xff] }
 0x1cc   : > { %v2807_v24 = vmul.f32 %v8390_v23, %v2523_v6  ;;  %v2806_v34 = vmul.f32 %v8390_v23, %v2519_v63  ;;  %v3357_v1 = vsel %vm2888_vm0, %v8470_v36, -inf  ;;  %v8482_v39 = vadd.f32 %v2805_v48, %v2197_v8  ;;  %v12416_v48 = vld [vmem:[#allocation51_spill] sm:$0xff]  ;;  %v12419_v8 = vld [vmem:[#allocation52_spill] sm:$0xff] }
 0x1cd   : > { %3355 = vmax.xlane.f32.xlu0 %v3354_v58  ;;  %3358 = vmax.xlane.f32.xlu1 %v3357_v1  ;;  %v2755_v7 = vrot.slane %v2708_v62, %v7588_v5  ;;  %v2663_v21 = vcombine.high %v8359_v47, %v8359_v47  ;;  %v1468_v18 = vmul.f32 %v8049_v33, %v12413_v10  ;;  %v12424_v10 = vld [vmem:[#allocation91_spill] sm:$0xff] }
 0x1ce   : > { %v2137_v23 = vmul.f32 %v8175_v19, %v12414_v9  ;;  %v8492_v37 = vadd.f32 %v2806_v34, %v2198_v11  ;;  %v2710_v22 = vcombine.high %v2700_v29, %v2700_v29  ;;  %v1533_v0 = vadd.f32 %v1469_v31, %v8201_v28  ;;  %v12417_v28 = vld [vmem:[#allocation90_spill] sm:$0xff]  ;;  %v12420_v11 = vld [vmem:[#allocation96_spill] sm:$0xff]  ;;  %v12425_v9 = vld [vmem:[#allocation95_spill] sm:$0xff] }
 0x1cf   : > { %v2200_v38 = vadd.f32 %v2136_v17, %v1528_v12  ;;  %v2138_v16 = vmul.f32 %v8186_v46, %v12415_v20  ;;  %v2534_v26 = vpop.permute.xlu1 %2533  ;;  %v2530_v35 = vpop.permute.xlu0 %2529  ;;  %v8497_v55 = vadd.f32 %v2807_v24, %v2199_v44  ;;  %v3360_v19 = vsel %vm2888_vm0, %v8482_v39, -inf  ;;  %v12422_v34 = vld [vmem:[#allocation104_spill] sm:$0xff] }
 0x1d0   : > { %v2809_v47 = vmul.f32 %v8424_v13, %v2534_v26  ;;  %v2808_v33 = vmul.f32 %v8424_v13, %v2530_v35  ;;  %v3363_v29 = vsel %vm2888_vm0, %v8492_v37, -inf  ;;  %v1471_v12 = vmul.f32 %v12417_v28, %v12416_v48  ;;  %v12427_v26 = vld [vmem:[#allocation98_spill] sm:$0xff]  ;;  %v12428_v35 = vld [vmem:[#allocation105_spill] sm:$0xff] }
 0x1d1   : > { %v2139_v53 = vmul.f32 %v8186_v46, %v12418_v25  ;;  %3361 = vmax.xlane.f32.xlu0 %v3360_v19  ;;  %3364 = vmax.xlane.f32.xlu1 %v3363_v29  ;;  %v2677_v4 = vrot.slane %v2663_v21, %v7901_v41  ;;  %v1532_v59 = vadd.f32 %v1468_v18, %v8205_v15  ;;  %v3366_v63 = vsel %vm2888_vm0, %v8497_v55, -inf  ;;  %v12423_v21 = vld [vmem:[#allocation53_spill] sm:$0xff]  ;;  %v12429_v25 = vld [vmem:[#allocation54_spill] sm:$0xff] }
 0x1d2   : > { %v2201_v13 = vadd.f32 %v2137_v23, %v8439_v54  ;;  %v8512_v3 = vadd.f32 %v2808_v33, %v2200_v38  ;;  %v2759_v62 = vrot.slane %v2710_v22, %v7588_v5  ;;  %v1470_v57 = vmul.f32 %v12417_v28, %v12419_v8  ;;  %v12426_v38 = vld [vmem:[#allocation106_spill] sm:$0xff] }
 0x1d3   : > { %v2202_v31 = vadd.f32 %v2138_v16, %v1530_v50  ;;  %v2140_v17 = vmul.f32 %v12421_v49, %v12420_v11  ;;  %v2545_v46 = vpop.permute.xlu1 %2544  ;;  %v2541_v6 = vpop.permute.xlu0 %2540  ;;  %v1535_v1 = vadd.f32 %v1471_v12, %v12422_v34  ;;  %v2203_v44 = vadd.f32 %v2139_v53, %v1531_v42  ;;  %v12431_v8 = vld [vmem:[#allocation78_spill] sm:$0xff] }
 0x1d4   : > { %v2811_v58 = vmul.f32 %v2751_v45, %v2545_v46  ;;  %v2810_v15 = vmul.f32 %v2751_v45, %v2541_v6  ;;  %v3369_v54 = vsel %vm2888_vm0, %v8512_v3, -inf  ;;  %v8523_v24 = vadd.f32 %v2809_v47, %v2201_v13 }
 0x1d5   : > { %3367 = vmax.xlane.f32.xlu0 %v3366_v63  ;;  %3370 = vmax.xlane.f32.xlu1 %v3369_v54  ;;  %v8527_v50 = vrot.slane %v2677_v4, %v7901_v41  ;;  %v1473_v18 = vmul.f32 %v12424_v10, %v12423_v21  ;;  %v2141_v23 = vmul.f32 %v12421_v49, %v12425_v9  ;;  %v12432_v49 = vld [vmem:[#allocation55_spill] sm:$0xff]  ;;  %v12434_v63 = vld [vmem:[#allocation100_spill] sm:$0xff] }
 0x1d6   : > { %v8533_v45 = vadd.f32 %v2810_v15, %v2202_v31  ;;  %v2679_v22 = vcombine.high %v2677_v4, %v2677_v4  ;;  %v1534_v20 = vadd.f32 %v1470_v57, %v12426_v38  ;;  %v2204_v16 = vadd.f32 %v2140_v17, %v1532_v59  ;;  %v12430_v4 = vld [vmem:[#allocation97_spill] sm:$0xff]  ;;  %v12433_v17 = vld [vmem:[#allocation92_spill] sm:$0xff] }
 0x1d7   : > { %v2142_v42 = vmul.f32 %v12428_v35, %v12427_v26  ;;  %v2556_v47 = vpop.permute.xlu1 %2555  ;;  %v2552_v33 = vpop.permute.xlu0 %2551  ;;  %v8538_v19 = vadd.f32 %v2811_v58, %v2203_v44  ;;  %v3372_v28 = vsel %vm2888_vm0, %v8523_v24, -inf  ;;  %v1472_v53 = vmul.f32 %v12424_v10, %v12429_v25  ;;  %v12435_v58 = vld [vmem:[#allocation107_spill] sm:$0xff]  ;;  %v12436_v9 = vld [vmem:[#allocation20_spill] sm:$0xff] }
 0x1d8   : > { %v2813_v29 = vmul.f32 %v2755_v7, %v2556_v47  ;;  %v2812_v48 = vmul.f32 %v2755_v7, %v2552_v33  ;;  %v3375_v12 = vsel %vm2888_vm0, %v8533_v45, -inf  ;;  %v2143_v59 = vmul.f32 %v12428_v35, %v12430_v4  ;;  %v12439_v47 = vld [vmem:[#allocation82_spill] sm:$0xff] }
 0x1d9   : > { %3373 = vmax.xlane.f32.xlu0 %v3372_v28  ;;  %3376 = vmax.xlane.f32.xlu1 %v3375_v12  ;;  %v2763_v13 = vrot.slane %v8527_v50, %v7588_v5  ;;  %v1537_v57 = vadd.f32 %v1473_v18, %v12431_v8  ;;  %v2205_v7 = vadd.f32 %v2141_v23, %v1533_v0  ;;  %v3378_v44 = vsel %vm2888_vm0, %v8538_v19, -inf  ;;  %v12441_v28 = vld [vmem:[#allocation27_spill] sm:$0xff] }
 0x1da   : > { %v8551_v31 = vadd.f32 %v2812_v48, %v2204_v16  ;;  %v2707_v11 = vrot.slane %v2679_v22, %v7901_v41  ;;  %v1475_v46 = vmul.f32 %v12433_v17, %v12432_v49  ;;  %v2206_v6 = vadd.f32 %v2142_v42, %v1534_v20  ;;  %v12437_v22 = vld [vmem:[#allocation56_spill] sm:$0xff]  ;;  %v12438_v16 = vld [vmem:[#allocation99_spill] sm:$0xff]  ;;  %v12442_v49 = vld [vmem:[#allocation21_spill] sm:$0xff] }
 0x1db   : > { %v2144_v15 = vmul.f32 %v12435_v58, %v12434_v63  ;;  %v2567_v54 = vpop.permute.xlu1 %2566  ;;  %v2563_v34 = vpop.permute.xlu0 %2562  ;;  %v8562_v18 = vadd.f32 %v2813_v29, %v2205_v7  ;;  %v1536_v23 = vadd.f32 %v1472_v53, %v12436_v9  ;;  %v1474_v38 = vmul.f32 %v12433_v17, %v12437_v22  ;;  %v12440_v48 = vld [vmem:[#allocation103_spill] sm:$0xff]  ;;  %v12443_v17 = vld [vmem:[#allocation58_spill] sm:$0xff] }
 0x1dc   : > { %v2815_v21 = vmul.f32 %v2759_v62, %v2567_v54  ;;  %v2814_v10 = vmul.f32 %v2759_v62, %v2563_v34  ;;  %v3381_v0 = vsel %vm2888_vm0, %v8551_v31, -inf  ;;  %v2207_v20 = vadd.f32 %v2143_v59, %v1535_v1  ;;  %v12445_v63 = vld [vmem:[#allocation102_spill] sm:$0xff] }
 0x1dd   : > { %3379 = vmax.xlane.f32.xlu0 %v3378_v44  ;;  %3382 = vmax.xlane.f32.xlu1 %v3381_v0  ;;  %v2145_v26 = vmul.f32 %v12435_v58, %v12438_v16  ;;  %v2767_v62 = vrot.slane %v2707_v11, %v7588_v5  ;;  %v2709_v42 = vcombine.high %v8527_v50, %v8527_v50  ;;  %v3384_v8 = vsel %vm2888_vm0, %v8562_v18, -inf  ;;  %v12448_v0 = vld [vmem:[#allocation79_spill] sm:$0xff] }
 0x1de   : > { %v8569_v35 = vadd.f32 %v2814_v10, %v2206_v6  ;;  %v1539_v33 = vadd.f32 %v1475_v46, %v12439_v47  ;;  %v2208_v29 = vadd.f32 %v2144_v15, %v1536_v23  ;;  %v2146_v12 = vmul.f32 %v12441_v28, %v12440_v48  ;;  %v12444_v46 = vld [vmem:[#allocation93_spill] sm:$0xff]  ;;  %v12447_v10 = vld [vmem:[#allocation28_spill] sm:$0xff] }
 0x1df   : > { %v2578_v25 = vpop.permute.xlu1 %2577  ;;  %v2574_v1 = vpop.permute.xlu0 %2573  ;;  %v8577_v53 = vadd.f32 %v2815_v21, %v2207_v20  ;;  %v1538_v50 = vadd.f32 %v1474_v38, %v12442_v49  ;;  %v1476_v6 = vmul.f32 %v12444_v46, %v12443_v17  ;;  %v2147_v58 = vmul.f32 %v12441_v28, %v12445_v63  ;;  %v12446_v15 = vld [vmem:[#allocation57_spill] sm:$0xff]  ;;  %v12451_v28 = vld [vmem:[#allocation94_spill] sm:$0xff]  ;;  %v12454_v49 = vld [vmem:[#allocation59_spill] sm:$0xff] }
 0x1e0   : > { %v2817_v4 = vmul.f32 %v2763_v13, %v2578_v25  ;;  %v2816_v59 = vmul.f32 %v2763_v13, %v2574_v1  ;;  %v3387_v7 = vsel %vm2888_vm0, %v8569_v35, -inf  ;;  %v1477_v54 = vmul.f32 %v12444_v46, %v12446_v15  ;;  %v12452_v1 = vld [vmem:[#allocation23_spill] sm:$0xff]  ;;  %v12455_v17 = vld [vmem:[#allocation85_spill] sm:$0xff]  ;;  %v12456_v46 = vld [vmem:[#allocation24_spill] sm:$0xff] }
 0x1e1   : > { %3385 = vmax.xlane.f32.xlu0 %v3384_v8  ;;  %3388 = vmax.xlane.f32.xlu1 %v3387_v7  ;;  %v2209_v13 = vadd.f32 %v2145_v26, %v1537_v57  ;;  %v2711_v44 = vcombine.high %v2707_v11, %v2707_v11  ;;  %v2210_v21 = vadd.f32 %v2146_v12, %v1538_v50  ;;  %v3390_v38 = vsel %vm2888_vm0, %v8577_v53, -inf  ;;  %v12449_v26 = vld [vmem:[#allocation80_spill] sm:$0xff]  ;;  %v12453_v8 = vld [vmem:[#allocation22_spill] sm:$0xff] }
 0x1e2   : > { %v8590_v34 = vadd.f32 %v2816_v59, %v2208_v29  ;;  %v2148_v9 = vmul.f32 %v12448_v0, %v12447_v10  ;;  %v2771_v20 = vrot.slane %v2709_v42, %v7588_v5  ;;  %v1540_v11 = vadd.f32 %v1476_v6, %v12449_v26  ;;  %v12450_v29 = vld [vmem:[#allocation60_spill] sm:$0xff]  ;;  %v12458_v10 = vld [vmem:[#allocation81_spill] sm:$0xff] }
 0x1e3   : > { %v2589_v23 = vpop.permute.xlu1 %2588  ;;  %v2585_v22 = vpop.permute.xlu0 %2584  ;;  %v8599_v57 = vadd.f32 %v2817_v4, %v2209_v13  ;;  %v1478_v12 = vmul.f32 %v12451_v28, %v12450_v29  ;;  %v2211_v25 = vadd.f32 %v2147_v58, %v1539_v33  ;;  %v1541_v59 = vadd.f32 %v1477_v54, %v12452_v1 }
 0x1e4   : > { %v2819_v16 = vmul.f32 %v2767_v62, %v2589_v23  ;;  %v2818_v47 = vmul.f32 %v2767_v62, %v2585_v22  ;;  %v3393_v48 = vsel %vm2888_vm0, %v8590_v34, -inf  ;;  %v2149_v42 = vmul.f32 %v12448_v0, %v12453_v8  ;;  %v12459_v23 = vld [vmem:[#allocation26_spill] sm:$0xff] }
 0x1e5   : > { %3391 = vmax.xlane.f32.xlu0 %v3390_v38  ;;  %3394 = vmax.xlane.f32.xlu1 %v3393_v48  ;;  %v2775_v62 = vrot.slane %v2711_v44, %v7588_v5  ;;  %v1479_v4 = vmul.f32 %v12451_v28, %v12454_v49  ;;  %v2212_v50 = vadd.f32 %v2148_v9, %v1540_v11  ;;  %v3396_v13 = vsel %vm2888_vm0, %v8599_v57, -inf  ;;  %v12457_v44 = vld [vmem:[#allocation25_spill] sm:$0xff] }
 0x1e6   : > { %v8607_v7 = vadd.f32 %v2818_v47, %v2210_v21  ;;  %v2150_v6 = vmul.f32 %v12456_v46, %v12455_v17  ;;  %v8614_v58 = vadd.f32 %v2819_v16, %v2211_v25  ;;  %v871_v0 = vmul.f32 %v12458_v10, %v12457_v44  ;;  %v12460_v38 = vld [vmem:[#allocation29_spill] sm:$0xff] }
 0x1e7   : > { %v2600_v63 = vpop.permute.xlu1 %2599  ;;  %v2596_v33 = vpop.permute.xlu0 %2595  ;;  %v1542_v9 = vadd.f32 %v1478_v12, %v12459_v23  ;;  %v2213_v22 = vadd.f32 %v2149_v42, %v1541_v59  ;;  %v2151_v16 = vmul.f32 %v12456_v46, %v12460_v38 }
 0x1e8   : > { %v2821_v15 = vmul.f32 %v2771_v20, %v2600_v63  ;;  %v2820_v54 = vmul.f32 %v2771_v20, %v2596_v33  ;;  %v3399_v21 = vsel %vm2888_vm0, %v8607_v7, -inf  ;;  %v1543_v20 = vadd.f32 %v1479_v4, %v871_v0 }
 0x1e9   : > { %3397 = vmax.xlane.f32.xlu0 %v3396_v13  ;;  %3400 = vmax.xlane.f32.xlu1 %v3399_v21  ;;  %v2214_v48 = vadd.f32 %v2150_v6, %v1542_v9  ;;  %v3402_v29 = vsel %vm2888_vm0, %v8614_v58, -inf }
 0x1ea   : > { %v8625_v47 = vadd.f32 %v2820_v54, %v2212_v50  ;;  %v8631_v1 = vadd.f32 %v2821_v15, %v2213_v22  ;;  %v2215_v59 = vadd.f32 %v2151_v16, %v1543_v20 }
 0x1eb   : > { %v2611_v26 = vpop.permute.xlu1 %2610  ;;  %v2607_v11 = vpop.permute.xlu0 %2606 }
 0x1ec   : > { %v2823_v28 = vmul.f32 %v2775_v62, %v2611_v26  ;;  %v2822_v25 = vmul.f32 %v2775_v62, %v2607_v11  ;;  %v3405_v12 = vsel %vm2888_vm0, %v8625_v47, -inf  ;;  %v3408_v42 = vsel %vm2888_vm0, %v8631_v1, -inf }
 0x1ed   : > { %3403 = vmax.xlane.f32.xlu0 %v3402_v29  ;;  %3406 = vmax.xlane.f32.xlu1 %v3405_v12 }
 0x1ee   : > { %v8633_v8 = vadd.f32 %v2822_v25, %v2214_v48  ;;  %v8639_v4 = vadd.f32 %v2823_v28, %v2215_v59 }
 0x1f0   : > { %v3411_v49 = vsel %vm2888_vm0, %v8633_v8, -inf  ;;  %v3414_v62 = vsel %vm2888_vm0, %v8639_v4, -inf }
 0x1f1   : > { %3409 = vmax.xlane.f32.xlu0 %v3408_v42  ;;  %3412 = vmax.xlane.f32.xlu1 %v3411_v49 }
 0x1f5   : > { %3415 = vmax.xlane.f32.xlu0 %v3414_v62 }
 0x242   : > { %v3326_v50 = vpop.xlane.xlu1 %3325  ;;  %v3323_v17 = vpop.xlane.xlu0 %3322 }
 0x243   : > { %v3418_v46 = vsub.f32 %v8325_v51, %v3326_v50  ;;  %v3417_v6 = vsub.f32 %v8327_v61, %v3323_v17 }
 0x245   : > { %v3451_v63 = vmul.f32 1.442695, %v3418_v46  ;;  %v3449_v33 = vmul.f32 1.442695, %v3417_v6 }
 0x246   : > { %v3329_v15 = vpop.xlane.xlu0 %3328 }
 0x247   : > { %6912 = vpow2.f32 %v3451_v63  ;;  %v3419_v54 = vsub.f32 %v8345_v40, %v3329_v15 }
 0x248   : > { %6914 = vpow2.f32 %v3449_v33 }
 0x249   : > { %v3453_v13 = vmul.f32 1.442695, %v3419_v54 }
 0x24a   : > { %v3335_v21 = vpop.xlane.xlu1 %3334  ;;  %v3332_v44 = vpop.xlane.xlu0 %3331 }
 0x24b   : > { %6916 = vpow2.f32 %v3453_v13  ;;  %v3421_v10 = vsub.f32 %v8373_v32, %v3335_v21  ;;  %v3420_v0 = vsub.f32 %v8356_v52, %v3332_v44 }
 0x24d   : > { %v3457_v23 = vmul.f32 1.442695, %v3421_v10  ;;  %v3455_v9 = vmul.f32 1.442695, %v3420_v0 }
 0x24e   : > { %v3341_v51 = vpop.xlane.xlu1 %3340  ;;  %v3338_v22 = vpop.xlane.xlu0 %3337 }
 0x24f   : > { %6918 = vpow2.f32 %v3457_v23  ;;  %v3423_v61 = vsub.f32 %v8396_v27, %v3341_v51  ;;  %v3422_v38 = vsub.f32 %v8385_v56, %v3338_v22 }
 0x250   : > { %6920 = vpow2.f32 %v3455_v9 }
 0x251   : > { %v8650_v40 = vpop.eup %6912  ;;  %v3461_v16 = vmul.f32 1.442695, %v3423_v61  ;;  %v3459_v20 = vmul.f32 1.442695, %v3422_v38 }
 0x252   : > { %v8652_v48 = vpop.eup %6914  ;;  %v3347_v26 = vpop.xlane.xlu1 %3346  ;;  %v3516_v52 = vsel %vm2888_vm0, %v8650_v40, 0.0 }
 0x253   : > { %v3344_v32 = vpop.xlane.xlu0 %3343  ;;  %6922 = vpow2.f32 %v3461_v16  ;;  %v3425_v11 = vsub.f32 %v8420_v30, %v3347_v26  ;;  %3517 = vadd.xlane.f32.xlu0 %v3516_v52  ;;  %v3513_v56 = vsel %vm2888_vm0, %v8652_v48, 0.0 }
 0x254   : > { %v3424_v29 = vsub.f32 %v8406_v14, %v3344_v32  ;;  %6924 = vpow2.f32 %v3459_v20  ;;  %3514 = vadd.xlane.f32.xlu1 %v3513_v56 }
 0x255   : > { %v8660_v27 = vpop.eup %6916  ;;  %v3465_v28 = vmul.f32 1.442695, %v3425_v11 }
 0x256   : > { %v3463_v25 = vmul.f32 1.442695, %v3424_v29  ;;  %v3353_v12 = vpop.xlane.xlu1 %3352  ;;  %v3519_v42 = vsel %vm2888_vm0, %v8660_v27, 0.0 }
 0x257   : > { %v3350_v59 = vpop.xlane.xlu0 %3349  ;;  %6926 = vpow2.f32 %v3465_v28  ;;  %v3427_v30 = vsub.f32 %v8449_v2, %v3353_v12 }
 0x258   : > { %v3426_v14 = vsub.f32 %v8436_v43, %v3350_v59  ;;  %6928 = vpow2.f32 %v3463_v25  ;;  %3520 = vadd.xlane.f32.xlu1 %v3519_v42 }
 0x259   : > { %v8666_v49 = vpop.eup %6918  ;;  %v3469_v62 = vmul.f32 1.442695, %v3427_v30 }
 0x25a   : > { %v3467_v50 = vmul.f32 1.442695, %v3426_v14  ;;  %v8668_v17 = vpop.eup %6920  ;;  %v3359_v46 = vpop.xlane.xlu1 %3358  ;;  %v3525_v63 = vsel %vm2888_vm0, %v8666_v49, 0.0 }
 0x25b   : > { %v3356_v6 = vpop.xlane.xlu0 %3355  ;;  %6930 = vpow2.f32 %v3469_v62  ;;  %v3429_v33 = vsub.f32 %v8470_v36, %v3359_v46  ;;  %v3522_v43 = vsel %vm2888_vm0, %v8668_v17, 0.0 }
 0x25c   : > { %v3428_v2 = vsub.f32 %v8454_v60, %v3356_v6  ;;  %6932 = vpow2.f32 %v3467_v50  ;;  %3526 = vadd.xlane.f32.xlu1 %v3525_v63  ;;  %3523 = vadd.xlane.f32.xlu0 %v3522_v43 }
 0x25d   : > { %v8676_v15 = vpop.eup %6922  ;;  %v3473_v54 = vmul.f32 1.442695, %v3429_v33 }
 0x25e   : > { %v3471_v13 = vmul.f32 1.442695, %v3428_v2  ;;  %v8678_v21 = vpop.eup %6924  ;;  %v3365_v44 = vpop.xlane.xlu1 %3364  ;;  %v3531_v0 = vsel %vm2888_vm0, %v8676_v15, 0.0 }
 0x25f   : > { %v3362_v10 = vpop.xlane.xlu0 %3361  ;;  %6934 = vpow2.f32 %v3473_v54  ;;  %v3431_v60 = vsub.f32 %v8492_v37, %v3365_v44  ;;  %v3528_v23 = vsel %vm2888_vm0, %v8678_v21, 0.0 }
 0x260   : > { %v3430_v36 = vsub.f32 %v8482_v39, %v3362_v10  ;;  %6936 = vpow2.f32 %v3471_v13  ;;  %3532 = vadd.xlane.f32.xlu1 %v3531_v0  ;;  %3529 = vadd.xlane.f32.xlu0 %v3528_v23 }
 0x261   : > { %v8686_v9 = vpop.eup %6926  ;;  %v3477_v51 = vmul.f32 1.442695, %v3431_v60 }
 0x262   : > { %12461 = vst [vmem:[#allocation30_spill] sm:$0xff] %v8686_v9  ;;  %v3475_v22 = vmul.f32 1.442695, %v3430_v36  ;;  %v8688_v61 = vpop.eup %6928  ;;  %v3371_v38 = vpop.xlane.xlu1 %3370  ;;  %v3537_v20 = vsel %vm2888_vm0, %v8686_v9, 0.0 }
 0x263   : > { %12462 = vst [vmem:[#allocation32_spill] sm:$0xff] %v8688_v61  ;;  %v3368_v16 = vpop.xlane.xlu0 %3367  ;;  %6938 = vpow2.f32 %v3477_v51  ;;  %v3433_v39 = vsub.f32 %v8512_v3, %v3371_v38  ;;  %v3534_v26 = vsel %vm2888_vm0, %v8688_v61, 0.0 }
 0x264   : > { %v3432_v37 = vsub.f32 %v8497_v55, %v3368_v16  ;;  %6940 = vpow2.f32 %v3475_v22  ;;  %3538 = vadd.xlane.f32.xlu1 %v3537_v20  ;;  %3535 = vadd.xlane.f32.xlu0 %v3534_v26 }
 0x265   : > { %v8696_v32 = vpop.eup %6930  ;;  %v3481_v52 = vmul.f32 1.442695, %v3433_v39 }
 0x266   : > { %12463 = vst [vmem:[#allocation33_spill] sm:$0xff] %v8696_v32  ;;  %v3479_v11 = vmul.f32 1.442695, %v3432_v37  ;;  %v8698_v29 = vpop.eup %6932  ;;  %v3377_v56 = vpop.xlane.xlu1 %3376  ;;  %v3543_v25 = vsel %vm2888_vm0, %v8696_v32, 0.0 }
 0x267   : > { %12464 = vst [vmem:[#allocation34_spill] sm:$0xff] %v8698_v29  ;;  %v3374_v28 = vpop.xlane.xlu0 %3373  ;;  %6942 = vpow2.f32 %v3481_v52  ;;  %v3435_v55 = vsub.f32 %v8533_v45, %v3377_v56  ;;  %v3540_v12 = vsel %vm2888_vm0, %v8698_v29, 0.0  ;;  %v8952_v29 = vld [vmem:[%s7576_s17 + $0x30] sm:$0xff] }
 0x268   : > { %v3434_v3 = vsub.f32 %v8523_v24, %v3374_v28  ;;  %6944 = vpow2.f32 %v3479_v11  ;;  %3544 = vadd.xlane.f32.xlu1 %v3543_v25  ;;  %3541 = vadd.xlane.f32.xlu0 %v3540_v12 }
 0x269   : > { %v8706_v59 = vpop.eup %6934  ;;  %v3485_v42 = vmul.f32 1.442695, %v3435_v55 }
 0x26a   : > { %12465 = vst [vmem:[#allocation61_spill] sm:$0xff] %v8706_v59  ;;  %v3483_v30 = vmul.f32 1.442695, %v3434_v3  ;;  %v8708_v14 = vpop.eup %6936  ;;  %v3383_v62 = vpop.xlane.xlu1 %3382  ;;  %v3549_v46 = vsel %vm2888_vm0, %v8706_v59, 0.0 }
 0x26b   : > { %12466 = vst [vmem:[#allocation62_spill] sm:$0xff] %v8708_v14  ;;  %v3380_v50 = vpop.xlane.xlu0 %3379  ;;  %6946 = vpow2.f32 %v3485_v42  ;;  %v3437_v24 = vsub.f32 %v8551_v31, %v3383_v62  ;;  %v3546_v6 = vsel %vm2888_vm0, %v8708_v14, 0.0 }
 0x26c   : > { %v3436_v45 = vsub.f32 %v8538_v19, %v3380_v50  ;;  %6948 = vpow2.f32 %v3483_v30  ;;  %3550 = vadd.xlane.f32.xlu1 %v3549_v46  ;;  %3547 = vadd.xlane.f32.xlu0 %v3546_v6 }
 0x26d   : > { %v8716_v63 = vpop.eup %6938  ;;  %v3489_v33 = vmul.f32 1.442695, %v3437_v24 }
 0x26e   : > { %12467 = vst [vmem:[#allocation35_spill] sm:$0xff] %v8716_v63  ;;  %v3487_v2 = vmul.f32 1.442695, %v3436_v45  ;;  %v8718_v43 = vpop.eup %6940  ;;  %v3389_v54 = vpop.xlane.xlu1 %3388  ;;  %v3555_v44 = vsel %vm2888_vm0, %v8716_v63, 0.0 }
 0x26f   : > { %12468 = vst [vmem:[#allocation36_spill] sm:$0xff] %v8718_v43  ;;  %v3386_v13 = vpop.xlane.xlu0 %3385  ;;  %6950 = vpow2.f32 %v3489_v33  ;;  %v3439_v19 = vsub.f32 %v8569_v35, %v3389_v54  ;;  %v3552_v10 = vsel %vm2888_vm0, %v8718_v43, 0.0 }
 0x270   : > { %v3438_v31 = vsub.f32 %v8562_v18, %v3386_v13  ;;  %6952 = vpow2.f32 %v3487_v2  ;;  %3556 = vadd.xlane.f32.xlu1 %v3555_v44  ;;  %3553 = vadd.xlane.f32.xlu0 %v3552_v10 }
 0x271   : > { %v8726_v0 = vpop.eup %6942  ;;  %v3493_v60 = vmul.f32 1.442695, %v3439_v19 }
 0x272   : > { %12469 = vst [vmem:[#allocation64_spill] sm:$0xff] %v8726_v0  ;;  %v3491_v36 = vmul.f32 1.442695, %v3438_v31  ;;  %v8728_v23 = vpop.eup %6944  ;;  %v3395_v51 = vpop.xlane.xlu1 %3394  ;;  %v3561_v38 = vsel %vm2888_vm0, %v8726_v0, 0.0 }
 0x273   : > { %12470 = vst [vmem:[#allocation37_spill] sm:$0xff] %v8728_v23  ;;  %v3392_v22 = vpop.xlane.xlu0 %3391  ;;  %6954 = vpow2.f32 %v3493_v60  ;;  %v3441_v18 = vsub.f32 %v8590_v34, %v3395_v51  ;;  %v3558_v16 = vsel %vm2888_vm0, %v8728_v23, 0.0  ;;  %v8933_v23 = vld [vmem:[%s7576_s17 + $0x20] sm:$0xff] }
 0x274   : > { %v3440_v35 = vsub.f32 %v8577_v53, %v3392_v22  ;;  %6956 = vpow2.f32 %v3491_v36  ;;  %3562 = vadd.xlane.f32.xlu1 %v3561_v38  ;;  %3559 = vadd.xlane.f32.xlu0 %v3558_v16 }
 0x275   : > { %v8736_v20 = vpop.eup %6946  ;;  %v3497_v39 = vmul.f32 1.442695, %v3441_v18 }
 0x276   : > { %12471 = vst [vmem:[#allocation63_spill] sm:$0xff] %v8736_v20  ;;  %v3495_v37 = vmul.f32 1.442695, %v3440_v35  ;;  %v8738_v26 = vpop.eup %6948  ;;  %v3401_v52 = vpop.xlane.xlu1 %3400  ;;  %v3567_v56 = vsel %vm2888_vm0, %v8736_v20, 0.0  ;;  %v8930_v20 = vld [vmem:[%s8804_s22 + $0x18] sm:$0xff] }
 0x277   : > { %12472 = vst [vmem:[#allocation38_spill] sm:$0xff] %v8738_v26  ;;  %v3398_v11 = vpop.xlane.xlu0 %3397  ;;  %6958 = vpow2.f32 %v3497_v39  ;;  %v3443_v53 = vsub.f32 %v8607_v7, %v3401_v52  ;;  %v3564_v28 = vsel %vm2888_vm0, %v8738_v26, 0.0  ;;  %v8926_v26 = vld [vmem:[%s7576_s17 + $0x8] sm:$0xff] }
 0x278   : > { %v3442_v34 = vsub.f32 %v8599_v57, %v3398_v11  ;;  %6960 = vpow2.f32 %v3495_v37  ;;  %3568 = vadd.xlane.f32.xlu1 %v3567_v56  ;;  %3565 = vadd.xlane.f32.xlu0 %v3564_v28 }
 0x279   : > { %v8746_v25 = vpop.eup %6950  ;;  %v3501_v55 = vmul.f32 1.442695, %v3443_v53 }
 0x27a   : > { %12473 = vst [vmem:[#allocation86_spill] sm:$0xff] %v8746_v25  ;;  %v3499_v3 = vmul.f32 1.442695, %v3442_v34  ;;  %v8748_v12 = vpop.eup %6952  ;;  %v3407_v42 = vpop.xlane.xlu1 %3406  ;;  %v3573_v62 = vsel %vm2888_vm0, %v8746_v25, 0.0 }
 0x27b   : > { %12474 = vst [vmem:[#allocation39_spill] sm:$0xff] %v8748_v12  ;;  %v3404_v30 = vpop.xlane.xlu0 %3403  ;;  %6962 = vpow2.f32 %v3501_v55  ;;  %v3445_v57 = vsub.f32 %v8625_v47, %v3407_v42  ;;  %v3570_v50 = vsel %vm2888_vm0, %v8748_v12, 0.0  ;;  %v8807_v55 = vld [vmem:[%s8804_s22] sm:$0xff] }
 0x27c   : > { %v3444_v7 = vsub.f32 %v8614_v58, %v3404_v30  ;;  %6964 = vpow2.f32 %v3499_v3  ;;  %3574 = vadd.xlane.f32.xlu1 %v3573_v62  ;;  %3571 = vadd.xlane.f32.xlu0 %v3570_v50  ;;  %12486 = vst [vmem:[#allocation44_spill] sm:$0xff] %v8807_v55  ;;  %v6817_v3 = vld [vmem:[%s8804_s22 + $0x10] sm:$0xff]  ;;  %v8811_v42 = vld [vmem:[%s8804_s22 + $0x20] sm:$0xff]  ;;  %v3860_v30 = vrot.slane %v8807_v55, %v7901_v41 }
 0x27d   : > { %v8756_v46 = vpop.eup %6954  ;;  %v3505_v24 = vmul.f32 1.442695, %v3445_v57  ;;  %v4614_v62 = vrot.slane %v6817_v3, %v7901_v41  ;;  %v8922_v12 = vld [vmem:[%s7576_s17] sm:$0xff] }
 0x27e   : > { %12475 = vst [vmem:[#allocation67_spill] sm:$0xff] %v8756_v46  ;;  %v3503_v45 = vmul.f32 1.442695, %v3444_v7  ;;  %v8758_v6 = vpop.eup %6956  ;;  %v3413_v33 = vpop.xlane.xlu1 %3412  ;;  %v3579_v54 = vsel %vm2888_vm0, %v8756_v46, 0.0  ;;  %v3868_v57 = vcombine.high %v3860_v30, %v3860_v30  ;;  %v5358_v7 = vrot.slane %v8811_v42, %v7901_v41  ;;  %v8919_v46 = vld [vmem:[%s8804_s22 + $0x8] sm:$0xff] }
 0x27f   : > { %12476 = vst [vmem:[#allocation40_spill] sm:$0xff] %v8758_v6  ;;  %v3410_v2 = vpop.xlane.xlu0 %3409  ;;  %6966 = vpow2.f32 %v3505_v24  ;;  %v3447_v58 = vsub.f32 %v8633_v8, %v3413_v33  ;;  %v3576_v13 = vsel %vm2888_vm0, %v8758_v6, 0.0  ;;  %v4622_v50 = vcombine.high %v4614_v62, %v4614_v62  ;;  %12495 = vst [vmem:[#allocation89_spill] sm:$0xff] %v8919_v46 }
 0x280   : > { %v3446_v47 = vsub.f32 %v8631_v1, %v3410_v2  ;;  %6968 = vpow2.f32 %v3503_v45  ;;  %3580 = vadd.xlane.f32.xlu1 %v3579_v54  ;;  %3577 = vadd.xlane.f32.xlu0 %v3576_v13  ;;  %v3853_v24 = vcombine.high %v8807_v55, %v8807_v55  ;;  %v3876_v45 = vrot.slane %v3860_v30, %v7901_v41  ;;  %v8956_v55 = vld [vmem:[%s7576_s17 + $0x38] sm:$0xff] }
 0x281   : > { %v8766_v44 = vpop.eup %6958  ;;  %v3509_v19 = vmul.f32 1.442695, %v3447_v58  ;;  %v4630_v33 = vrot.slane %v4614_v62, %v7901_v41  ;;  %v5366_v2 = vcombine.high %v5358_v7, %v5358_v7  ;;  %v3890_v54 = vrot.slane %v3868_v57, %v7901_v41 }
 0x282   : > { %12477 = vst [vmem:[#allocation66_spill] sm:$0xff] %v8766_v44  ;;  %v3507_v31 = vmul.f32 1.442695, %v3446_v47  ;;  %v8768_v10 = vpop.eup %6960  ;;  %v3585_v36 = vsel %vm2888_vm0, %v8766_v44, 0.0  ;;  %v5374_v58 = vrot.slane %v5358_v7, %v7901_v41  ;;  %v4644_v47 = vrot.slane %v4622_v50, %v7901_v41 }
 0x283   : > { %12478 = vst [vmem:[#allocation69_spill] sm:$0xff] %v8768_v10  ;;  %v3416_v60 = vpop.xlane.xlu0 %3415  ;;  %6970 = vpow2.f32 %v3509_v19  ;;  %v3582_v1 = vsel %vm2888_vm0, %v8768_v10, 0.0  ;;  %v3898_v13 = vcombine.high %v3876_v45, %v3876_v45  ;;  %v3867_v19 = vrot.slane %v3853_v24, %v7901_v41 }
 0x284   : > { %v3448_v8 = vsub.f32 %v8639_v4, %v3416_v60  ;;  %6972 = vpow2.f32 %v3507_v31  ;;  %3586 = vadd.xlane.f32.xlu1 %v3585_v36  ;;  %3583 = vadd.xlane.f32.xlu0 %v3582_v1  ;;  %v4652_v31 = vcombine.high %v4630_v33, %v4630_v33  ;;  %v4607_v60 = vcombine.high %v6817_v3, %v6817_v3  ;;  %v12488_v3 = vld [vmem:[#allocation14_spill] sm:$0xff] }
 0x285   : > { %v8775_v51 = vpop.eup %6962  ;;  %v8827_v36 = vrot.slane %v3876_v45, %v7588_v5  ;;  %v5388_v1 = vrot.slane %v5366_v2, %v7901_v41  ;;  %v8848_v30 = vrot.slane %v12488_v3, %v7901_v41  ;;  %v8851_v62 = vrot.slane %v3898_v13, %v7588_v5 }
 0x286   : > { %12479 = vst [vmem:[#allocation41_spill] sm:$0xff] %v8775_v51  ;;  %v3511_v22 = vmul.f32 1.442695, %v3448_v8  ;;  %v8777_v38 = vpop.eup %6964  ;;  %v3591_v18 = vsel %vm2888_vm0, %v8775_v51, 0.0  ;;  %v8830_v8 = vrot.slane %v4630_v33, %v7588_v5  ;;  %v8854_v57 = vrot.slane %v3867_v19, %v7901_v41  ;;  %v12490_v33 = vld [vmem:[#allocation18_spill] sm:$0xff]  ;;  %v8908_v51 = vld [vmem:[%s7576_s17 + $0x18] sm:$0xff] }
 0x287   : > { %12480 = vst [vmem:[#allocation68_spill] sm:$0xff] %v8777_v38  ;;  %v3588_v35 = vsel %vm2888_vm0, %v8777_v38, 0.0  ;;  %v8857_v7 = vrot.slane %v4652_v31, %v7588_v5  ;;  %v4621_v50 = vrot.slane %v4607_v60, %v7901_v41  ;;  %v8861_v24 = vrot.slane %v5388_v1, %v7588_v5 }
 0x288   : > { %6974 = vpow2.f32 %v3511_v22  ;;  %3592 = vadd.xlane.f32.xlu1 %v3591_v18  ;;  %3589 = vadd.xlane.f32.xlu0 %v3588_v35  ;;  %v8834_v22 = vrot.slane %v3890_v54, %v7588_v5  ;;  %v3900_v18 = vcombine.high %v3890_v54, %v3890_v54  ;;  %v4654_v35 = vcombine.high %v4644_v47, %v4644_v47 }
 0x289   : > { %v8783_v4 = vpop.eup %6966  ;;  %12489 = vst [vmem:[#allocation72_spill] sm:$0xff] %v8857_v7  ;;  %v8869_v2 = vrot.slane %v12490_v33, %v7901_v41  ;;  %v8873_v54 = vrot.slane %v8848_v30, %v7901_v41  ;;  %v5351_v31 = vcombine.high %v8811_v42, %v8811_v42  ;;  %v8897_v42 = vrot.slane %v8854_v57, %v7588_v5 }
 0x28a   : > { %12481 = vst [vmem:[#allocation42_spill] sm:$0xff] %v8783_v4  ;;  %v8785_v16 = vpop.eup %6968  ;;  %v3597_v39 = vsel %vm2888_vm0, %v8783_v4, 0.0  ;;  %v8879_v13 = vrot.slane %v4654_v35, %v7588_v5  ;;  %v4637_v35 = vrot.slane %v4621_v50, %v7901_v41  ;;  %v8904_v4 = vld [vmem:[%s7576_s17 + $0x10] sm:$0xff] }
 0x28b   : > { %12482 = vst [vmem:[#allocation71_spill] sm:$0xff] %v8785_v16  ;;  %v3594_v37 = vsel %vm2888_vm0, %v8785_v16, 0.0  ;;  %12493 = vst [vmem:[#allocation75_spill] sm:$0xff] %v8897_v42  ;;  %v5398_v16 = vcombine.high %v5388_v1, %v5388_v1  ;;  %v4623_v1 = vcombine.high %v4621_v50, %v4621_v50  ;;  %v5365_v63 = vrot.slane %v5351_v31, %v7901_v41 }
 0x28c   : > { %3598 = vadd.xlane.f32.xlu1 %v3597_v39  ;;  %3595 = vadd.xlane.f32.xlu0 %v3594_v37  ;;  %v8837_v39 = vrot.slane %v5374_v58, %v7588_v5  ;;  %v8840_v37 = vrot.slane %v4644_v47, %v7588_v5  ;;  %v3869_v47 = vcombine.high %v3867_v19, %v3867_v19 }
 0x28d   : > { %v8791_v52 = vpop.eup %6970  ;;  %12491 = vst [vmem:[#allocation45_spill] sm:$0xff] %v8879_v13  ;;  %v375_v19 = vrot.slane %v8873_v54, %v7588_v5  ;;  %v8944_v14 = vrot.slane %v4637_v35, %v7588_v5  ;;  %v5367_v31 = vcombine.high %v5365_v63, %v5365_v63  ;;  %v4651_v7 = vrot.slane %v4623_v1, %v7901_v41 }
 0x28e   : > { %12483 = vst [vmem:[#allocation43_spill] sm:$0xff] %v8791_v52  ;;  %v8793_v11 = vpop.eup %6972  ;;  %v3603_v56 = vsel %vm2888_vm0, %v8791_v52, 0.0 }
 0x28f   : > { %12484 = vst [vmem:[#allocation70_spill] sm:$0xff] %v8793_v11  ;;  %v3600_v53 = vsel %vm2888_vm0, %v8793_v11, 0.0  ;;  %v12492_v11 = vld [vmem:[#allocation31_spill] sm:$0xff]  ;;  %v452_v25 = vmul.f32 %v8922_v12, %v375_v19  ;;  %12496 = vst [vmem:[#allocation47_spill] sm:$0xff] %v8944_v14 }
 0x290   : > { %3604 = vadd.xlane.f32.xlu1 %v3603_v56  ;;  %3601 = vadd.xlane.f32.xlu0 %v3600_v53  ;;  %v5396_v56 = vcombine.high %v5374_v58, %v5374_v58  ;;  %v12487_v53 = vld [vmem:[#allocation16_spill] sm:$0xff]  ;;  %v8876_v58 = vrot.slane %v3900_v18, %v7588_v5  ;;  %v8891_v18 = vrot.slane %v12492_v11, %v7901_v41 }
 0x292   : > { %v8799_v34 = vpop.eup %6974  ;;  %v8901_v52 = vrot.slane %v5396_v56, %v7588_v5  ;;  %v8915_v6 = vrot.slane %v8891_v18, %v7901_v41  ;;  %v3897_v56 = vrot.slane %v3869_v47, %v7901_v41  ;;  %v8937_v47 = vld [vmem:[%s7576_s17 + $0x28] sm:$0xff] }
 0x293   : > { %12485 = vst [vmem:[#allocation73_spill] sm:$0xff] %v8799_v34  ;;  %v3606_v28 = vsel %vm2888_vm0, %v8799_v34, 0.0  ;;  %v8887_v34 = vrot.slane %v8869_v2, %v7901_v41 }
 0x294   : > { %3607 = vadd.xlane.f32.xlu0 %v3606_v28  ;;  %v8844_v28 = vrot.slane %v12487_v53, %v7901_v41  ;;  %12494 = vst [vmem:[#allocation46_spill] sm:$0xff] %v8901_v52  ;;  %v2327_v43 = vrot.slane %v8915_v6, %v7588_v5  ;;  %v3909_v52 = vrot.slane %v8919_v46, %v7901_v41 }
 0x295   : > { %v1655_v44 = vrot.slane %v8887_v34, %v7588_v5  ;;  %v3901_v42 = vcombine.high %v3897_v56, %v3897_v56  ;;  %v8970_v1 = vrot.slane %v3897_v56, %v7588_v5 }
 0x296   : > { %v8865_v45 = vrot.slane %v8844_v28, %v7901_v41  ;;  %v2405_v32 = vmul.f32 %v8956_v55, %v2327_v43 }
 0x297   : > { %v1732_v0 = vmul.f32 %v8933_v23, %v1655_v44  ;;  %v1733_v50 = vmul.f32 %v8937_v47, %v1655_v44  ;;  %v2404_v44 = vmul.f32 %v8952_v29, %v2327_v43  ;;  %12498 = vst [vmem:[#allocation77_spill] sm:$0xff] %v8970_v1 }
 0x298   : > { %v983_v60 = vrot.slane %v8865_v45, %v7588_v5 }
 0x29a   : > { %v1060_v38 = vmul.f32 %v8904_v4, %v983_v60  ;;  %v1061_v10 = vmul.f32 %v8908_v51, %v983_v60  ;;  %v453_v60 = vmul.f32 %v8926_v26, %v375_v19  ;;  %v8947_v19 = vrot.slane %v5398_v16, %v7588_v5 }
 0x29b   : > { %v4663_v16 = vrot.slane %v8930_v20, %v7901_v41 }
 0x29c   : > { %12497 = vst [vmem:[#allocation74_spill] sm:$0xff] %v8947_v19  ;;  %v1480_v13 = vadd.f32 %v1060_v38, %v452_v25  ;;  %v1481_v59 = vadd.f32 %v1061_v10, %v453_v60  ;;  %v3899_v10 = vcombine.high %v8854_v57, %v8854_v57  ;;  %v3917_v38 = vcombine.high %v3909_v52, %v3909_v52 }
 0x29d   : > { %v4653_v60 = vcombine.high %v4637_v35, %v4637_v35  ;;  %v5381_v19 = vrot.slane %v5365_v63, %v7901_v41  ;;  %v4671_v61 = vcombine.high %v4663_v16, %v4663_v16  ;;  %v8977_v57 = vrot.slane %v4651_v7, %v7588_v5 }
 0x29e   : > { %v2152_v14 = vadd.f32 %v1732_v0, %v1480_v13  ;;  %v2153_v25 = vadd.f32 %v1733_v50, %v1481_v59  ;;  %v3925_v0 = vrot.slane %v3909_v52, %v7901_v41  ;;  %v4655_v59 = vcombine.high %v4651_v7, %v4651_v7 }
 0x29f   : > { %v8974_v13 = vrot.slane %v5367_v31, %v7901_v41  ;;  %12499 = vst [vmem:[#allocation76_spill] sm:$0xff] %v8977_v57  ;;  %v4679_v63 = vrot.slane %v4663_v16, %v7901_v41  ;;  %v8985_v35 = vrot.slane %v3899_v10, %v7588_v5  ;;  %v3939_v52 = vrot.slane %v3917_v38, %v7901_v41 }
 0x2a0   : > { %v8965_v9 = vadd.f32 %v2404_v44, %v2152_v14  ;;  %v8967_v43 = vadd.f32 %v2405_v32, %v2153_v25  ;;  %v8989_v50 = vrot.slane %v5381_v19, %v7588_v5  ;;  %v8992_v44 = vld.sshfl [vmem:[%s8804_s22 + $0x30] sm:$0xff pattern:$0x75316420]  ;;  %v8995_v7 = vrot.slane %v3901_v42, %v7588_v5 }
 0x2a1   : > { %12500 = vst [vmem:[#allocation49_spill] sm:$0xff] %v8985_v35  ;;  %v8998_v31 = vrot.slane %v4653_v60, %v7588_v5  ;;  %v4693_v16 = vrot.slane %v4671_v61, %v7901_v41  ;;  %v5397_v25 = vcombine.high %v5381_v19, %v5381_v19  ;;  %v9002_v10 = vrot.slane %v3925_v0, %v7588_v5 }
 0x2a2   : > { %v2889_v14 = vsel %vm2888_vm0, %v8965_v9, -inf  ;;  %v2890_v32 = vsel %vm2888_vm0, %v8967_v43, -inf  ;;  %12501 = vst [vmem:[#allocation84_spill] sm:$0xff] %v8989_v50  ;;  %12502 = vst [vmem:[#allocation50_spill] sm:$0xff] %v8995_v7  ;;  %v9005_v38 = vrot.slane %v4655_v59, %v7588_v5  ;;  %v3947_v50 = vcombine.high %v3925_v0, %v3925_v0 }
 0x2a3   : > { %v2891_v56 = vmax.f32 %v2889_v14, %v2890_v32  ;;  %12503 = vst [vmem:[#allocation83_spill] sm:$0xff] %v8998_v31  ;;  %12504 = vst [vmem:[#allocation88_spill] sm:$0xff] %v9002_v10  ;;  %v9009_v32 = vrot.slane %v8974_v13, %v7588_v5  ;;  %v9012_v42 = vrot.slane %v4679_v63, %v7588_v5 }
 0x2a4   : > { %12505 = vst [vmem:[#allocation51_spill] sm:$0xff] %v9005_v38  ;;  %v4701_v60 = vcombine.high %v4679_v63, %v4679_v63  ;;  %v9015_v31 = vrot.slane %v3939_v52, %v7588_v5  ;;  %v897_v19 = vcombine.high %v8844_v28, %v8844_v28  ;;  %v289_v59 = vcombine.high %v8848_v30, %v8848_v30 }
 0x2a5   : > { %v2892_v14 = vrot.slane %v2891_v56, 4  ;;  %12506 = vst [vmem:[#allocation90_spill] sm:$0xff] %v9009_v32  ;;  %12507 = vst [vmem:[#allocation87_spill] sm:$0xff] %v9012_v42  ;;  %v3949_v38 = vcombine.high %v3939_v52, %v3939_v52  ;;  %v9022_v10 = vrot.slane %v4693_v16, %v7588_v5  ;;  %v9025_v0 = vrot.slane %v5397_v25, %v7588_v5 }
 0x2a6   : > { %12508 = vst [vmem:[#allocation52_spill] sm:$0xff] %v9015_v31  ;;  %v6110_v63 = vcombine.high %v8992_v44, %v8992_v44  ;;  %v9030_v42 = vrot.slane %v897_v19, %v7901_v41  ;;  %v1569_v28 = vcombine.high %v8869_v2, %v8869_v2  ;;  %v9038_v30 = vrot.slane %v3947_v50, %v7588_v5 }
 0x2a7   : > { %v2893_v61 = vmax.f32 %v2891_v56, %v2892_v14  ;;  %12509 = vst [vmem:[#allocation96_spill] sm:$0xff] %v9022_v10  ;;  %12510 = vst [vmem:[#allocation101_spill] sm:$0xff] %v9025_v0  ;;  %v9035_v56 = vrot.slane %v289_v59, %v7901_v41  ;;  %v3902_v52 = vcombine.high %v8919_v46, %v8919_v46 }
 0x2a8   : > { %12511 = vst [vmem:[#allocation104_spill] sm:$0xff] %v9038_v30  ;;  %v9043_v25 = vrot.slane %v4701_v60, %v7588_v5  ;;  %v4703_v14 = vcombine.high %v4693_v16, %v4693_v16  ;;  %v987_v19 = vrot.slane %v9030_v42, %v7588_v5  ;;  %v9048_v10 = vrot.slane %v1569_v28, %v7901_v41 }
 0x2a9   : > { %v2894_v32 = vrot.slane %v2893_v61, 2  ;;  %v2241_v2 = vcombine.high %v8891_v18, %v8891_v18  ;;  %v9053_v50 = vrot.slane %v3949_v38, %v7588_v5  ;;  %v4656_v59 = vcombine.high %v8930_v20, %v8930_v20 }
 0x2aa   : > { %12512 = vst [vmem:[#allocation53_spill] sm:$0xff] %v9043_v25  ;;  %v379_v60 = vrot.slane %v9035_v56, %v7588_v5  ;;  %v9060_v16 = vrot.slane %v6110_v63, %v7901_v41  ;;  %v1063_v28 = vmul.f32 %v8908_v51, %v987_v19  ;;  %v1659_v18 = vrot.slane %v9048_v10, %v7588_v5 }
 0x2ab   : > { %v2895_v0 = vmax.f32 %v2893_v61, %v2894_v32  ;;  %12513 = vst [vmem:[#allocation91_spill] sm:$0xff] %v9053_v50  ;;  %v1062_v61 = vmul.f32 %v8904_v4, %v987_v19  ;;  %v3916_v38 = vrot.slane %v3902_v52, %v7901_v41  ;;  %v9068_v25 = vrot.slane %v2241_v2, %v7901_v41 }
 0x2ac   : > { %12514 = vst [vmem:[#allocation95_spill] sm:$0xff] %v9060_v16  ;;  %v454_v20 = vmul.f32 %v8922_v12, %v379_v60  ;;  %v455_v50 = vmul.f32 %v8926_v26, %v379_v60  ;;  %v9073_v63 = vrot.slane %v4703_v14, %v7588_v5  ;;  %v1734_v31 = vmul.f32 %v8933_v23, %v1659_v18 }
 0x2ad   : > { %v2896_v32 = vrot.slane %v2895_v0, 1  ;;  %v1735_v19 = vmul.f32 %v8937_v47, %v1659_v18  ;;  %v4670_v57 = vrot.slane %v4656_v59, %v7901_v41  ;;  %v2331_v52 = vrot.slane %v9068_v25, %v7588_v5 }
 0x2ae   : > { %12515 = vst [vmem:[#allocation106_spill] sm:$0xff] %v9073_v63  ;;  %v1482_v7 = vadd.f32 %v1062_v61, %v454_v20  ;;  %v1483_v2 = vadd.f32 %v1063_v28, %v455_v50  ;;  %v927_v14 = vcombine.high %v8865_v45, %v8865_v45 }
 0x2af   : > { %v2897_v30 = vmax.f32 %v2895_v0, %v2896_v32  ;;  %v319_v0 = vcombine.high %v8873_v54, %v8873_v54  ;;  %v2406_v60 = vmul.f32 %v8952_v29, %v2331_v52  ;;  %v2407_v32 = vmul.f32 %v8956_v55, %v2331_v52 }
 0x2b0   : > { %v2154_v59 = vadd.f32 %v1734_v31, %v1482_v7  ;;  %v2155_v18 = vadd.f32 %v1735_v19, %v1483_v2  ;;  %v991_v50 = vrot.slane %v927_v14, %v7588_v5  ;;  %v2271_v31 = vcombine.high %v8915_v6, %v8915_v6 }
 0x2b1   : > { %v3033_v35 = vsub.f32 %v8965_v9, %v2897_v30  ;;  %v3034_v46 = vsub.f32 %v8967_v43, %v2897_v30  ;;  %v1599_v9 = vcombine.high %v8887_v34, %v8887_v34  ;;  %v3918_v43 = vcombine.high %v3916_v38, %v3916_v38 }
 0x2b2   : > { %v9091_v30 = vadd.f32 %v2406_v60, %v2154_v59  ;;  %v9093_v45 = vadd.f32 %v2407_v32, %v2155_v18  ;;  %v383_v54 = vrot.slane %v319_v0, %v7588_v5  ;;  %v1064_v61 = vmul.f32 %v8904_v4, %v991_v50 }
 0x2b3   : > { %v3065_v63 = vmul.f32 1.442695, %v3033_v35  ;;  %v3067_v1 = vmul.f32 1.442695, %v3034_v46  ;;  %v1065_v7 = vmul.f32 %v8908_v51, %v991_v50  ;;  %v1663_v35 = vrot.slane %v1599_v9, %v7588_v5 }
 0x2b4   : > { %v2898_v46 = vsel %vm2888_vm0, %v9091_v30, -inf  ;;  %v2899_v34 = vsel %vm2888_vm0, %v9093_v45, -inf  ;;  %v4672_v28 = vcombine.high %v4670_v57, %v4670_v57  ;;  %v456_v19 = vmul.f32 %v8922_v12, %v383_v54 }
 0x2b5   : > { %6976 = vpow2.f32 %v3065_v63  ;;  %v2900_v20 = vmax.f32 %v2898_v46, %v2899_v34  ;;  %v1736_v63 = vmul.f32 %v8933_v23, %v1663_v35  ;;  %v1737_v52 = vmul.f32 %v8937_v47, %v1663_v35 }
 0x2b6   : > { %6978 = vpow2.f32 %v3067_v1  ;;  %v2335_v2 = vrot.slane %v2271_v31, %v7588_v5  ;;  %v457_v1 = vmul.f32 %v8926_v26, %v383_v54  ;;  %v5399_v14 = vcombine.high %v8974_v13, %v8974_v13 }
 0x2b7   : > { %v9113_v0 = vrot.slane %v3916_v38, %v7901_v41  ;;  %v9116_v6 = vrot.slane %v4670_v57, %v7901_v41  ;;  %v2901_v60 = vrot.slane %v2900_v20, 4  ;;  %v1484_v32 = vadd.f32 %v1064_v61, %v456_v19 }
 0x2b8   : > { %v2408_v59 = vmul.f32 %v8952_v29, %v2335_v2  ;;  %v2409_v18 = vmul.f32 %v8956_v55, %v2335_v2  ;;  %v1485_v50 = vadd.f32 %v1065_v7, %v457_v1  ;;  %v9122_v9 = vrot.slane %v9060_v16, %v7588_v5 }
 0x2b9   : > { %v9125_v54 = vrot.slane %v3918_v43, %v7901_v41  ;;  %v9128_v13 = vrot.slane %v4672_v28, %v7901_v41  ;;  %v2902_v38 = vmax.f32 %v2900_v20, %v2901_v60  ;;  %v2156_v57 = vadd.f32 %v1736_v63, %v1484_v32 }
 0x2ba   : > { %12516 = vst [vmem:[#allocation98_spill] sm:$0xff] %v9122_v9  ;;  %v2157_v35 = vadd.f32 %v1737_v52, %v1485_v50  ;;  %v9131_v61 = vrot.slane %v5399_v14, %v7588_v5  ;;  %v929_v46 = vcombine.high %v9030_v42, %v9030_v42  ;;  %v321_v7 = vcombine.high %v9035_v56, %v9035_v56  ;;  %v7176_v9 = vld.sshfl [vmem:[%s8804_s22 + $0x28] sm:$0xff pattern:$0x75316420] }
 0x2bb   : > { %v9139_v34 = vrot.slane %v9113_v0, %v7588_v5  ;;  %v9143_v43 = vrot.slane %v9116_v6, %v7588_v5  ;;  %v2903_v31 = vrot.slane %v2902_v38, 2  ;;  %v9145_v28 = vadd.f32 %v2408_v59, %v2156_v57 }
 0x2bc   : > { %12517 = vst [vmem:[#allocation105_spill] sm:$0xff] %v9131_v61  ;;  %v9147_v20 = vadd.f32 %v2409_v18, %v2157_v35  ;;  %v995_v63 = vrot.slane %v929_v46, %v7588_v5  ;;  %v1601_v42 = vcombine.high %v9048_v10, %v9048_v10  ;;  %v387_v56 = vrot.slane %v321_v7, %v7588_v5 }
 0x2bd   : > { %12518 = vst [vmem:[#allocation54_spill] sm:$0xff] %v9143_v43  ;;  %v9157_v52 = vrot.slane %v9125_v54, %v7588_v5  ;;  %v9161_v2 = vrot.slane %v9128_v13, %v7588_v5  ;;  %v2904_v1 = vmax.f32 %v2902_v38, %v2903_v31  ;;  %v2907_v14 = vsel %vm2888_vm0, %v9145_v28, -inf }
 0x2be   : > { %v2908_v32 = vsel %vm2888_vm0, %v9147_v20, -inf  ;;  %v1066_v59 = vmul.f32 %v8904_v4, %v995_v63  ;;  %v1067_v18 = vmul.f32 %v8908_v51, %v995_v63  ;;  %v1667_v35 = vrot.slane %v1601_v42, %v7588_v5 }
 0x2bf   : > { %v9153_v19 = vpop.eup %6976  ;;  %12519 = vst [vmem:[#allocation97_spill] sm:$0xff] %v9157_v52  ;;  %12520 = vst [vmem:[#allocation78_spill] sm:$0xff] %v9161_v2  ;;  %v2905_v57 = vrot.slane %v2904_v1, 1  ;;  %v2909_v38 = vmax.f32 %v2907_v14, %v2908_v32  ;;  %v2273_v7 = vcombine.high %v9068_v25, %v9068_v25  ;;  %v458_v31 = vmul.f32 %v8922_v12, %v387_v56 }
 0x2c0   : > { %v9165_v60 = vpop.eup %6978  ;;  %v3129_v10 = vsel %vm2888_vm0, %v9153_v19, 0.0  ;;  %v459_v16 = vmul.f32 %v8926_v26, %v387_v56  ;;  %v1738_v63 = vmul.f32 %v8933_v23, %v1667_v35  ;;  %v1739_v43 = vmul.f32 %v8937_v47, %v1667_v35 }
 0x2c1   : > { %v3130_v50 = vsel %vm2888_vm0, %v9165_v60, 0.0  ;;  %v2906_v61 = vmax.f32 %v2904_v1, %v2905_v57  ;;  %v2910_v2 = vrot.slane %v2909_v38, 4  ;;  %v2339_v14 = vrot.slane %v2273_v7, %v7588_v5 }
 0x2c2   : > { %v3131_v46 = vadd.f32 %v3130_v50, %v3129_v10  ;;  %v1486_v32 = vadd.f32 %v1066_v59, %v458_v31  ;;  %v1487_v42 = vadd.f32 %v1067_v18, %v459_v16  ;;  %v3948_v10 = vcombine.high %v9113_v0, %v9113_v0 }
 0x2c3   : > { %v4702_v12 = vcombine.high %v9116_v6, %v9116_v6  ;;  %v2911_v25 = vmax.f32 %v2909_v38, %v2910_v2  ;;  %v2410_v1 = vmul.f32 %v8952_v29, %v2339_v14  ;;  %v2411_v50 = vmul.f32 %v8956_v55, %v2339_v14 }
 0x2c4   : > { %v3132_v52 = vrot.slane %v3131_v46, 4  ;;  %v2158_v57 = vadd.f32 %v1738_v63, %v1486_v32  ;;  %v3035_v7 = vsub.f32 %v9091_v30, %v2906_v61  ;;  %v882_v16 = vcombine.high %v12487_v53, %v12487_v53 }
 0x2c5   : > { %v2912_v59 = vrot.slane %v2911_v25, 2  ;;  %v2159_v18 = vadd.f32 %v1739_v43, %v1487_v42  ;;  %v5423_v38 = vrot.slane %v7176_v9, %v7901_v41  ;;  %v3036_v63 = vsub.f32 %v9093_v45, %v2906_v61 }
 0x2c6   : > { %v3133_v56 = vadd.f32 %v3132_v52, %v3131_v46  ;;  %v9193_v6 = vadd.f32 %v2410_v1, %v2158_v57  ;;  %v3950_v52 = vcombine.high %v9125_v54, %v9125_v54  ;;  %v5415_v46 = vcombine.high %v7176_v9, %v7176_v9 }
 0x2c7   : > { %v2913_v2 = vmax.f32 %v2911_v25, %v2912_v59  ;;  %v9199_v30 = vadd.f32 %v2411_v50, %v2159_v18  ;;  %v1554_v53 = vcombine.high %v12490_v33, %v12490_v33  ;;  %v9204_v43 = vrot.slane %v3948_v10, %v7588_v5 }
 0x2c8   : > { %v3134_v0 = vrot.slane %v3133_v56, 2  ;;  %v4704_v32 = vcombine.high %v9128_v13, %v9128_v13  ;;  %v3069_v54 = vmul.f32 1.442695, %v3035_v7  ;;  %v2916_v9 = vsel %vm2888_vm0, %v9193_v6, -inf }
 0x2c9   : > { %v2914_v42 = vrot.slane %v2913_v2, 1  ;;  %v2917_v45 = vsel %vm2888_vm0, %v9199_v30, -inf  ;;  %v9213_v61 = vrot.slane %v882_v16, %v7901_v41  ;;  %v9216_v33 = vrot.slane %v3950_v52, %v7588_v5 }
 0x2ca   : > { %v3135_v31 = vadd.f32 %v3134_v0, %v3133_v56  ;;  %v9219_v10 = vrot.slane %v4702_v12, %v7588_v5  ;;  %v9222_v13 = vrot.slane %v5423_v38, %v7588_v5  ;;  %v9225_v25 = vrot.slane %v5415_v46, %v7901_v41 }
 0x2cb   : > { %v3071_v56 = vmul.f32 1.442695, %v3036_v63  ;;  %v9228_v1 = vrot.slane %v1554_v53, %v7901_v41  ;;  %v9232_v50 = vrot.slane %v8992_v44, %v7901_v41  ;;  %v2915_v12 = vmax.f32 %v2913_v2, %v2914_v42 }
 0x2cc   : > { %12521 = vst [vmem:[#allocation55_spill] sm:$0xff] %v9225_v25  ;;  %v2918_v7 = vmax.f32 %v2916_v9, %v2917_v45  ;;  %v5445_v59 = vcombine.high %v5423_v38, %v5423_v38  ;;  %v9235_v16 = vrot.slane %v4704_v32, %v7588_v5  ;;  %v9239_v0 = vrot.slane %v9213_v61, %v7901_v41 }
 0x2cd   : > { %12522 = vst [vmem:[#allocation92_spill] sm:$0xff] %v9232_v50  ;;  %v6140_v18 = vcombine.high %v9232_v50, %v9232_v50  ;;  %v2226_v44 = vcombine.high %v12492_v11, %v12492_v11  ;;  %v274_v2 = vcombine.high %v12488_v3, %v12488_v3  ;;  %v9249_v38 = vrot.slane %v9225_v25, %v7588_v5  ;;  %v12544_v25 = vld [vmem:[#allocation32_spill] sm:$0xff] }
 0x2ce   : > { %12523 = vst [vmem:[#allocation100_spill] sm:$0xff] %v9239_v0  ;;  %v3037_v3 = vsub.f32 %v9145_v28, %v2915_v12  ;;  %v2919_v42 = vrot.slane %v2918_v7, 4  ;;  %v9263_v9 = vrot.slane %v5445_v59, %v7588_v5 }
 0x2cf   : > { %12524 = vst [vmem:[#allocation107_spill] sm:$0xff] %v9249_v38  ;;  %v9270_v45 = vrot.slane %v6140_v18, %v7588_v5  ;;  %v9275_v28 = vrot.slane %v2226_v44, %v7901_v41  ;;  %v12581_v38 = vld [vmem:[#allocation76_spill] sm:$0xff] }
 0x2d0   : > { %12528 = vst [vmem:[#allocation82_spill] sm:$0xff] %v9263_v9  ;;  %v3073_v44 = vmul.f32 1.442695, %v3037_v3 }
 0x2d1   : > { %12529 = vst [vmem:[#allocation103_spill] sm:$0xff] %v9270_v45  ;;  %v12551_v45 = vld [vmem:[#allocation33_spill] sm:$0xff] }
 0x2e0   : > { %v3518_v26 = vpop.xlane.xlu0 %3517 }
 0x2e1   : > { %v3515_v35 = vpop.xlane.xlu1 %3514  ;;  %6980 = vrcp.f32 %v3518_v26  ;;  %v3136_v26 = vrot.slane %v3135_v31, 1 }
 0x2e2   : > { %6982 = vrcp.f32 %v3515_v35 }
 0x2e3   : > { %v3137_v53 = vadd.f32 %v3136_v26, %v3135_v31  ;;  %v999_v31 = vrot.slane %v9239_v0, %v7588_v5  ;;  %v9278_v26 = vrot.slane %v274_v2, %v7901_v41  ;;  %v2920_v2 = vmax.f32 %v2918_v7, %v2919_v42 }
 0x2e5   : > { %v3521_v14 = vpop.xlane.xlu1 %3520 }
 0x2e6   : > { %6984 = vrcp.f32 %v3521_v14  ;;  %v9256_v14 = vrot.slane %v9228_v1, %v7901_v41 }
 0x2e7   : > { %6986 = vpow2.f32 %v3069_v54 }
 0x2e8   : > { %12526 = vst [vmem:[#allocation56_spill] sm:$0xff] %v9256_v14  ;;  %v1671_v59 = vrot.slane %v9256_v14, %v7588_v5 }
 0x2e9   : > { %v3527_v57 = vpop.xlane.xlu1 %3526  ;;  %v3524_v35 = vpop.xlane.xlu0 %3523 }
 0x2ea   : > { %6988 = vrcp.f32 %v3527_v57 }
 0x2eb   : > { %v6981_v52 = vpop.eup %6980  ;;  %6990 = vrcp.f32 %v3524_v35  ;;  %v3038_v35 = vsub.f32 %v9147_v20, %v2915_v12  ;;  %v9292_v20 = vmul.f32 %v8908_v51, %v999_v31 }
 0x2ec   : > { %v6983_v46 = vpop.eup %6982  ;;  %v9252_v63 = vmul.f32 %v6981_v52, %v8650_v40  ;;  %6992 = vpow2.f32 %v3071_v56 }
 0x2ed   : > { %v3533_v32 = vpop.xlane.xlu1 %3532  ;;  %v3530_v54 = vpop.xlane.xlu0 %3529  ;;  %v9259_v11 = vmul.f32 %v6983_v46, %v8652_v48  ;;  %v3075_v42 = vmul.f32 1.442695, %v3038_v35  ;;  %v9325_v35 = vmul.f32 %v8937_v47, %v1671_v59 }
 0x2ee   : > { %12525 = vst [vmem:[#allocation20_spill] sm:$0xff] %v9252_v63  ;;  %6994 = vrcp.f32 %v3533_v32  ;;  %v4032_v40 = vmul.f32 %v8827_v36, %v9252_v63  ;;  %v9289_v32 = vmul.f32 %v8904_v4, %v999_v31  ;;  %v4786_v7 = vmul.f32 %v8830_v8, %v9252_v63 }
 0x2ef   : > { %12527 = vst [vmem:[#allocation99_spill] sm:$0xff] %v9259_v11  ;;  %6996 = vrcp.f32 %v3530_v54  ;;  %v4031_v48 = vmul.f32 %v8827_v36, %v9259_v11  ;;  %v9304_v54 = vrot.slane %v9275_v28, %v7901_v41  ;;  %v4785_v51 = vmul.f32 %v8830_v8, %v9259_v11  ;;  %12535 = vst [vmem:[#allocation57_spill] sm:$0xff] %v9325_v35 }
 0x2f0   : > { %v6985_v56 = vpop.eup %6984  ;;  %v4066_v57 = vsel %vm2888_vm0, %v4032_v40, 0.0  ;;  %6998 = vrcp.f32 %v3137_v53  ;;  %v5530_v3 = vmul.f32 %v8837_v39, %v9252_v63  ;;  %v9311_v40 = vmul.f32 %v8933_v23, %v1671_v59 }
 0x2f1   : > { %v3539_v18 = vpop.xlane.xlu1 %3538  ;;  %v3536_v52 = vpop.xlane.xlu0 %3535  ;;  %v4063_v46 = vsel %vm2888_vm0, %v4031_v48, 0.0  ;;  %4067 = vadd.xlane.f32.xlu0 %v4066_v57  ;;  %v9286_v36 = vmul.f32 %v6985_v56, %v8660_v27  ;;  %12531 = vst [vmem:[#allocation21_spill] sm:$0xff] %v9304_v54  ;;  %v5529_v23 = vmul.f32 %v8837_v39, %v9259_v11 }
 0x2f2   : > { %7000 = vrcp.f32 %v3539_v18  ;;  %4064 = vadd.xlane.f32.xlu1 %v4063_v46  ;;  %v9296_v53 = vpop.eup %6986  ;;  %12532 = vst [vmem:[#allocation58_spill] sm:$0xff] %v9311_v40  ;;  %v9340_v39 = vsel %vm2888_vm0, %v5530_v3, 0.0 }
 0x2f3   : > { %12530 = vst [vmem:[#allocation27_spill] sm:$0xff] %v9286_v36  ;;  %7002 = vrcp.f32 %v3536_v52  ;;  %v4033_v27 = vmul.f32 %v8834_v22, %v9286_v36  ;;  %v2921_v52 = vrot.slane %v2920_v2, 2  ;;  %12536 = vst [vmem:[#allocation28_spill] sm:$0xff] %v9340_v39  ;;  %v3138_v47 = vsel %vm2888_vm0, %v9296_v53, 0.0 }
 0x2f4   : > { %v6989_v4 = vpop.eup %6988  ;;  %7004 = vpow2.f32 %v3073_v44  ;;  %v9330_v44 = vsel %vm2888_vm0, %v4786_v7, 0.0  ;;  %v9355_v11 = vsel %vm2888_vm0, %v5529_v23, 0.0 }
 0x2f5   : > { %v6991_v31 = vpop.eup %6990  ;;  %v3545_v48 = vpop.xlane.xlu1 %3544  ;;  %v4069_v57 = vsel %vm2888_vm0, %v4033_v27, 0.0  ;;  %v9315_v18 = vmul.f32 %v6989_v4, %v8666_v49  ;;  %v2343_v27 = vrot.slane %v9304_v54, %v7588_v5  ;;  %v2922_v12 = vmax.f32 %v2920_v2, %v2921_v52  ;;  %12539 = vst [vmem:[#allocation60_spill] sm:$0xff] %v9355_v11 }
 0x2f6   : > { %v3542_v56 = vpop.xlane.xlu0 %3541  ;;  %v9317_v46 = vpop.eup %6992  ;;  %7006 = vrcp.f32 %v3545_v48  ;;  %4070 = vadd.xlane.f32.xlu1 %v4069_v57  ;;  %v9320_v8 = vmul.f32 %v6991_v31, %v8668_v17  ;;  %v9337_v31 = vsel %vm2888_vm0, %v4785_v51, 0.0 }
 0x2f7   : > { %12533 = vst [vmem:[#allocation93_spill] sm:$0xff] %v9315_v18  ;;  %7008 = vrcp.f32 %v3542_v56  ;;  %v4035_v49 = vmul.f32 %v8851_v62, %v9315_v18  ;;  %v9362_v2 = vmul.f32 %v8952_v29, %v2343_v27  ;;  %v2923_v50 = vrot.slane %v2922_v12, 1 }
 0x2f8   : > { %12534 = vst [vmem:[#allocation102_spill] sm:$0xff] %v9320_v8  ;;  %v6995_v4 = vpop.eup %6994  ;;  %v4034_v17 = vmul.f32 %v8834_v22, %v9320_v8  ;;  %v3139_v22 = vsel %vm2888_vm0, %v9317_v46, 0.0 }
 0x2f9   : > { %v6997_v59 = vpop.eup %6996  ;;  %v3551_v48 = vpop.xlane.xlu1 %3550  ;;  %v4075_v56 = vsel %vm2888_vm0, %v4035_v49, 0.0  ;;  %v9346_v57 = vmul.f32 %v6995_v4, %v8676_v15  ;;  %v4787_v49 = vmul.f32 %v8840_v37, %v9286_v36  ;;  %12540 = vst [vmem:[#allocation94_spill] sm:$0xff] %v9362_v2  ;;  %v9368_v23 = vadd.f32 %v3139_v22, %v3138_v47 }
 0x2fa   : > { %v3548_v7 = vpop.xlane.xlu0 %3547  ;;  %v6999_v51 = vpop.eup %6998  ;;  %7010 = vrcp.f32 %v3551_v48  ;;  %4076 = vadd.xlane.f32.xlu1 %v4075_v56  ;;  %v4072_v3 = vsel %vm2888_vm0, %v4034_v17, 0.0  ;;  %v9352_v63 = vmul.f32 %v6997_v59, %v8678_v21  ;;  %v5531_v21 = vmul.f32 %v8861_v24, %v9286_v36  ;;  %v12541_v56 = vld [vmem:[#allocation30_spill] sm:$0xff] }
 0x2fb   : > { %12537 = vst [vmem:[#allocation79_spill] sm:$0xff] %v9346_v57  ;;  %7012 = vrcp.f32 %v3548_v7  ;;  %4073 = vadd.xlane.f32.xlu0 %v4072_v3  ;;  %v4037_v15 = vmul.f32 %v8876_v58, %v9346_v57  ;;  %v9375_v29 = vmul.f32 %v6999_v51, %v9153_v19  ;;  %v9389_v19 = vsel %vm2888_vm0, %v4787_v49, 0.0 }
 0x2fc   : > { %12538 = vst [vmem:[#allocation80_spill] sm:$0xff] %v9352_v63  ;;  %v7001_v52 = vpop.eup %7000  ;;  %v4036_v4 = vmul.f32 %v8851_v62, %v9352_v63  ;;  %7014 = vpow2.f32 %v3075_v42  ;;  %v9382_v42 = vmul.f32 %v8956_v55, %v2343_v27  ;;  %v12549_v55 = vld [vmem:[#allocation72_spill] sm:$0xff] }
 0x2fd   : > { %v7003_v17 = vpop.eup %7002  ;;  %v3557_v59 = vpop.xlane.xlu1 %3556  ;;  %v4081_v7 = vsel %vm2888_vm0, %v4037_v15, 0.0  ;;  %v9372_v3 = vmul.f32 %v7001_v52, %v12541_v56  ;;  %12543 = vst [vmem:[#allocation22_spill] sm:$0xff] %v9375_v29  ;;  %v12547_v15 = vld [vmem:[#allocation75_spill] sm:$0xff]  ;;  %v4789_v27 = vmul.f32 %v12549_v55, %v9315_v18 }
 0x2fe   : > { %v3554_v48 = vpop.xlane.xlu0 %3553  ;;  %7016 = vrcp.f32 %v3557_v59  ;;  %4082 = vadd.xlane.f32.xlu1 %v4081_v7  ;;  %v4078_v62 = vsel %vm2888_vm0, %v4036_v4, 0.0  ;;  %v9379_v47 = vmul.f32 %v7003_v17, %v12544_v25  ;;  %12546 = vst [vmem:[#allocation85_spill] sm:$0xff] %v9382_v42  ;;  %v9384_v22 = vpop.eup %7004  ;;  %v9392_v59 = vmul.f32 %v6999_v51, %v9165_v60  ;;  %v12553_v51 = vld [vmem:[#allocation44_spill] sm:$0xff] }
 0x2ff   : > { %12542 = vst [vmem:[#allocation23_spill] sm:$0xff] %v9372_v3  ;;  %7018 = vrcp.f32 %v3554_v48  ;;  %4079 = vadd.xlane.f32.xlu0 %v4078_v62  ;;  %v4039_v52 = vmul.f32 %v12547_v15, %v9372_v3  ;;  %v9399_v17 = vsel %vm2888_vm0, %v5531_v21, 0.0  ;;  %v3675_v39 = vmul.f32 %v12553_v51, %v9375_v29  ;;  %v12556_v48 = vld [vmem:[#allocation46_spill] sm:$0xff]  ;;  %v12559_v29 = vld [vmem:[#allocation61_spill] sm:$0xff] }
 0x300   : > { %12545 = vst [vmem:[#allocation59_spill] sm:$0xff] %v9379_v47  ;;  %12548 = vst [vmem:[#allocation24_spill] sm:$0xff] %v9392_v59  ;;  %v7007_v4 = vpop.eup %7006  ;;  %v4038_v25 = vmul.f32 %v8876_v58, %v9379_v47  ;;  %v9408_v58 = vmax.f32 %v2922_v12, %v2923_v50  ;;  %v5533_v36 = vmul.f32 %v12556_v48, %v9315_v18  ;;  %v12558_v50 = vld [vmem:[#allocation89_spill] sm:$0xff] }
 0x301   : > { %12550 = vst [vmem:[#allocation25_spill] sm:$0xff] %v9399_v17  ;;  %v7009_v7 = vpop.eup %7008  ;;  %v3563_v56 = vpop.xlane.xlu1 %3562  ;;  %v4087_v49 = vsel %vm2888_vm0, %v4039_v52, 0.0  ;;  %v9404_v60 = vmul.f32 %v7007_v4, %v12551_v45  ;;  %v12554_v17 = vld [vmem:[#allocation34_spill] sm:$0xff]  ;;  %v12557_v45 = vld [vmem:[#allocation77_spill] sm:$0xff]  ;;  %v4788_v4 = vmul.f32 %v8840_v37, %v9320_v8  ;;  %v3676_v12 = vmul.f32 %v12558_v50, %v9392_v59 }
 0x302   : > { %v3560_v62 = vpop.xlane.xlu0 %3559  ;;  %7020 = vrcp.f32 %v3563_v56  ;;  %4088 = vadd.xlane.f32.xlu1 %v4087_v49  ;;  %v4084_v21 = vsel %vm2888_vm0, %v4038_v25, 0.0  ;;  %v9412_v11 = vmul.f32 %v7009_v7, %v12554_v17  ;;  %v9425_v17 = vsel %vm2888_vm0, %v4789_v27, 0.0  ;;  %v12561_v50 = vld [vmem:[#allocation45_spill] sm:$0xff] }
 0x303   : > { %12552 = vst [vmem:[#allocation81_spill] sm:$0xff] %v9404_v60  ;;  %7022 = vrcp.f32 %v3560_v62  ;;  %4085 = vadd.xlane.f32.xlu0 %v4084_v21  ;;  %v4041_v52 = vmul.f32 %v12557_v45, %v9404_v60  ;;  %v5532_v7 = vmul.f32 %v8861_v24, %v9320_v8  ;;  %v3707_v62 = vsel %vm2888_vm0, %v3675_v39, 0.0  ;;  %v12562_v39 = vld [vmem:[#allocation62_spill] sm:$0xff] }
 0x304   : > { %12555 = vst [vmem:[#allocation26_spill] sm:$0xff] %v9412_v11  ;;  %v7011_v56 = vpop.eup %7010  ;;  %v4040_v25 = vmul.f32 %v12547_v15, %v9412_v11  ;;  %v4791_v59 = vmul.f32 %v12561_v50, %v9346_v57  ;;  %v3708_v15 = vsel %vm2888_vm0, %v3676_v12, 0.0  ;;  %v9444_v9 = vsel %vm2888_vm0, %v5533_v36, 0.0 }
 0x305   : > { %v7013_v49 = vpop.eup %7012  ;;  %v3569_v51 = vpop.xlane.xlu1 %3568  ;;  %v4093_v37 = vsel %vm2888_vm0, %v4041_v52, 0.0  ;;  %v9432_v18 = vmul.f32 %v7011_v56, %v12559_v29  ;;  %12564 = vst [vmem:[#allocation14_spill] sm:$0xff] %v9444_v9  ;;  %v12565_v29 = vld [vmem:[#allocation49_spill] sm:$0xff]  ;;  %v4790_v12 = vmul.f32 %v12549_v55, %v9352_v63  ;;  %v3709_v56 = vadd.f32 %v3708_v15, %v3707_v62  ;;  %v12568_v55 = vld [vmem:[#allocation35_spill] sm:$0xff] }
 0x306   : > { %v3566_v21 = vpop.xlane.xlu0 %3565  ;;  %v9437_v27 = vpop.eup %7014  ;;  %7024 = vrcp.f32 %v3569_v51  ;;  %4094 = vadd.xlane.f32.xlu1 %v4093_v37  ;;  %v4090_v24 = vsel %vm2888_vm0, %v4040_v25, 0.0  ;;  %v9441_v8 = vmul.f32 %v7013_v49, %v12562_v39  ;;  %v9453_v25 = vsel %vm2888_vm0, %v4788_v4, 0.0  ;;  %v12567_v49 = vld [vmem:[#allocation74_spill] sm:$0xff] }
 0x307   : > { %12560 = vst [vmem:[#allocation29_spill] sm:$0xff] %v9432_v18  ;;  %7026 = vrcp.f32 %v3566_v21  ;;  %4091 = vadd.xlane.f32.xlu0 %v4090_v24  ;;  %v4043_v52 = vmul.f32 %v12565_v29, %v9432_v18  ;;  %12566 = vst [vmem:[#allocation18_spill] sm:$0xff] %v9453_v25  ;;  %v5535_v36 = vmul.f32 %v12567_v49, %v9346_v57  ;;  %v9464_v15 = vsel %vm2888_vm0, %v4791_v59, 0.0  ;;  %v12572_v57 = vld [vmem:[#allocation36_spill] sm:$0xff] }
 0x308   : > { %12563 = vst [vmem:[#allocation16_spill] sm:$0xff] %v9441_v8  ;;  %v7017_v54 = vpop.eup %7016  ;;  %v4042_v51 = vmul.f32 %v12557_v45, %v9441_v8  ;;  %v5534_v21 = vmul.f32 %v12556_v48, %v9352_v63  ;;  %12570 = vst [vmem:[#allocation30_spill] sm:$0xff] %v9464_v15  ;;  %v9467_v45 = vsel %vm2888_vm0, %v5532_v7, 0.0  ;;  %v12574_v63 = vld [vmem:[#allocation47_spill] sm:$0xff]  ;;  %v9478_v59 = vsel %vm2888_vm0, %v4790_v12, 0.0 }
 0x309   : > { %v7019_v37 = vpop.eup %7018  ;;  %v3575_v24 = vpop.xlane.xlu1 %3574  ;;  %v4099_v9 = vsel %vm2888_vm0, %v4043_v52, 0.0  ;;  %v9461_v62 = vmul.f32 %v7017_v54, %v12568_v55  ;;  %12571 = vst [vmem:[#allocation32_spill] sm:$0xff] %v9467_v45  ;;  %v4793_v14 = vmul.f32 %v12574_v63, %v9372_v3  ;;  %v12575_v54 = vld [vmem:[#allocation50_spill] sm:$0xff]  ;;  %12576 = vst [vmem:[#allocation72_spill] sm:$0xff] %v9478_v59  ;;  %v3710_v7 = vrot.slane %v3709_v56, 4  ;;  %v12579_v45 = vld [vmem:[#allocation64_spill] sm:$0xff] }
 0x30a   : > { %v3572_v39 = vpop.xlane.xlu0 %3571  ;;  %7028 = vrcp.f32 %v3575_v24  ;;  %4100 = vadd.xlane.f32.xlu1 %v4099_v9  ;;  %v4096_v4 = vsel %vm2888_vm0, %v4042_v51, 0.0  ;;  %v9471_v48 = vmul.f32 %v7019_v37, %v12572_v57  ;;  %v4792_v57 = vmul.f32 %v12561_v50, %v9379_v47  ;;  %v12586_v59 = vld [vmem:[#allocation84_spill] sm:$0xff] }
 0x30b   : > { %12569 = vst [vmem:[#allocation31_spill] sm:$0xff] %v9461_v62  ;;  %7030 = vrcp.f32 %v3572_v39  ;;  %4097 = vadd.xlane.f32.xlu0 %v4096_v4  ;;  %v4045_v52 = vmul.f32 %v12575_v54, %v9461_v62  ;;  %v9485_v51 = vsel %vm2888_vm0, %v5535_v36, 0.0  ;;  %v9488_v37 = vsel %vm2888_vm0, %v5534_v21, 0.0  ;;  %v12582_v21 = vld [vmem:[#allocation37_spill] sm:$0xff] }
 0x30c   : > { %12573 = vst [vmem:[#allocation75_spill] sm:$0xff] %v9471_v48  ;;  %v7021_v55 = vpop.eup %7020  ;;  %v4044_v9 = vmul.f32 %v12565_v29, %v9471_v48  ;;  %12577 = vst [vmem:[#allocation33_spill] sm:$0xff] %v9485_v51  ;;  %v4795_v29 = vmul.f32 %v12581_v38, %v9404_v60  ;;  %v4794_v50 = vmul.f32 %v12574_v63, %v9412_v11  ;;  %v9503_v51 = vsel %vm2888_vm0, %v4793_v14, 0.0 }
 0x30d   : > { %12578 = vst [vmem:[#allocation44_spill] sm:$0xff] %v9488_v37  ;;  %v7023_v24 = vpop.eup %7022  ;;  %v3581_v39 = vpop.xlane.xlu1 %3580  ;;  %v4105_v12 = vsel %vm2888_vm0, %v4045_v52, 0.0  ;;  %v9492_v0 = vmul.f32 %v7021_v55, %v12579_v45  ;;  %12584 = vst [vmem:[#allocation77_spill] sm:$0xff] %v9503_v51  ;;  %v12585_v45 = vld [vmem:[#allocation88_spill] sm:$0xff]  ;;  %v3711_v55 = vadd.f32 %v3710_v7, %v3709_v56  ;;  %v5537_v42 = vmul.f32 %v12586_v59, %v9372_v3  ;;  %v12589_v7 = vld [vmem:[#allocation63_spill] sm:$0xff] }
 0x30e   : > { %v3578_v4 = vpop.xlane.xlu0 %3577  ;;  %7032 = vrcp.f32 %v3581_v39  ;;  %4106 = vadd.xlane.f32.xlu1 %v4105_v12  ;;  %v4102_v36 = vsel %vm2888_vm0, %v4044_v9, 0.0  ;;  %v9500_v37 = vmul.f32 %v7023_v24, %v12582_v21  ;;  %v9512_v9 = vsel %vm2888_vm0, %v4792_v57, 0.0  ;;  %v12588_v24 = vld [vmem:[#allocation83_spill] sm:$0xff] }
 0x30f   : > { %12580 = vst [vmem:[#allocation34_spill] sm:$0xff] %v9492_v0  ;;  %7034 = vrcp.f32 %v3578_v4  ;;  %4103 = vadd.xlane.f32.xlu0 %v4102_v36  ;;  %v4047_v52 = vmul.f32 %v12585_v45, %v9492_v0  ;;  %12587 = vst [vmem:[#allocation89_spill] sm:$0xff] %v9512_v9  ;;  %v4797_v14 = vmul.f32 %v12588_v24, %v9432_v18  ;;  %v9523_v51 = vsel %vm2888_vm0, %v4795_v29, 0.0  ;;  %v12592_v9 = vld [vmem:[#allocation38_spill] sm:$0xff] }
 0x310   : > { %12583 = vst [vmem:[#allocation46_spill] sm:$0xff] %v9500_v37  ;;  %v7025_v63 = vpop.eup %7024  ;;  %v4046_v39 = vmul.f32 %v12575_v54, %v9500_v37  ;;  %v4796_v4 = vmul.f32 %v12581_v38, %v9441_v8  ;;  %12590 = vst [vmem:[#allocation61_spill] sm:$0xff] %v9523_v51  ;;  %v9526_v54 = vsel %vm2888_vm0, %v4794_v50, 0.0  ;;  %v5536_v2 = vmul.f32 %v12567_v49, %v9379_v47  ;;  %v12598_v49 = vld [vmem:[#allocation51_spill] sm:$0xff] }
 0x311   : > { %v7027_v12 = vpop.eup %7026  ;;  %v3587_v36 = vpop.xlane.xlu1 %3586  ;;  %v4111_v56 = vsel %vm2888_vm0, %v4047_v52, 0.0  ;;  %v9520_v3 = vmul.f32 %v7025_v63, %v12589_v7  ;;  %12591 = vst [vmem:[#allocation45_spill] sm:$0xff] %v9526_v54  ;;  %v12594_v52 = vld [vmem:[#allocation52_spill] sm:$0xff]  ;;  %v3712_v29 = vrot.slane %v3711_v55, 2  ;;  %v9537_v7 = vsel %vm2888_vm0, %v5537_v42, 0.0  ;;  %v12599_v42 = vld [vmem:[#allocation86_spill] sm:$0xff] }
 0x312   : > { %v3584_v21 = vpop.xlane.xlu0 %3583  ;;  %7036 = vrcp.f32 %v3587_v36  ;;  %4112 = vadd.xlane.f32.xlu1 %v4111_v56  ;;  %v4108_v57 = vsel %vm2888_vm0, %v4046_v39, 0.0  ;;  %v9530_v38 = vmul.f32 %v7027_v12, %v12592_v9  ;;  %12595 = vst [vmem:[#allocation49_spill] sm:$0xff] %v9537_v7  ;;  %v9542_v39 = vsel %vm2888_vm0, %v4797_v14, 0.0 }
 0x313   : > { %7038 = vrcp.f32 %v3584_v21  ;;  %4109 = vadd.xlane.f32.xlu0 %v4108_v57  ;;  %v4049_v63 = vmul.f32 %v12594_v52, %v9520_v3  ;;  %12596 = vst [vmem:[#allocation74_spill] sm:$0xff] %v9542_v39  ;;  %v9545_v9 = vsel %vm2888_vm0, %v4796_v4, 0.0  ;;  %v4799_v12 = vmul.f32 %v12598_v49, %v9461_v62 }
 0x314   : > { %12593 = vst [vmem:[#allocation62_spill] sm:$0xff] %v9530_v38  ;;  %v7029_v50 = vpop.eup %7028  ;;  %v4048_v36 = vmul.f32 %v12585_v45, %v9530_v38  ;;  %12597 = vst [vmem:[#allocation35_spill] sm:$0xff] %v9545_v9  ;;  %v4798_v45 = vmul.f32 %v12588_v24, %v9471_v48  ;;  %v12600_v14 = vrot.slane %v9368_v23, 4  ;;  %v12601_v9 = vld [vmem:[#allocation39_spill] sm:$0xff]  ;;  %v9563_v51 = vsel %vm2888_vm0, %v5536_v2, 0.0  ;;  %v12606_v2 = vld [vmem:[#allocation90_spill] sm:$0xff] }
 0x315   : > { %v7031_v21 = vpop.eup %7030  ;;  %v3593_v56 = vpop.xlane.xlu1 %3592  ;;  %v4117_v47 = vsel %vm2888_vm0, %v4049_v63, 0.0  ;;  %v9551_v7 = vmul.f32 %v7029_v50, %v12599_v42  ;;  %12602 = vst [vmem:[#allocation36_spill] sm:$0xff] %v9563_v51  ;;  %v12603_v63 = vld [vmem:[#allocation104_spill] sm:$0xff]  ;;  %v3713_v24 = vadd.f32 %v3712_v29, %v3711_v55  ;;  %v12607_v55 = vld [vmem:[#allocation67_spill] sm:$0xff] }
 0x316   : > { %v3590_v57 = vpop.xlane.xlu0 %3589  ;;  %v3142_v39 = vadd.f32 %v12600_v14, %v9368_v23  ;;  %7040 = vrcp.f32 %v3593_v56  ;;  %4118 = vadd.xlane.f32.xlu1 %v4117_v47  ;;  %v4114_v4 = vsel %vm2888_vm0, %v4048_v36, 0.0  ;;  %v9560_v54 = vmul.f32 %v7031_v21, %v12601_v9  ;;  %v12605_v36 = vld [vmem:[#allocation87_spill] sm:$0xff] }
 0x317   : > { %7042 = vrcp.f32 %v3590_v57  ;;  %4115 = vadd.xlane.f32.xlu0 %v4114_v4  ;;  %v4051_v50 = vmul.f32 %v12603_v63, %v9551_v7  ;;  %v9570_v47 = vsel %vm2888_vm0, %v4799_v12, 0.0  ;;  %v4801_v9 = vmul.f32 %v12605_v36, %v9492_v0 }
 0x318   : > { %v3143_v42 = vrot.slane %v3142_v39, 2  ;;  %v7033_v15 = vpop.eup %7032  ;;  %v4050_v23 = vmul.f32 %v12594_v52, %v9560_v54  ;;  %12604 = vst [vmem:[#allocation47_spill] sm:$0xff] %v9570_v47  ;;  %v5539_v21 = vmul.f32 %v12606_v2, %v9404_v60  ;;  %v4800_v52 = vmul.f32 %v12598_v49, %v9500_v37  ;;  %v12609_v47 = vld [vmem:[#allocation40_spill] sm:$0xff] }
 0x319   : > { %v7035_v56 = vpop.eup %7034  ;;  %v3599_v57 = vpop.xlane.xlu1 %3598  ;;  %v4123_v4 = vsel %vm2888_vm0, %v4051_v50, 0.0  ;;  %v9578_v29 = vmul.f32 %v7033_v15, %v12607_v55  ;;  %v9587_v60 = vsel %vm2888_vm0, %v4798_v45, 0.0  ;;  %v12612_v50 = vld [vmem:[#allocation91_spill] sm:$0xff]  ;;  %v3714_v55 = vrot.slane %v3713_v24, 1 }
 0x31a   : > { %v3596_v14 = vpop.xlane.xlu0 %3595  ;;  %v3144_v51 = vadd.f32 %v3143_v42, %v3142_v39  ;;  %7044 = vrcp.f32 %v3599_v57  ;;  %4124 = vadd.xlane.f32.xlu1 %v4123_v4  ;;  %v4120_v12 = vsel %vm2888_vm0, %v4050_v23, 0.0  ;;  %v9584_v35 = vmul.f32 %v7035_v56, %v12609_v47  ;;  %12611 = vst [vmem:[#allocation76_spill] sm:$0xff] %v9587_v60 }
 0x31b   : > { %12608 = vst [vmem:[#allocation50_spill] sm:$0xff] %v9578_v29  ;;  %7046 = vrcp.f32 %v3596_v14  ;;  %4121 = vadd.xlane.f32.xlu0 %v4120_v12  ;;  %v4053_v15 = vmul.f32 %v12612_v50, %v9578_v29  ;;  %v9594_v49 = vsel %vm2888_vm0, %v4801_v9, 0.0  ;;  %v9597_v42 = vsel %vm2888_vm0, %v5539_v21, 0.0  ;;  %v12615_v14 = vld [vmem:[#allocation66_spill] sm:$0xff]  ;;  %v12618_v21 = vld [vmem:[#allocation69_spill] sm:$0xff] }
 0x31c   : > { %12610 = vst [vmem:[#allocation64_spill] sm:$0xff] %v9584_v35  ;;  %v3145_v40 = vrot.slane %v3144_v51, 1  ;;  %v7037_v25 = vpop.eup %7036  ;;  %v4052_v39 = vmul.f32 %v12603_v63, %v9584_v35  ;;  %12613 = vst [vmem:[#allocation37_spill] sm:$0xff] %v9594_v49  ;;  %v5538_v45 = vmul.f32 %v12586_v59, %v9412_v11  ;;  %v9606_v12 = vsel %vm2888_vm0, %v4800_v52, 0.0  ;;  %v12620_v59 = vld [vmem:[#allocation96_spill] sm:$0xff]  ;;  %v12631_v49 = vld [vmem:[#allocation42_spill] sm:$0xff] }
 0x31d   : > { %12614 = vst [vmem:[#allocation88_spill] sm:$0xff] %v9597_v42  ;;  %v7039_v23 = vpop.eup %7038  ;;  %v3605_v47 = vpop.xlane.xlu1 %3604  ;;  %v4129_v57 = vsel %vm2888_vm0, %v4053_v15, 0.0  ;;  %v9603_v4 = vmul.f32 %v7037_v25, %v12615_v14  ;;  %12617 = vst [vmem:[#allocation83_spill] sm:$0xff] %v9606_v12  ;;  %v4803_v11 = vmul.f32 %v12620_v59, %v9520_v3  ;;  %v4802_v52 = vmul.f32 %v12605_v36, %v9530_v38  ;;  %v12623_v14 = vld [vmem:[#allocation41_spill] sm:$0xff] }
 0x31e   : > { %v3602_v56 = vpop.xlane.xlu0 %3601  ;;  %v3146_v63 = vadd.f32 %v3145_v40, %v3144_v51  ;;  %7048 = vrcp.f32 %v3605_v47  ;;  %4130 = vadd.xlane.f32.xlu1 %v4129_v57  ;;  %v4126_v9 = vsel %vm2888_vm0, %v4052_v39, 0.0  ;;  %v9610_v42 = vmul.f32 %v7039_v23, %v12618_v21 }
 0x31f   : > { %12616 = vst [vmem:[#allocation84_spill] sm:$0xff] %v9603_v4  ;;  %7050 = vrcp.f32 %v3602_v56  ;;  %4127 = vadd.xlane.f32.xlu0 %v4126_v9  ;;  %v4055_v25 = vmul.f32 %v9139_v34, %v9603_v4  ;;  %v9618_v15 = vadd.f32 %v3714_v55, %v3713_v24  ;;  %v9623_v39 = vsel %vm2888_vm0, %v5538_v45, 0.0  ;;  %v12625_v24 = vld [vmem:[#allocation53_spill] sm:$0xff]  ;;  %v12626_v45 = vld [vmem:[#allocation68_spill] sm:$0xff] }
 0x320   : > { %12619 = vst [vmem:[#allocation63_spill] sm:$0xff] %v9610_v42  ;;  %v7041_v40 = vpop.eup %7040  ;;  %v4054_v51 = vmul.f32 %v12612_v50, %v9610_v42  ;;  %12622 = vst [vmem:[#allocation52_spill] sm:$0xff] %v9623_v39  ;;  %7052 = vrcp.f32 %v3146_v63  ;;  %v3147_v23 = vsel %vm2888_vm0, %v9384_v22, 0.0  ;;  %v4805_v36 = vmul.f32 %v12625_v24, %v9551_v7 }
 0x321   : > { %12621 = vst [vmem:[#allocation38_spill] sm:$0xff] %v9618_v15  ;;  %v7043_v47 = vpop.eup %7042  ;;  %v4135_v57 = vsel %vm2888_vm0, %v4055_v25, 0.0  ;;  %v9629_v9 = vmul.f32 %v7041_v40, %v12623_v14  ;;  %v3148_v50 = vsel %vm2888_vm0, %v9437_v27, 0.0  ;;  %v4804_v21 = vmul.f32 %v12620_v59, %v9560_v54  ;;  %v12628_v25 = vld [vmem:[#allocation97_spill] sm:$0xff]  ;;  %v12630_v59 = vld [vmem:[#allocation106_spill] sm:$0xff] }
 0x322   : > { %v3608_v56 = vpop.xlane.xlu0 %3607  ;;  %4136 = vadd.xlane.f32.xlu1 %v4135_v57  ;;  %v4132_v55 = vsel %vm2888_vm0, %v4054_v51, 0.0  ;;  %v9637_v63 = vmul.f32 %v7043_v47, %v12626_v45  ;;  %v12629_v14 = vld [vmem:[#allocation101_spill] sm:$0xff]  ;;  %v5540_v39 = vmul.f32 %v12606_v2, %v9441_v8  ;;  %v9650_v47 = vsel %vm2888_vm0, %v4803_v11, 0.0  ;;  %v12633_v11 = vld [vmem:[#allocation71_spill] sm:$0xff] }
 0x323   : > { %12624 = vst [vmem:[#allocation51_spill] sm:$0xff] %v9629_v9  ;;  %7054 = vrcp.f32 %v3608_v56  ;;  %4133 = vadd.xlane.f32.xlu0 %v4132_v55  ;;  %v4057_v40 = vmul.f32 %v12628_v25, %v9629_v9  ;;  %v5541_v15 = vmul.f32 %v12629_v14, %v9432_v18  ;;  %v3149_v56 = vadd.f32 %v3148_v50, %v3147_v23 }
 0x324   : > { %12627 = vst [vmem:[#allocation86_spill] sm:$0xff] %v9637_v63  ;;  %v7045_v57 = vpop.eup %7044  ;;  %v4056_v51 = vmul.f32 %v9139_v34, %v9637_v63  ;;  %v4807_v55 = vmul.f32 %v12630_v59, %v9578_v29  ;;  %v4806_v45 = vmul.f32 %v12625_v24, %v9584_v35  ;;  %v9661_v2 = vsel %vm2888_vm0, %v4802_v52, 0.0 }
 0x325   : > { %v7047_v12 = vpop.eup %7046  ;;  %v4141_v18 = vsel %vm2888_vm0, %v4057_v40, 0.0  ;;  %v9658_v60 = vmul.f32 %v7045_v57, %v12631_v49  ;;  %v3150_v23 = vrot.slane %v3149_v56, 4  ;;  %v9668_v8 = vsel %vm2888_vm0, %v4805_v36, 0.0 }
 0x326   : > { %4142 = vadd.xlane.f32.xlu1 %v4141_v18  ;;  %v4138_v34 = vsel %vm2888_vm0, %v4056_v51, 0.0  ;;  %v9665_v50 = vmul.f32 %v7047_v12, %v12633_v11  ;;  %v9671_v24 = vsel %vm2888_vm0, %v4804_v21, 0.0  ;;  %v9676_v52 = vsel %vm2888_vm0, %v5541_v15, 0.0  ;;  %v12637_v11 = vld [vmem:[#allocation43_spill] sm:$0xff] }
 0x327   : > { %12632 = vst [vmem:[#allocation39_spill] sm:$0xff] %v9658_v60  ;;  %4139 = vadd.xlane.f32.xlu0 %v4138_v34  ;;  %v4059_v49 = vmul.f32 %v9204_v43, %v9658_v60  ;;  %12635 = vst [vmem:[#allocation87_spill] sm:$0xff] %v9676_v52  ;;  %v9679_v18 = vsel %vm2888_vm0, %v5540_v39, 0.0  ;;  %v3151_v40 = vadd.f32 %v3150_v23, %v3149_v56  ;;  %v9684_v36 = vsel %vm2888_vm0, %v4807_v55, 0.0  ;;  %v12639_v56 = vld [vmem:[#allocation54_spill] sm:$0xff] }
 0x328   : > { %12634 = vst [vmem:[#allocation104_spill] sm:$0xff] %v9665_v50  ;;  %12636 = vst [vmem:[#allocation90_spill] sm:$0xff] %v9679_v18  ;;  %v7049_v57 = vpop.eup %7048  ;;  %v4058_v12 = vmul.f32 %v12628_v25, %v9665_v50  ;;  %v9687_v21 = vsel %vm2888_vm0, %v4806_v45, 0.0  ;;  %v3039_v51 = vsub.f32 %v9193_v6, %v9408_v58  ;;  %v4809_v23 = vmul.f32 %v12639_v56, %v9603_v4  ;;  %v12640_v18 = vld [vmem:[#allocation70_spill] sm:$0xff] }
 0x329   : > { %v7051_v34 = vpop.eup %7050  ;;  %v4147_v15 = vsel %vm2888_vm0, %v4059_v49, 0.0  ;;  %v9693_v39 = vmul.f32 %v7049_v57, %v12637_v11  ;;  %v3152_v29 = vrot.slane %v3151_v40, 2  ;;  %v4808_v6 = vmul.f32 %v12630_v59, %v9610_v42  ;;  %v12644_v59 = vld [vmem:[#allocation78_spill] sm:$0xff]  ;;  %v12646_v42 = vld [vmem:[#allocation73_spill] sm:$0xff] }
 0x32a   : > { %v7053_v25 = vpop.eup %7052  ;;  %4148 = vadd.xlane.f32.xlu1 %v4147_v15  ;;  %v4144_v55 = vsel %vm2888_vm0, %v4058_v12, 0.0  ;;  %v9699_v45 = vmul.f32 %v7051_v34, %v12640_v18  ;;  %v3077_v52 = vmul.f32 1.442695, %v3039_v51  ;;  %v3040_v12 = vsub.f32 %v9199_v30, %v9408_v58 }
 0x32b   : > { %12638 = vst [vmem:[#allocation67_spill] sm:$0xff] %v9693_v39  ;;  %4145 = vadd.xlane.f32.xlu0 %v4144_v55  ;;  %v4061_v49 = vmul.f32 %v9216_v33, %v9693_v39  ;;  %v9706_v57 = vmul.f32 %v7053_v25, %v9296_v53  ;;  %v9709_v15 = vmul.f32 %v7053_v25, %v9317_v46  ;;  %v12645_v55 = vld [vmem:[#allocation105_spill] sm:$0xff]  ;;  %v9724_v46 = vld [vmem:[%s8804_s22] sm:$0xff] }
 0x32c   : > { %12641 = vst [vmem:[#allocation40_spill] sm:$0xff] %v9699_v45  ;;  %v4060_v34 = vmul.f32 %v9204_v43, %v9699_v45  ;;  %v4811_v51 = vmul.f32 %v12644_v59, %v9629_v9  ;;  %v3153_v11 = vadd.f32 %v3152_v29, %v3151_v40  ;;  %v5543_v4 = vmul.f32 %v12645_v55, %v9461_v62  ;;  %v9732_v29 = vld [vmem:[%s8804_s22 + $0x8] sm:$0xff] }
 0x32d   : > { %12642 = vst [vmem:[#allocation91_spill] sm:$0xff] %v9706_v57  ;;  %12643 = vst [vmem:[#allocation66_spill] sm:$0xff] %v9709_v15  ;;  %v7055_v18 = vpop.eup %7054  ;;  %v4153_v53 = vsel %vm2888_vm0, %v4061_v49, 0.0  ;;  %v3677_v30 = vmul.f32 %v9724_v46, %v9706_v57  ;;  %7056 = vpow2.f32 %v3077_v52  ;;  %v4810_v58 = vmul.f32 %v12639_v56, %v9637_v63  ;;  %v9876_v57 = vld [vmem:[%s7576_s17 + $0x30] sm:$0xff] }
 0x32e   : > { %v9721_v35 = vmul.f32 %v7055_v18, %v12646_v42  ;;  %4154 = vadd.xlane.f32.xlu1 %v4153_v53  ;;  %v4150_v43 = vsel %vm2888_vm0, %v4060_v34, 0.0  ;;  %v3678_v40 = vmul.f32 %v9732_v29, %v9709_v15  ;;  %v3154_v25 = vrot.slane %v3153_v11, 1  ;;  %12666 = vst [vmem:[#allocation73_spill] sm:$0xff] %v9876_v57  ;;  %v12667_v63 = vld [vmem:[#allocation30_spill] sm:$0xff] }
 0x32f   : > { %4151 = vadd.xlane.f32.xlu0 %v4150_v43  ;;  %v9739_v49 = vsel %vm2888_vm0, %v4809_v23, 0.0  ;;  %v3716_v52 = vsel %vm2888_vm0, %v3677_v30, 0.0  ;;  %v3079_v18 = vmul.f32 1.442695, %v3040_v12  ;;  %v9743_v34 = vsel %vm2888_vm0, %v4808_v6, 0.0 }
 0x330   : > { %12647 = vst [vmem:[#allocation69_spill] sm:$0xff] %v9721_v35  ;;  %v4062_v42 = vmul.f32 %v9216_v33, %v9721_v35  ;;  %12648 = vst [vmem:[#allocation96_spill] sm:$0xff] %v9739_v49  ;;  %v3717_v56 = vsel %vm2888_vm0, %v3678_v40, 0.0  ;;  %v3155_v53 = vadd.f32 %v3154_v25, %v3153_v11  ;;  %v5542_v62 = vmul.f32 %v12629_v14, %v9471_v48 }
 0x331   : > { %12649 = vst [vmem:[#allocation41_spill] sm:$0xff] %v9743_v34  ;;  %v4813_v33 = vmul.f32 %v9219_v10, %v9658_v60  ;;  %v3718_v9 = vadd.f32 %v3717_v56, %v3716_v52  ;;  %7058 = vpow2.f32 %v3079_v18  ;;  %v9753_v23 = vsel %vm2888_vm0, %v4811_v51, 0.0  ;;  %v9809_v56 = vld [vmem:[%s7576_s17] sm:$0xff] }
 0x332   : > { %v4156_v43 = vsel %vm2888_vm0, %v4062_v42, 0.0  ;;  %4818 = vadd.xlane.f32.xlu1 %v9337_v31  ;;  %12650 = vst [vmem:[#allocation53_spill] sm:$0xff] %v9753_v23  ;;  %v9756_v6 = vsel %vm2888_vm0, %v4810_v58, 0.0  ;;  %7060 = vrcp.f32 %v3155_v53  ;;  %v9759_v12 = vsel %vm2888_vm0, %v5543_v4, 0.0  ;;  %v9862_v60 = vld [vmem:[%s7576_s17 + $0x20] sm:$0xff]  ;;  %v12672_v23 = vld [vmem:[#allocation89_spill] sm:$0xff] }
 0x333   : > { %12651 = vst [vmem:[#allocation68_spill] sm:$0xff] %v9756_v6  ;;  %12652 = vst [vmem:[#allocation97_spill] sm:$0xff] %v9759_v12  ;;  %4157 = vadd.xlane.f32.xlu0 %v4156_v43  ;;  %v4812_v14 = vmul.f32 %v12644_v59, %v9665_v50  ;;  %v4815_v11 = vmul.f32 %v9235_v16, %v9693_v39  ;;  %v3719_v30 = vrot.slane %v3718_v9, 4  ;;  %v9782_v25 = vsel %vm2888_vm0, %v4813_v33, 0.0  ;;  %v12669_v12 = vld [vmem:[#allocation85_spill] sm:$0xff] }
 0x334   : > { %v9767_v31 = vrot.slane %v9278_v26, %v7901_v41  ;;  %v4814_v51 = vmul.f32 %v9219_v10, %v9699_v45  ;;  %v12653_v4 = vcombine.high %v9213_v61, %v9213_v61  ;;  %v1570_v59 = vcombine.high %v9228_v1, %v9228_v1  ;;  %12654 = vst [vmem:[#allocation101_spill] sm:$0xff] %v9782_v25 }
 0x335   : > { %v2242_v40 = vcombine.high %v9275_v28, %v9275_v28  ;;  %v4816_v10 = vmul.f32 %v9235_v16, %v9721_v35  ;;  %v9787_v42 = vsel %vm2888_vm0, %v5542_v62, 0.0  ;;  %v9792_v52 = vadd.f32 %v3719_v30, %v3718_v9  ;;  %v9813_v9 = vld [vmem:[%s7576_s17 + $0x8] sm:$0xff] }
 0x336   : > { %v9775_v58 = vrot.slane %v12653_v4, %v7901_v41  ;;  %12655 = vst [vmem:[#allocation106_spill] sm:$0xff] %v9787_v42  ;;  %v391_v61 = vrot.slane %v9767_v31, %v7588_v5  ;;  %4824 = vadd.xlane.f32.xlu1 %v9389_v19  ;;  %v9795_v1 = vrot.slane %v1570_v59, %v7901_v41  ;;  %v9806_v62 = vsel %vm2888_vm0, %v4812_v14, 0.0 }
 0x337   : > { %v9798_v28 = vrot.slane %v2242_v40, %v7901_v41  ;;  %v290_v18 = vcombine.high %v9278_v26, %v9278_v26  ;;  %v9802_v16 = vpop.eup %7056  ;;  %4821 = vadd.xlane.f32.xlu0 %v9330_v44  ;;  %12656 = vst [vmem:[#allocation42_spill] sm:$0xff] %v9806_v62  ;;  %v9819_v26 = vsel %vm2888_vm0, %v4815_v11, 0.0  ;;  %v9822_v33 = vsel %vm2888_vm0, %v4814_v51, 0.0 }
 0x338   : > { %v460_v19 = vmul.f32 %v9809_v56, %v391_v61  ;;  %v461_v53 = vmul.f32 %v9813_v9, %v391_v61  ;;  %v1003_v43 = vrot.slane %v9775_v58, %v7588_v5  ;;  %12657 = vst [vmem:[#allocation71_spill] sm:$0xff] %v9819_v26  ;;  %12658 = vst [vmem:[#allocation43_spill] sm:$0xff] %v9822_v33  ;;  %v9837_v51 = vsel %vm2888_vm0, %v4816_v10, 0.0  ;;  %v9850_v10 = vld [vmem:[%s7576_s17 + $0x10] sm:$0xff]  ;;  %v12670_v33 = vld [vmem:[#allocation72_spill] sm:$0xff] }
 0x339   : > { %v5545_v44 = vmul.f32 %v9222_v13, %v9492_v0  ;;  %v1675_v14 = vrot.slane %v9795_v1, %v7588_v5  ;;  %v2347_v59 = vrot.slane %v9798_v28, %v7588_v5  ;;  %v9833_v11 = vrot.slane %v290_v18, %v7901_v41  ;;  %12659 = vst [vmem:[#allocation54_spill] sm:$0xff] %v9837_v51  ;;  %v12661_v18 = vld [vmem:[#allocation58_spill] sm:$0xff] }
 0x33a   : > { %v1488_v30 = vadd.f32 %v9289_v32, %v460_v19  ;;  %v1489_v4 = vadd.f32 %v9292_v20, %v461_v53  ;;  %4830 = vadd.xlane.f32.xlu1 %v9425_v17  ;;  %v3721_v40 = vrot.slane %v9792_v52, 2  ;;  %v3156_v32 = vsel %vm2888_vm0, %v9802_v16, 0.0  ;;  %v12660_v19 = vld [vmem:[#allocation18_spill] sm:$0xff]  ;;  %v12662_v17 = vld [vmem:[#allocation57_spill] sm:$0xff] }
 0x33b   : > { %v5544_v20 = vmul.f32 %v12645_v55, %v9500_v37  ;;  %v9844_v61 = vpop.eup %7058  ;;  %4827 = vadd.xlane.f32.xlu0 %v12660_v19  ;;  %v1070_v39 = vmul.f32 %v9850_v10, %v1003_v43  ;;  %v395_v48 = vrot.slane %v9833_v11, %v7588_v5  ;;  %v9858_v37 = vld [vmem:[%s7576_s17 + $0x18] sm:$0xff]  ;;  %v12668_v0 = vld [vmem:[#allocation94_spill] sm:$0xff]  ;;  %v9907_v49 = vsel %vm2888_vm0, %v5545_v44, 0.0 }
 0x33c   : > { %v2160_v53 = vadd.f32 %v12661_v18, %v1488_v30  ;;  %v2161_v35 = vadd.f32 %v12662_v17, %v1489_v4  ;;  %v7061_v45 = vpop.eup %7060  ;;  %v3157_v55 = vsel %vm2888_vm0, %v9844_v61, 0.0  ;;  %v1071_v19 = vmul.f32 %v9858_v37, %v1003_v43  ;;  %v9866_v4 = vld [vmem:[%s7576_s17 + $0x28] sm:$0xff] }
 0x33d   : > { %v1742_v30 = vmul.f32 %v9862_v60, %v1675_v14  ;;  %12663 = vst [vmem:[#allocation70_spill] sm:$0xff] %v9866_v4  ;;  %v1743_v18 = vmul.f32 %v9866_v4, %v1675_v14  ;;  %v9870_v17 = vmul.f32 %v7061_v45, %v9384_v22  ;;  %v9873_v50 = vmul.f32 %v7061_v45, %v9437_v27 }
 0x33e   : > { %v3158_v15 = vadd.f32 %v3157_v55, %v3156_v32  ;;  %v2414_v43 = vmul.f32 %v9876_v57, %v2347_v59  ;;  %4836 = vadd.xlane.f32.xlu1 %v12667_v63  ;;  %v9881_v42 = vadd.f32 %v12668_v0, %v2160_v53  ;;  %v9884_v51 = vadd.f32 %v12669_v12, %v2161_v35  ;;  %v9894_v63 = vld [vmem:[%s7576_s17 + $0x38] sm:$0xff] }
 0x33f   : > { %12664 = vst [vmem:[#allocation78_spill] sm:$0xff] %v9870_v17  ;;  %12665 = vst [vmem:[#allocation105_spill] sm:$0xff] %v9873_v50  ;;  %v462_v14 = vmul.f32 %v9809_v56, %v395_v48  ;;  %v463_v22 = vmul.f32 %v9813_v9, %v395_v48  ;;  %4833 = vadd.xlane.f32.xlu0 %v12670_v33  ;;  %v3679_v27 = vmul.f32 %v9724_v46, %v9870_v17 }
 0x340   : > { %v3680_v45 = vmul.f32 %v9732_v29, %v9873_v50  ;;  %v3159_v32 = vrot.slane %v3158_v15, 4  ;;  %v2415_v0 = vmul.f32 %v9894_v63, %v2347_v59  ;;  %v2925_v35 = vsel %vm2888_vm0, %v9881_v42, -inf  ;;  %v12671_v50 = vld [vmem:[#allocation77_spill] sm:$0xff] }
 0x341   : > { %v2926_v12 = vsel %vm2888_vm0, %v9884_v51, -inf  ;;  %v1490_v48 = vadd.f32 %v1070_v39, %v462_v14  ;;  %v1491_v53 = vadd.f32 %v1071_v19, %v463_v22  ;;  %v3725_v33 = vsel %vm2888_vm0, %v3679_v27, 0.0  ;;  %v12673_v19 = vld [vmem:[#allocation107_spill] sm:$0xff]  ;;  %v12675_v27 = vld [vmem:[#allocation61_spill] sm:$0xff] }
 0x342   : > { %v3726_v55 = vsel %vm2888_vm0, %v3680_v45, 0.0  ;;  %v3160_v17 = vadd.f32 %v3159_v32, %v3158_v15  ;;  %v2927_v26 = vmax.f32 %v2925_v35, %v2926_v12  ;;  %4842 = vadd.xlane.f32.xlu1 %v12671_v50  ;;  %v3722_v62 = vadd.f32 %v3721_v40, %v9792_v52  ;;  %v12674_v52 = vld [vmem:[#allocation100_spill] sm:$0xff] }
 0x343   : > { %v3727_v25 = vadd.f32 %v3726_v55, %v3725_v33  ;;  %v2162_v59 = vadd.f32 %v1742_v30, %v1490_v48  ;;  %v2163_v6 = vadd.f32 %v1743_v18, %v1491_v53  ;;  %4839 = vadd.xlane.f32.xlu0 %v12672_v23  ;;  %v5547_v14 = vmul.f32 %v12673_v19, %v9520_v3  ;;  %v12679_v53 = vld [vmem:[#allocation82_spill] sm:$0xff] }
 0x344   : > { %v3161_v34 = vrot.slane %v3160_v17, 2  ;;  %v2928_v39 = vrot.slane %v2927_v26, 4  ;;  %v5546_v15 = vmul.f32 %v9222_v13, %v9530_v38  ;;  %v928_v40 = vcombine.high %v12674_v52, %v12674_v52 }
 0x345   : > { %v9913_v22 = vadd.f32 %v2414_v43, %v2162_v59  ;;  %v9915_v50 = vadd.f32 %v2415_v0, %v2163_v6  ;;  %v3728_v30 = vrot.slane %v3727_v25, 4  ;;  %v9920_v18 = vsel %vm2888_vm0, %v5544_v20, 0.0  ;;  %v12676_v6 = vld [vmem:[#allocation56_spill] sm:$0xff]  ;;  %v12677_v0 = vld [vmem:[#allocation45_spill] sm:$0xff] }
 0x346   : > { %v3162_v23 = vadd.f32 %v3161_v34, %v3160_v17  ;;  %v2929_v44 = vmax.f32 %v2927_v26, %v2928_v39  ;;  %4848 = vadd.xlane.f32.xlu1 %v12675_v27  ;;  %v3723_v45 = vrot.slane %v3722_v62, 1  ;;  %v1600_v43 = vcombine.high %v12676_v6, %v12676_v6  ;;  %v12678_v20 = vld [vmem:[#allocation21_spill] sm:$0xff]  ;;  %v12680_v6 = vld [vmem:[#allocation74_spill] sm:$0xff] }
 0x347   : > { %v2934_v32 = vsel %vm2888_vm0, %v9913_v22, -inf  ;;  %v2935_v13 = vsel %vm2888_vm0, %v9915_v50, -inf  ;;  %4845 = vadd.xlane.f32.xlu0 %v12677_v0  ;;  %v2272_v26 = vcombine.high %v12678_v20, %v12678_v20  ;;  %v9933_v12 = vsel %vm2888_vm0, %v5547_v14, 0.0  ;;  %v12681_v0 = vld [vmem:[#allocation35_spill] sm:$0xff] }
 0x348   : > { %v3163_v35 = vrot.slane %v3162_v23, 1  ;;  %v2930_v34 = vrot.slane %v2929_v44, 2  ;;  %v2936_v17 = vmax.f32 %v2934_v32, %v2935_v13  ;;  %v9936_v48 = vsel %vm2888_vm0, %v5546_v15, 0.0 }
 0x349   : > { %v5549_v33 = vmul.f32 %v12679_v53, %v9551_v7  ;;  %v1007_v55 = vrot.slane %v928_v40, %v7588_v5  ;;  %v3729_v59 = vadd.f32 %v3728_v30, %v3727_v25  ;;  %v9942_v32 = vadd.f32 %v3723_v45, %v3722_v62 }
 0x34a   : > { %v3164_v39 = vadd.f32 %v3163_v35, %v3162_v23  ;;  %v2931_v52 = vmax.f32 %v2929_v44, %v2930_v34  ;;  %v2937_v27 = vrot.slane %v2936_v17, 4  ;;  %4854 = vadd.xlane.f32.xlu1 %v12680_v6  ;;  %v5548_v14 = vmul.f32 %v12673_v19, %v9560_v54  ;;  %v12682_v34 = vld [vmem:[#allocation47_spill] sm:$0xff] }
 0x34b   : > { %v1679_v13 = vrot.slane %v1600_v43, %v7588_v5  ;;  %v320_v15 = vcombine.high %v9767_v31, %v9767_v31  ;;  %4851 = vadd.xlane.f32.xlu0 %v12681_v0  ;;  %v2351_v30 = vrot.slane %v2272_v26, %v7588_v5  ;;  %v9952_v23 = vsel %vm2888_vm0, %v5549_v33, 0.0 }
 0x34c   : > { %7062 = vrcp.f32 %v3164_v39  ;;  %v2932_v40 = vrot.slane %v2931_v52, 1  ;;  %v2938_v25 = vmax.f32 %v2936_v17, %v2937_v27  ;;  %v1072_v62 = vmul.f32 %v9850_v10, %v1007_v55  ;;  %v12683_v39 = vld [vmem:[#allocation76_spill] sm:$0xff] }
 0x34d   : > { %v1073_v44 = vmul.f32 %v9858_v37, %v1007_v55  ;;  %v399_v19 = vrot.slane %v320_v15, %v7588_v5  ;;  %v3730_v45 = vrot.slane %v3729_v59, 2  ;;  %v930_v31 = vcombine.high %v9775_v58, %v9775_v58 }
 0x34e   : > { %v2933_v43 = vmax.f32 %v2931_v52, %v2932_v40  ;;  %v2939_v35 = vrot.slane %v2938_v25, 2  ;;  %4860 = vadd.xlane.f32.xlu1 %v12682_v34  ;;  %v1744_v17 = vmul.f32 %v9862_v60, %v1679_v13  ;;  %v1745_v20 = vmul.f32 %v9866_v4, %v1679_v13 }
 0x34f   : > { %v464_v26 = vmul.f32 %v9809_v56, %v399_v19  ;;  %v465_v33 = vmul.f32 %v9813_v9, %v399_v19  ;;  %4857 = vadd.xlane.f32.xlu0 %v12683_v39  ;;  %v2416_v6 = vmul.f32 %v9876_v57, %v2351_v30  ;;  %v2417_v58 = vmul.f32 %v9894_v63, %v2351_v30  ;;  %v12684_v39 = vld [vmem:[#allocation37_spill] sm:$0xff] }
 0x350   : > { %v3041_v55 = vsub.f32 %v9881_v42, %v2933_v43  ;;  %v3042_v52 = vsub.f32 %v9884_v51, %v2933_v43  ;;  %v2940_v27 = vmax.f32 %v2938_v25, %v2939_v35  ;;  %v1602_v13 = vcombine.high %v9795_v1, %v9795_v1 }
 0x351   : > { %v1492_v15 = vadd.f32 %v1072_v62, %v464_v26  ;;  %v1493_v0 = vadd.f32 %v1073_v44, %v465_v33  ;;  %v1011_v19 = vrot.slane %v930_v31, %v7588_v5  ;;  %v9974_v42 = vsel %vm2888_vm0, %v5548_v14, 0.0  ;;  %v12685_v62 = vld [vmem:[#allocation83_spill] sm:$0xff] }
 0x352   : > { %v3081_v40 = vmul.f32 1.442695, %v3041_v55  ;;  %v3083_v34 = vmul.f32 1.442695, %v3042_v52  ;;  %v2941_v38 = vrot.slane %v2940_v27, 1  ;;  %4866 = vadd.xlane.f32.xlu1 %v12684_v39  ;;  %v2274_v30 = vcombine.high %v9798_v28, %v9798_v28 }
 0x353   : > { %v2164_v51 = vadd.f32 %v1744_v17, %v1492_v15  ;;  %v2165_v25 = vadd.f32 %v1745_v20, %v1493_v0  ;;  %4863 = vadd.xlane.f32.xlu0 %v12685_v62  ;;  %v9979_v44 = vadd.f32 %v3730_v45, %v3729_v59  ;;  %v322_v43 = vcombine.high %v9833_v11, %v9833_v11 }
 0x354   : > { %7064 = vpow2.f32 %v3081_v40  ;;  %v2942_v1 = vmax.f32 %v2940_v27, %v2941_v38  ;;  %v1683_v14 = vrot.slane %v1602_v13, %v7588_v5  ;;  %v1074_v59 = vmul.f32 %v9850_v10, %v1011_v19  ;;  %v10004_v27 = vld.sshfl [vmem:[%s8804_s22 + $0x38] sm:$0xff pattern:$0x75316420] }
 0x355   : > { %7066 = vpow2.f32 %v3083_v34  ;;  %v9983_v35 = vadd.f32 %v2416_v6, %v2164_v51  ;;  %v9985_v31 = vadd.f32 %v2417_v58, %v2165_v25  ;;  %v403_v38 = vrot.slane %v322_v43, %v7588_v5  ;;  %v12688_v6 = vld [vmem:[#allocation102_spill] sm:$0xff]  ;;  %v12691_v43 = vld [vmem:[#allocation17_spill] sm:$0xff] }
 0x356   : > { %v7063_v17 = vpop.eup %7062  ;;  %v3043_v28 = vsub.f32 %v9913_v22, %v2942_v1  ;;  %v3044_v20 = vsub.f32 %v9915_v50, %v2942_v1  ;;  %4872 = vadd.xlane.f32.xlu1 %v9650_v47  ;;  %v1075_v26 = vmul.f32 %v9858_v37, %v1011_v19  ;;  %v2355_v33 = vrot.slane %v2274_v30, %v7588_v5  ;;  %v12689_v58 = vld [vmem:[#allocation98_spill] sm:$0xff]  ;;  %v12690_v1 = vld [vmem:[#allocation15_spill] sm:$0xff] }
 0x357   : > { %v2943_v11 = vsel %vm2888_vm0, %v9983_v35, -inf  ;;  %v2944_v45 = vsel %vm2888_vm0, %v9985_v31, -inf  ;;  %4869 = vadd.xlane.f32.xlu0 %v9661_v2  ;;  %v10001_v22 = vmul.f32 %v7063_v17, %v9802_v16  ;;  %v10007_v47 = vmul.f32 %v7063_v17, %v9844_v61 }
 0x358   : > { %v3085_v50 = vmul.f32 1.442695, %v3043_v28  ;;  %v3087_v55 = vmul.f32 1.442695, %v3044_v20  ;;  %v2945_v52 = vmax.f32 %v2943_v11, %v2944_v45  ;;  %v6276_v15 = vmul.f32 %v12689_v58, %v12688_v6  ;;  %v12692_v20 = vld [vmem:[#allocation27_spill] sm:$0xff] }
 0x359   : > { %12686 = vst [vmem:[#allocation18_spill] sm:$0xff] %v10001_v22  ;;  %12687 = vst [vmem:[#allocation58_spill] sm:$0xff] %v10007_v47  ;;  %v1746_v0 = vmul.f32 %v9862_v60, %v1683_v14  ;;  %v466_v13 = vmul.f32 %v9809_v56, %v403_v38  ;;  %v1747_v16 = vmul.f32 %v9866_v4, %v1683_v14  ;;  %v3732_v17 = vrot.slane %v9979_v44, 1 }
 0x35a   : > { %7068 = vpow2.f32 %v3085_v50  ;;  %v2946_v2 = vrot.slane %v2945_v52, 4  ;;  %v467_v40 = vmul.f32 %v9813_v9, %v403_v38  ;;  %4878 = vadd.xlane.f32.xlu1 %v9668_v8  ;;  %v2418_v34 = vmul.f32 %v9876_v57, %v2355_v33 }
 0x35b   : > { %7070 = vpow2.f32 %v3087_v55  ;;  %v1494_v61 = vadd.f32 %v1074_v59, %v466_v13  ;;  %4875 = vadd.xlane.f32.xlu0 %v9671_v24  ;;  %v3681_v19 = vmul.f32 %v9724_v46, %v10001_v22  ;;  %v2419_v51 = vmul.f32 %v9894_v63, %v2355_v33 }
 0x35c   : > { %v2947_v39 = vmax.f32 %v2945_v52, %v2946_v2  ;;  %v1495_v25 = vadd.f32 %v1075_v26, %v467_v40  ;;  %v3682_v30 = vmul.f32 %v9732_v29, %v10007_v47  ;;  %v10025_v8 = vrot.slane %v12690_v1, %v7901_v41 }
 0x35d   : > { %v2166_v62 = vadd.f32 %v1746_v0, %v1494_v61  ;;  %v10029_v14 = vrot.slane %v12691_v43, %v7901_v41  ;;  %v6275_v59 = vmul.f32 %v12689_v58, %v12692_v20  ;;  %v6159_v33 = vcombine.high %v10004_v27, %v10004_v27  ;;  %v12693_v61 = vld [vmem:[#allocation96_spill] sm:$0xff] }
 0x35e   : > { %v10031_v24 = vpop.eup %7064  ;;  %v2948_v28 = vrot.slane %v2947_v39, 2  ;;  %v2167_v38 = vadd.f32 %v1747_v16, %v1495_v25  ;;  %4884 = vadd.xlane.f32.xlu1 %v9684_v36  ;;  %v10047_v50 = vrot.slane %v10025_v8, %v7901_v41  ;;  %v3734_v55 = vsel %vm2888_vm0, %v3681_v19, 0.0 }
 0x35f   : > { %v10036_v11 = vpop.eup %7066  ;;  %v3165_v45 = vsel %vm2888_vm0, %v10031_v24, 0.0  ;;  %v10041_v26 = vadd.f32 %v2418_v34, %v2166_v62  ;;  %4881 = vadd.xlane.f32.xlu0 %v9687_v21  ;;  %v3735_v58 = vsel %vm2888_vm0, %v3682_v30, 0.0  ;;  %v10060_v2 = vrot.slane %v10029_v14, %v7901_v41 }
 0x360   : > { %v3166_v52 = vsel %vm2888_vm0, %v10036_v11, 0.0  ;;  %v2949_v36 = vmax.f32 %v2947_v39, %v2948_v28  ;;  %v10053_v6 = vadd.f32 %v2419_v51, %v2167_v38  ;;  %v10063_v21 = vsel %vm2888_vm0, %v6276_v15, 0.0  ;;  %v12695_v15 = vld [vmem:[#allocation41_spill] sm:$0xff]  ;;  %v12697_v38 = vld [vmem:[#allocation19_spill] sm:$0xff] }
 0x361   : > { %v3167_v0 = vadd.f32 %v3166_v52, %v3165_v45  ;;  %v2952_v13 = vsel %vm2888_vm0, %v10041_v26, -inf  ;;  %v407_v34 = vrot.slane %v10047_v50, %v7588_v5  ;;  %v10071_v19 = vadd.f32 %v3732_v17, %v9979_v44 }
 0x362   : > { %v2950_v16 = vrot.slane %v2949_v36, 1  ;;  %v2953_v40 = vsel %vm2888_vm0, %v10053_v6, -inf  ;;  %4890 = vadd.xlane.f32.xlu1 %v12693_v61  ;;  %v10074_v51 = vsel %vm2888_vm0, %v6275_v59, 0.0  ;;  %v3736_v62 = vadd.f32 %v3735_v58, %v3734_v55 }
 0x363   : > { %v3168_v39 = vrot.slane %v3167_v0, 4  ;;  %12694 = vst [vmem:[#allocation57_spill] sm:$0xff] %v10074_v51  ;;  %v2954_v25 = vmax.f32 %v2952_v13, %v2953_v40  ;;  %4887 = vadd.xlane.f32.xlu0 %v12695_v15  ;;  %v10080_v20 = vrot.slane %v6159_v33, %v7901_v41  ;;  %v10084_v45 = vrot.slane %v12697_v38, %v7901_v41  ;;  %v12699_v15 = vld [vmem:[#allocation68_spill] sm:$0xff] }
 0x364   : > { %v10076_v30 = vpop.eup %7068  ;;  %v2951_v28 = vmax.f32 %v2949_v36, %v2950_v16  ;;  %v1015_v13 = vrot.slane %v10060_v2, %v7588_v5  ;;  %v468_v58 = vmul.f32 %v9809_v56, %v407_v34  ;;  %v12698_v16 = vld [vmem:[#allocation53_spill] sm:$0xff] }
 0x365   : > { %12696 = vst [vmem:[#allocation30_spill] sm:$0xff] %v10080_v20  ;;  %v10086_v44 = vpop.eup %7070  ;;  %v3169_v17 = vadd.f32 %v3168_v39, %v3167_v0  ;;  %v3174_v59 = vsel %vm2888_vm0, %v10076_v30, 0.0  ;;  %v2955_v52 = vrot.slane %v2954_v25, 4  ;;  %v469_v39 = vmul.f32 %v9813_v9, %v407_v34 }
 0x366   : > { %v3175_v55 = vsel %vm2888_vm0, %v10086_v44, 0.0  ;;  %v3045_v33 = vsub.f32 %v9983_v35, %v2951_v28  ;;  %v3046_v36 = vsub.f32 %v9985_v31, %v2951_v28  ;;  %4896 = vadd.xlane.f32.xlu1 %v12698_v16  ;;  %v1076_v38 = vmul.f32 %v9850_v10, %v1015_v13 }
 0x367   : > { %v3170_v40 = vrot.slane %v3169_v17, 2  ;;  %v3176_v0 = vadd.f32 %v3175_v55, %v3174_v59  ;;  %v2956_v61 = vmax.f32 %v2954_v25, %v2955_v52  ;;  %4893 = vadd.xlane.f32.xlu0 %v12699_v15  ;;  %v1077_v43 = vmul.f32 %v9858_v37, %v1015_v13  ;;  %v12700_v25 = vld [vmem:[#allocation48_spill] sm:$0xff]  ;;  %v12701_v52 = vld [vmem:[#allocation101_spill] sm:$0xff] }
 0x368   : > { %v3089_v47 = vmul.f32 1.442695, %v3045_v33  ;;  %v3091_v22 = vmul.f32 1.442695, %v3046_v36  ;;  %v3737_v35 = vrot.slane %v3736_v62, 4  ;;  %v10104_v16 = vrot.slane %v10080_v20, %v7588_v5  ;;  %v12702_v33 = vld [vmem:[#allocation42_spill] sm:$0xff] }
 0x369   : > { %v3171_v1 = vadd.f32 %v3170_v40, %v3169_v17  ;;  %v3177_v31 = vrot.slane %v3176_v0, 4  ;;  %v2957_v28 = vrot.slane %v2956_v61, 2  ;;  %v10108_v34 = vrot.slane %v10084_v45, %v7901_v41 }
 0x36a   : > { %7072 = vpow2.f32 %v3089_v47  ;;  %v10112_v59 = vrot.slane %v12700_v25, %v7901_v41  ;;  %4902 = vadd.xlane.f32.xlu1 %v12701_v52  ;;  %v1496_v47 = vadd.f32 %v1076_v38, %v468_v58  ;;  %v1497_v36 = vadd.f32 %v1077_v43, %v469_v39  ;;  %v12703_v38 = vld [vmem:[#allocation71_spill] sm:$0xff] }
 0x36b   : > { %v3172_v13 = vrot.slane %v3171_v1, 1  ;;  %v3178_v55 = vadd.f32 %v3177_v31, %v3176_v0  ;;  %7074 = vpow2.f32 %v3091_v22  ;;  %v2958_v17 = vmax.f32 %v2956_v61, %v2957_v28  ;;  %4899 = vadd.xlane.f32.xlu0 %v12702_v33  ;;  %v12704_v31 = vld [vmem:[#allocation43_spill] sm:$0xff] }
 0x36c   : > { %v1687_v40 = vrot.slane %v10108_v34, %v7588_v5  ;;  %v10120_v15 = vrot.slane %v10112_v59, %v7901_v41  ;;  %v338_v52 = vcombine.high %v10025_v8, %v10025_v8  ;;  %v3738_v0 = vadd.f32 %v3737_v35, %v3736_v62 }
 0x36d   : > { %v3173_v20 = vadd.f32 %v3172_v13, %v3171_v1  ;;  %v3179_v25 = vrot.slane %v3178_v55, 2  ;;  %v2959_v51 = vrot.slane %v2958_v17, 1  ;;  %v6292_v1 = vmul.f32 %v10104_v16, %v9560_v54 }
 0x36e   : > { %v1748_v22 = vmul.f32 %v9862_v60, %v1687_v40  ;;  %v1749_v61 = vmul.f32 %v9866_v4, %v1687_v40  ;;  %v2359_v43 = vrot.slane %v10120_v15, %v7588_v5  ;;  %4908 = vadd.xlane.f32.xlu1 %v12703_v38  ;;  %v946_v54 = vcombine.high %v10029_v14, %v10029_v14 }
 0x36f   : > { %7076 = vrcp.f32 %v3173_v20  ;;  %v3180_v58 = vadd.f32 %v3179_v25, %v3178_v55  ;;  %v2960_v39 = vmax.f32 %v2958_v17, %v2959_v51  ;;  %4905 = vadd.xlane.f32.xlu0 %v12704_v31  ;;  %v10137_v20 = vrot.slane %v338_v52, %v7901_v41  ;;  %v12706_v17 = vld [vmem:[#allocation60_spill] sm:$0xff] }
 0x370   : > { %v2168_v28 = vadd.f32 %v1748_v22, %v1496_v47  ;;  %v2169_v8 = vadd.f32 %v1749_v61, %v1497_v36  ;;  %v2420_v62 = vmul.f32 %v9876_v57, %v2359_v43  ;;  %v2421_v35 = vmul.f32 %v9894_v63, %v2359_v43  ;;  %v12707_v22 = vld [vmem:[#allocation54_spill] sm:$0xff] }
 0x371   : > { %v3181_v13 = vrot.slane %v3180_v58, 1  ;;  %v3047_v33 = vsub.f32 %v10041_v26, %v2960_v39  ;;  %v3048_v40 = vsub.f32 %v10053_v6, %v2960_v39  ;;  %12705 = vst [vmem:[#allocation94_spill] sm:$0xff] %v10137_v20  ;;  %v1618_v55 = vcombine.high %v10084_v45, %v10084_v45 }
 0x372   : > { %v10139_v51 = vadd.f32 %v2420_v62, %v2168_v28  ;;  %v10141_v25 = vadd.f32 %v2421_v35, %v2169_v8  ;;  %5562 = vadd.xlane.f32.xlu1 %v12706_v17  ;;  %v411_v6 = vrot.slane %v10137_v20, %v7588_v5  ;;  %v10158_v45 = vrot.slane %v946_v54, %v7901_v41  ;;  %v12710_v35 = vld [vmem:[#allocation25_spill] sm:$0xff]  ;;  %v12711_v54 = vld [vmem:[#allocation28_spill] sm:$0xff] }
 0x373   : > { %v3182_v47 = vadd.f32 %v3181_v13, %v3180_v58  ;;  %v3093_v36 = vmul.f32 1.442695, %v3047_v33  ;;  %v3095_v26 = vmul.f32 1.442695, %v3048_v40  ;;  %4911 = vadd.xlane.f32.xlu0 %v12707_v22  ;;  %v10161_v43 = vrot.slane %v1618_v55, %v7901_v41 }
 0x374   : > { %v10150_v52 = vpop.eup %7072  ;;  %v2961_v61 = vsel %vm2888_vm0, %v10139_v51, -inf  ;;  %v2962_v14 = vsel %vm2888_vm0, %v10141_v25, -inf  ;;  %12708 = vst [vmem:[#allocation85_spill] sm:$0xff] %v10158_v45  ;;  %v3739_v58 = vrot.slane %v3738_v0, 2  ;;  %v470_v8 = vmul.f32 %v9809_v56, %v411_v6 }
 0x375   : > { %12709 = vst [vmem:[#allocation72_spill] sm:$0xff] %v10161_v43  ;;  %v10163_v38 = vpop.eup %7074  ;;  %7078 = vrcp.f32 %v3182_v47  ;;  %v3183_v39 = vsel %vm2888_vm0, %v10150_v52, 0.0  ;;  %v2963_v31 = vmax.f32 %v2961_v61, %v2962_v14  ;;  %v1019_v62 = vrot.slane %v10158_v45, %v7588_v5 }
 0x376   : > { %v3184_v28 = vsel %vm2888_vm0, %v10163_v38, 0.0  ;;  %7080 = vpow2.f32 %v3093_v36  ;;  %5568 = vadd.xlane.f32.xlu1 %v12710_v35  ;;  %v1691_v40 = vrot.slane %v10161_v43, %v7588_v5  ;;  %v471_v55 = vmul.f32 %v9813_v9, %v411_v6 }
 0x377   : > { %v3185_v13 = vadd.f32 %v3184_v28, %v3183_v39  ;;  %7082 = vpow2.f32 %v3095_v26  ;;  %v2964_v33 = vrot.slane %v2963_v31, 4  ;;  %5565 = vadd.xlane.f32.xlu0 %v12711_v54  ;;  %v1078_v17 = vmul.f32 %v9850_v10, %v1019_v62 }
 0x378   : > { %v1079_v47 = vmul.f32 %v9858_v37, %v1019_v62  ;;  %v2290_v36 = vcombine.high %v10112_v59, %v10112_v59  ;;  %v10182_v14 = vsel %vm2888_vm0, %v6292_v1, 0.0  ;;  %v6291_v26 = vmul.f32 %v10104_v16, %v9520_v3  ;;  %v12714_v59 = vld [vmem:[#allocation14_spill] sm:$0xff]  ;;  %v12716_v3 = vld [vmem:[#allocation32_spill] sm:$0xff] }
 0x379   : > { %v7077_v22 = vpop.eup %7076  ;;  %v3186_v61 = vrot.slane %v3185_v13, 4  ;;  %v2965_v39 = vmax.f32 %v2963_v31, %v2964_v33  ;;  %v10186_v28 = vadd.f32 %v3739_v58, %v3738_v0  ;;  %v1750_v62 = vmul.f32 %v9862_v60, %v1691_v40 }
 0x37a   : > { %v10189_v6 = vmul.f32 %v7077_v22, %v10031_v24  ;;  %v10192_v35 = vmul.f32 %v7077_v22, %v10036_v11  ;;  %5574 = vadd.xlane.f32.xlu1 %v12714_v59  ;;  %v1751_v1 = vmul.f32 %v9866_v4, %v1691_v40  ;;  %v10198_v45 = vrot.slane %v2290_v36, %v7901_v41  ;;  %v12718_v59 = vld [vmem:[#allocation103_spill] sm:$0xff]  ;;  %v12721_v40 = vld [vmem:[#allocation44_spill] sm:$0xff] }
 0x37b   : > { %v3187_v54 = vadd.f32 %v3186_v61, %v3185_v13  ;;  %v2966_v43 = vrot.slane %v2965_v39, 2  ;;  %5571 = vadd.xlane.f32.xlu0 %v12716_v3  ;;  %v1498_v16 = vadd.f32 %v1078_v17, %v470_v8  ;;  %v1499_v0 = vadd.f32 %v1079_v47, %v471_v55  ;;  %v12717_v61 = vld [vmem:[#allocation93_spill] sm:$0xff]  ;;  %v12726_v4 = vld [vmem:[#allocation64_spill] sm:$0xff] }
 0x37c   : > { %12712 = vst [vmem:[#allocation77_spill] sm:$0xff] %v10189_v6  ;;  %12713 = vst [vmem:[#allocation89_spill] sm:$0xff] %v10192_v35  ;;  %v3683_v24 = vmul.f32 %v9724_v46, %v10189_v6  ;;  %v3684_v11 = vmul.f32 %v9732_v29, %v10192_v35  ;;  %v10206_v31 = vsel %vm2888_vm0, %v6291_v26, 0.0  ;;  %v2363_v33 = vrot.slane %v10198_v45, %v7588_v5  ;;  %v12719_v55 = vld [vmem:[#allocation33_spill] sm:$0xff] }
 0x37d   : > { %12715 = vst [vmem:[#allocation107_spill] sm:$0xff] %v10198_v45  ;;  %v3188_v58 = vrot.slane %v3187_v54, 2  ;;  %v2967_v13 = vmax.f32 %v2965_v39, %v2966_v43  ;;  %v10215_v3 = vmul.f32 %v12718_v59, %v12717_v61  ;;  %v10220_v43 = vrot.slane %v10004_v27, %v7901_v41  ;;  %v12725_v45 = vld [vmem:[#allocation36_spill] sm:$0xff] }
 0x37e   : > { %v3743_v36 = vsel %vm2888_vm0, %v3683_v24, 0.0  ;;  %v3744_v22 = vsel %vm2888_vm0, %v3684_v11, 0.0  ;;  %5580 = vadd.xlane.f32.xlu1 %v12719_v55  ;;  %v2170_v55 = vadd.f32 %v1750_v62, %v1498_v16  ;;  %v2422_v35 = vmul.f32 %v9876_v57, %v2363_v33  ;;  %v4068_v41 = vpop.xlane.xlu0 %4067 }
 0x37f   : > { %v7079_v8 = vpop.eup %7078  ;;  %v3745_v17 = vadd.f32 %v3744_v22, %v3743_v36  ;;  %v3189_v47 = vadd.f32 %v3188_v58, %v3187_v54  ;;  %v2968_v26 = vrot.slane %v2967_v13, 1  ;;  %12720 = vst [vmem:[#allocation100_spill] sm:$0xff] %v10220_v43  ;;  %5577 = vadd.xlane.f32.xlu0 %v12721_v40  ;;  %v4065_v24 = vpop.xlane.xlu1 %4064  ;;  %v2171_v36 = vadd.f32 %v1751_v1, %v1499_v0  ;;  %v12724_v1 = vld [vmem:[#allocation49_spill] sm:$0xff] }
 0x380   : > { %v10222_v39 = vpop.eup %7080  ;;  %v10226_v11 = vmul.f32 %v7079_v8, %v10076_v30  ;;  %v10229_v61 = vmul.f32 %v7079_v8, %v10086_v44  ;;  %v2423_v6 = vmul.f32 %v9894_v63, %v2363_v33 }
 0x381   : > { %v10231_v54 = vpop.eup %7082  ;;  %v3746_v58 = vrot.slane %v3745_v17, 4  ;;  %v3190_v22 = vrot.slane %v3189_v47, 1  ;;  %v3192_v27 = vsel %vm2888_vm0, %v10222_v39, 0.0  ;;  %v2969_v62 = vmax.f32 %v2967_v13, %v2968_v26 }
 0x382   : > { %12722 = vst [vmem:[#allocation61_spill] sm:$0xff] %v10226_v11  ;;  %12723 = vst [vmem:[#allocation56_spill] sm:$0xff] %v10229_v61  ;;  %v3685_v40 = vmul.f32 %v9724_v46, %v10226_v11  ;;  %v3686_v30 = vmul.f32 %v9732_v29, %v10229_v61  ;;  %v3193_v44 = vsel %vm2888_vm0, %v10231_v54, 0.0  ;;  %5586 = vadd.xlane.f32.xlu1 %v12724_v1 }
 0x383   : > { %v3747_v16 = vadd.f32 %v3746_v58, %v3745_v17  ;;  %v3191_v0 = vadd.f32 %v3190_v22, %v3189_v47  ;;  %v3194_v8 = vadd.f32 %v3193_v44, %v3192_v27  ;;  %5583 = vadd.xlane.f32.xlu0 %v12725_v45  ;;  %v4071_v20 = vpop.xlane.xlu1 %4070  ;;  %v3049_v61 = vsub.f32 %v10139_v51, %v2969_v62  ;;  %v12727_v22 = vld [vmem:[#allocation12_spill] sm:$0xff] }
 0x384   : > { %v3752_v11 = vsel %vm2888_vm0, %v3685_v40, 0.0  ;;  %v3753_v57 = vsel %vm2888_vm0, %v3686_v30, 0.0  ;;  %v5550_v13 = vmul.f32 %v12679_v53, %v12726_v4  ;;  %v6189_v17 = vcombine.high %v10220_v43, %v10220_v43  ;;  %v12728_v40 = vld [vmem:[#allocation13_spill] sm:$0xff]  ;;  %v12729_v51 = vld [vmem:[#allocation88_spill] sm:$0xff] }
 0x385   : > { %v3748_v26 = vrot.slane %v3747_v16, 2  ;;  %v3754_v1 = vadd.f32 %v3753_v57, %v3752_v11  ;;  %7084 = vrcp.f32 %v3191_v0  ;;  %v3195_v33 = vrot.slane %v3194_v8, 4  ;;  %v12730_v57 = vld [vmem:[#allocation52_spill] sm:$0xff] }
 0x386   : > { %v3050_v47 = vsub.f32 %v10141_v25, %v2969_v62  ;;  %v3097_v45 = vmul.f32 1.442695, %v3049_v61  ;;  %v10253_v58 = vadd.f32 %v2422_v35, %v2170_v55  ;;  %v4196_v27 = vrot.slane %v4065_v24, %v12727_v22  ;;  %5592 = vadd.xlane.f32.xlu1 %v12729_v51 }
 0x387   : > { %v4201_v30 = vrot.slane %v4068_v41, %v12728_v40  ;;  %v3755_v44 = vrot.slane %v3754_v1, 4  ;;  %v10258_v53 = vadd.f32 %v2423_v6, %v2171_v36  ;;  %5589 = vadd.xlane.f32.xlu0 %v12730_v57  ;;  %v4077_v11 = vpop.xlane.xlu1 %4076  ;;  %v3196_v0 = vadd.f32 %v3195_v33, %v3194_v8  ;;  %v12731_v33 = vld [vmem:[#allocation87_spill] sm:$0xff] }
 0x388   : > { %7086 = vpow2.f32 %v3097_v45  ;;  %v3099_v43 = vmul.f32 1.442695, %v3050_v47  ;;  %v2970_v25 = vsel %vm2888_vm0, %v10253_v58, -inf  ;;  %v4207_v35 = vrot.slane %v4071_v20, %v12727_v22  ;;  %v4074_v61 = vpop.xlane.xlu0 %4073 }
 0x389   : > { %v3749_v24 = vadd.f32 %v3748_v26, %v3747_v16  ;;  %v3756_v55 = vadd.f32 %v3755_v44, %v3754_v1  ;;  %v2971_v41 = vsel %vm2888_vm0, %v10258_v53, -inf  ;;  %v4211_v6 = vrot.slane %v4074_v61, %v12728_v40  ;;  %v12733_v1 = vld [vmem:[#allocation90_spill] sm:$0xff] }
 0x38a   : > { %v3197_v36 = vrot.slane %v3196_v0, 2  ;;  %7088 = vpow2.f32 %v3099_v43  ;;  %v2972_v62 = vmax.f32 %v2970_v25, %v2971_v41  ;;  %v4203_v8 = vsel %vm4202_vm1, %v4201_v30, %v4196_v27  ;;  %5598 = vadd.xlane.f32.xlu1 %v12731_v33  ;;  %v12734_v25 = vld [vmem:[#allocation80_spill] sm:$0xff]  ;;  %v12735_v61 = vld [vmem:[#allocation38_spill] sm:$0xff]  ;;  %v12736_v33 = vld [vmem:[#allocation97_spill] sm:$0xff] }
 0x38b   : > { %v12732_v47 = vrot.slane %v10186_v28, 1  ;;  %v10274_v20 = vsel %vm2888_vm0, %v10215_v3, 0.0  ;;  %v10277_v16 = vrot.slane %v6189_v17, %v7588_v5  ;;  %v4212_v26 = vsel %vm4202_vm1, %v4211_v6, %v4207_v35  ;;  %5595 = vadd.xlane.f32.xlu0 %v12733_v1  ;;  %v4083_v43 = vpop.xlane.xlu1 %4082  ;;  %v12737_v1 = vld [vmem:[#allocation106_spill] sm:$0xff] }
 0x38c   : > { %v3198_v51 = vadd.f32 %v3197_v36, %v3196_v0  ;;  %v10282_v27 = vsel %vm2888_vm0, %v5550_v13, 0.0  ;;  %v2973_v30 = vrot.slane %v2972_v62, 4  ;;  %v4080_v44 = vpop.xlane.xlu0 %4079  ;;  %v3757_v57 = vrot.slane %v3756_v55, 2 }
 0x38d   : > { %v3742_v45 = vadd.f32 %v12732_v47, %v10186_v28  ;;  %v3750_v28 = vrot.slane %v3749_v24, 1  ;;  %v6278_v3 = vmul.f32 %v12718_v59, %v12734_v25  ;;  %v368_v17 = vcombine.high %v10047_v50, %v10047_v50 }
 0x38e   : > { %v4355_v35 = vadd.f32 %v4203_v8, %v12735_v61  ;;  %v4216_v41 = vrot.slane %v4077_v11, %v12727_v22  ;;  %v4220_v0 = vrot.slane %v4080_v44, %v12728_v40  ;;  %v3199_v6 = vrot.slane %v3198_v51, 1  ;;  %5604 = vadd.xlane.f32.xlu1 %v12736_v33 }
 0x38f   : > { %v7085_v13 = vpop.eup %7084  ;;  %v4356_v36 = vadd.f32 %v4212_v26, %v9942_v32  ;;  %v2974_v47 = vmax.f32 %v2972_v62, %v2973_v30  ;;  %v6293_v59 = vmul.f32 %v10277_v16, %v9551_v7  ;;  %v976_v50 = vcombine.high %v10060_v2, %v10060_v2  ;;  %5601 = vadd.xlane.f32.xlu0 %v12737_v1  ;;  %v4089_v61 = vpop.xlane.xlu1 %4088 }
 0x390   : > { %v4221_v8 = vsel %vm4202_vm1, %v4220_v0, %v4216_v41  ;;  %v10300_v11 = vmul.f32 %v7085_v13, %v10150_v52  ;;  %v10303_v44 = vmul.f32 %v7085_v13, %v10163_v38  ;;  %v3200_v32 = vadd.f32 %v3199_v6, %v3198_v51  ;;  %v4086_v30 = vpop.xlane.xlu0 %4085 }
 0x391   : > { %v4225_v26 = vrot.slane %v4083_v43, %v12727_v22  ;;  %v4357_v62 = vadd.f32 %v4221_v8, %v10071_v19  ;;  %v10307_v7 = vadd.f32 %v3750_v28, %v3749_v24  ;;  %v3758_v25 = vadd.f32 %v3757_v57, %v3756_v55 }
 0x392   : > { %12738 = vst [vmem:[#allocation45_spill] sm:$0xff] %v10300_v11  ;;  %12739 = vst [vmem:[#allocation21_spill] sm:$0xff] %v10303_v44  ;;  %v10309_v2 = vpop.eup %7086  ;;  %v4229_v41 = vrot.slane %v4086_v30, %v12728_v40  ;;  %v3687_v52 = vmul.f32 %v9724_v46, %v10300_v11  ;;  %v3688_v38 = vmul.f32 %v9732_v29, %v10303_v44  ;;  %7090 = vrcp.f32 %v3200_v32 }
 0x393   : > { %v4387_v43 = vrot.slane %v4356_v36, 7  ;;  %5610 = vadd.xlane.f32.xlu1 %v9907_v49  ;;  %v2975_v19 = vrot.slane %v2974_v47, 2  ;;  %v415_v24 = vrot.slane %v368_v17, %v7588_v5  ;;  %v1023_v55 = vrot.slane %v976_v50, %v7588_v5  ;;  %5607 = vadd.xlane.f32.xlu0 %v9920_v18 }
 0x394   : > { %v10319_v51 = vpop.eup %7088  ;;  %v4230_v28 = vsel %vm4202_vm1, %v4229_v41, %v4225_v26  ;;  %v3761_v46 = vsel %vm2888_vm0, %v3687_v52, 0.0  ;;  %v3762_v57 = vsel %vm2888_vm0, %v3688_v38, 0.0  ;;  %v3201_v29 = vsel %vm2888_vm0, %v10309_v2, 0.0  ;;  %v4092_v49 = vpop.xlane.xlu0 %4091 }
 0x395   : > { %v4358_v0 = vadd.f32 %v4230_v28, %v3742_v45  ;;  %v3763_v6 = vadd.f32 %v3762_v57, %v3761_v46  ;;  %v10328_v17 = vsel %vm2888_vm0, %v6293_v59, 0.0  ;;  %v10331_v13 = vsel %vm2888_vm0, %v6278_v3, 0.0  ;;  %v4095_v3 = vpop.xlane.xlu1 %4094 }
 0x396   : > { %v4390_v36 = vrot.slane %v4357_v62, 6  ;;  %v3759_v33 = vrot.slane %v3758_v25, 1  ;;  %v3202_v18 = vsel %vm2888_vm0, %v10319_v51, 0.0  ;;  %v2976_v50 = vmax.f32 %v2974_v47, %v2975_v19 }
 0x397   : > { %5616 = vadd.xlane.f32.xlu1 %v9933_v12  ;;  %v3764_v8 = vrot.slane %v3763_v6, 4  ;;  %v3203_v1 = vadd.f32 %v3202_v18, %v3201_v29  ;;  %v472_v45 = vmul.f32 %v9809_v56, %v415_v24  ;;  %v473_v32 = vmul.f32 %v9813_v9, %v415_v24  ;;  %5613 = vadd.xlane.f32.xlu0 %v9936_v48 }
 0x398   : > { %v4389_v59 = vsel %vm4388_vm2, %v4387_v43, %v4355_v35  ;;  %v4234_v26 = vrot.slane %v4089_v61, %v12727_v22  ;;  %v2977_v62 = vrot.slane %v2976_v50, 1  ;;  %v1080_v30 = vmul.f32 %v9850_v10, %v1023_v55  ;;  %v4098_v12 = vpop.xlane.xlu0 %4097 }
 0x399   : > { %v4393_v41 = vrot.slane %v4358_v0, 5  ;;  %v4238_v47 = vrot.slane %v4092_v49, %v12728_v40  ;;  %v3765_v52 = vadd.f32 %v3764_v8, %v3763_v6  ;;  %v1081_v38 = vmul.f32 %v9858_v37, %v1023_v55  ;;  %v4101_v29 = vpop.xlane.xlu1 %4100  ;;  %v10370_v8 = vld [vmem:[%s8804_s22] sm:$0xff] }
 0x39a   : > { %v4392_v56 = vsel %vm4391_vm3, %v4390_v36, %v4389_v59  ;;  %v3760_v9 = vadd.f32 %v3759_v33, %v3758_v25  ;;  %v3204_v19 = vrot.slane %v3203_v1, 4  ;;  %v2978_v35 = vmax.f32 %v2976_v50, %v2977_v62  ;;  %v12742_v50 = vld [vmem:[#allocation57_spill] sm:$0xff] }
 0x39b   : > { %v4243_v61 = vrot.slane %v4095_v3, %v12727_v22  ;;  %5622 = vadd.xlane.f32.xlu1 %v9952_v23  ;;  %v3766_v48 = vrot.slane %v3765_v52, 2  ;;  %v1648_v10 = vcombine.high %v10108_v34, %v10108_v34  ;;  %v2320_v43 = vcombine.high %v10120_v15, %v10120_v15  ;;  %5619 = vadd.xlane.f32.xlu0 %v9974_v42 }
 0x39c   : > { %v7091_v24 = vpop.eup %7090  ;;  %v3205_v37 = vadd.f32 %v3204_v19, %v3203_v1  ;;  %v3051_v55 = vsub.f32 %v10253_v58, %v2978_v35  ;;  %v3052_v25 = vsub.f32 %v10258_v53, %v2978_v35  ;;  %v1500_v28 = vadd.f32 %v1080_v30, %v472_v45  ;;  %v4104_v0 = vpop.xlane.xlu0 %4103  ;;  %v12743_v30 = vld [vmem:[#allocation55_spill] sm:$0xff]  ;;  %v12744_v19 = vld [vmem:[#allocation70_spill] sm:$0xff] }
 0x39d   : > { %v10355_v46 = vsel %vm4394_vm4, %v4393_v41, %v4392_v56  ;;  %v4239_v23 = vsel %vm4202_vm1, %v4238_v47, %v4234_v26  ;;  %v3767_v57 = vadd.f32 %v3766_v48, %v3765_v52  ;;  %v1501_v34 = vadd.f32 %v1081_v38, %v473_v32  ;;  %v12745_v48 = vld [vmem:[#allocation73_spill] sm:$0xff] }
 0x39e   : > { %v4247_v15 = vrot.slane %v4098_v12, %v12728_v40  ;;  %v10360_v42 = vmul.f32 %v7091_v24, %v10222_v39  ;;  %v10363_v58 = vmul.f32 %v7091_v24, %v10231_v54  ;;  %v3206_v53 = vrot.slane %v3205_v37, 2  ;;  %v10375_v54 = vld [vmem:[%s8804_s22 + $0x8] sm:$0xff] }
 0x39f   : > { %6315 = vadd.xlane.f32.xlu1 %v10063_v21  ;;  %v3101_v49 = vmul.f32 1.442695, %v3051_v55  ;;  %v3103_v6 = vmul.f32 1.442695, %v3052_v25  ;;  %v1695_v36 = vrot.slane %v1648_v10, %v7588_v5  ;;  %v2367_v33 = vrot.slane %v2320_v43, %v7588_v5  ;;  %6312 = vadd.xlane.f32.xlu0 %v12742_v50 }
 0x3a0   : > { %12740 = vst [vmem:[#allocation82_spill] sm:$0xff] %v10360_v42  ;;  %12741 = vst [vmem:[#allocation74_spill] sm:$0xff] %v10363_v58  ;;  %v3768_v18 = vrot.slane %v3767_v57, 1  ;;  %v3689_v39 = vmul.f32 %v10370_v8, %v10360_v42  ;;  %v3690_v1 = vmul.f32 %v10375_v54, %v10363_v58  ;;  %v3207_v21 = vadd.f32 %v3206_v53, %v3205_v37  ;;  %v4110_v38 = vpop.xlane.xlu0 %4109 }
 0x3a1   : > { %v4359_v45 = vadd.f32 %v4239_v23, %v10307_v7  ;;  %v4252_v32 = vrot.slane %v4101_v29, %v12727_v22  ;;  %v4256_v59 = vrot.slane %v4104_v0, %v12728_v40  ;;  %7092 = vpow2.f32 %v3101_v49  ;;  %v12747_v49 = vld [vmem:[#allocation50_spill] sm:$0xff] }
 0x3a2   : > { %v3770_v26 = vsel %vm2888_vm0, %v3689_v39, 0.0  ;;  %v3771_v3 = vsel %vm2888_vm0, %v3690_v1, 0.0  ;;  %v3208_v62 = vrot.slane %v3207_v21, 1  ;;  %v5447_v41 = vcombine.high %v12743_v30, %v12743_v30  ;;  %v12748_v1 = vld [vmem:[#allocation85_spill] sm:$0xff] }
 0x3a3   : > { %v4248_v47 = vsel %vm4202_vm1, %v4247_v15, %v4243_v61  ;;  %v3772_v12 = vadd.f32 %v3771_v3, %v3770_v26  ;;  %6363 = vadd.xlane.f32.xlu1 %v10182_v14  ;;  %7094 = vpow2.f32 %v3103_v6  ;;  %v1752_v7 = vmul.f32 %v9862_v60, %v1695_v36  ;;  %6360 = vadd.xlane.f32.xlu0 %v10206_v31  ;;  %v4107_v14 = vpop.xlane.xlu1 %4106 }
 0x3a4   : > { %v3769_v52 = vadd.f32 %v3768_v18, %v3767_v57  ;;  %v3209_v56 = vadd.f32 %v3208_v62, %v3207_v21  ;;  %v1753_v35 = vmul.f32 %v12744_v19, %v1695_v36  ;;  %v2424_v10 = vmul.f32 %v12745_v48, %v2367_v33  ;;  %v12750_v19 = vld [vmem:[#allocation107_spill] sm:$0xff] }
 0x3a5   : > { %v4396_v43 = vrot.slane %v4359_v45, 4  ;;  %v4257_v24 = vsel %vm4202_vm1, %v4256_v59, %v4252_v32  ;;  %v3773_v61 = vrot.slane %v3772_v12, 4  ;;  %v2172_v37 = vadd.f32 %v1752_v7, %v1500_v28  ;;  %v10424_v45 = vpop.xlane.xlu0 %4115  ;;  %v10441_v7 = vld [vmem:[%s7576_s17 + $0x8] sm:$0xff] }
 0x3a6   : > { %v4360_v55 = vadd.f32 %v4248_v47, %v3760_v9  ;;  %7096 = vrcp.f32 %v3209_v56  ;;  %v2173_v25 = vadd.f32 %v1753_v35, %v1501_v34  ;;  %v2425_v60 = vmul.f32 %v9894_v63, %v2367_v33  ;;  %v12746_v63 = vld [vmem:[#allocation94_spill] sm:$0xff] }
 0x3a7   : > { %v3774_v23 = vadd.f32 %v3773_v61, %v3772_v12  ;;  %v4265_v31 = vrot.slane %v4110_v38, %v12728_v40  ;;  %6318 = vadd.xlane.f32.xlu1 %v10274_v20  ;;  %v10396_v57 = vadd.f32 %v2424_v10, %v2172_v37  ;;  %v10399_v29 = vrot.slane %v5447_v41, %v7588_v5  ;;  %v10434_v41 = vld [vmem:[%s7576_s17] sm:$0xff] }
 0x3a8   : > { %v4361_v15 = vadd.f32 %v4257_v24, %v3769_v52  ;;  %5625 = vadd.xlane.f32.xlu0 %v10282_v27  ;;  %v10402_v9 = vadd.f32 %v2425_v60, %v2173_v25  ;;  %v6294_v28 = vmul.f32 %v10277_v16, %v12726_v4  ;;  %v370_v34 = vcombine.high %v12746_v63, %v12746_v63  ;;  %v12749_v38 = vld [vmem:[#allocation72_spill] sm:$0xff]  ;;  %v10449_v24 = vld [vmem:[%s7576_s17 + $0x10] sm:$0xff] }
 0x3a9   : > { %v4261_v0 = vrot.slane %v4107_v14, %v12727_v22  ;;  %v3775_v20 = vrot.slane %v3774_v23, 2  ;;  %v2979_v53 = vsel %vm2888_vm0, %v10396_v57, -inf  ;;  %v5551_v6 = vmul.f32 %v10399_v29, %v12747_v49  ;;  %v10454_v14 = vld [vmem:[%s7576_s17 + $0x18] sm:$0xff] }
 0x3aa   : > { %v4398_v27 = vsel %vm4397_vm5, %v4396_v43, %v10355_v46  ;;  %v4399_v36 = vrot.slane %v4360_v55, 3  ;;  %v2980_v4 = vsel %vm2888_vm0, %v10402_v9, -inf  ;;  %v419_v16 = vrot.slane %v370_v34, %v7588_v5 }
 0x3ab   : > { %v10418_v33 = vpop.eup %7092  ;;  %v3776_v18 = vadd.f32 %v3775_v20, %v3774_v23  ;;  %v4266_v50 = vsel %vm4202_vm1, %v4265_v31, %v4261_v0  ;;  %6366 = vadd.xlane.f32.xlu1 %v10328_v17  ;;  %v2981_v39 = vmax.f32 %v2979_v53, %v2980_v4  ;;  %v978_v46 = vcombine.high %v12748_v1, %v12748_v1  ;;  %v4113_v17 = vpop.xlane.xlu1 %4112 }
 0x3ac   : > { %v4402_v21 = vrot.slane %v4361_v15, 2  ;;  %v3210_v32 = vsel %vm2888_vm0, %v10418_v33, 0.0  ;;  %6321 = vadd.xlane.f32.xlu0 %v10331_v13  ;;  %v5627_v59 = vsel %vm2888_vm0, %v5551_v6, 0.0  ;;  %v6368_v26 = vsel %vm2888_vm0, %v6294_v28, 0.0  ;;  %v10467_v0 = vpop.xlane.xlu0 %4121 }
 0x3ad   : > { %v10431_v3 = vpop.eup %7094  ;;  %v3777_v62 = vrot.slane %v3776_v18, 1  ;;  %v2982_v30 = vrot.slane %v2981_v39, 4  ;;  %v474_v47 = vmul.f32 %v10434_v41, %v419_v16  ;;  %v1027_v12 = vrot.slane %v978_v46, %v7588_v5  ;;  %v10483_v46 = vld [vmem:[%s7576_s17 + $0x30] sm:$0xff] }
 0x3ae   : > { %v3211_v13 = vsel %vm2888_vm0, %v10431_v3, 0.0  ;;  %v475_v52 = vmul.f32 %v10441_v7, %v419_v16  ;;  %v1650_v56 = vcombine.high %v12749_v38, %v12749_v38  ;;  %v2322_v35 = vcombine.high %v12750_v19, %v12750_v19 }
 0x3af   : > { %v3778_v48 = vadd.f32 %v3777_v62, %v3776_v18  ;;  %v3212_v10 = vadd.f32 %v3211_v13, %v3210_v32  ;;  %v2983_v43 = vmax.f32 %v2981_v39, %v2982_v30  ;;  %5628 = vadd.xlane.f32.xlu1 %v5627_v59  ;;  %v1082_v61 = vmul.f32 %v10449_v24, %v1027_v12  ;;  %v10475_v18 = vld [vmem:[%s7576_s17 + $0x20] sm:$0xff]  ;;  %v10479_v39 = vld [vmem:[%s7576_s17 + $0x28] sm:$0xff] }
 0x3b0   : > { %v7097_v37 = vpop.eup %7096  ;;  %v4401_v55 = vsel %vm4400_vm6, %v4399_v36, %v4398_v27  ;;  %6369 = vadd.xlane.f32.xlu0 %v6368_v26  ;;  %v1083_v25 = vmul.f32 %v10454_v14, %v1027_v12  ;;  %v1699_v60 = vrot.slane %v1650_v56, %v7588_v5  ;;  %v2371_v23 = vrot.slane %v2322_v35, %v7588_v5  ;;  %v12753_v56 = vld [vmem:[#allocation92_spill] sm:$0xff] }
 0x3b1   : > { %v4362_v31 = vadd.f32 %v4266_v50, %v3778_v48  ;;  %v10460_v15 = vmul.f32 %v7097_v37, %v10309_v2  ;;  %v10463_v28 = vmul.f32 %v7097_v37, %v10319_v51  ;;  %v3213_v63 = vrot.slane %v3212_v10, 4  ;;  %v10470_v2 = vpop.xlane.xlu1 %4118 }
 0x3b2   : > { %v4274_v34 = vrot.slane %v10424_v45, %v12728_v40  ;;  %v2984_v20 = vrot.slane %v2983_v43, 2  ;;  %v1502_v53 = vadd.f32 %v1082_v61, %v474_v47  ;;  %v1503_v6 = vadd.f32 %v1083_v25, %v475_v52  ;;  %v10501_v52 = vld [vmem:[%s7576_s17 + $0x38] sm:$0xff] }
 0x3b3   : > { %12751 = vst [vmem:[#allocation35_spill] sm:$0xff] %v10460_v15  ;;  %12752 = vst [vmem:[#allocation47_spill] sm:$0xff] %v10463_v28  ;;  %v4404_v27 = vsel %vm4403_vm7, %v4402_v21, %v4401_v55  ;;  %v4405_v36 = vrot.slane %v4362_v31, 1  ;;  %v3691_v51 = vmul.f32 %v10370_v8, %v10460_v15  ;;  %v3214_v4 = vadd.f32 %v3213_v63, %v3212_v10  ;;  %v4128_v10 = vpop.xlane.xlu0 %4127  ;;  %v12754_v61 = vld [vmem:[#allocation63_spill] sm:$0xff] }
 0x3b4   : > { %v2985_v16 = vmax.f32 %v2983_v43, %v2984_v20  ;;  %v1754_v50 = vmul.f32 %v10475_v18, %v1699_v60  ;;  %v1755_v1 = vmul.f32 %v10479_v39, %v1699_v60  ;;  %v2426_v21 = vmul.f32 %v10483_v46, %v2371_v23  ;;  %v12755_v63 = vld [vmem:[#allocation99_spill] sm:$0xff] }
 0x3b5   : > { %v4270_v45 = vrot.slane %v4113_v17, %v12727_v22  ;;  %v4407_v32 = vsel %vm4406_vm8, %v4405_v36, %v4404_v27  ;;  %v3692_v59 = vmul.f32 %v10375_v54, %v10463_v28  ;;  %v3215_v26 = vrot.slane %v3214_v4, 2  ;;  %v4125_v25 = vpop.xlane.xlu1 %4124 }
 0x3b6   : > { %4424 = vst.msk [vmem:[%s10491_s7] sm:$0xff] %vm2888_vm0, %v4407_v32  ;;  %v4279_v62 = vrot.slane %v10470_v2, %v12727_v22  ;;  %v2986_v30 = vrot.slane %v2985_v16, 1  ;;  %v2174_v47 = vadd.f32 %v1754_v50, %v1502_v53  ;;  %v2175_v12 = vadd.f32 %v1755_v1, %v1503_v6  ;;  %v12757_v1 = vld [vmem:[#allocation17_spill] sm:$0xff] }
 0x3b7   : > { %v10498_v13 = vsel %vm4202_vm1, %v4274_v34, %v4270_v45  ;;  %v3216_v17 = vadd.f32 %v3215_v26, %v3214_v4  ;;  %v2427_v38 = vmul.f32 %v10501_v52, %v2371_v23  ;;  %v6196_v19 = vrot.slane %v12753_v56, %v7588_v5  ;;  %v12758_v26 = vld [vmem:[#allocation19_spill] sm:$0xff]  ;;  %v12760_v56 = vld [vmem:[#allocation48_spill] sm:$0xff] }
 0x3b8   : > { %v3779_v35 = vsel %vm2888_vm0, %v3691_v51, 0.0  ;;  %v2987_v48 = vmax.f32 %v2985_v16, %v2986_v30  ;;  %v10507_v43 = vadd.f32 %v2426_v21, %v2174_v47  ;;  %v5552_v37 = vmul.f32 %v10399_v29, %v12754_v61 }
 0x3b9   : > { %v3780_v55 = vsel %vm2888_vm0, %v3692_v59, 0.0  ;;  %v3217_v60 = vrot.slane %v3216_v17, 1  ;;  %v10512_v31 = vadd.f32 %v2427_v38, %v2175_v12  ;;  %v6273_v23 = vmul.f32 %v6196_v19, %v12755_v63  ;;  %v10531_v59 = vpop.xlane.xlu0 %4133  ;;  %v10535_v47 = vpop.xlane.xlu1 %4130  ;;  %v12759_v12 = vld [vmem:[#allocation65_spill] sm:$0xff] }
 0x3ba   : > { %v4283_v34 = vrot.slane %v10467_v0, %v12728_v40  ;;  %v3053_v20 = vsub.f32 %v10396_v57, %v2987_v48  ;;  %v3054_v53 = vsub.f32 %v10402_v9, %v2987_v48  ;;  %v2988_v6 = vsel %vm2888_vm0, %v10507_v43, -inf  ;;  %v12756_v9 = vld [vmem:[#allocation15_spill] sm:$0xff] }
 0x3bb   : > { %v3218_v27 = vadd.f32 %v3217_v60, %v3216_v17  ;;  %v2989_v29 = vsel %vm2888_vm0, %v10512_v31, -inf  ;;  %v6305_v36 = vsel %vm2888_vm0, %v6273_v23, 0.0  ;;  %v5630_v2 = vsel %vm2888_vm0, %v5552_v37, 0.0  ;;  %v12761_v23 = vld [vmem:[#allocation95_spill] sm:$0xff] }
 0x3bc   : > { %v3781_v51 = vadd.f32 %v3780_v55, %v3779_v35  ;;  %v3105_v4 = vmul.f32 1.442695, %v3053_v20  ;;  %v3107_v16 = vmul.f32 1.442695, %v3054_v53  ;;  %v2990_v50 = vmax.f32 %v2988_v6, %v2989_v29  ;;  %6306 = vadd.xlane.f32.xlu1 %v6305_v36  ;;  %5631 = vadd.xlane.f32.xlu0 %v5630_v2 }
 0x3bd   : > { %v4288_v57 = vrot.slane %v4125_v25, %v12727_v22  ;;  %7098 = vrcp.f32 %v3218_v27  ;;  %v323_v0 = vcombine.high %v12756_v9, %v12756_v9  ;;  %v931_v21 = vcombine.high %v12757_v1, %v12757_v1  ;;  %v12763_v9 = vld [vmem:[#allocation20_spill] sm:$0xff] }
 0x3be   : > { %7100 = vpow2.f32 %v3105_v4  ;;  %v4292_v45 = vrot.slane %v4128_v10, %v12728_v40  ;;  %v2991_v32 = vrot.slane %v2990_v50, 4  ;;  %v1603_v30 = vcombine.high %v12758_v26, %v12758_v26  ;;  %v10593_v26 = vpop.xlane.xlu1 %4136 }
 0x3bf   : > { %7102 = vpow2.f32 %v3107_v16  ;;  %v10538_v17 = vrot.slane %v323_v0, %v12759_v12  ;;  %v10541_v38 = vrot.slane %v931_v21, %v12759_v12  ;;  %v2275_v35 = vcombine.high %v12760_v56, %v12760_v56 }
 0x3c0   : > { %v3782_v48 = vrot.slane %v3781_v51, 4  ;;  %v10546_v10 = vsel %vm4202_vm1, %v4283_v34, %v4279_v62  ;;  %v2992_v37 = vmax.f32 %v2990_v50, %v2991_v32  ;;  %v10549_v55 = vrot.slane %v1603_v30, %v12759_v12 }
 0x3c1   : > { %v10553_v25 = vrot.slane %v10538_v17, %v12759_v12  ;;  %v10557_v60 = vrot.slane %v10541_v38, %v12759_v12  ;;  %v10560_v63 = vrot.slane %v2275_v35, %v12759_v12  ;;  %v6142_v20 = vcombine.high %v12761_v23, %v12761_v23  ;;  %v12764_v23 = vld [vmem:[#allocation79_spill] sm:$0xff] }
 0x3c2   : > { %v10567_v34 = vsel %vm4202_vm1, %v4292_v45, %v4288_v57  ;;  %v2993_v53 = vrot.slane %v2992_v37, 2  ;;  %v10571_v6 = vrot.slane %v10549_v55, %v12759_v12  ;;  %v3783_v4 = vadd.f32 %v3782_v48, %v3781_v51  ;;  %v10586_v57 = vpop.xlane.xlu0 %4139 }
 0x3c3   : > { %12762 = vst [vmem:[#allocation76_spill] sm:$0xff] %v10567_v34  ;;  %v423_v27 = vrot.slane %v10553_v25, %v7588_v5  ;;  %v1031_v29 = vrot.slane %v10557_v60, %v7588_v5  ;;  %v10579_v36 = vrot.slane %v10560_v63, %v12759_v12  ;;  %v10582_v2 = vrot.slane %v6142_v20, %v7588_v5 }
 0x3c4   : > { %v2994_v16 = vmax.f32 %v2992_v37, %v2993_v53  ;;  %v1703_v50 = vrot.slane %v10571_v6, %v7588_v5  ;;  %v6274_v0 = vmul.f32 %v6196_v19, %v12763_v9 }
 0x3c5   : > { %v476_v1 = vmul.f32 %v10434_v41, %v423_v27  ;;  %v477_v21 = vmul.f32 %v10441_v7, %v423_v27  ;;  %v1084_v45 = vmul.f32 %v10449_v24, %v1031_v29  ;;  %v1085_v32 = vmul.f32 %v10454_v14, %v1031_v29 }
 0x3c6   : > { %v2995_v30 = vrot.slane %v2994_v16, 1  ;;  %v1756_v51 = vmul.f32 %v10475_v18, %v1703_v50  ;;  %v1757_v56 = vmul.f32 %v10479_v39, %v1703_v50  ;;  %v2375_v35 = vrot.slane %v10579_v36, %v7588_v5 }
 0x3c7   : > { %v7099_v48 = vpop.eup %7098  ;;  %v1504_v19 = vadd.f32 %v1084_v45, %v476_v1  ;;  %v1505_v37 = vadd.f32 %v1085_v32, %v477_v21  ;;  %v6279_v20 = vmul.f32 %v10582_v2, %v12764_v23  ;;  %v6308_v53 = vsel %vm2888_vm0, %v6274_v0, 0.0 }
 0x3c8   : > { %v10602_v27 = vpop.eup %7100  ;;  %v10605_v29 = vmul.f32 %v7099_v48, %v10418_v33  ;;  %v10608_v9 = vmul.f32 %v7099_v48, %v10431_v3  ;;  %v2996_v50 = vmax.f32 %v2994_v16, %v2995_v30  ;;  %v2428_v62 = vmul.f32 %v10483_v46, %v2375_v35  ;;  %6309 = vadd.xlane.f32.xlu0 %v6308_v53  ;;  %v10623_v30 = vpop.xlane.xlu0 %4145 }
 0x3c9   : > { %v10611_v28 = vpop.eup %7102  ;;  %v3219_v1 = vsel %vm2888_vm0, %v10602_v27, 0.0  ;;  %v2176_v21 = vadd.f32 %v1756_v51, %v1504_v19  ;;  %v2177_v45 = vadd.f32 %v1757_v56, %v1505_v37  ;;  %v2429_v0 = vmul.f32 %v10501_v52, %v2375_v35  ;;  %v10634_v53 = vpop.xlane.xlu1 %4142 }
 0x3ca   : > { %12765 = vst [vmem:[#allocation37_spill] sm:$0xff] %v10605_v29  ;;  %12766 = vst [vmem:[#allocation83_spill] sm:$0xff] %v10608_v9  ;;  %v3693_v33 = vmul.f32 %v10370_v8, %v10605_v29  ;;  %v3694_v3 = vmul.f32 %v10375_v54, %v10608_v9  ;;  %v3220_v16 = vsel %vm2888_vm0, %v10611_v28, 0.0  ;;  %v3055_v32 = vsub.f32 %v10507_v43, %v2996_v50 }
 0x3cb   : > { %v3221_v48 = vadd.f32 %v3220_v16, %v3219_v1  ;;  %v3056_v23 = vsub.f32 %v10512_v31, %v2996_v50  ;;  %v10626_v51 = vadd.f32 %v2428_v62, %v2176_v21  ;;  %v10628_v56 = vadd.f32 %v2429_v0, %v2177_v45  ;;  %12767 = vst [vmem:[#allocation102_spill] sm:$0xff] %v10634_v53 }
 0x3cc   : > { %v3109_v19 = vmul.f32 1.442695, %v3055_v32  ;;  %v4301_v37 = vrot.slane %v10531_v59, %v12728_v40  ;;  %v6323_v43 = vsel %vm2888_vm0, %v6279_v20, 0.0  ;;  %v3784_v9 = vrot.slane %v3783_v4, 2 }
 0x3cd   : > { %v3222_v29 = vrot.slane %v3221_v48, 4  ;;  %v3111_v1 = vmul.f32 1.442695, %v3056_v23  ;;  %v2997_v31 = vsel %vm2888_vm0, %v10626_v51, -inf  ;;  %6324 = vadd.xlane.f32.xlu1 %v6323_v43  ;;  %v3788_v62 = vsel %vm2888_vm0, %v3693_v33, 0.0  ;;  %v10654_v23 = vpop.xlane.xlu0 %4151  ;;  %v10662_v43 = vpop.xlane.xlu1 %4148 }
 0x3ce   : > { %7104 = vpow2.f32 %v3109_v19  ;;  %v2998_v50 = vsel %vm2888_vm0, %v10628_v56, -inf  ;;  %v339_v59 = vcombine.high %v10538_v17, %v10538_v17  ;;  %v3789_v21 = vsel %vm2888_vm0, %v3694_v3, 0.0  ;;  %12768 = vst [vmem:[#allocation98_spill] sm:$0xff] %v10654_v23 }
 0x3cf   : > { %v3223_v45 = vadd.f32 %v3222_v29, %v3221_v48  ;;  %7106 = vpow2.f32 %v3111_v1  ;;  %v2999_v20 = vmax.f32 %v2997_v31, %v2998_v50  ;;  %v947_v16 = vcombine.high %v10541_v38, %v10541_v38 }
 0x3d0   : > { %v10646_v0 = vrot.slane %v339_v59, %v12759_v12  ;;  %v1619_v33 = vcombine.high %v10549_v55, %v10549_v55  ;;  %v2291_v32 = vcombine.high %v10560_v63, %v10560_v63  ;;  %v3785_v17 = vadd.f32 %v3784_v9, %v3783_v4 }
 0x3d1   : > { %v3224_v19 = vrot.slane %v3223_v45, 2  ;;  %v12769_v29 = vrot.slane %v10535_v47, %v12727_v22  ;;  %v3000_v48 = vrot.slane %v2999_v20, 4  ;;  %v10667_v55 = vrot.slane %v947_v16, %v12759_v12  ;;  %v10699_v34 = vpop.xlane.xlu1 %4154 }
 0x3d2   : > { %v427_v38 = vrot.slane %v10646_v0, %v7588_v5  ;;  %v10670_v63 = vrot.slane %v1619_v33, %v12759_v12  ;;  %v10673_v4 = vrot.slane %v2291_v32, %v12759_v12  ;;  %v3790_v9 = vadd.f32 %v3789_v21, %v3788_v62  ;;  %12773 = vst [vmem:[#allocation41_spill] sm:$0xff] %v10699_v34  ;;  %v12775_v34 = vld [vmem:[#allocation59_spill] sm:$0xff] }
 0x3d3   : > { %v10660_v3 = vsel %vm4202_vm1, %v4301_v37, %v12769_v29  ;;  %v3225_v47 = vadd.f32 %v3224_v19, %v3223_v45  ;;  %v3001_v1 = vmax.f32 %v2999_v20, %v3000_v48  ;;  %v1035_v59 = vrot.slane %v10667_v55, %v7588_v5  ;;  %v10689_v48 = vpop.xlane.xlu0 %4157 }
 0x3d4   : > { %12770 = vst [vmem:[#allocation27_spill] sm:$0xff] %v10660_v3  ;;  %v478_v31 = vmul.f32 %v10434_v41, %v427_v38  ;;  %v479_v50 = vmul.f32 %v10441_v7, %v427_v38  ;;  %v1707_v16 = vrot.slane %v10670_v63, %v7588_v5  ;;  %v3786_v33 = vrot.slane %v3785_v17, 1  ;;  %12771 = vst [vmem:[#allocation96_spill] sm:$0xff] %v10689_v48  ;;  %v12772_v3 = vld [vmem:[#allocation100_spill] sm:$0xff] }
 0x3d5   : > { %v3226_v29 = vrot.slane %v3225_v47, 1  ;;  %v3002_v32 = vrot.slane %v3001_v1, 2  ;;  %v2379_v62 = vrot.slane %v10673_v4, %v7588_v5  ;;  %v1086_v21 = vmul.f32 %v10449_v24, %v1035_v59 }
 0x3d6   : > { %v1087_v45 = vmul.f32 %v10454_v14, %v1035_v59  ;;  %v1758_v20 = vmul.f32 %v10475_v18, %v1707_v16  ;;  %v1759_v19 = vmul.f32 %v10479_v39, %v1707_v16  ;;  %v3791_v38 = vrot.slane %v3790_v9, 4 }
 0x3d7   : > { %v3227_v37 = vadd.f32 %v3226_v29, %v3225_v47  ;;  %v3003_v35 = vmax.f32 %v3001_v1, %v3002_v32  ;;  %v2430_v15 = vmul.f32 %v10483_v46, %v2379_v62  ;;  %v1506_v42 = vadd.f32 %v1086_v21, %v478_v31  ;;  %v10718_v53 = vpop.xlane.xlu0 %4821 }
 0x3d8   : > { %v10692_v58 = vpop.eup %7104  ;;  %v1507_v44 = vadd.f32 %v1087_v45, %v479_v50  ;;  %v2431_v11 = vmul.f32 %v10501_v52, %v2379_v62  ;;  %v10697_v59 = vrot.slane %v12772_v3, %v7588_v5  ;;  %v4310_v29 = vrot.slane %v10586_v57, %v12728_v40  ;;  %v12774_v62 = vld [vmem:[#allocation34_spill] sm:$0xff] }
 0x3d9   : > { %v10701_v16 = vpop.eup %7106  ;;  %7108 = vrcp.f32 %v3227_v37  ;;  %v3228_v47 = vsel %vm2888_vm0, %v10692_v58, 0.0  ;;  %v3004_v1 = vrot.slane %v3003_v35, 1  ;;  %v2178_v50 = vadd.f32 %v1758_v20, %v1506_v42 }
 0x3da   : > { %v3229_v31 = vsel %vm2888_vm0, %v10701_v16, 0.0  ;;  %v2179_v32 = vadd.f32 %v1759_v19, %v1507_v44  ;;  %v6289_v3 = vmul.f32 %v10697_v59, %v12774_v62  ;;  %v3792_v21 = vadd.f32 %v3791_v38, %v3790_v9 }
 0x3db   : > { %v3230_v45 = vadd.f32 %v3229_v31, %v3228_v47  ;;  %v3005_v48 = vmax.f32 %v3003_v35, %v3004_v1  ;;  %v6280_v37 = vmul.f32 %v10582_v2, %v12775_v34  ;;  %v3787_v61 = vadd.f32 %v3786_v33, %v3785_v17  ;;  %v10749_v62 = vpop.xlane.xlu0 %4827 }
 0x3dc   : > { %v10713_v12 = vadd.f32 %v2430_v15, %v2178_v50  ;;  %v10715_v23 = vadd.f32 %v2431_v11, %v2179_v32  ;;  %v6353_v57 = vsel %vm2888_vm0, %v6289_v3, 0.0  ;;  %v12776_v35 = vrot.slane %v10593_v26, %v12727_v22 }
 0x3dd   : > { %v3231_v42 = vrot.slane %v3230_v45, 4  ;;  %v3057_v44 = vsub.f32 %v10626_v51, %v3005_v48  ;;  %v3058_v20 = vsub.f32 %v10628_v56, %v3005_v48  ;;  %6354 = vadd.xlane.f32.xlu1 %v6353_v57  ;;  %v6326_v34 = vsel %vm2888_vm0, %v6280_v37, 0.0  ;;  %v10735_v51 = vpop.xlane.xlu1 %4818 }
 0x3de   : > { %v10726_v9 = vsel %vm4202_vm1, %v4310_v29, %v12776_v35  ;;  %v3006_v11 = vsel %vm2888_vm0, %v10713_v12, -inf  ;;  %v3007_v15 = vsel %vm2888_vm0, %v10715_v23, -inf  ;;  %v369_v2 = vcombine.high %v10553_v25, %v10553_v25  ;;  %6327 = vadd.xlane.f32.xlu0 %v6326_v34 }
 0x3df   : > { %v3793_v56 = vrot.slane %v3792_v21, 2  ;;  %v3232_v17 = vadd.f32 %v3231_v42, %v3230_v45  ;;  %v3113_v26 = vmul.f32 1.442695, %v3057_v44  ;;  %v3115_v33 = vmul.f32 1.442695, %v3058_v20 }
 0x3e0   : > { %v3008_v19 = vmax.f32 %v3006_v11, %v3007_v15  ;;  %v431_v48 = vrot.slane %v369_v2, %v7588_v5  ;;  %v977_v38 = vcombine.high %v10557_v60, %v10557_v60  ;;  %v1649_v47 = vcombine.high %v10571_v6, %v10571_v6 }
 0x3e1   : > { %v10743_v1 = vadd.f32 %v10498_v13, %v3787_v61  ;;  %v3233_v25 = vrot.slane %v3232_v17, 2  ;;  %7110 = vpow2.f32 %v3113_v26  ;;  %v2321_v29 = vcombine.high %v10579_v36, %v10579_v36  ;;  %v10760_v42 = vpop.xlane.xlu1 %4824 }
 0x3e2   : > { %7112 = vpow2.f32 %v3115_v33  ;;  %v3009_v31 = vrot.slane %v3008_v19, 4  ;;  %v480_v50 = vmul.f32 %v10434_v41, %v431_v48  ;;  %v481_v32 = vmul.f32 %v10441_v7, %v431_v48 }
 0x3e3   : > { %v7109_v60 = vpop.eup %7108  ;;  %v3234_v3 = vadd.f32 %v3233_v25, %v3232_v17  ;;  %v1039_v6 = vrot.slane %v977_v38, %v7588_v5  ;;  %v1711_v13 = vrot.slane %v1649_v47, %v7588_v5  ;;  %v2383_v61 = vrot.slane %v2321_v29, %v7588_v5  ;;  %v10774_v38 = vpop.xlane.xlu0 %4833 }
 0x3e4   : > { %v3794_v45 = vadd.f32 %v3793_v56, %v3792_v21  ;;  %v10755_v37 = vmul.f32 %v7109_v60, %v10602_v27  ;;  %v10758_v36 = vmul.f32 %v7109_v60, %v10611_v28  ;;  %v3010_v57 = vmax.f32 %v3008_v19, %v3009_v31 }
 0x3e5   : > { %v3235_v44 = vrot.slane %v3234_v3, 1  ;;  %v1088_v20 = vmul.f32 %v10449_v24, %v1039_v6  ;;  %v1089_v35 = vmul.f32 %v10454_v14, %v1039_v6  ;;  %v1760_v11 = vmul.f32 %v10475_v18, %v1711_v13 }
 0x3e6   : > { %12777 = vst [vmem:[#allocation53_spill] sm:$0xff] %v10755_v37  ;;  %12778 = vst [vmem:[#allocation68_spill] sm:$0xff] %v10758_v36  ;;  %v3695_v15 = vmul.f32 %v10370_v8, %v10755_v37  ;;  %v3696_v27 = vmul.f32 %v10375_v54, %v10758_v36  ;;  %v3011_v21 = vrot.slane %v3010_v57, 2  ;;  %v1761_v28 = vmul.f32 %v10479_v39, %v1711_v13  ;;  %v10780_v13 = vpop.xlane.xlu1 %4830 }
 0x3e7   : > { %v3236_v34 = vadd.f32 %v3235_v44, %v3234_v3  ;;  %v1508_v2 = vadd.f32 %v1088_v20, %v480_v50  ;;  %v1509_v56 = vadd.f32 %v1089_v35, %v481_v32  ;;  %v2432_v17 = vmul.f32 %v10483_v46, %v2383_v61  ;;  %v12779_v3 = vld [vmem:[#allocation30_spill] sm:$0xff] }
 0x3e8   : > { %v3797_v26 = vsel %vm2888_vm0, %v3695_v15, 0.0  ;;  %v3798_v33 = vsel %vm2888_vm0, %v3696_v27, 0.0  ;;  %v3012_v19 = vmax.f32 %v3010_v57, %v3011_v21  ;;  %v2433_v48 = vmul.f32 %v10501_v52, %v2383_v61  ;;  %v12780_v32 = vld [vmem:[#allocation62_spill] sm:$0xff] }
 0x3e9   : > { %v3799_v47 = vadd.f32 %v3798_v33, %v3797_v26  ;;  %7114 = vrcp.f32 %v3236_v34  ;;  %v2180_v25 = vadd.f32 %v1760_v11, %v1508_v2  ;;  %v2181_v29 = vadd.f32 %v1761_v28, %v1509_v56 }
 0x3ea   : > { %v3795_v31 = vrot.slane %v3794_v45, 1  ;;  %v3013_v60 = vrot.slane %v3012_v19, 1  ;;  %v6191_v50 = vcombine.high %v12779_v3, %v12779_v3  ;;  %v6290_v6 = vmul.f32 %v10697_v59, %v12780_v32  ;;  %v10815_v32 = vpop.xlane.xlu1 %4836 }
 0x3eb   : > { %v10782_v44 = vpop.eup %7110  ;;  %v3800_v57 = vrot.slane %v3799_v47, 4  ;;  %v10784_v61 = vadd.f32 %v2432_v17, %v2180_v25  ;;  %v10786_v20 = vadd.f32 %v2433_v48, %v2181_v29  ;;  %v371_v35 = vcombine.high %v10646_v0, %v10646_v0 }
 0x3ec   : > { %v10790_v11 = vpop.eup %7112  ;;  %v3237_v15 = vsel %vm2888_vm0, %v10782_v44, 0.0  ;;  %v3014_v27 = vmax.f32 %v3012_v19, %v3013_v60  ;;  %v10795_v59 = vrot.slane %v6191_v50, %v7588_v5  ;;  %v6356_v21 = vsel %vm2888_vm0, %v6290_v6, 0.0  ;;  %v10806_v19 = vpop.xlane.xlu0 %4839 }
 0x3ed   : > { %v3801_v28 = vadd.f32 %v3800_v57, %v3799_v47  ;;  %v3238_v34 = vsel %vm2888_vm0, %v10790_v11, 0.0  ;;  %v3015_v2 = vsel %vm2888_vm0, %v10784_v61, -inf  ;;  %v3016_v0 = vsel %vm2888_vm0, %v10786_v20, -inf  ;;  %6357 = vadd.xlane.f32.xlu0 %v6356_v21 }
 0x3ee   : > { %v3239_v56 = vadd.f32 %v3238_v34, %v3237_v15  ;;  %v3059_v17 = vsub.f32 %v10713_v12, %v3014_v27  ;;  %v3060_v26 = vsub.f32 %v10715_v23, %v3014_v27  ;;  %v3017_v33 = vmax.f32 %v3015_v2, %v3016_v0 }
 0x3ef   : > { %v4324_v48 = vrot.slane %v10662_v43, %v12727_v22  ;;  %v6295_v47 = vmul.f32 %v10795_v59, %v12747_v49  ;;  %v435_v25 = vrot.slane %v371_v35, %v7588_v5  ;;  %v979_v29 = vcombine.high %v10667_v55, %v10667_v55 }
 0x3f0   : > { %v3240_v60 = vrot.slane %v3239_v56, 4  ;;  %v3117_v3 = vmul.f32 1.442695, %v3059_v17  ;;  %v3119_v50 = vmul.f32 1.442695, %v3060_v26  ;;  %v3018_v12 = vrot.slane %v3017_v33, 4 }
 0x3f1   : > { %v3796_v23 = vadd.f32 %v3795_v31, %v3794_v45  ;;  %v3802_v6 = vrot.slane %v3801_v28, 2  ;;  %v4319_v57 = vrot.slane %v10623_v30, %v12728_v40  ;;  %v6371_v15 = vsel %vm2888_vm0, %v6295_v47, 0.0  ;;  %v10842_v47 = vpop.xlane.xlu1 %4842 }
 0x3f2   : > { %v3241_v27 = vadd.f32 %v3240_v60, %v3239_v56  ;;  %7116 = vpow2.f32 %v3117_v3  ;;  %v3019_v49 = vmax.f32 %v3017_v33, %v3018_v12  ;;  %6372 = vadd.xlane.f32.xlu1 %v6371_v15  ;;  %v1043_v35 = vrot.slane %v979_v29, %v7588_v5  ;;  %v10831_v56 = vpop.xlane.xlu0 %4845 }
 0x3f3   : > { %v7115_v55 = vpop.eup %7114  ;;  %7118 = vpow2.f32 %v3119_v50  ;;  %v482_v21 = vmul.f32 %v10434_v41, %v435_v25  ;;  %v483_v34 = vmul.f32 %v10441_v7, %v435_v25  ;;  %v1651_v45 = vcombine.high %v10670_v63, %v10670_v63 }
 0x3f4   : > { %v10826_v31 = vmul.f32 %v7115_v55, %v10692_v58  ;;  %v10829_v30 = vmul.f32 %v7115_v55, %v10701_v16  ;;  %v3242_v2 = vrot.slane %v3241_v27, 2  ;;  %v3020_v0 = vrot.slane %v3019_v49, 2 }
 0x3f5   : > { %v1090_v17 = vmul.f32 %v10449_v24, %v1043_v35  ;;  %v1091_v26 = vmul.f32 %v10454_v14, %v1043_v35  ;;  %v1715_v41 = vrot.slane %v1651_v45, %v7588_v5  ;;  %v2323_v7 = vcombine.high %v10673_v4, %v10673_v4  ;;  %v12783_v35 = vld [vmem:[#allocation102_spill] sm:$0xff] }
 0x3f6   : > { %12781 = vst [vmem:[#allocation101_spill] sm:$0xff] %v10826_v31  ;;  %12782 = vst [vmem:[#allocation42_spill] sm:$0xff] %v10829_v30  ;;  %v3697_v58 = vmul.f32 %v10370_v8, %v10826_v31  ;;  %v3698_v63 = vmul.f32 %v10375_v54, %v10829_v30  ;;  %v3243_v16 = vadd.f32 %v3242_v2, %v3241_v27  ;;  %v12799_v31 = vld [vmem:[#allocation23_spill] sm:$0xff] }
 0x3f7   : > { %v3021_v33 = vmax.f32 %v3019_v49, %v3020_v0  ;;  %v3803_v25 = vadd.f32 %v3802_v6, %v3801_v28  ;;  %v1510_v29 = vadd.f32 %v1090_v17, %v482_v21  ;;  %v1511_v24 = vadd.f32 %v1091_v26, %v483_v34  ;;  %v10856_v34 = vpop.xlane.xlu0 %4851 }
 0x3f8   : > { %v1762_v14 = vmul.f32 %v10475_v18, %v1715_v41  ;;  %v3806_v60 = vsel %vm2888_vm0, %v3697_v58, 0.0  ;;  %v3807_v4 = vsel %vm2888_vm0, %v3698_v63, 0.0  ;;  %v3244_v3 = vrot.slane %v3243_v16, 1 }
 0x3f9   : > { %v3022_v50 = vrot.slane %v3021_v33, 1  ;;  %v4364_v12 = vadd.f32 %v10546_v10, %v3796_v23  ;;  %v3808_v15 = vadd.f32 %v3807_v4, %v3806_v60  ;;  %v12784_v27 = vrot.slane %v12783_v35, %v12727_v22  ;;  %v7164_v10 = vld [vmem:[%s8804_s22 + $0x28] sm:$0xff] }
 0x3fa   : > { %v1763_v28 = vmul.f32 %v10479_v39, %v1715_v41  ;;  %v3245_v6 = vadd.f32 %v3244_v3, %v3243_v16  ;;  %v2182_v55 = vadd.f32 %v1762_v14, %v1510_v29  ;;  %v2387_v21 = vrot.slane %v2323_v7, %v7588_v5  ;;  %v10864_v41 = vpop.xlane.xlu1 %4848  ;;  %v12786_v3 = vld [vmem:[#allocation65_spill] sm:$0xff] }
 0x3fb   : > { %v10852_v49 = vsel %vm4202_vm1, %v4319_v57, %v12784_v27  ;;  %v3023_v18 = vmax.f32 %v3021_v33, %v3022_v50  ;;  %v3804_v45 = vrot.slane %v3803_v25, 1  ;;  %v3809_v2 = vrot.slane %v3808_v15, 4  ;;  %v10886_v27 = vpop.xlane.xlu0 %4857 }
 0x3fc   : > { %v2183_v0 = vadd.f32 %v1763_v28, %v1511_v24  ;;  %v5400_v23 = vcombine.high %v7164_v10, %v7164_v10  ;;  %v10859_v17 = vpop.eup %7116  ;;  %7120 = vrcp.f32 %v3245_v6  ;;  %v2434_v39 = vmul.f32 %v10483_v46, %v2387_v21  ;;  %v12785_v46 = vld [vmem:[#allocation98_spill] sm:$0xff]  ;;  %12788 = vst [vmem:[#allocation71_spill] sm:$0xff] %v10886_v27 }
 0x3fd   : > { %v3061_v57 = vsub.f32 %v10784_v61, %v3023_v18  ;;  %v3062_v26 = vsub.f32 %v10786_v20, %v3023_v18  ;;  %v10866_v58 = vpop.eup %7118  ;;  %v4408_v7 = vrot.slane %v4364_v12, 7  ;;  %v3810_v63 = vadd.f32 %v3809_v2, %v3808_v15  ;;  %v12787_v15 = vld [vmem:[#allocation63_spill] sm:$0xff] }
 0x3fe   : > { %v3246_v16 = vsel %vm2888_vm0, %v10859_v17, 0.0  ;;  %v2435_v33 = vmul.f32 %v10501_v52, %v2387_v21  ;;  %v3247_v29 = vsel %vm2888_vm0, %v10866_v58, 0.0  ;;  %v10873_v14 = vadd.f32 %v2434_v39, %v2182_v55  ;;  %v10909_v39 = vld [vmem:[%s8804_s22 + $0x18] sm:$0xff] }
 0x3ff   : > { %v3121_v24 = vmul.f32 1.442695, %v3061_v57  ;;  %v3123_v61 = vmul.f32 1.442695, %v3062_v26  ;;  %v3248_v20 = vadd.f32 %v3247_v29, %v3246_v16  ;;  %v4328_v60 = vrot.slane %v12785_v46, %v12728_v40  ;;  %v12790_v57 = vld [vmem:[#allocation41_spill] sm:$0xff]  ;;  %v12791_v16 = vld [vmem:[#allocation24_spill] sm:$0xff] }
 0x400   : > { %v10877_v4 = vadd.f32 %v2435_v33, %v2183_v0  ;;  %v10880_v50 = vrot.slane %v5400_v23, %v12786_v3  ;;  %v3805_v12 = vadd.f32 %v3804_v45, %v3803_v25  ;;  %v3024_v52 = vsel %vm2888_vm0, %v10873_v14, -inf  ;;  %v10896_v45 = vld [vmem:[%s8804_s22 + $0x10] sm:$0xff]  ;;  %v10900_v0 = vpop.xlane.xlu1 %4854  ;;  %v12793_v26 = vld [vmem:[#allocation84_spill] sm:$0xff] }
 0x401   : > { %7122 = vpow2.f32 %v3121_v24  ;;  %v6296_v35 = vmul.f32 %v10795_v59, %v12787_v15  ;;  %v3811_v28 = vrot.slane %v3810_v63, 2  ;;  %v3249_v6 = vrot.slane %v3248_v20, 4  ;;  %v12789_v59 = vld [vmem:[#allocation22_spill] sm:$0xff] }
 0x402   : > { %7124 = vpow2.f32 %v3123_v61  ;;  %v3025_v18 = vsel %vm2888_vm0, %v10877_v4, -inf  ;;  %v10892_v25 = vrot.slane %v10880_v50, %v12786_v3  ;;  %v4429_v2 = vmul.f32 %v10896_v45, %v12789_v59  ;;  %v7167_v46 = vld [vmem:[%s8804_s22 + $0x30] sm:$0xff] }
 0x403   : > { %v3026_v55 = vmax.f32 %v3024_v52, %v3025_v18  ;;  %v6374_v21 = vsel %vm2888_vm0, %v6296_v35, 0.0  ;;  %v10904_v10 = vsel %vm4388_vm2, %v4408_v7, %v10743_v1  ;;  %v3250_v23 = vadd.f32 %v3249_v6, %v3248_v20  ;;  %v12792_v6 = vld [vmem:[#allocation76_spill] sm:$0xff] }
 0x404   : > { %6375 = vadd.xlane.f32.xlu0 %v6374_v21  ;;  %v4430_v33 = vmul.f32 %v10909_v39, %v12791_v16  ;;  %v5500_v24 = vrot.slane %v10892_v25, %v7588_v5  ;;  %v4461_v61 = vsel %vm2888_vm0, %v4429_v2, 0.0  ;;  %v6095_v52 = vcombine.high %v7167_v46, %v7167_v46  ;;  %v10929_v46 = vpop.xlane.xlu0 %4863 }
 0x405   : > { %v3027_v29 = vrot.slane %v3026_v55, 4  ;;  %v3812_v1 = vadd.f32 %v3811_v28, %v3810_v63  ;;  %v3251_v7 = vrot.slane %v3250_v23, 2  ;;  %v10921_v20 = vsel %vm4202_vm1, %v4328_v60, %v4324_v48  ;;  %12794 = vst [vmem:[#allocation43_spill] sm:$0xff] %v10929_v46 }
 0x406   : > { %v4462_v15 = vsel %vm2888_vm0, %v4430_v33, 0.0  ;;  %v7121_v35 = vpop.eup %7120  ;;  %v4365_v18 = vadd.f32 %v12792_v6, %v3805_v12  ;;  %v5553_v16 = vmul.f32 %v5500_v24, %v12793_v26  ;;  %v10927_v2 = vrot.slane %v6095_v52, %v12786_v3 }
 0x407   : > { %v3028_v21 = vmax.f32 %v3026_v55, %v3027_v29  ;;  %v10932_v63 = vmul.f32 %v7121_v35, %v10782_v44  ;;  %v10935_v43 = vmul.f32 %v7121_v35, %v10790_v11  ;;  %v3252_v48 = vadd.f32 %v3251_v7, %v3250_v23  ;;  %v10944_v29 = vpop.xlane.xlu1 %4860  ;;  %v12797_v35 = vld [vmem:[#allocation86_spill] sm:$0xff] }
 0x408   : > { %v4463_v60 = vadd.f32 %v4462_v15, %v4461_v61  ;;  %v5633_v55 = vsel %vm2888_vm0, %v5553_v16, 0.0  ;;  %v10942_v33 = vrot.slane %v10927_v2, %v12786_v3  ;;  %v3813_v52 = vrot.slane %v3812_v1, 1 }
 0x409   : > { %12795 = vst [vmem:[#allocation60_spill] sm:$0xff] %v10932_v63  ;;  %12796 = vst [vmem:[#allocation54_spill] sm:$0xff] %v10935_v43  ;;  %v3029_v12 = vrot.slane %v3028_v21, 2  ;;  %v3699_v44 = vmul.f32 %v10370_v8, %v10932_v63  ;;  %v3700_v11 = vmul.f32 %v10375_v54, %v10935_v43  ;;  %v3253_v23 = vrot.slane %v3252_v48, 1  ;;  %5634 = vadd.xlane.f32.xlu1 %v5633_v55 }
 0x40a   : > { %v4410_v7 = vrot.slane %v4365_v18, 6  ;;  %v6212_v16 = vrot.slane %v10942_v33, %v7588_v5  ;;  %v5554_v6 = vmul.f32 %v5500_v24, %v12797_v35  ;;  %v4464_v30 = vrot.slane %v4463_v60, 4 }
 0x40b   : > { %v10950_v61 = vpop.eup %7122  ;;  %v3030_v15 = vmax.f32 %v3028_v21, %v3029_v12  ;;  %v3815_v59 = vsel %vm2888_vm0, %v3699_v44, 0.0  ;;  %v3816_v8 = vsel %vm2888_vm0, %v3700_v11, 0.0  ;;  %v3254_v63 = vadd.f32 %v3253_v23, %v3252_v48  ;;  %v10963_v12 = vpop.xlane.xlu0 %4869  ;;  %v12800_v48 = vld [vmem:[#allocation96_spill] sm:$0xff] }
 0x40c   : > { %v10955_v28 = vpop.eup %7124  ;;  %v3817_v54 = vadd.f32 %v3816_v8, %v3815_v59  ;;  %v3255_v55 = vsel %vm2888_vm0, %v10950_v61, 0.0  ;;  %12798 = vst [vmem:[#allocation25_spill] sm:$0xff] %v10963_v12  ;;  %v3814_v43 = vadd.f32 %v3813_v52, %v3812_v1  ;;  %v6281_v36 = vmul.f32 %v6212_v16, %v12799_v31  ;;  %v10969_v23 = vpop.xlane.xlu1 %4866  ;;  %v12801_v12 = vld [vmem:[#allocation91_spill] sm:$0xff] }
 0x40d   : > { %v3256_v18 = vsel %vm2888_vm0, %v10955_v28, 0.0  ;;  %v3031_v21 = vrot.slane %v3030_v15, 1  ;;  %7126 = vrcp.f32 %v3254_v63  ;;  %v4337_v11 = vrot.slane %v12800_v48, %v12728_v40 }
 0x40e   : > { %v3257_v24 = vadd.f32 %v3256_v18, %v3255_v55  ;;  %v3818_v44 = vrot.slane %v3817_v54, 4  ;;  %v5636_v59 = vsel %vm2888_vm0, %v5554_v6, 0.0  ;;  %v4465_v46 = vadd.f32 %v4464_v30, %v4463_v60  ;;  %v12803_v30 = vld [vmem:[#allocation27_spill] sm:$0xff] }
 0x40f   : > { %v3032_v37 = vmax.f32 %v3030_v15, %v3031_v21  ;;  %v6329_v27 = vsel %vm2888_vm0, %v6281_v36, 0.0  ;;  %5637 = vadd.xlane.f32.xlu0 %v5636_v59  ;;  %v4431_v1 = vmul.f32 %v10896_v45, %v12801_v12  ;;  %v12802_v15 = vld [vmem:[#allocation66_spill] sm:$0xff]  ;;  %v4411_v6 = vsel %vm4391_vm3, %v4410_v7, %v10904_v10 }
 0x410   : > { %v3258_v8 = vrot.slane %v3257_v24, 4  ;;  %v3819_v63 = vadd.f32 %v3818_v44, %v3817_v54  ;;  %6330 = vadd.xlane.f32.xlu1 %v6329_v27  ;;  %v4432_v55 = vmul.f32 %v10909_v39, %v12802_v15  ;;  %v4366_v60 = vadd.f32 %v12803_v30, %v3814_v43  ;;  %v10983_v44 = vpop.xlane.xlu0 %4875 }
 0x411   : > { %v3063_v31 = vsub.f32 %v10873_v14, %v3032_v37  ;;  %v3064_v52 = vsub.f32 %v10877_v4, %v3032_v37  ;;  %v4470_v18 = vsel %vm2888_vm0, %v4431_v1, 0.0  ;;  %v12804_v4 = vrot.slane %v12790_v57, %v12727_v22 }
 0x412   : > { %v3259_v36 = vadd.f32 %v3258_v8, %v3257_v24  ;;  %v3820_v21 = vrot.slane %v3819_v63, 2  ;;  %v4471_v14 = vsel %vm2888_vm0, %v4432_v55, 0.0  ;;  %v4466_v10 = vrot.slane %v4465_v46, 2  ;;  %v7168_v24 = vld [vmem:[%s8804_s22 + $0x38] sm:$0xff]  ;;  %v12805_v8 = vld [vmem:[#allocation26_spill] sm:$0xff]  ;;  %v11027_v55 = vld [vmem:[%s8804_s22 + $0x8] sm:$0xff] }
 0x413   : > { %v3125_v48 = vmul.f32 1.442695, %v3063_v31  ;;  %v3127_v54 = vmul.f32 1.442695, %v3064_v52  ;;  %v10989_v27 = vsel %vm4202_vm1, %v4337_v11, %v12804_v4  ;;  %v4472_v7 = vadd.f32 %v4471_v14, %v4470_v18  ;;  %v10993_v31 = vpop.xlane.xlu1 %4872  ;;  %v12807_v14 = vld [vmem:[#allocation105_spill] sm:$0xff] }
 0x414   : > { %v3260_v37 = vrot.slane %v3259_v36, 2  ;;  %v3821_v43 = vadd.f32 %v3820_v21, %v3819_v63  ;;  %v6144_v59 = vcombine.high %v7168_v24, %v7168_v24  ;;  %v6282_v1 = vmul.f32 %v6212_v16, %v12805_v8 }
 0x415   : > { %7128 = vpow2.f32 %v3125_v48  ;;  %v4473_v30 = vrot.slane %v4472_v7, 4  ;;  %v4412_v57 = vrot.slane %v4366_v60, 5  ;;  %v4952_v11 = vrot.slane %v10718_v53, %v12728_v40 }
 0x416   : > { %v3261_v52 = vadd.f32 %v3260_v37, %v3259_v36  ;;  %7130 = vpow2.f32 %v3127_v54  ;;  %v11000_v18 = vrot.slane %v6144_v59, %v12786_v3  ;;  %v6332_v63 = vsel %vm2888_vm0, %v6282_v1, 0.0  ;;  %v12806_v36 = vld [vmem:[#allocation78_spill] sm:$0xff]  ;;  %v11017_v59 = vpop.xlane.xlu0 %4881 }
 0x417   : > { %v7127_v21 = vpop.eup %7126  ;;  %v4467_v48 = vadd.f32 %v4466_v10, %v4465_v46  ;;  %6333 = vadd.xlane.f32.xlu0 %v6332_v63  ;;  %v4433_v54 = vmul.f32 %v10896_v45, %v12806_v36  ;;  %v4434_v60 = vmul.f32 %v10909_v39, %v12807_v14  ;;  %v3822_v37 = vrot.slane %v3821_v43, 1  ;;  %v11022_v63 = vld [vmem:[%s8804_s22] sm:$0xff] }
 0x418   : > { %v3262_v16 = vrot.slane %v3261_v52, 1  ;;  %v11008_v53 = vmul.f32 %v7127_v21, %v10859_v17  ;;  %v11011_v4 = vmul.f32 %v7127_v21, %v10866_v58  ;;  %v11015_v24 = vrot.slane %v11000_v18, %v12786_v3 }
 0x419   : > { %v4474_v10 = vadd.f32 %v4473_v30, %v4472_v7  ;;  %v4479_v8 = vsel %vm2888_vm0, %v4433_v54, 0.0  ;;  %v4480_v1 = vsel %vm2888_vm0, %v4434_v60, 0.0  ;;  %v12810_v21 = vrot.slane %v10735_v51, %v12727_v22  ;;  %v11037_v30 = vpop.xlane.xlu1 %4878 }
 0x41a   : > { %12808 = vst [vmem:[#allocation28_spill] sm:$0xff] %v11008_v53  ;;  %12809 = vst [vmem:[#allocation14_spill] sm:$0xff] %v11011_v4  ;;  %v3263_v46 = vadd.f32 %v3262_v16, %v3261_v52  ;;  %v3701_v17 = vmul.f32 %v11022_v63, %v11008_v53  ;;  %v3702_v58 = vmul.f32 %v11027_v55, %v11011_v4  ;;  %v4468_v54 = vrot.slane %v4467_v48, 1 }
 0x41b   : > { %v4953_v52 = vsel %vm4202_vm1, %v4952_v11, %v12810_v21  ;;  %v6244_v7 = vrot.slane %v11015_v24, %v7588_v5  ;;  %12811 = vst [vmem:[#allocation32_spill] sm:$0xff] %v11037_v30  ;;  %v11040_v16 = vsel %vm4394_vm4, %v4412_v57, %v4411_v6  ;;  %v4481_v60 = vadd.f32 %v4480_v1, %v4479_v8 }
 0x41c   : > { %7132 = vrcp.f32 %v3263_v46  ;;  %v3823_v14 = vadd.f32 %v3822_v37, %v3821_v43  ;;  %v3824_v36 = vsel %vm2888_vm0, %v3701_v17, 0.0  ;;  %v3825_v15 = vsel %vm2888_vm0, %v3702_v58, 0.0  ;;  %v11055_v46 = vpop.xlane.xlu0 %4887 }
 0x41d   : > { %v6297_v51 = vmul.f32 %v6244_v7, %v12793_v26  ;;  %v3826_v12 = vadd.f32 %v3825_v15, %v3824_v36  ;;  %v4966_v11 = vrot.slane %v10780_v13, %v12727_v22  ;;  %v4475_v21 = vrot.slane %v4474_v10, 2  ;;  %12812 = vst [vmem:[#allocation93_spill] sm:$0xff] %v11055_v46  ;;  %v11068_v17 = vpop.xlane.xlu1 %4884 }
 0x41e   : > { %v4482_v4 = vrot.slane %v4481_v60, 4  ;;  %v4961_v6 = vrot.slane %v10749_v62, %v12728_v40  ;;  %v5416_v43 = vcombine.high %v10880_v50, %v10880_v50  ;;  %v6298_v37 = vmul.f32 %v6244_v7, %v12797_v35  ;;  %12813 = vst [vmem:[#allocation103_spill] sm:$0xff] %v11068_v17 }
 0x41f   : > { %v11047_v30 = vpop.eup %7128  ;;  %v6377_v57 = vsel %vm2888_vm0, %v6297_v51, 0.0  ;;  %v3827_v15 = vrot.slane %v3826_v12, 4  ;;  %v4469_v36 = vadd.f32 %v4468_v54, %v4467_v48  ;;  %v4367_v62 = vadd.f32 %v10726_v9, %v3823_v14 }
 0x420   : > { %v11057_v26 = vpop.eup %7130  ;;  %v3264_v13 = vsel %vm2888_vm0, %v11047_v30, 0.0  ;;  %6378 = vadd.xlane.f32.xlu1 %v6377_v57  ;;  %v4483_v8 = vadd.f32 %v4482_v4, %v4481_v60  ;;  %v11065_v50 = vrot.slane %v5416_v43, %v12786_v3  ;;  %v6380_v35 = vsel %vm2888_vm0, %v6298_v37, 0.0  ;;  %v12815_v4 = vld [vmem:[#allocation18_spill] sm:$0xff] }
 0x421   : > { %v3265_v1 = vsel %vm2888_vm0, %v11057_v26, 0.0  ;;  %v3828_v58 = vadd.f32 %v3827_v15, %v3826_v12  ;;  %v4476_v51 = vadd.f32 %v4475_v21, %v4474_v10  ;;  %6381 = vadd.xlane.f32.xlu0 %v6380_v35  ;;  %v12814_v48 = vrot.slane %v10760_v42, %v12727_v22  ;;  %v12816_v60 = vld [vmem:[#allocation58_spill] sm:$0xff]  ;;  %v12817_v42 = vld [vmem:[#allocation51_spill] sm:$0xff]  ;;  %v11098_v21 = vpop.xlane.xlu1 %4890 }
 0x422   : > { %v3266_v7 = vadd.f32 %v3265_v1, %v3264_v13  ;;  %v4484_v46 = vrot.slane %v4483_v8, 2  ;;  %v5504_v14 = vrot.slane %v11065_v50, %v7588_v5  ;;  %v4435_v54 = vmul.f32 %v10896_v45, %v12815_v4  ;;  %v11087_v1 = vpop.xlane.xlu0 %4893  ;;  %12821 = vst [vmem:[#allocation36_spill] sm:$0xff] %v11098_v21 }
 0x423   : > { %v4962_v9 = vsel %vm4202_vm1, %v4961_v6, %v12814_v48  ;;  %v4436_v57 = vmul.f32 %v10909_v39, %v12816_v60  ;;  %v3829_v43 = vrot.slane %v3828_v58, 2  ;;  %v11080_v37 = vadd.f32 %v4953_v52, %v4469_v36  ;;  %12818 = vst [vmem:[#allocation33_spill] sm:$0xff] %v11087_v1 }
 0x424   : > { %v3267_v12 = vrot.slane %v3266_v7, 4  ;;  %v4485_v10 = vadd.f32 %v4484_v46, %v4483_v8  ;;  %v5555_v15 = vmul.f32 %v5504_v14, %v12817_v42  ;;  %v4488_v6 = vsel %vm2888_vm0, %v4435_v54, 0.0 }
 0x425   : > { %v4489_v13 = vsel %vm2888_vm0, %v4436_v57, 0.0  ;;  %v4414_v48 = vrot.slane %v4367_v62, 4  ;;  %v4477_v60 = vrot.slane %v4476_v51, 1  ;;  %v4970_v52 = vrot.slane %v10774_v38, %v12728_v40 }
 0x426   : > { %v7133_v35 = vpop.eup %7132  ;;  %v3268_v4 = vadd.f32 %v3267_v12, %v3266_v7  ;;  %v5639_v8 = vsel %vm2888_vm0, %v5555_v15, 0.0  ;;  %v4490_v54 = vadd.f32 %v4489_v13, %v4488_v6  ;;  %v3830_v57 = vadd.f32 %v3829_v43, %v3828_v58  ;;  %v12822_v7 = vld [vmem:[#allocation104_spill] sm:$0xff]  ;;  %v11114_v21 = vpop.xlane.xlu0 %4899 }
 0x427   : > { %v11092_v46 = vmul.f32 %v7133_v35, %v10950_v61  ;;  %v11095_v36 = vmul.f32 %v7133_v35, %v10955_v28  ;;  %v4486_v17 = vrot.slane %v4485_v10, 1  ;;  %5640 = vadd.xlane.f32.xlu1 %v5639_v8  ;;  %v6111_v62 = vcombine.high %v10927_v2, %v10927_v2  ;;  %12823 = vst [vmem:[#allocation64_spill] sm:$0xff] %v11114_v21 }
 0x428   : > { %v3269_v1 = vrot.slane %v3268_v4, 2  ;;  %v4491_v28 = vrot.slane %v4490_v54, 4  ;;  %v5556_v12 = vmul.f32 %v5504_v14, %v12822_v7  ;;  %v4478_v6 = vadd.f32 %v4477_v60, %v4476_v51 }
 0x429   : > { %12819 = vst [vmem:[#allocation44_spill] sm:$0xff] %v11092_v46  ;;  %12820 = vst [vmem:[#allocation49_spill] sm:$0xff] %v11095_v36  ;;  %v3703_v38 = vmul.f32 %v11022_v63, %v11092_v46  ;;  %v3704_v61 = vmul.f32 %v11027_v55, %v11095_v36  ;;  %v4971_v13 = vsel %vm4202_vm1, %v4970_v52, %v4966_v11  ;;  %v3831_v14 = vrot.slane %v3830_v57, 1  ;;  %v12824_v52 = vld [vmem:[#allocation77_spill] sm:$0xff] }
 0x42a   : > { %v3270_v15 = vadd.f32 %v3269_v1, %v3268_v4  ;;  %v11109_v58 = vrot.slane %v6111_v62, %v12786_v3  ;;  %v4492_v35 = vadd.f32 %v4491_v28, %v4490_v54  ;;  %v5642_v8 = vsel %vm2888_vm0, %v5556_v12, 0.0  ;;  %v11124_v62 = vpop.xlane.xlu1 %4896  ;;  %v12826_v12 = vld [vmem:[#allocation81_spill] sm:$0xff] }
 0x42b   : > { %v3833_v43 = vsel %vm2888_vm0, %v3703_v38, 0.0  ;;  %v3834_v2 = vsel %vm2888_vm0, %v3704_v61, 0.0  ;;  %v11118_v36 = vsel %vm4397_vm5, %v4414_v48, %v11040_v16  ;;  %5643 = vadd.xlane.f32.xlu0 %v5642_v8  ;;  %v4487_v11 = vadd.f32 %v4486_v17, %v4485_v10  ;;  %12825 = vst [vmem:[#allocation12_spill] sm:$0xff] %v11124_v62 }
 0x42c   : > { %v3835_v51 = vadd.f32 %v3834_v2, %v3833_v43  ;;  %v3271_v4 = vrot.slane %v3270_v15, 1  ;;  %v4493_v60 = vrot.slane %v4492_v35, 2  ;;  %v6216_v1 = vrot.slane %v11109_v58, %v7588_v5  ;;  %v12827_v2 = vld [vmem:[#allocation89_spill] sm:$0xff] }
 0x42d   : > { %v4437_v54 = vmul.f32 %v10896_v45, %v12824_v52  ;;  %v5106_v28 = vadd.f32 %v4962_v9, %v4478_v6  ;;  %v4979_v16 = vrot.slane %v10806_v19, %v12728_v40  ;;  %v4438_v17 = vmul.f32 %v10909_v39, %v12827_v2  ;;  %v11138_v6 = vpop.xlane.xlu0 %4905 }
 0x42e   : > { %v3836_v38 = vrot.slane %v3835_v51, 4  ;;  %v3272_v61 = vadd.f32 %v3271_v4, %v3270_v15  ;;  %v4494_v48 = vadd.f32 %v4493_v60, %v4492_v35  ;;  %v6283_v43 = vmul.f32 %v6216_v1, %v12826_v12 }
 0x42f   : > { %v4497_v10 = vsel %vm2888_vm0, %v4437_v54, 0.0  ;;  %v3832_v8 = vadd.f32 %v3831_v14, %v3830_v57  ;;  %v4984_v52 = vrot.slane %v10842_v47, %v12727_v22  ;;  %v5107_v62 = vadd.f32 %v4971_v13, %v4487_v11  ;;  %v12828_v57 = vld [vmem:[#allocation16_spill] sm:$0xff] }
 0x430   : > { %v3837_v21 = vadd.f32 %v3836_v38, %v3835_v51  ;;  %7134 = vrcp.f32 %v3272_v61  ;;  %v6335_v9 = vsel %vm2888_vm0, %v6283_v43, 0.0  ;;  %v4498_v15 = vsel %vm2888_vm0, %v4438_v17, 0.0  ;;  %v12830_v38 = vld [vmem:[#allocation61_spill] sm:$0xff]  ;;  %v11150_v61 = vpop.xlane.xlu1 %4902  ;;  %v12831_v17 = vld [vmem:[#allocation56_spill] sm:$0xff] }
 0x431   : > { %v6160_v19 = vcombine.high %v11000_v18, %v11000_v18  ;;  %v5137_v4 = vrot.slane %v5106_v28, 7  ;;  %6336 = vadd.xlane.f32.xlu1 %v6335_v9  ;;  %v4499_v60 = vadd.f32 %v4498_v15, %v4497_v10  ;;  %v6284_v14 = vmul.f32 %v6216_v1, %v12828_v57  ;;  %v11167_v57 = vpop.xlane.xlu0 %4911 }
 0x432   : > { %v3838_v35 = vrot.slane %v3837_v21, 2  ;;  %v4495_v51 = vrot.slane %v4494_v48, 1  ;;  %v12829_v54 = vrot.slane %v10815_v32, %v12727_v22  ;;  %v4439_v18 = vmul.f32 %v10896_v45, %v12830_v38 }
 0x433   : > { %v11146_v11 = vrot.slane %v6160_v19, %v12786_v3  ;;  %v4500_v28 = vrot.slane %v4499_v60, 4  ;;  %v6338_v43 = vsel %vm2888_vm0, %v6284_v14, 0.0  ;;  %v4440_v1 = vmul.f32 %v10909_v39, %v12831_v17 }
 0x434   : > { %v4980_v13 = vsel %vm4202_vm1, %v4979_v16, %v12829_v54  ;;  %v3839_v12 = vadd.f32 %v3838_v35, %v3837_v21  ;;  %v4368_v10 = vadd.f32 %v10852_v49, %v3832_v8  ;;  %v5139_v32 = vrot.slane %v5107_v62, 6  ;;  %6339 = vadd.xlane.f32.xlu0 %v6338_v43  ;;  %v11175_v43 = vpop.xlane.xlu1 %4908 }
 0x435   : > { %v6248_v16 = vrot.slane %v11146_v11, %v7588_v5  ;;  %v4506_v3 = vsel %vm2888_vm0, %v4439_v18, 0.0  ;;  %v4501_v15 = vadd.f32 %v4500_v28, %v4499_v60  ;;  %v4507_v19 = vsel %vm2888_vm0, %v4440_v1, 0.0 }
 0x436   : > { %v3840_v9 = vrot.slane %v3839_v12, 1  ;;  %v5446_v21 = vcombine.high %v10892_v25, %v10892_v25  ;;  %v5138_v35 = vsel %vm4388_vm2, %v5137_v4, %v11080_v37  ;;  %v4993_v49 = vrot.slane %v10864_v41, %v12727_v22 }
 0x437   : > { %v6299_v62 = vmul.f32 %v6248_v16, %v12817_v42  ;;  %v4508_v8 = vadd.f32 %v4507_v19, %v4506_v3  ;;  %v4496_v14 = vadd.f32 %v4495_v51, %v4494_v48  ;;  %v4502_v54 = vrot.slane %v4501_v15, 2  ;;  %v12832_v48 = vld [vmem:[#allocation39_spill] sm:$0xff] }
 0x438   : > { %v5508_v60 = vrot.slane %v5446_v21, %v7588_v5  ;;  %v6300_v18 = vmul.f32 %v6248_v16, %v12822_v7  ;;  %v4416_v28 = vrot.slane %v4368_v10, 3  ;;  %v11172_v25 = vsel %vm4391_vm3, %v5139_v32, %v5138_v35  ;;  %v12835_v16 = vld [vmem:[#allocation45_spill] sm:$0xff] }
 0x439   : > { %v6383_v37 = vsel %vm2888_vm0, %v6299_v62, 0.0  ;;  %v4509_v4 = vrot.slane %v4508_v8, 4  ;;  %v3841_v42 = vadd.f32 %v3840_v9, %v3839_v12  ;;  %v4988_v1 = vrot.slane %v10831_v56, %v12728_v40  ;;  %v12836_v21 = vld [vmem:[#allocation21_spill] sm:$0xff] }
 0x43a   : > { %v7135_v41 = vpop.eup %7134  ;;  %6384 = vadd.xlane.f32.xlu1 %v6383_v37  ;;  %v5557_v51 = vmul.f32 %v5508_v60, %v12832_v48  ;;  %v6386_v3 = vsel %vm2888_vm0, %v6300_v18, 0.0  ;;  %v4441_v19 = vmul.f32 %v10896_v45, %v12835_v16  ;;  %v11189_v12 = vadd.f32 %v4980_v13, %v4496_v14  ;;  %v11199_v18 = vpop.xlane.xlu0 %5565 }
 0x43b   : > { %v11182_v7 = vmul.f32 %v7135_v41, %v11047_v30  ;;  %v11185_v10 = vmul.f32 %v7135_v41, %v11057_v26  ;;  %v4510_v32 = vadd.f32 %v4509_v4, %v4508_v8  ;;  %6387 = vadd.xlane.f32.xlu0 %v6386_v3  ;;  %v4503_v9 = vadd.f32 %v4502_v54, %v4501_v15  ;;  %v11213_v41 = vpop.xlane.xlu1 %5562 }
 0x43c   : > { %v5645_v56 = vsel %vm2888_vm0, %v5557_v51, 0.0  ;;  %v4442_v35 = vmul.f32 %v10909_v39, %v12836_v21  ;;  %v4515_v8 = vsel %vm2888_vm0, %v4441_v19, 0.0  ;;  %v4417_v13 = vsel %vm4400_vm6, %v4416_v28, %v11118_v36 }
 0x43d   : > { %12833 = vst [vmem:[#allocation13_spill] sm:$0xff] %v11182_v7  ;;  %12834 = vst [vmem:[#allocation88_spill] sm:$0xff] %v11185_v10  ;;  %v3705_v30 = vmul.f32 %v11022_v63, %v11182_v7  ;;  %v3706_v26 = vmul.f32 %v11027_v55, %v11185_v10  ;;  %v4511_v62 = vrot.slane %v4510_v32, 2  ;;  %v4989_v15 = vsel %vm4202_vm1, %v4988_v1, %v4984_v52 }
 0x43e   : > { %v4997_v14 = vrot.slane %v10856_v34, %v12728_v40  ;;  %5646 = vadd.xlane.f32.xlu1 %v5645_v56  ;;  %v4516_v63 = vsel %vm2888_vm0, %v4442_v35, 0.0  ;;  %v4369_v55 = vadd.f32 %v10921_v20, %v3841_v42  ;;  %v4504_v28 = vrot.slane %v4503_v9, 1  ;;  %v12837_v20 = vld [vmem:[#allocation40_spill] sm:$0xff]  ;;  %v12838_v35 = vld [vmem:[#allocation82_spill] sm:$0xff] }
 0x43f   : > { %v3842_v54 = vsel %vm2888_vm0, %v3705_v30, 0.0  ;;  %v3843_v37 = vsel %vm2888_vm0, %v3706_v26, 0.0  ;;  %v4517_v4 = vadd.f32 %v4516_v63, %v4515_v8  ;;  %v5002_v47 = vrot.slane %v10900_v0, %v12727_v22  ;;  %v12839_v63 = vld [vmem:[#allocation74_spill] sm:$0xff] }
 0x440   : > { %v3844_v36 = vadd.f32 %v3843_v37, %v3842_v54  ;;  %v6141_v34 = vcombine.high %v10942_v33, %v10942_v33  ;;  %v4512_v1 = vadd.f32 %v4511_v62, %v4510_v32  ;;  %v5558_v42 = vmul.f32 %v5508_v60, %v12837_v20  ;;  %v11228_v54 = vpop.xlane.xlu0 %5571  ;;  %v12840_v60 = vld [vmem:[#allocation29_spill] sm:$0xff] }
 0x441   : > { %v4518_v51 = vrot.slane %v4517_v4, 4  ;;  %v4998_v19 = vsel %vm4202_vm1, %v4997_v14, %v4993_v49  ;;  %v4443_v30 = vmul.f32 %v10896_v45, %v12838_v35  ;;  %v4418_v26 = vrot.slane %v4369_v55, 2 }
 0x442   : > { %v3845_v3 = vrot.slane %v3844_v36, 4  ;;  %v6220_v56 = vrot.slane %v6141_v34, %v7588_v5  ;;  %v5648_v0 = vsel %vm2888_vm0, %v5558_v42, 0.0  ;;  %v4444_v33 = vmul.f32 %v10909_v39, %v12839_v63 }
 0x443   : > { %v4519_v8 = vadd.f32 %v4518_v51, %v4517_v4  ;;  %v4505_v62 = vadd.f32 %v4504_v28, %v4503_v9  ;;  %5649 = vadd.xlane.f32.xlu0 %v5648_v0  ;;  %v4524_v49 = vsel %vm2888_vm0, %v4443_v30, 0.0  ;;  %v4513_v14 = vrot.slane %v4512_v1, 1  ;;  %v11235_v51 = vpop.xlane.xlu1 %5568 }
 0x444   : > { %v3846_v32 = vadd.f32 %v3845_v3, %v3844_v36  ;;  %v6285_v37 = vmul.f32 %v6220_v56, %v12840_v60  ;;  %v5011_v34 = vrot.slane %v10944_v29, %v12727_v22  ;;  %v4525_v4 = vsel %vm2888_vm0, %v4444_v33, 0.0  ;;  %v12841_v3 = vld [vmem:[#allocation71_spill] sm:$0xff] }
 0x445   : > { %v4520_v55 = vrot.slane %v4519_v8, 2  ;;  %v4526_v63 = vadd.f32 %v4525_v4, %v4524_v49  ;;  %v6190_v9 = vcombine.high %v11015_v24, %v11015_v24  ;;  %v4419_v36 = vsel %vm4403_vm7, %v4418_v26, %v4417_v13  ;;  %v12842_v29 = vld [vmem:[#allocation75_spill] sm:$0xff]  ;;  %v11248_v13 = vpop.xlane.xlu0 %5577 }
 0x446   : > { %v3847_v42 = vrot.slane %v3846_v32, 2  ;;  %v6341_v52 = vsel %vm2888_vm0, %v6285_v37, 0.0  ;;  %v5006_v30 = vrot.slane %v12841_v3, %v12728_v40  ;;  %v6286_v0 = vmul.f32 %v6220_v56, %v12842_v29  ;;  %v12843_v4 = vld [vmem:[#allocation35_spill] sm:$0xff] }
 0x447   : > { %v4521_v28 = vadd.f32 %v4520_v55, %v4519_v8  ;;  %6342 = vadd.xlane.f32.xlu1 %v6341_v52  ;;  %v5109_v33 = vadd.f32 %v4989_v15, %v4505_v62  ;;  %v4527_v35 = vrot.slane %v4526_v63, 4  ;;  %v6252_v21 = vrot.slane %v6190_v9, %v7588_v5  ;;  %v12844_v56 = vld [vmem:[#allocation47_spill] sm:$0xff]  ;;  %v11257_v55 = vpop.xlane.xlu1 %5574 }
 0x448   : > { %v3848_v60 = vadd.f32 %v3847_v42, %v3846_v32  ;;  %v4514_v16 = vadd.f32 %v4513_v14, %v4512_v1  ;;  %v6344_v49 = vsel %vm2888_vm0, %v6286_v0, 0.0  ;;  %v4445_v24 = vmul.f32 %v10896_v45, %v12843_v4  ;;  %v12845_v3 = vld [vmem:[#allocation43_spill] sm:$0xff] }
 0x449   : > { %v4522_v37 = vrot.slane %v4521_v28, 1  ;;  %v4528_v8 = vadd.f32 %v4527_v35, %v4526_v63  ;;  %v6301_v52 = vmul.f32 %v6252_v21, %v12832_v48  ;;  %6345 = vadd.xlane.f32.xlu0 %v6344_v49  ;;  %v4446_v15 = vmul.f32 %v10909_v39, %v12844_v56 }
 0x44a   : > { %v3849_v26 = vrot.slane %v3848_v60, 1  ;;  %v5007_v62 = vsel %vm4202_vm1, %v5006_v30, %v5002_v47  ;;  %v4533_v1 = vsel %vm2888_vm0, %v4445_v24, 0.0  ;;  %v5448_v14 = vcombine.high %v11065_v50, %v11065_v50  ;;  %v12846_v24 = vld [vmem:[#allocation67_spill] sm:$0xff] }
 0x44b   : > { %v4523_v32 = vadd.f32 %v4522_v37, %v4521_v28  ;;  %v4529_v9 = vrot.slane %v4528_v8, 2  ;;  %v6389_v35 = vsel %vm2888_vm0, %v6301_v52, 0.0  ;;  %v4534_v48 = vsel %vm2888_vm0, %v4446_v15, 0.0  ;;  %v12847_v52 = vld [vmem:[#allocation37_spill] sm:$0xff] }
 0x44c   : > { %v3850_v42 = vadd.f32 %v3849_v26, %v3848_v60  ;;  %v5110_v63 = vadd.f32 %v4998_v19, %v4514_v16  ;;  %v5015_v29 = vrot.slane %v12845_v3, %v12728_v40  ;;  %6390 = vadd.xlane.f32.xlu1 %v6389_v35  ;;  %v4535_v28 = vadd.f32 %v4534_v48, %v4533_v1  ;;  %v11269_v19 = vpop.xlane.xlu0 %5583  ;;  %v12848_v35 = vld [vmem:[#allocation83_spill] sm:$0xff] }
 0x44d   : > { %v5512_v47 = vrot.slane %v5448_v14, %v7588_v5  ;;  %v5111_v0 = vadd.f32 %v5007_v62, %v4523_v32  ;;  %v4530_v50 = vadd.f32 %v4529_v9, %v4528_v8  ;;  %v6302_v37 = vmul.f32 %v6252_v21, %v12837_v20  ;;  %v11277_v32 = vpop.xlane.xlu1 %5580 }
 0x44e   : > { %v4370_v30 = vadd.f32 %v10989_v27, %v3850_v42  ;;  %v5143_v60 = vrot.slane %v5109_v33, 4  ;;  %v4536_v49 = vrot.slane %v4535_v28, 4  ;;  %v4447_v16 = vmul.f32 %v10896_v45, %v12847_v52 }
 0x44f   : > { %v5559_v26 = vmul.f32 %v5512_v47, %v12846_v24  ;;  %v4531_v1 = vrot.slane %v4530_v50, 1  ;;  %v6392_v14 = vsel %vm2888_vm0, %v6302_v37, 0.0  ;;  %v4448_v27 = vmul.f32 %v10909_v39, %v12848_v35 }
 0x450   : > { %v4420_v15 = vrot.slane %v4370_v30, 1  ;;  %v5145_v8 = vrot.slane %v5110_v63, 3  ;;  %v5016_v21 = vsel %vm4202_vm1, %v5015_v29, %v5011_v34  ;;  %6393 = vadd.xlane.f32.xlu0 %v6392_v14  ;;  %v4542_v33 = vsel %vm2888_vm0, %v4447_v16, 0.0  ;;  %v12849_v29 = vld [vmem:[#allocation69_spill] sm:$0xff] }
 0x451   : > { %v5651_v20 = vsel %vm2888_vm0, %v5559_v26, 0.0  ;;  %v5147_v42 = vrot.slane %v5111_v0, 2  ;;  %v4532_v9 = vadd.f32 %v4531_v1, %v4530_v50  ;;  %v4543_v48 = vsel %vm2888_vm0, %v4448_v27, 0.0  ;;  %v12851_v0 = vld [vmem:[#allocation53_spill] sm:$0xff] }
 0x452   : > { %v4421_v62 = vsel %vm4406_vm8, %v4420_v15, %v4419_v36  ;;  %5652 = vadd.xlane.f32.xlu1 %v5651_v20  ;;  %v4537_v3 = vadd.f32 %v4536_v49, %v4535_v28  ;;  %v4544_v63 = vadd.f32 %v4543_v48, %v4542_v33  ;;  %v6143_v34 = vcombine.high %v11109_v58, %v11109_v58  ;;  %v11295_v58 = vpop.xlane.xlu0 %5589  ;;  %v12854_v48 = vld [vmem:[#allocation46_spill] sm:$0xff] }
 0x453   : > { %4425 = vst.msk [vmem:[%s10491_s7 + $0x8] sm:$0xff] %vm2888_vm0, %v4421_v62  ;;  %v5560_v30 = vmul.f32 %v5512_v47, %v12849_v29  ;;  %v12850_v37 = vrot.slane %v11189_v12, 5  ;;  %v5112_v36 = vadd.f32 %v5016_v21, %v4532_v9  ;;  %v4449_v50 = vmul.f32 %v10896_v45, %v12851_v0  ;;  %v12852_v12 = vld [vmem:[#allocation68_spill] sm:$0xff]  ;;  %v12853_v21 = vld [vmem:[#allocation31_spill] sm:$0xff]  ;;  %v11305_v62 = vpop.xlane.xlu1 %5586 }
 0x454   : > { %v4545_v15 = vrot.slane %v4544_v63, 4  ;;  %v6224_v28 = vrot.slane %v6143_v34, %v7588_v5  ;;  %v6192_v33 = vcombine.high %v11146_v11, %v11146_v11  ;;  %v12855_v11 = vld [vmem:[#allocation101_spill] sm:$0xff] }
 0x455   : > { %v5142_v26 = vsel %vm4394_vm4, %v12850_v37, %v11172_v25  ;;  %v5654_v49 = vsel %vm2888_vm0, %v5560_v30, 0.0  ;;  %v5149_v1 = vrot.slane %v5112_v36, 1  ;;  %v4450_v25 = vmul.f32 %v10909_v39, %v12852_v12  ;;  %v12872_v12 = vld [vmem:[#allocation22_spill] sm:$0xff] }
 0x456   : > { %v5144_v16 = vsel %vm4397_vm5, %v5143_v60, %v5142_v26  ;;  %5655 = vadd.xlane.f32.xlu0 %v5654_v49  ;;  %v4551_v14 = vsel %vm2888_vm0, %v4449_v50, 0.0  ;;  %v4538_v60 = vrot.slane %v4537_v3, 2  ;;  %v6287_v20 = vmul.f32 %v6224_v28, %v12853_v21 }
 0x457   : > { %v5146_v47 = vsel %vm4400_vm6, %v5145_v8, %v5144_v16  ;;  %v4552_v8 = vsel %vm2888_vm0, %v4450_v25, 0.0  ;;  %v6288_v34 = vmul.f32 %v6224_v28, %v12854_v48  ;;  %v4546_v30 = vadd.f32 %v4545_v15, %v4544_v63  ;;  %v12857_v63 = vld [vmem:[#allocation25_spill] sm:$0xff] }
 0x458   : > { %v5148_v27 = vsel %vm4403_vm7, %v5147_v42, %v5146_v47  ;;  %v6347_v37 = vsel %vm2888_vm0, %v6287_v20, 0.0  ;;  %v4553_v42 = vadd.f32 %v4552_v8, %v4551_v14  ;;  %v6256_v26 = vrot.slane %v6192_v33, %v7588_v5  ;;  %v12856_v47 = vld [vmem:[#allocation42_spill] sm:$0xff]  ;;  %v11329_v20 = vpop.xlane.xlu1 %5592 }
 0x459   : > { %v5150_v9 = vsel %vm4406_vm8, %v5149_v1, %v5148_v27  ;;  %6348 = vadd.xlane.f32.xlu1 %v6347_v37  ;;  %v6350_v36 = vsel %vm2888_vm0, %v6288_v34, 0.0  ;;  %v4451_v50 = vmul.f32 %v10896_v45, %v12855_v11  ;;  %v4539_v16 = vadd.f32 %v4538_v60, %v4537_v3  ;;  %v11319_v1 = vpop.xlane.xlu0 %5595  ;;  %v12859_v37 = vld [vmem:[#allocation54_spill] sm:$0xff] }
 0x45a   : > { %6819 = vst.msk [vmem:[%s10491_s7 + $0x10] sm:$0xff] %vm2888_vm0, %v5150_v9  ;;  %v4554_v49 = vrot.slane %v4553_v42, 4  ;;  %6351 = vadd.xlane.f32.xlu0 %v6350_v36  ;;  %v4452_v28 = vmul.f32 %v10909_v39, %v12856_v47  ;;  %v5024_v15 = vrot.slane %v12857_v63, %v12728_v40  ;;  %v6303_v25 = vmul.f32 %v6256_v26, %v12846_v24 }
 0x45b   : > { %v4560_v5 = vsel %vm2888_vm0, %v4451_v50, 0.0  ;;  %v6304_v14 = vmul.f32 %v6256_v26, %v12849_v29  ;;  %v5020_v27 = vrot.slane %v10969_v23, %v12727_v22  ;;  %v4547_v3 = vrot.slane %v4546_v30, 2  ;;  %v12858_v23 = vld [vmem:[#allocation60_spill] sm:$0xff] }
 0x45c   : > { %v4555_v60 = vadd.f32 %v4554_v49, %v4553_v42  ;;  %v4561_v21 = vsel %vm2888_vm0, %v4452_v28, 0.0  ;;  %v5029_v33 = vrot.slane %v10993_v31, %v12727_v22  ;;  %v6395_v9 = vsel %vm2888_vm0, %v6303_v25, 0.0 }
 0x45d   : > { %v4562_v8 = vadd.f32 %v4561_v21, %v4560_v5  ;;  %v6398_v24 = vsel %vm2888_vm0, %v6304_v14, 0.0  ;;  %v4540_v48 = vrot.slane %v4539_v16, 1  ;;  %v5033_v29 = vrot.slane %v10983_v44, %v12728_v40  ;;  %6396 = vadd.xlane.f32.xlu1 %v6395_v9  ;;  %v11348_v25 = vpop.xlane.xlu0 %5601  ;;  %v12860_v5 = vld [vmem:[#allocation32_spill] sm:$0xff] }
 0x45e   : > { %6399 = vadd.xlane.f32.xlu0 %v6398_v24  ;;  %v4453_v34 = vmul.f32 %v10896_v45, %v12858_v23  ;;  %v4454_v42 = vmul.f32 %v10909_v39, %v12859_v37  ;;  %v5025_v26 = vsel %vm4202_vm1, %v5024_v15, %v5020_v27  ;;  %v5042_v31 = vrot.slane %v11017_v59, %v12728_v40  ;;  %v12861_v27 = vld [vmem:[#allocation14_spill] sm:$0xff]  ;;  %v12863_v37 = vld [vmem:[#allocation93_spill] sm:$0xff] }
 0x45f   : > { %v4563_v36 = vrot.slane %v4562_v8, 4  ;;  %v4455_v50 = vmul.f32 %v10896_v45, %v11008_v53  ;;  %v4548_v49 = vadd.f32 %v4547_v3, %v4546_v30  ;;  %v4556_v28 = vrot.slane %v4555_v60, 2  ;;  %v12862_v30 = vld [vmem:[#allocation103_spill] sm:$0xff]  ;;  %v11358_v53 = vpop.xlane.xlu1 %5598 }
 0x460   : > { %v4569_v44 = vsel %vm2888_vm0, %v4453_v34, 0.0  ;;  %v4570_v63 = vsel %vm2888_vm0, %v4454_v42, 0.0  ;;  %v5038_v14 = vrot.slane %v12860_v5, %v12727_v22  ;;  %v4456_v59 = vmul.f32 %v10909_v39, %v12861_v27 }
 0x461   : > { %v4564_v21 = vadd.f32 %v4563_v36, %v4562_v8  ;;  %v4571_v15 = vadd.f32 %v4570_v63, %v4569_v44  ;;  %v4541_v9 = vadd.f32 %v4540_v48, %v4539_v16  ;;  %v5034_v24 = vsel %vm4202_vm1, %v5033_v29, %v5029_v33 }
 0x462   : > { %v5047_v3 = vrot.slane %v12862_v30, %v12727_v22  ;;  %v4578_v34 = vsel %vm2888_vm0, %v4455_v50, 0.0  ;;  %v5051_v23 = vrot.slane %v12863_v37, %v12728_v40  ;;  %v4579_v8 = vsel %vm2888_vm0, %v4456_v59, 0.0  ;;  %v12864_v50 = vld [vmem:[#allocation49_spill] sm:$0xff]  ;;  %v12865_v37 = vld [vmem:[#allocation36_spill] sm:$0xff] }
 0x463   : > { %v4565_v42 = vrot.slane %v4564_v21, 2  ;;  %v4572_v5 = vrot.slane %v4571_v15, 4  ;;  %v4549_v36 = vrot.slane %v4548_v49, 1  ;;  %v4557_v44 = vadd.f32 %v4556_v28, %v4555_v60  ;;  %v12866_v59 = vld [vmem:[#allocation12_spill] sm:$0xff]  ;;  %v11374_v28 = vpop.xlane.xlu0 %5607 }
 0x464   : > { %v5043_v16 = vsel %vm4202_vm1, %v5042_v31, %v5038_v14  ;;  %v4580_v48 = vadd.f32 %v4579_v8, %v4578_v34  ;;  %v4457_v63 = vmul.f32 %v10896_v45, %v11092_v46  ;;  %v4458_v30 = vmul.f32 %v10909_v39, %v12864_v50  ;;  %12867 = vst [vmem:[#allocation52_spill] sm:$0xff] %v11374_v28  ;;  %v11398_v46 = vld [vmem:[%s8804_s22 + $0x20] sm:$0xff] }
 0x465   : > { %v4566_v33 = vadd.f32 %v4565_v42, %v4564_v21  ;;  %v4573_v29 = vadd.f32 %v4572_v5, %v4571_v15  ;;  %v11368_v27 = vadd.f32 %v5025_v26, %v4541_v9  ;;  %v5056_v47 = vrot.slane %v12865_v37, %v12727_v22  ;;  %v11379_v5 = vpop.xlane.xlu1 %5604 }
 0x466   : > { %v5065_v11 = vrot.slane %v12866_v59, %v12727_v22  ;;  %v4581_v60 = vrot.slane %v4580_v48, 4  ;;  %v5052_v31 = vsel %vm4202_vm1, %v5051_v23, %v5047_v3  ;;  %v4587_v21 = vsel %vm2888_vm0, %v4457_v63, 0.0  ;;  %12868 = vst [vmem:[#allocation87_spill] sm:$0xff] %v11379_v5  ;;  %v12869_v23 = vld [vmem:[#allocation33_spill] sm:$0xff] }
 0x467   : > { %v4574_v14 = vrot.slane %v4573_v29, 2  ;;  %v4588_v15 = vsel %vm2888_vm0, %v4458_v30, 0.0  ;;  %v4550_v34 = vadd.f32 %v4549_v36, %v4548_v49  ;;  %v4558_v42 = vrot.slane %v4557_v44, 1  ;;  %v12870_v30 = vld [vmem:[#allocation64_spill] sm:$0xff] }
 0x468   : > { %v4582_v26 = vadd.f32 %v4581_v60, %v4580_v48  ;;  %v4589_v9 = vadd.f32 %v4588_v15, %v4587_v21  ;;  %v4567_v8 = vrot.slane %v4566_v33, 1  ;;  %v4459_v59 = vmul.f32 %v10896_v45, %v11182_v7 }
 0x469   : > { %v4575_v37 = vadd.f32 %v4574_v14, %v4573_v29  ;;  %v4460_v50 = vmul.f32 %v10909_v39, %v11185_v10  ;;  %v5060_v3 = vrot.slane %v12869_v23, %v12728_v40  ;;  %v5074_v49 = vrot.slane %v11150_v61, %v12727_v22  ;;  %v11393_v23 = vpop.xlane.xlu0 %5613 }
 0x46a   : > { %v4583_v36 = vrot.slane %v4582_v26, 2  ;;  %v4590_v48 = vrot.slane %v4589_v9, 4  ;;  %v5069_v60 = vrot.slane %v12870_v30, %v12728_v40  ;;  %v4596_v29 = vsel %vm2888_vm0, %v4459_v59, 0.0  ;;  %12871 = vst [vmem:[#allocation90_spill] sm:$0xff] %v11393_v23 }
 0x46b   : > { %v4576_v63 = vrot.slane %v4575_v37, 1  ;;  %v4597_v45 = vsel %vm2888_vm0, %v4460_v50, 0.0  ;;  %v5114_v14 = vadd.f32 %v5034_v24, %v4550_v34  ;;  %v4559_v10 = vadd.f32 %v4558_v42, %v4557_v44  ;;  %v11403_v50 = vld [vmem:[%s8804_s22 + $0x28] sm:$0xff]  ;;  %v12873_v24 = vld [vmem:[#allocation24_spill] sm:$0xff] }
 0x46c   : > { %v4584_v39 = vadd.f32 %v4583_v36, %v4582_v26  ;;  %v4591_v21 = vadd.f32 %v4590_v48, %v4589_v9  ;;  %v4598_v15 = vadd.f32 %v4597_v45, %v4596_v29  ;;  %v4568_v7 = vadd.f32 %v4567_v8, %v4566_v33  ;;  %v11407_v26 = vpop.xlane.xlu1 %5610 }
 0x46d   : > { %v5078_v61 = vrot.slane %v11138_v6, %v12728_v40  ;;  %v5173_v30 = vmul.f32 %v11398_v46, %v12872_v12  ;;  %v5174_v34 = vmul.f32 %v11403_v50, %v12873_v24  ;;  %12874 = vst [vmem:[#allocation80_spill] sm:$0xff] %v11407_v26  ;;  %v4577_v44 = vadd.f32 %v4576_v63, %v4575_v37  ;;  %v12875_v37 = vld [vmem:[#allocation91_spill] sm:$0xff] }
 0x46e   : > { %v4585_v0 = vrot.slane %v4584_v39, 1  ;;  %v4592_v59 = vrot.slane %v4591_v21, 2  ;;  %v4599_v5 = vrot.slane %v4598_v15, 4  ;;  %v5061_v33 = vsel %vm4202_vm1, %v5060_v3, %v5056_v47  ;;  %v11416_v3 = vpop.xlane.xlu0 %5619 }
 0x46f   : > { %v5070_v6 = vsel %vm4202_vm1, %v5069_v60, %v5065_v11  ;;  %v5205_v42 = vsel %vm2888_vm0, %v5173_v30, 0.0  ;;  %v5206_v48 = vsel %vm2888_vm0, %v5174_v34, 0.0  ;;  %v5151_v29 = vrot.slane %v5114_v14, 7 }
 0x470   : > { %v4586_v9 = vadd.f32 %v4585_v0, %v4584_v39  ;;  %v4593_v8 = vadd.f32 %v4592_v59, %v4591_v21  ;;  %v4600_v36 = vadd.f32 %v4599_v5, %v4598_v15  ;;  %v5115_v45 = vadd.f32 %v5043_v16, %v4559_v10  ;;  %v12876_v5 = vld [vmem:[#allocation66_spill] sm:$0xff] }
 0x471   : > { %v5079_v12 = vsel %vm4202_vm1, %v5078_v61, %v5074_v49  ;;  %v5207_v23 = vadd.f32 %v5206_v48, %v5205_v42  ;;  %v5116_v24 = vadd.f32 %v5052_v31, %v4568_v7  ;;  %v5175_v47 = vmul.f32 %v11398_v46, %v12875_v37  ;;  %v11423_v31 = vpop.xlane.xlu1 %5616 }
 0x472   : > { %v4594_v28 = vrot.slane %v4593_v8, 1  ;;  %v4601_v26 = vrot.slane %v4600_v36, 2  ;;  %v5117_v11 = vadd.f32 %v5061_v33, %v4577_v44  ;;  %v5118_v63 = vadd.f32 %v5070_v6, %v4586_v9  ;;  %v12878_v33 = vld [vmem:[#allocation105_spill] sm:$0xff] }
 0x473   : > { %v5087_v0 = vrot.slane %v11167_v57, %v12728_v40  ;;  %v5176_v60 = vmul.f32 %v11403_v50, %v12876_v5  ;;  %v5208_v49 = vrot.slane %v5207_v23, 4  ;;  %v5214_v7 = vsel %vm2888_vm0, %v5175_v47, 0.0 }
 0x474   : > { %v4595_v10 = vadd.f32 %v4594_v28, %v4593_v8  ;;  %v4602_v16 = vadd.f32 %v4601_v26, %v4600_v36  ;;  %v5152_v14 = vsel %vm4388_vm2, %v5151_v29, %v11368_v27  ;;  %v5153_v39 = vrot.slane %v5115_v45, 6  ;;  %v12877_v26 = vld [vmem:[#allocation78_spill] sm:$0xff] }
 0x475   : > { %v5083_v21 = vrot.slane %v11175_v43, %v12727_v22  ;;  %v5215_v15 = vsel %vm2888_vm0, %v5176_v60, 0.0  ;;  %v5155_v57 = vrot.slane %v5116_v24, 5  ;;  %v5157_v28 = vrot.slane %v5117_v11, 4  ;;  %v11435_v43 = vpop.xlane.xlu0 %6312 }
 0x476   : > { %v5119_v61 = vadd.f32 %v5079_v12, %v4595_v10  ;;  %v4603_v30 = vrot.slane %v4602_v16, 1  ;;  %v5216_v59 = vadd.f32 %v5215_v15, %v5214_v7  ;;  %v5177_v44 = vmul.f32 %v11398_v46, %v12877_v26  ;;  %v12880_v10 = vld [vmem:[#allocation58_spill] sm:$0xff] }
 0x477   : > { %v5088_v34 = vsel %vm4202_vm1, %v5087_v0, %v5083_v21  ;;  %v5178_v6 = vmul.f32 %v11403_v50, %v12878_v33  ;;  %v5159_v27 = vrot.slane %v5118_v63, 3  ;;  %v5209_v9 = vadd.f32 %v5208_v49, %v5207_v23  ;;  %v11441_v0 = vpop.xlane.xlu1 %5622  ;;  %v12879_v23 = vld [vmem:[#allocation18_spill] sm:$0xff] }
 0x478   : > { %v4604_v42 = vadd.f32 %v4603_v30, %v4602_v16  ;;  %v5217_v8 = vrot.slane %v5216_v59, 4  ;;  %v5154_v24 = vsel %vm4391_vm3, %v5153_v39, %v5152_v14  ;;  %v5161_v12 = vrot.slane %v5119_v61, 2 }
 0x479   : > { %v5223_v36 = vsel %vm2888_vm0, %v5177_v44, 0.0  ;;  %v5224_v48 = vsel %vm2888_vm0, %v5178_v6, 0.0  ;;  %v5156_v29 = vsel %vm4394_vm4, %v5155_v57, %v5154_v24  ;;  %v5179_v60 = vmul.f32 %v11398_v46, %v12879_v23  ;;  %v11455_v44 = vpop.xlane.xlu0 %6360 }
 0x47a   : > { %v5120_v45 = vadd.f32 %v5088_v34, %v4604_v42  ;;  %v5218_v47 = vadd.f32 %v5217_v8, %v5216_v59  ;;  %v5225_v11 = vadd.f32 %v5224_v48, %v5223_v36  ;;  %v5158_v63 = vsel %vm4397_vm5, %v5157_v28, %v5156_v29 }
 0x47b   : > { %v5180_v16 = vmul.f32 %v11403_v50, %v12880_v10  ;;  %v5160_v49 = vsel %vm4400_vm6, %v5159_v27, %v5158_v63  ;;  %v5210_v14 = vrot.slane %v5209_v9, 2  ;;  %v5696_v15 = vrot.slane %v11199_v18, %v12728_v40  ;;  %v12881_v18 = vld [vmem:[#allocation77_spill] sm:$0xff]  ;;  %v11469_v48 = vpop.xlane.xlu1 %6315 }
 0x47c   : > { %v5163_v7 = vrot.slane %v5120_v45, 1  ;;  %v5226_v39 = vrot.slane %v5225_v11, 4  ;;  %v5162_v21 = vsel %vm4403_vm7, %v5161_v12, %v5160_v49  ;;  %v5232_v57 = vsel %vm2888_vm0, %v5179_v60, 0.0 }
 0x47d   : > { %v5233_v61 = vsel %vm2888_vm0, %v5180_v16, 0.0  ;;  %v5219_v59 = vrot.slane %v5218_v47, 2  ;;  %v5692_v6 = vrot.slane %v11213_v41, %v12727_v22  ;;  %v5705_v27 = vrot.slane %v11228_v54, %v12728_v40 }
 0x47e   : > { %v5164_v30 = vsel %vm4406_vm8, %v5163_v7, %v5162_v21  ;;  %v5227_v28 = vadd.f32 %v5226_v39, %v5225_v11  ;;  %v5234_v34 = vadd.f32 %v5233_v61, %v5232_v57  ;;  %v5181_v42 = vmul.f32 %v11398_v46, %v12881_v18  ;;  %v12882_v61 = vld [vmem:[#allocation45_spill] sm:$0xff] }
 0x47f   : > { %6820 = vst.msk [vmem:[%s10491_s7 + $0x18] sm:$0xff] %vm2888_vm0, %v5164_v30  ;;  %v5182_v8 = vmul.f32 %v11403_v50, %v12827_v2  ;;  %v5701_v24 = vrot.slane %v11235_v51, %v12727_v22  ;;  %v5211_v12 = vadd.f32 %v5210_v14, %v5209_v9  ;;  %v5697_v41 = vsel %vm4202_vm1, %v5696_v15, %v5692_v6 }
 0x480   : > { %v5235_v36 = vrot.slane %v5234_v34, 4  ;;  %v5241_v29 = vsel %vm2888_vm0, %v5181_v42, 0.0  ;;  %v5183_v54 = vmul.f32 %v11398_v46, %v12830_v38  ;;  %v5220_v11 = vadd.f32 %v5219_v59, %v5218_v47  ;;  %v11484_v47 = vpop.xlane.xlu0 %5625  ;;  %v12883_v59 = vld [vmem:[#allocation21_spill] sm:$0xff] }
 0x481   : > { %v5242_v45 = vsel %vm2888_vm0, %v5182_v8, 0.0  ;;  %v5228_v63 = vrot.slane %v5227_v28, 2  ;;  %v5710_v51 = vrot.slane %v11257_v55, %v12727_v22  ;;  %v5706_v9 = vsel %vm4202_vm1, %v5705_v27, %v5701_v24  ;;  %v11495_v8 = vpop.xlane.xlu1 %6363 }
 0x482   : > { %v5236_v60 = vadd.f32 %v5235_v36, %v5234_v34  ;;  %v5243_v16 = vadd.f32 %v5242_v45, %v5241_v29  ;;  %v5714_v49 = vrot.slane %v11248_v13, %v12728_v40  ;;  %v5184_v7 = vmul.f32 %v11403_v50, %v12831_v17 }
 0x483   : > { %v5212_v14 = vrot.slane %v5211_v12, 1  ;;  %v5250_v15 = vsel %vm2888_vm0, %v5183_v54, 0.0  ;;  %v5723_v57 = vrot.slane %v11269_v19, %v12728_v40  ;;  %v5185_v30 = vmul.f32 %v11398_v46, %v12882_v61 }
 0x484   : > { %v5237_v39 = vrot.slane %v5236_v60, 2  ;;  %v5244_v21 = vrot.slane %v5243_v16, 4  ;;  %v5251_v55 = vsel %vm2888_vm0, %v5184_v7, 0.0  ;;  %v5186_v13 = vmul.f32 %v11403_v50, %v12883_v59 }
 0x485   : > { %v5221_v34 = vrot.slane %v5220_v11, 1  ;;  %v5719_v6 = vrot.slane %v11277_v32, %v12727_v22  ;;  %v5229_v27 = vadd.f32 %v5228_v63, %v5227_v28  ;;  %v5252_v36 = vadd.f32 %v5251_v55, %v5250_v15 }
 0x486   : > { %v5245_v42 = vadd.f32 %v5244_v21, %v5243_v16  ;;  %v5238_v24 = vadd.f32 %v5237_v39, %v5236_v60  ;;  %v5259_v19 = vsel %vm2888_vm0, %v5185_v30, 0.0  ;;  %v5260_v29 = vsel %vm2888_vm0, %v5186_v13, 0.0  ;;  %v12884_v21 = vld [vmem:[#allocation82_spill] sm:$0xff] }
 0x487   : > { %v5213_v45 = vadd.f32 %v5212_v14, %v5211_v12  ;;  %v5715_v54 = vsel %vm4202_vm1, %v5714_v49, %v5710_v51  ;;  %v5728_v7 = vrot.slane %v11305_v62, %v12727_v22  ;;  %v5724_v61 = vsel %vm4202_vm1, %v5723_v57, %v5719_v6  ;;  %v11507_v12 = vpop.xlane.xlu0 %6321  ;;  %v12885_v62 = vld [vmem:[#allocation74_spill] sm:$0xff] }
 0x488   : > { %v5246_v59 = vrot.slane %v5245_v42, 2  ;;  %v5737_v32 = vrot.slane %v11329_v20, %v12727_v22  ;;  %v5253_v28 = vrot.slane %v5252_v36, 4  ;;  %v5261_v63 = vadd.f32 %v5260_v29, %v5259_v19 }
 0x489   : > { %v5222_v60 = vadd.f32 %v5221_v34, %v5220_v11  ;;  %v5230_v16 = vrot.slane %v5229_v27, 1  ;;  %v5187_v15 = vmul.f32 %v11398_v46, %v12884_v21  ;;  %v5239_v51 = vrot.slane %v5238_v24, 1 }
 0x48a   : > { %v5247_v39 = vadd.f32 %v5246_v59, %v5245_v42  ;;  %v5254_v49 = vadd.f32 %v5253_v28, %v5252_v36  ;;  %v5262_v14 = vrot.slane %v5261_v63, 4  ;;  %v5188_v55 = vmul.f32 %v11403_v50, %v12885_v62  ;;  %v11516_v59 = vpop.xlane.xlu1 %6318 }
 0x48b   : > { %v5849_v57 = vadd.f32 %v5697_v41, %v5213_v45  ;;  %v5732_v20 = vrot.slane %v11295_v58, %v12728_v40  ;;  %v5741_v11 = vrot.slane %v11319_v1, %v12728_v40  ;;  %v5268_v30 = vsel %vm2888_vm0, %v5187_v15, 0.0 }
 0x48c   : > { %v5248_v13 = vrot.slane %v5247_v39, 1  ;;  %v5255_v34 = vrot.slane %v5254_v49, 2  ;;  %v5263_v6 = vadd.f32 %v5262_v14, %v5261_v63  ;;  %v5269_v42 = vsel %vm2888_vm0, %v5188_v55, 0.0 }
 0x48d   : > { %v5850_v36 = vadd.f32 %v5706_v9, %v5222_v60  ;;  %v5231_v19 = vadd.f32 %v5230_v16, %v5229_v27  ;;  %v5750_v41 = vrot.slane %v11348_v25, %v12728_v40  ;;  %v5270_v29 = vadd.f32 %v5269_v42, %v5268_v30  ;;  %v11528_v27 = vpop.xlane.xlu0 %6369 }
 0x48e   : > { %v5240_v45 = vadd.f32 %v5239_v51, %v5238_v24  ;;  %v5746_v58 = vrot.slane %v11358_v53, %v12727_v22  ;;  %v5256_v1 = vadd.f32 %v5255_v34, %v5254_v49  ;;  %v5264_v28 = vrot.slane %v5263_v6, 2 }
 0x48f   : > { %v5733_v15 = vsel %vm4202_vm1, %v5732_v20, %v5728_v7  ;;  %v5271_v62 = vrot.slane %v5270_v29, 4  ;;  %v5189_v63 = vmul.f32 %v11398_v46, %v12843_v4  ;;  %v5190_v9 = vmul.f32 %v11403_v50, %v12844_v56  ;;  %v11532_v7 = vpop.xlane.xlu1 %6366 }
 0x490   : > { %v5249_v60 = vadd.f32 %v5248_v13, %v5247_v39  ;;  %v5257_v25 = vrot.slane %v5256_v1, 1  ;;  %v5742_v24 = vsel %vm4202_vm1, %v5741_v11, %v5737_v32  ;;  %v5265_v16 = vadd.f32 %v5264_v28, %v5263_v6 }
 0x491   : > { %v5881_v51 = vrot.slane %v5850_v36, 7  ;;  %v5851_v53 = vadd.f32 %v5715_v54, %v5231_v19  ;;  %v5751_v49 = vsel %vm4202_vm1, %v5750_v41, %v5746_v58  ;;  %v5272_v14 = vadd.f32 %v5271_v62, %v5270_v29  ;;  %v12886_v62 = vld [vmem:[#allocation52_spill] sm:$0xff]  ;;  %v12887_v19 = vld [vmem:[#allocation87_spill] sm:$0xff]  ;;  %v11546_v58 = vpop.xlane.xlu0 %5631 }
 0x492   : > { %v5852_v55 = vadd.f32 %v5724_v61, %v5240_v45  ;;  %v5258_v20 = vadd.f32 %v5257_v25, %v5256_v1  ;;  %v5266_v30 = vrot.slane %v5265_v16, 1  ;;  %v5191_v34 = vmul.f32 %v11398_v46, %v12847_v52  ;;  %v11549_v25 = vld [vmem:[%s8804_s22 + $0x30] sm:$0xff] }
 0x493   : > { %v5273_v42 = vrot.slane %v5272_v14, 2  ;;  %v5277_v39 = vsel %vm2888_vm0, %v5189_v63, 0.0  ;;  %v5278_v13 = vsel %vm2888_vm0, %v5190_v9, 0.0  ;;  %v5192_v32 = vmul.f32 %v11403_v50, %v12848_v35 }
 0x494   : > { %v5853_v54 = vadd.f32 %v5733_v15, %v5249_v60  ;;  %v5267_v11 = vadd.f32 %v5266_v30, %v5265_v16  ;;  %v5759_v61 = vrot.slane %v12886_v62, %v12728_v40  ;;  %v5286_v6 = vsel %vm2888_vm0, %v5191_v34, 0.0 }
 0x495   : > { %v5854_v36 = vadd.f32 %v5742_v24, %v5258_v20  ;;  %v5755_v41 = vrot.slane %v12887_v19, %v12727_v22  ;;  %v5274_v29 = vadd.f32 %v5273_v42, %v5272_v14  ;;  %v5287_v45 = vsel %vm2888_vm0, %v5192_v32, 0.0  ;;  %v11554_v24 = vld [vmem:[%s8804_s22 + $0x38] sm:$0xff]  ;;  %v11558_v20 = vpop.xlane.xlu1 %5628 }
 0x496   : > { %v5883_v1 = vrot.slane %v5851_v53, 6  ;;  %v5855_v28 = vadd.f32 %v5751_v49, %v5267_v11  ;;  %v5279_v63 = vadd.f32 %v5278_v13, %v5277_v39  ;;  %v5288_v15 = vadd.f32 %v5287_v45, %v5286_v6 }
 0x497   : > { %v5885_v9 = vrot.slane %v5852_v55, 5  ;;  %v5275_v60 = vrot.slane %v5274_v29, 1  ;;  %v5919_v16 = vmul.f32 %v11549_v25, %v12875_v37  ;;  %v5920_v14 = vmul.f32 %v11554_v24, %v12876_v5 }
 0x498   : > { %v5882_v30 = vsel %vm4388_vm2, %v5881_v51, %v5849_v57  ;;  %v5887_v53 = vrot.slane %v5853_v54, 4  ;;  %v5760_v49 = vsel %vm4202_vm1, %v5759_v61, %v5755_v41  ;;  %v5289_v34 = vrot.slane %v5288_v15, 4  ;;  %v11568_v51 = vpop.xlane.xlu0 %6309 }
 0x499   : > { %v5889_v55 = vrot.slane %v5854_v36, 3  ;;  %v5276_v42 = vadd.f32 %v5275_v60, %v5274_v29  ;;  %v5958_v39 = vsel %vm2888_vm0, %v5919_v16, 0.0  ;;  %v5959_v13 = vsel %vm2888_vm0, %v5920_v14, 0.0  ;;  %v11574_v29 = vpop.xlane.xlu1 %6306  ;;  %v12888_v60 = vld [vmem:[#allocation53_spill] sm:$0xff]  ;;  %v12889_v14 = vld [vmem:[#allocation68_spill] sm:$0xff] }
 0x49a   : > { %v5884_v37 = vsel %vm4391_vm3, %v5883_v1, %v5882_v30  ;;  %v5891_v32 = vrot.slane %v5855_v28, 2  ;;  %v5280_v11 = vrot.slane %v5279_v63, 4  ;;  %v5935_v57 = vmul.f32 %v11549_v25, %v12847_v52 }
 0x49b   : > { %v5886_v5 = vsel %vm4394_vm4, %v5885_v9, %v5884_v37  ;;  %v5856_v62 = vadd.f32 %v5760_v49, %v5276_v42  ;;  %v5290_v61 = vadd.f32 %v5289_v34, %v5288_v15  ;;  %v5960_v6 = vadd.f32 %v5959_v13, %v5958_v39 }
 0x49c   : > { %v5888_v54 = vsel %vm4397_vm5, %v5887_v53, %v5886_v5  ;;  %v5936_v36 = vmul.f32 %v11554_v24, %v12848_v35  ;;  %v5281_v1 = vadd.f32 %v5280_v11, %v5279_v63  ;;  %v6030_v52 = vsel %vm2888_vm0, %v5935_v57, 0.0  ;;  %v11589_v49 = vpop.xlane.xlu0 %6327 }
 0x49d   : > { %v5890_v19 = vsel %vm4400_vm6, %v5889_v55, %v5888_v54  ;;  %v5893_v41 = vrot.slane %v5856_v62, 1  ;;  %v5193_v15 = vmul.f32 %v11398_v46, %v12888_v60  ;;  %v5291_v35 = vrot.slane %v5290_v61, 2  ;;  %v11594_v37 = vpop.xlane.xlu1 %6324  ;;  %v12890_v62 = vld [vmem:[#allocation90_spill] sm:$0xff] }
 0x49e   : > { %v5892_v45 = vsel %vm4403_vm7, %v5891_v32, %v5890_v19  ;;  %v6031_v9 = vsel %vm2888_vm0, %v5936_v36, 0.0  ;;  %v5961_v16 = vrot.slane %v5960_v6, 4  ;;  %v5194_v30 = vmul.f32 %v11403_v50, %v12889_v14 }
 0x49f   : > { %v5894_v28 = vsel %vm4406_vm8, %v5893_v41, %v5892_v45  ;;  %v5295_v53 = vsel %vm2888_vm0, %v5193_v15, 0.0  ;;  %v5921_v63 = vmul.f32 %v11549_v25, %v12877_v26  ;;  %v6032_v34 = vadd.f32 %v6031_v9, %v6030_v52 }
 0x4a0   : > { %6823 = vst.msk [vmem:[%s10491_s7 + $0x20] sm:$0xff] %vm2888_vm0, %v5894_v28  ;;  %v5296_v55 = vsel %vm2888_vm0, %v5194_v30, 0.0  ;;  %v5282_v42 = vrot.slane %v5281_v1, 2  ;;  %v5922_v13 = vmul.f32 %v11554_v24, %v12878_v33  ;;  %v5292_v32 = vadd.f32 %v5291_v35, %v5290_v61  ;;  %v11613_v45 = vpop.xlane.xlu0 %6357 }
 0x4a1   : > { %v5297_v39 = vadd.f32 %v5296_v55, %v5295_v53  ;;  %v5962_v11 = vadd.f32 %v5961_v16, %v5960_v6  ;;  %v6454_v5 = vrot.slane %v11516_v59, %v12727_v22  ;;  %v6458_v26 = vrot.slane %v11507_v12, %v12728_v40  ;;  %v12891_v6 = vld [vmem:[#allocation80_spill] sm:$0xff]  ;;  %v11620_v30 = vpop.xlane.xlu1 %6354 }
 0x4a2   : > { %v5768_v57 = vrot.slane %v12890_v62, %v12728_v40  ;;  %v5967_v54 = vsel %vm2888_vm0, %v5921_v63, 0.0  ;;  %v5968_v36 = vsel %vm2888_vm0, %v5922_v13, 0.0  ;;  %v6033_v19 = vrot.slane %v6032_v34, 4 }
 0x4a3   : > { %v11605_v33 = vsel %vm4202_vm1, %v6458_v26, %v6454_v5  ;;  %v5937_v61 = vmul.f32 %v11549_v25, %v12888_v60  ;;  %v5764_v59 = vrot.slane %v12891_v6, %v12727_v22  ;;  %v5298_v41 = vrot.slane %v5297_v39, 4  ;;  %v12893_v5 = vld [vmem:[#allocation42_spill] sm:$0xff] }
 0x4a4   : > { %v5938_v12 = vmul.f32 %v11554_v24, %v12889_v14  ;;  %v5283_v28 = vadd.f32 %v5282_v42, %v5281_v1  ;;  %v5293_v52 = vrot.slane %v5292_v32, 1  ;;  %v5963_v9 = vrot.slane %v5962_v11, 2 }
 0x4a5   : > { %v5969_v15 = vadd.f32 %v5968_v36, %v5967_v54  ;;  %v5773_v35 = vrot.slane %v11423_v31, %v12727_v22  ;;  %v5769_v16 = vsel %vm4202_vm1, %v5768_v57, %v5764_v59  ;;  %v5777_v60 = vrot.slane %v11416_v3, %v12728_v40  ;;  %v12892_v31 = vld [vmem:[#allocation101_spill] sm:$0xff] }
 0x4a6   : > { %v5782_v53 = vrot.slane %v11441_v0, %v12727_v22  ;;  %v6034_v14 = vadd.f32 %v6033_v19, %v6032_v34  ;;  %v6039_v63 = vsel %vm2888_vm0, %v5937_v61, 0.0  ;;  %v6040_v1 = vsel %vm2888_vm0, %v5938_v12, 0.0  ;;  %v11635_v61 = vpop.xlane.xlu0 %6375 }
 0x4a7   : > { %v6449_v55 = vrot.slane %v11469_v48, %v12728_v40  ;;  %v5299_v42 = vadd.f32 %v5298_v41, %v5297_v39  ;;  %v5195_v13 = vmul.f32 %v11398_v46, %v12892_v31  ;;  %v5196_v3 = vmul.f32 %v11403_v50, %v12893_v5  ;;  %v12894_v41 = vld [vmem:[#allocation22_spill] sm:$0xff] }
 0x4a8   : > { %v5284_v26 = vrot.slane %v5283_v28, 1  ;;  %v5294_v62 = vadd.f32 %v5293_v52, %v5292_v32  ;;  %v5964_v57 = vadd.f32 %v5963_v9, %v5962_v11  ;;  %v5970_v54 = vrot.slane %v5969_v15, 4  ;;  %v12895_v52 = vld [vmem:[#allocation24_spill] sm:$0xff] }
 0x4a9   : > { %v5778_v0 = vsel %vm4202_vm1, %v5777_v60, %v5773_v35  ;;  %v6041_v34 = vadd.f32 %v6040_v1, %v6039_v63  ;;  %v5304_v36 = vsel %vm2888_vm0, %v5195_v13, 0.0  ;;  %v5305_v19 = vsel %vm2888_vm0, %v5196_v3, 0.0  ;;  %v11647_v35 = vpop.xlane.xlu1 %6372 }
 0x4aa   : > { %v6445_v48 = vrot.slane %v11435_v43, %v12727_v22  ;;  %v6521_v39 = vrot.slane %v11495_v8, %v12728_v40  ;;  %v6035_v6 = vrot.slane %v6034_v14, 2  ;;  %v5306_v59 = vadd.f32 %v5305_v19, %v5304_v36 }
 0x4ab   : > { %v6517_v32 = vrot.slane %v11455_v44, %v12727_v22  ;;  %v5300_v11 = vrot.slane %v5299_v42, 2  ;;  %v5917_v12 = vmul.f32 %v11549_v25, %v12894_v41  ;;  %v5918_v9 = vmul.f32 %v11554_v24, %v12895_v52 }
 0x4ac   : > { %v5285_v60 = vadd.f32 %v5284_v26, %v5283_v28  ;;  %v5858_v63 = vadd.f32 %v5778_v0, %v5294_v62  ;;  %v5965_v43 = vrot.slane %v5964_v57, 1  ;;  %v5971_v1 = vadd.f32 %v5970_v54, %v5969_v15  ;;  %v11659_v26 = vpop.xlane.xlu0 %5637 }
 0x4ad   : > { %v6042_v13 = vrot.slane %v6041_v34, 4  ;;  %v5307_v8 = vrot.slane %v5306_v59, 4  ;;  %v5949_v3 = vsel %vm2888_vm0, %v5917_v12, 0.0  ;;  %v5950_v36 = vsel %vm2888_vm0, %v5918_v9, 0.0 }
 0x4ae   : > { %v6450_v44 = vsel %vm4202_vm1, %v6449_v55, %v6445_v48  ;;  %v6036_v19 = vadd.f32 %v6035_v6, %v6034_v14  ;;  %v5786_v41 = vrot.slane %v11484_v47, %v12728_v40  ;;  %v5951_v21 = vadd.f32 %v5950_v36, %v5949_v3 }
 0x4af   : > { %v6522_v52 = vsel %vm4202_vm1, %v6521_v39, %v6517_v32  ;;  %v5301_v17 = vadd.f32 %v5300_v11, %v5299_v42  ;;  %v5923_v28 = vmul.f32 %v11549_v25, %v12879_v23  ;;  %v5924_v15 = vmul.f32 %v11554_v24, %v12880_v10  ;;  %v11663_v39 = vpop.xlane.xlu1 %5634 }
 0x4b0   : > { %v5857_v62 = vadd.f32 %v5769_v16, %v5285_v60  ;;  %v5895_v54 = vrot.slane %v5858_v63, 7  ;;  %v5966_v0 = vadd.f32 %v5965_v43, %v5964_v57  ;;  %v5972_v55 = vrot.slane %v5971_v1, 2  ;;  %v11682_v43 = vpop.xlane.xlu0 %6333 }
 0x4b1   : > { %v6043_v14 = vadd.f32 %v6042_v13, %v6041_v34  ;;  %v5308_v48 = vadd.f32 %v5307_v8, %v5306_v59  ;;  %v5976_v47 = vsel %vm2888_vm0, %v5923_v28, 0.0  ;;  %v5977_v6 = vsel %vm2888_vm0, %v5924_v15, 0.0 }
 0x4b2   : > { %v6037_v42 = vrot.slane %v6036_v19, 1  ;;  %v5787_v23 = vsel %vm4202_vm1, %v5786_v41, %v5782_v53  ;;  %v6526_v10 = vrot.slane %v11532_v7, %v12727_v22  ;;  %v5952_v32 = vrot.slane %v5951_v21, 4 }
 0x4b3   : > { %v5302_v11 = vrot.slane %v5301_v17, 1  ;;  %v5791_v16 = vrot.slane %v11558_v20, %v12727_v22  ;;  %v5978_v57 = vadd.f32 %v5977_v6, %v5976_v47  ;;  %v5933_v34 = vmul.f32 %v11549_v25, %v12843_v4 }
 0x4b4   : > { %v11672_v59 = vadd.f32 %v6450_v44, %v5966_v0  ;;  %v5973_v12 = vadd.f32 %v5972_v55, %v5971_v1  ;;  %v6530_v9 = vrot.slane %v11528_v27, %v12728_v40  ;;  %v5934_v53 = vmul.f32 %v11554_v24, %v12844_v56  ;;  %v11689_v44 = vpop.xlane.xlu1 %6330 }
 0x4b5   : > { %v11679_v7 = vsel %vm4388_vm2, %v5895_v54, %v5857_v62  ;;  %v6044_v60 = vrot.slane %v6043_v14, 2  ;;  %v5309_v63 = vrot.slane %v5308_v48, 2  ;;  %v6021_v20 = vsel %vm2888_vm0, %v5933_v34, 0.0 }
 0x4b6   : > { %v6038_v13 = vadd.f32 %v6037_v42, %v6036_v19  ;;  %v6436_v4 = vrot.slane %v11574_v29, %v12727_v22  ;;  %v5953_v1 = vadd.f32 %v5952_v32, %v5951_v21  ;;  %v6022_v8 = vsel %vm2888_vm0, %v5934_v53, 0.0 }
 0x4b7   : > { %v5303_v27 = vadd.f32 %v5302_v11, %v5301_v17  ;;  %v5979_v3 = vrot.slane %v5978_v57, 4  ;;  %v6023_v36 = vadd.f32 %v6022_v8, %v6021_v20  ;;  %v5939_v56 = vmul.f32 %v11549_v25, %v12892_v31  ;;  %v12897_v11 = vld [vmem:[#allocation54_spill] sm:$0xff] }
 0x4b8   : > { %v6625_v41 = vrot.slane %v11672_v59, 7  ;;  %v5974_v28 = vrot.slane %v5973_v12, 1  ;;  %v6531_v15 = vsel %vm4202_vm1, %v6530_v9, %v6526_v10  ;;  %v5940_v19 = vmul.f32 %v11554_v24, %v12893_v5  ;;  %v12896_v10 = vld [vmem:[#allocation60_spill] sm:$0xff]  ;;  %v11703_v5 = vpop.xlane.xlu0 %6381  ;;  %v11712_v53 = vpop.xlane.xlu1 %6378 }
 0x4b9   : > { %v6045_v29 = vadd.f32 %v6044_v60, %v6043_v14  ;;  %v5310_v21 = vadd.f32 %v5309_v63, %v5308_v48  ;;  %v6024_v62 = vrot.slane %v6023_v36, 4  ;;  %v6048_v17 = vsel %vm2888_vm0, %v5939_v56, 0.0 }
 0x4ba   : > { %v11696_v54 = vadd.f32 %v6522_v52, %v6038_v13  ;;  %v5795_v31 = vrot.slane %v11546_v58, %v12728_v40  ;;  %v5954_v0 = vrot.slane %v5953_v1, 2  ;;  %v6049_v55 = vsel %vm2888_vm0, %v5940_v19, 0.0 }
 0x4bb   : > { %v5859_v47 = vadd.f32 %v5787_v23, %v5303_v27  ;;  %v5980_v6 = vadd.f32 %v5979_v3, %v5978_v57  ;;  %v6050_v42 = vadd.f32 %v6049_v55, %v6048_v17  ;;  %v5197_v32 = vmul.f32 %v11398_v46, %v12896_v10 }
 0x4bc   : > { %v6463_v14 = vrot.slane %v11594_v37, %v12727_v22  ;;  %v6440_v52 = vrot.slane %v11568_v51, %v12728_v40  ;;  %v6025_v48 = vadd.f32 %v6024_v62, %v6023_v36  ;;  %v5198_v58 = vmul.f32 %v11403_v50, %v12897_v11  ;;  %v11727_v62 = vpop.xlane.xlu0 %5643 }
 0x4bd   : > { %v5975_v34 = vadd.f32 %v5974_v28, %v5973_v12  ;;  %v6046_v9 = vrot.slane %v6045_v29, 1  ;;  %v5311_v23 = vrot.slane %v5310_v21, 1  ;;  %v5313_v57 = vsel %vm2888_vm0, %v5197_v32, 0.0 }
 0x4be   : > { %v6639_v60 = vrot.slane %v11696_v54, 7  ;;  %v5796_v63 = vsel %vm4202_vm1, %v5795_v31, %v5791_v16  ;;  %v5955_v20 = vadd.f32 %v5954_v0, %v5953_v1  ;;  %v5314_v37 = vsel %vm2888_vm0, %v5198_v58, 0.0 }
 0x4bf   : > { %v5897_v13 = vrot.slane %v5859_v47, 6  ;;  %v6508_v51 = vrot.slane %v11620_v30, %v12727_v22  ;;  %v5981_v8 = vrot.slane %v5980_v6, 2  ;;  %v6051_v27 = vrot.slane %v6050_v42, 4 }
 0x4c0   : > { %v6026_v12 = vrot.slane %v6025_v48, 2  ;;  %v5315_v3 = vadd.f32 %v5314_v37, %v5313_v57  ;;  %v5925_v36 = vmul.f32 %v11549_v25, %v12881_v18  ;;  %v5926_v56 = vmul.f32 %v11554_v24, %v12827_v2 }
 0x4c1   : > { %v11724_v28 = vadd.f32 %v11605_v33, %v5975_v34  ;;  %v6047_v16 = vadd.f32 %v6046_v9, %v6045_v29  ;;  %v5312_v1 = vadd.f32 %v5311_v23, %v5310_v21  ;;  %v6441_v19 = vsel %vm4202_vm1, %v6440_v52, %v6436_v4  ;;  %v11733_v33 = vpop.xlane.xlu1 %5640  ;;  %v11751_v57 = vpop.xlane.xlu0 %6339 }
 0x4c2   : > { %v5956_v30 = vrot.slane %v5955_v20, 1  ;;  %v5316_v17 = vrot.slane %v5315_v3, 4  ;;  %v5985_v31 = vsel %vm2888_vm0, %v5925_v36, 0.0  ;;  %v5986_v0 = vsel %vm2888_vm0, %v5926_v56, 0.0 }
 0x4c3   : > { %v5982_v55 = vadd.f32 %v5981_v8, %v5980_v6  ;;  %v6467_v18 = vrot.slane %v11589_v49, %v12728_v40  ;;  %v6052_v2 = vadd.f32 %v6051_v27, %v6050_v42  ;;  %v5987_v47 = vadd.f32 %v5986_v0, %v5985_v31 }
 0x4c4   : > { %v6027_v29 = vadd.f32 %v6026_v12, %v6025_v48  ;;  %v5317_v21 = vadd.f32 %v5316_v17, %v5315_v3  ;;  %v5941_v4 = vmul.f32 %v11549_v25, %v12896_v10  ;;  %v5942_v32 = vmul.f32 %v11554_v24, %v12897_v11 }
 0x4c5   : > { %v5898_v52 = vsel %vm4391_vm3, %v5897_v13, %v11679_v7  ;;  %v6627_v6 = vrot.slane %v11724_v28, 6  ;;  %v11742_v58 = vadd.f32 %v6531_v15, %v6047_v16  ;;  %v5988_v49 = vrot.slane %v5987_v47, 4  ;;  %v11757_v12 = vpop.xlane.xlu1 %6336 }
 0x4c6   : > { %v5860_v42 = vadd.f32 %v5796_v63, %v5312_v1  ;;  %v5957_v34 = vadd.f32 %v5956_v30, %v5955_v20  ;;  %v6057_v9 = vsel %vm2888_vm0, %v5941_v4, 0.0  ;;  %v6058_v48 = vsel %vm2888_vm0, %v5942_v32, 0.0  ;;  %v12898_v63 = vld [vmem:[#allocation28_spill] sm:$0xff] }
 0x4c7   : > { %v6468_v23 = vsel %vm4202_vm1, %v6467_v18, %v6463_v14  ;;  %v6535_v10 = vrot.slane %v11647_v35, %v12727_v22  ;;  %v6512_v11 = vrot.slane %v11613_v45, %v12728_v40  ;;  %v6053_v7 = vrot.slane %v6052_v2, 2  ;;  %v12899_v35 = vld [vmem:[#allocation14_spill] sm:$0xff]  ;;  %v12900_v32 = vld [vmem:[#allocation56_spill] sm:$0xff] }
 0x4c8   : > { %v5983_v15 = vrot.slane %v5982_v55, 1  ;;  %v6028_v37 = vrot.slane %v6027_v29, 1  ;;  %v5318_v13 = vrot.slane %v5317_v21, 2  ;;  %v5199_v20 = vmul.f32 %v11398_v46, %v12898_v63 }
 0x4c9   : > { %v5800_v8 = vrot.slane %v11663_v39, %v12727_v22  ;;  %v5989_v27 = vadd.f32 %v5988_v49, %v5987_v47  ;;  %v6059_v14 = vadd.f32 %v6058_v48, %v6057_v9  ;;  %v5200_v3 = vmul.f32 %v11403_v50, %v12899_v35 }
 0x4ca   : > { %v6641_v45 = vrot.slane %v11742_v58, 6  ;;  %v5899_v36 = vrot.slane %v5860_v42, 5  ;;  %v6593_v56 = vadd.f32 %v6441_v19, %v5957_v34  ;;  %v6539_v28 = vrot.slane %v11635_v61, %v12728_v40  ;;  %v11787_v34 = vpop.xlane.xlu1 %6384 }
 0x4cb   : > { %v6054_v16 = vadd.f32 %v6053_v7, %v6052_v2  ;;  %v5804_v1 = vrot.slane %v11659_v26, %v12728_v40  ;;  %v5322_v39 = vsel %vm2888_vm0, %v5199_v20, 0.0  ;;  %v5323_v30 = vsel %vm2888_vm0, %v5200_v3, 0.0  ;;  %v11773_v2 = vpop.xlane.xlu0 %6387 }
 0x4cc   : > { %v5984_v17 = vadd.f32 %v5983_v15, %v5982_v55  ;;  %v6029_v31 = vadd.f32 %v6028_v37, %v6027_v29  ;;  %v6513_v0 = vsel %vm4202_vm1, %v6512_v11, %v6508_v51  ;;  %v5319_v18 = vadd.f32 %v5318_v13, %v5317_v21 }
 0x4cd   : > { %v5990_v47 = vrot.slane %v5989_v27, 2  ;;  %v6060_v4 = vrot.slane %v6059_v14, 4  ;;  %v5927_v19 = vmul.f32 %v11549_v25, %v12830_v38  ;;  %v5928_v61 = vmul.f32 %v11554_v24, %v12900_v32 }
 0x4ce   : > { %v11776_v26 = vsel %vm4394_vm4, %v5899_v36, %v5898_v52  ;;  %v6540_v49 = vsel %vm4202_vm1, %v6539_v28, %v6535_v10  ;;  %v6472_v55 = vrot.slane %v11689_v44, %v12727_v22  ;;  %v5324_v51 = vadd.f32 %v5323_v30, %v5322_v39  ;;  %v11818_v36 = vpop.xlane.xlu1 %5646  ;;  %v12902_v39 = vld [vmem:[#allocation49_spill] sm:$0xff] }
 0x4cf   : > { %v6626_v29 = vsel %vm4388_vm2, %v6625_v41, %v6593_v56  ;;  %v6055_v21 = vrot.slane %v6054_v16, 1  ;;  %v5805_v38 = vsel %vm4202_vm1, %v5804_v1, %v5800_v8  ;;  %v6476_v42 = vrot.slane %v11682_v43, %v12728_v40  ;;  %v12901_v56 = vld [vmem:[#allocation44_spill] sm:$0xff] }
 0x4d0   : > { %v11789_v52 = vadd.f32 %v6468_v23, %v5984_v17  ;;  %v6601_v9 = vadd.f32 %v6513_v0, %v6029_v31  ;;  %v5320_v48 = vrot.slane %v5319_v18, 1  ;;  %v6548_v44 = vrot.slane %v11703_v5, %v12728_v40  ;;  %v11807_v8 = vpop.xlane.xlu0 %5649 }
 0x4d1   : > { %v5991_v10 = vadd.f32 %v5990_v47, %v5989_v27  ;;  %v6061_v11 = vadd.f32 %v6060_v4, %v6059_v14  ;;  %v5994_v59 = vsel %vm2888_vm0, %v5927_v19, 0.0  ;;  %v5995_v41 = vsel %vm2888_vm0, %v5928_v61, 0.0 }
 0x4d2   : > { %v6544_v7 = vrot.slane %v11712_v53, %v12727_v22  ;;  %v5325_v15 = vrot.slane %v5324_v51, 4  ;;  %v5943_v43 = vmul.f32 %v11549_v25, %v12898_v63  ;;  %v5944_v23 = vmul.f32 %v11554_v24, %v12899_v35 }
 0x4d3   : > { %v11802_v37 = vsel %vm4391_vm3, %v6627_v6, %v6626_v29  ;;  %v6056_v5 = vadd.f32 %v6055_v21, %v6054_v16  ;;  %v6477_v13 = vsel %vm4202_vm1, %v6476_v42, %v6472_v55  ;;  %v5809_v20 = vrot.slane %v11733_v33, %v12727_v22  ;;  %v12904_v21 = vld [vmem:[#allocation21_spill] sm:$0xff] }
 0x4d4   : > { %v6629_v53 = vrot.slane %v11789_v52, 5  ;;  %v5321_v27 = vadd.f32 %v5320_v48, %v5319_v18  ;;  %v11811_v14 = vsel %vm4202_vm1, %v6548_v44, %v6544_v7  ;;  %v5996_v63 = vadd.f32 %v5995_v41, %v5994_v59 }
 0x4d5   : > { %v11816_v6 = vsel %vm4388_vm2, %v6639_v60, %v6601_v9  ;;  %v5992_v35 = vrot.slane %v5991_v10, 1  ;;  %v6062_v3 = vrot.slane %v6061_v11, 2  ;;  %v5201_v33 = vmul.f32 %v11398_v46, %v12901_v56 }
 0x4d6   : > { %v5326_v28 = vadd.f32 %v5325_v15, %v5324_v51  ;;  %v6066_v16 = vsel %vm2888_vm0, %v5943_v43, 0.0  ;;  %v6067_v1 = vsel %vm2888_vm0, %v5944_v23, 0.0  ;;  %v5202_v30 = vmul.f32 %v11403_v50, %v12902_v39 }
 0x4d7   : > { %v11826_v17 = vadd.f32 %v6540_v49, %v6056_v5  ;;  %v6481_v54 = vrot.slane %v11757_v12, %v12727_v22  ;;  %v5813_v60 = vrot.slane %v11727_v62, %v12728_v40  ;;  %v5331_v31 = vsel %vm2888_vm0, %v5201_v33, 0.0  ;;  %v11838_v49 = vpop.xlane.xlu0 %6345  ;;  %v12903_v12 = vld [vmem:[#allocation45_spill] sm:$0xff] }
 0x4d8   : > { %v5861_v0 = vadd.f32 %v5805_v38, %v5321_v27  ;;  %v5997_v18 = vrot.slane %v5996_v63, 4  ;;  %v6485_v47 = vrot.slane %v11751_v57, %v12728_v40  ;;  %v5332_v4 = vsel %vm2888_vm0, %v5202_v30, 0.0 }
 0x4d9   : > { %v6553_v19 = vrot.slane %v11787_v34, %v12727_v22  ;;  %v6068_v32 = vadd.f32 %v6067_v1, %v6066_v16  ;;  %v5333_v61 = vadd.f32 %v5332_v4, %v5331_v31  ;;  %v5929_v55 = vmul.f32 %v11549_v25, %v12903_v12  ;;  %v11849_v34 = vpop.xlane.xlu1 %6342  ;;  %v12906_v4 = vld [vmem:[#allocation88_spill] sm:$0xff] }
 0x4da   : > { %v5993_v62 = vadd.f32 %v5992_v35, %v5991_v10  ;;  %v6063_v51 = vadd.f32 %v6062_v3, %v6061_v11  ;;  %v5327_v29 = vrot.slane %v5326_v28, 2  ;;  %v5930_v38 = vmul.f32 %v11554_v24, %v12904_v21  ;;  %v12907_v21 = vld [vmem:[#allocation82_spill] sm:$0xff] }
 0x4db   : > { %v11845_v57 = vsel %vm4202_vm1, %v5813_v60, %v5809_v20  ;;  %v5818_v42 = vrot.slane %v11818_v36, %v12727_v22  ;;  %v5334_v9 = vrot.slane %v5333_v61, 4  ;;  %v6003_v48 = vsel %vm2888_vm0, %v5929_v55, 0.0 }
 0x4dc   : > { %v5901_v44 = vrot.slane %v5861_v0, 4  ;;  %v5998_v59 = vadd.f32 %v5997_v18, %v5996_v63  ;;  %v11853_v10 = vsel %vm4202_vm1, %v6485_v47, %v6481_v54  ;;  %v6004_v11 = vsel %vm2888_vm0, %v5930_v38, 0.0 }
 0x4dd   : > { %v6069_v41 = vrot.slane %v6068_v32, 4  ;;  %v5335_v7 = vadd.f32 %v5334_v9, %v5333_v61  ;;  %v6005_v15 = vadd.f32 %v6004_v11, %v6003_v48  ;;  %v5945_v43 = vmul.f32 %v11549_v25, %v12901_v56  ;;  %v11865_v16 = vpop.xlane.xlu0 %6393  ;;  %v11874_v60 = vpop.xlane.xlu1 %6390 }
 0x4de   : > { %v11858_v23 = vadd.f32 %v6477_v13, %v5993_v62  ;;  %v6064_v5 = vrot.slane %v6063_v51, 1  ;;  %v5328_v20 = vadd.f32 %v5327_v29, %v5326_v28  ;;  %v5946_v27 = vmul.f32 %v11554_v24, %v12902_v39  ;;  %v12905_v28 = vld [vmem:[#allocation13_spill] sm:$0xff] }
 0x4df   : > { %v6557_v63 = vrot.slane %v11773_v2, %v12728_v40  ;;  %v5336_v35 = vrot.slane %v5335_v7, 2  ;;  %v6006_v3 = vrot.slane %v6005_v15, 4  ;;  %v6075_v33 = vsel %vm2888_vm0, %v5945_v43, 0.0 }
 0x4e0   : > { %v11869_v1 = vsel %vm4397_vm5, %v5901_v44, %v11776_v26  ;;  %v5999_v13 = vrot.slane %v5998_v59, 2  ;;  %v6076_v56 = vsel %vm2888_vm0, %v5946_v27, 0.0  ;;  %v5203_v30 = vmul.f32 %v11398_v46, %v12905_v28 }
 0x4e1   : > { %v6070_v39 = vadd.f32 %v6069_v41, %v6068_v32  ;;  %v5337_v54 = vadd.f32 %v5336_v35, %v5335_v7  ;;  %v6007_v2 = vadd.f32 %v6006_v3, %v6005_v15  ;;  %v6077_v31 = vadd.f32 %v6076_v56, %v6075_v33  ;;  %v12908_v41 = vld [vmem:[#allocation74_spill] sm:$0xff]  ;;  %v5653_v15 = vpop.xlane.xlu1 %5652 }
 0x4e2   : > { %v6631_v0 = vrot.slane %v11858_v23, 4  ;;  %v6065_v18 = vadd.f32 %v6064_v5, %v6063_v51  ;;  %v5329_v47 = vrot.slane %v5328_v20, 1  ;;  %v5204_v26 = vmul.f32 %v11403_v50, %v12906_v4 }
 0x4e3   : > { %v11880_v61 = vsel %vm4202_vm1, %v6557_v63, %v6553_v19  ;;  %v6008_v12 = vrot.slane %v6007_v2, 2  ;;  %v6078_v55 = vrot.slane %v6077_v31, 4  ;;  %v5340_v46 = vsel %vm2888_vm0, %v5203_v30, 0.0  ;;  %v5656_v44 = vpop.xlane.xlu0 %5655 }
 0x4e4   : > { %v6000_v32 = vadd.f32 %v5999_v13, %v5998_v59  ;;  %v5822_v62 = vrot.slane %v11807_v8, %v12728_v40  ;;  %v5341_v29 = vsel %vm2888_vm0, %v5204_v26, 0.0  ;;  %v5931_v51 = vmul.f32 %v11549_v25, %v12907_v21 }
 0x4e5   : > { %v6071_v38 = vrot.slane %v6070_v39, 2  ;;  %v5338_v9 = vrot.slane %v5337_v54, 1  ;;  %v6079_v48 = vadd.f32 %v6078_v55, %v6077_v31  ;;  %v5342_v50 = vadd.f32 %v5341_v29, %v5340_v46 }
 0x4e6   : > { %v11889_v19 = vadd.f32 %v11811_v14, %v6065_v18  ;;  %v5330_v11 = vadd.f32 %v5329_v47, %v5328_v20  ;;  %v6490_v59 = vrot.slane %v11849_v34, %v12727_v22  ;;  %v5932_v8 = vmul.f32 %v11554_v24, %v12908_v41 }
 0x4e7   : > { %v6009_v7 = vadd.f32 %v6008_v12, %v6007_v2  ;;  %v6080_v43 = vrot.slane %v6079_v48, 2  ;;  %v5343_v5 = vrot.slane %v5342_v50, 4  ;;  %v6012_v27 = vsel %vm2888_vm0, %v5931_v51, 0.0 }
 0x4e8   : > { %v6001_v63 = vrot.slane %v6000_v32, 1  ;;  %v6562_v35 = vrot.slane %v11874_v60, %v12727_v22  ;;  %v6013_v14 = vsel %vm2888_vm0, %v5932_v8, 0.0  ;;  %v5947_v20 = vmul.f32 %v11549_v25, %v12905_v28 }
 0x4e9   : > { %v6072_v3 = vadd.f32 %v6071_v38, %v6070_v39  ;;  %v5339_v34 = vadd.f32 %v5338_v9, %v5337_v54  ;;  %v5823_v33 = vsel %vm4202_vm1, %v5822_v62, %v5818_v42  ;;  %v5344_v13 = vadd.f32 %v5343_v5, %v5342_v50  ;;  %v6352_v39 = vpop.xlane.xlu0 %6351 }
 0x4ea   : > { %v6081_v56 = vadd.f32 %v6080_v43, %v6079_v48  ;;  %v6014_v30 = vadd.f32 %v6013_v14, %v6012_v27  ;;  %v5948_v2 = vmul.f32 %v11554_v24, %v12906_v4  ;;  %v6084_v60 = vsel %vm2888_vm0, %v5947_v20, 0.0  ;;  %v6349_v24 = vpop.xlane.xlu1 %6348 }
 0x4eb   : > { %v5862_v31 = vadd.f32 %v11845_v57, %v5330_v11  ;;  %v6010_v18 = vrot.slane %v6009_v7, 1  ;;  %v6494_v25 = vrot.slane %v11838_v49, %v12728_v40  ;;  %v5345_v28 = vrot.slane %v5344_v13, 2 }
 0x4ec   : > { %v6002_v54 = vadd.f32 %v6001_v63, %v6000_v32  ;;  %v5831_v36 = vrot.slane %v5656_v44, %v12728_v40  ;;  %v6015_v42 = vrot.slane %v6014_v30, 4  ;;  %v6085_v47 = vsel %vm2888_vm0, %v5948_v2, 0.0 }
 0x4ed   : > { %v6073_v26 = vrot.slane %v6072_v3, 1  ;;  %v5827_v12 = vrot.slane %v5653_v15, %v12727_v22  ;;  %v5346_v4 = vadd.f32 %v5345_v28, %v5344_v13  ;;  %v6086_v55 = vadd.f32 %v6085_v47, %v6084_v60  ;;  %v6400_v15 = vpop.xlane.xlu0 %6399 }
 0x4ee   : > { %v5863_v46 = vadd.f32 %v5823_v33, %v5339_v34  ;;  %v6082_v57 = vrot.slane %v6081_v56, 1  ;;  %v6566_v62 = vrot.slane %v11865_v16, %v12728_v40  ;;  %v6016_v49 = vadd.f32 %v6015_v42, %v6014_v30  ;;  %v6397_v14 = vpop.xlane.xlu1 %6396 }
 0x4ef   : > { %v5903_v29 = vrot.slane %v5862_v31, 3  ;;  %v6011_v21 = vadd.f32 %v6010_v18, %v6009_v7  ;;  %v5347_v32 = vrot.slane %v5346_v4, 1  ;;  %v6087_v51 = vrot.slane %v6086_v55, 4 }
 0x4f0   : > { %v6598_v38 = vadd.f32 %v11853_v10, %v6002_v54  ;;  %v6495_v9 = vsel %vm4202_vm1, %v6494_v25, %v6490_v59  ;;  %v5832_v48 = vsel %vm4202_vm1, %v5831_v36, %v5827_v12  ;;  %v6017_v50 = vrot.slane %v6016_v49, 2 }
 0x4f1   : > { %v6074_v44 = vadd.f32 %v6073_v26, %v6072_v3  ;;  %v5348_v11 = vadd.f32 %v5347_v32, %v5346_v4  ;;  %v6503_v41 = vrot.slane %v6352_v39, %v12728_v40  ;;  %v6088_v8 = vadd.f32 %v6087_v51, %v6086_v55 }
 0x4f2   : > { %v5905_v43 = vrot.slane %v5863_v46, 2  ;;  %v6083_v16 = vadd.f32 %v6082_v57, %v6081_v56  ;;  %v6567_v5 = vsel %vm4202_vm1, %v6566_v62, %v6562_v35  ;;  %v6018_v7 = vadd.f32 %v6017_v50, %v6016_v49 }
 0x4f3   : > { %v6599_v27 = vadd.f32 %v6495_v9, %v6011_v21  ;;  %v6499_v63 = vrot.slane %v6349_v24, %v12727_v22  ;;  %v5864_v10 = vadd.f32 %v5832_v48, %v5348_v11  ;;  %v6089_v59 = vrot.slane %v6088_v8, 2 }
 0x4f4   : > { %v5904_v20 = vsel %vm4400_vm6, %v5903_v29, %v11869_v1  ;;  %v6633_v3 = vrot.slane %v6598_v38, 3  ;;  %v6019_v34 = vrot.slane %v6018_v7, 1  ;;  %v6575_v33 = vrot.slane %v6400_v15, %v12728_v40 }
 0x4f5   : > { %v6606_v13 = vadd.f32 %v11880_v61, %v6074_v44  ;;  %v5907_v56 = vrot.slane %v5864_v10, 1  ;;  %v6504_v35 = vsel %vm4202_vm1, %v6503_v41, %v6499_v63  ;;  %v6090_v30 = vadd.f32 %v6089_v59, %v6088_v8 }
 0x4f6   : > { %v5906_v2 = vsel %vm4403_vm7, %v5905_v43, %v5904_v20  ;;  %v6607_v60 = vadd.f32 %v6567_v5, %v6083_v16  ;;  %v6571_v31 = vrot.slane %v6397_v14, %v12727_v22  ;;  %v6020_v18 = vadd.f32 %v6019_v34, %v6018_v7 }
 0x4f7   : > { %v6643_v25 = vrot.slane %v11826_v17, 5  ;;  %v6635_v1 = vrot.slane %v6599_v27, 2  ;;  %v5908_v28 = vsel %vm4406_vm8, %v5907_v56, %v5906_v2  ;;  %v6091_v40 = vrot.slane %v6090_v30, 1 }
 0x4f8   : > { %v6630_v61 = vsel %vm4394_vm4, %v6629_v53, %v11802_v37  ;;  %v6645_v39 = vrot.slane %v11889_v19, 4  ;;  %6824 = vst.msk [vmem:[%s10491_s7 + $0x28] sm:$0xff] %vm2888_vm0, %v5908_v28  ;;  %v6600_v54 = vadd.f32 %v6504_v35, %v6020_v18  ;;  %v6576_v22 = vsel %vm4202_vm1, %v6575_v33, %v6571_v31 }
 0x4f9   : > { %v6632_v17 = vsel %vm4397_vm5, %v6631_v0, %v6630_v61  ;;  %v6647_v36 = vrot.slane %v6606_v13, 3  ;;  %v6092_v42 = vadd.f32 %v6091_v40, %v6090_v30  ;;  %v6642_v52 = vsel %vm4391_vm3, %v6641_v45, %v11816_v6 }
 0x4fa   : > { %v6634_v37 = vsel %vm4400_vm6, %v6633_v3, %v6632_v17  ;;  %v6649_v53 = vrot.slane %v6607_v60, 2  ;;  %v6637_v19 = vrot.slane %v6600_v54, 1  ;;  %v6644_v23 = vsel %vm4394_vm4, %v6643_v25, %v6642_v52 }
 0x4fb   : > { %v6636_v0 = vsel %vm4403_vm7, %v6635_v1, %v6634_v37  ;;  %v6608_v47 = vadd.f32 %v6576_v22, %v6092_v42  ;;  %v6646_v26 = vsel %vm4397_vm5, %v6645_v39, %v6644_v23 }
 0x4fc   : > { %v6638_v58 = vsel %vm4406_vm8, %v6637_v19, %v6636_v0  ;;  %v6648_v45 = vsel %vm4400_vm6, %v6647_v36, %v6646_v26 }
 0x4fd   : > { %6827 = vst.msk [vmem:[%s10491_s7 + $0x30] sm:$0xff] %vm2888_vm0, %v6638_v58  ;;  %v6651_v6 = vrot.slane %v6608_v47, 1  ;;  %v6650_v12 = vsel %vm4403_vm7, %v6649_v53, %v6648_v45 }
 0x4ff   : > { %v6652_v24 = vsel %vm4406_vm8, %v6651_v6, %v6650_v12 }
 0x500   : > { %6828 = vst.msk [vmem:[%s10491_s7 + $0x38] sm:$0xff] %vm2888_vm0, %v6652_v24 }
 0x501   : > { %7281 = shalt.err (!%p7278_p10)
}
 0x502   : > { %s7282_s20 = scalar_lea.hbm %s11959_s16, 1024  ;;  %s7286_s9 = scalar_lea.hbm %s12012_s3, 2048 }
 0x503   : > { %p7283_p11 = scmp.ne.s32.totalorder %s11959_s16, %s7282_s20  ;;  %p7287_p5 = scmp.lt.u32.totalorder %s11959_s16, %s12012_s3 }
 0x504   : > { %p7288_p2 = scmp.lt.u32.totalorder %s7286_s9, %s7282_s20  ;;  %p7290_p13 = scmp.lt.u32.totalorder %s7282_s20, %s11959_s16 }
 0x505   : > { %p7284_p4 = pnand %p7283_p11, %p12909_p7 }
 0x506   : > { %p7289_p1 = por %p7288_p2, %p7287_p5 }
 0x507   : > { %p7285_p3 = pneg %p7284_p4 }
 0x508   : > { %p7291_p6 = por %p7290_p13, %p7289_p1 }
 0x50a   : > { %p7292_p9 = pnand %p7291_p6, %p7285_p3 }
 0x50c   : > { %7295 = shalt.err (!%p7292_p9)
}
 0x50d   : > { %s7347_s17 = smov 128   ;;  %s7348_s22 = smov 8  }
 0x50e   : > { %6844 = dma.vmem_to_hbm [thread:$0]  (%p12909_p7), %s11961_s11, 1024, %s11959_s16, %s6659_s5, %s7347_s17, %s7347_s17, %s7348_s22  }
 0x50f PF: > { %s6687_s7 = sand.u32 1, %s7326_s12   ;;  %p12910_p12 = scmp.ne.s32.totalorder %s12241_s24, 0 }
 0x510   : > { %p12911_p0 = scmp.ge.s32.totalorder %s7338_s15, 2  ;;  %s6688_s4 = scalar_lea.sflag [#allocation4], %s6687_s7 }
 0x512   : > { %p6857_p8 = pnand %p12911_p0, %p12910_p12 }
 0x514   : > { %7321 = dma.done.wait (!%p6857_p8), %s6688_s4, 1024  }
 0x515   : > { %7323 = vsyncadd (!%p6857_p8), %s6688_s4, 4294966272  ;;  %p19_p10 = scmp.ge.s32.totalorder %s7394_s18, 4   ;;  %s12912_s12 = smov %s7330_s13 }
 0x516   : > { %s12913_s13 = smov %s7334_s14  ;;  %s12914_s14 = smov %s7406_s21 }
 0x517   : > { %s12915_s15 = smov %s7394_s18  ;;  %21 = sbr.rel (!%p19_p10) target bundleno = 9 (0x9), region = 113 }
 0x51e   :  { %6693 = vsyncpa [#allocation3], 1 }
 0x51f   :  { %6695 = vsyncpa [#allocation3 + $0x1], 1 }
 0x520   :  { %6696 = vsyncpa [#allocation6], 1 }
 0x521   :  { %6698 = vsyncpa [#allocation6 + $0x1], 1 }
 0x522   :  { %6699 = vsyncpa [#allocation4], 1 }
 0x523   :  { %6701 = vsyncpa [#allocation4 + $0x1], 1 }

</bundles_post_ra>
